<compile_context>
chip_gen: v5e
topology: v5e:2x2
jax: 0.10.0
libtpu: 0.0.40
codegen_flags: <defaults>
</compile_context>

<pallas_src>
import functools

import jax
import jax.numpy as jnp
from jax.experimental import pallas as pl
from jax.experimental.pallas import tpu as pltpu

H = 768              # bert-base hidden size (fixed by nn.Linear(768, 4))
NUM_HEADS = 7        # 7 classifier heads
NUM_CLASSES = 4
GAMMA = 2            # FocalLoss gamma (realized as an explicit square below)
PAD_N = 32           # 7*4 = 28 logit columns, zero-padded to 32
PAD_H = 8            # 7 heads padded to 8 for the per-sample loss slab


# ----------------------------------------------------------------------------
# Fused kernel: tiled seq mean-pool + 7-head linear + per-sample focal terms.
# ----------------------------------------------------------------------------
def fused_head_kernel(hid_ref, w_ref, b_ref, alpha_ref, y_ref,
                      logits_ref, per_ref, acc_ref, *, seq_len):
    """
    hid_ref    : (TB, TS, H)  hidden-state tile (f32 or bf16)
    w_ref      : (H, 32)      fused head weights (cols 28..31 are zero padding)
    b_ref      : (1, 32)      fused head biases  (cols 28..31 are zero padding)
    alpha_ref  : (7, 4)       per-head class weights (already rescaled)
    y_ref      : (TB, 7)      int32 labels
    logits_ref : (TB, 32)     output logits (cols 0..27 valid)
    per_ref    : (TB, 16)     per-sample focal terms: [:, 0:7] = (1 - p_y)^2,
                              [:, 8:15] = -alpha[y] * log p_y   (cols 7, 15 zero)
    acc_ref    : (TB, H) f32  running sum over the sequence axis (scratch)
    """
    s_id = pl.program_id(1)

    @pl.when(s_id == 0)
    def _():
        acc_ref[...] = jnp.zeros_like(acc_ref)

    # Running seq-sum in f32 (single divide by S at the end; XLU sublane reduce).
    acc_ref[...] += jnp.sum(hid_ref[...].astype(jnp.float32), axis=1)

    @pl.when(s_id == pl.num_programs(1) - 1)
    def _():
        h_mean = acc_ref[...] * (1.0 / float(seq_len))                # (TB, H)
        # Dropout(p=0.1) is identity in eval mode.
        logits = jnp.dot(h_mean, w_ref[...],
                         preferred_element_type=jnp.float32) + b_ref[...]
        logits_ref[...] = logits.astype(logits_ref.dtype)             # (TB, 32)

        # ---- fused FocalLoss terms (tiny VPU/EUP filler under matmul/DMA slack) ----
        y = y_ref[...]                                                # (TB, 7) int32
        alpha = alpha_ref[...]                                        # (7, 4)
        tb = logits.shape[0]
        cls_iota = jax.lax.broadcasted_iota(jnp.int32, (tb, NUM_CLASSES), 1)
        fw_cols, ce_cols = [], []
        for hd in range(NUM_HEADS):                                   # static unroll, 7 heads
            lg = logits[:, hd * NUM_CLASSES:(hd + 1) * NUM_CLASSES]   # (TB, 4)
            m = jnp.max(lg, axis=-1, keepdims=True)
            z = jnp.sum(jnp.exp(lg - m), axis=-1, keepdims=True)
            logp = lg - m - jnp.log(z)                                # log_softmax
            oh = (cls_iota == y[:, hd:hd + 1]).astype(jnp.float32)    # in-kernel one-hot
            logp_y = jnp.sum(logp * oh, axis=-1, keepdims=True)       # (TB, 1)
            p_y = jnp.exp(logp_y)                                     # softmax[y] (no divide)
            w_y = jnp.sum(alpha[hd:hd + 1, :] * oh, axis=-1, keepdims=True)
            one_m = 1.0 - p_y
            fw_cols.append(one_m * one_m)                             # (1 - p_y)^GAMMA, GAMMA=2
            ce_cols.append(-w_y * logp_y)                             # CE(weight, reduction='none')
        pad = jnp.zeros_like(fw_cols[0])
        per_ref[...] = jnp.concatenate(fw_cols + [pad] + ce_cols + [pad], axis=-1)


def _pick_seq_tile(seq_len, max_ts):
    for cand in (512, 256, 128, 64, 32, 16, 8):
        if cand <= max_ts and cand <= seq_len and seq_len % cand == 0:
            return cand
    return seq_len   # fall back: full (un-tileable) sequence as one block


def run_fused_head(hidden, w_pad, b_pad, alphas, y, *, max_ts=512):
    """hidden (B, S, H) -> (logits (B,32) f32, per-sample focal terms (B,16) f32)."""
    B, S, Hh = hidden.shape
    assert Hh == H
    TB = 8 if B % 8 == 0 else B      # batch tile: 8-sublane friendly, or the full batch
    # NOTE(v7x): only 64 MiB VMEM/TC -> prefer max_ts=256 (or TB=4 at TS=512).
    TS = _pick_seq_tile(S, max_ts)
    grid = (B // TB, S // TS)

    hid_tile_bytes = TB * TS * H * hidden.dtype.itemsize
    # 2x for input double-buffering + generous headroom for weights/outputs/scratch.
    vmem_limit = int(min(64 * 1024 * 1024, 2 * hid_tile_bytes + (16 << 20)))

    kernel = functools.partial(fused_head_kernel, seq_len=S)
    logits, per = pl.pallas_call(
        kernel,
        out_shape=(jax.ShapeDtypeStruct((B, PAD_N), jnp.float32),
                   jax.ShapeDtypeStruct((B, 2 * PAD_H), jnp.float32)),
        grid_spec=pltpu.PrefetchScalarGridSpec(
            num_scalar_prefetch=0,
            grid=grid,
            in_specs=[
                pl.BlockSpec((TB, TS, H), lambda b, s: (b, s, 0)),            # hidden tiles
                pl.BlockSpec((H, PAD_N), lambda b, s: (0, 0)),                # fused weights
                pl.BlockSpec((1, PAD_N), lambda b, s: (0, 0)),                # fused biases
                pl.BlockSpec((NUM_HEADS, NUM_CLASSES), lambda b, s: (0, 0)),  # alphas
                pl.BlockSpec((TB, NUM_HEADS), lambda b, s: (b, 0)),           # labels
            ],
            out_specs=[
                pl.BlockSpec((TB, PAD_N), lambda b, s: (b, 0)),
                pl.BlockSpec((TB, 2 * PAD_H), lambda b, s: (b, 0)),
            ],
            scratch_shapes=[pltpu.VMEM((TB, H), jnp.float32)],
        ),
        compiler_params=pltpu.CompilerParams(
            dimension_semantics=("parallel", "arbitrary"),
            vmem_limit_bytes=vmem_limit,
        ),
    )(hidden, w_pad, b_pad, alphas, y)
    return logits, per


# ----------------------------------------------------------------------------
# Wrapper mirroring SentimentAnalysis.forward (post-BERT part).
# ----------------------------------------------------------------------------
@jax.jit
def sentiment_forward(hidden_states, w_pad, b_pad, alphas, y):
    B = hidden_states.shape[0]
    logits, per = run_fused_head(hidden_states, w_pad, b_pad, alphas, y)
    x = logits[:, :NUM_HEADS * NUM_CLASSES].reshape(B, NUM_HEADS, NUM_CLASSES)
    fw = per[:, :NUM_HEADS]                # (B, 7)  (1 - p_y)^2
    ce = per[:, PAD_H:PAD_H + NUM_HEADS]   # (B, 7)  -alpha[y] * log p_y
    # FocalLoss.forward multiplies a (B,1) tensor by a (B,) tensor -> broadcasts to
    # (B,B); torch.mean of that outer product factorizes into mean(fw)*mean(ce).
    # (The elementwise variant would be jnp.mean(fw * ce, axis=0).)
    losses = jnp.mean(fw, axis=0) * jnp.mean(ce, axis=0)
    return x, losses


if __name__ == "__main__":
    key = jax.random.PRNGKey(0)
    k_hid, k_w, k_b, k_a, k_y = jax.random.split(key, 5)

    B, S = 16, 256   # small, but exercises the (batch, seq) grid = (2, 2)
    hidden_states = jax.random.normal(k_hid, (B, S, H), dtype=jnp.float32)

    # 7 heads of nn.Linear(768, 4): weights (7, 4, 768), biases (7, 4).
    w_heads = jax.random.normal(k_w, (NUM_HEADS, NUM_CLASSES, H), jnp.float32) * 0.02
    b_heads = jax.random.normal(k_b, (NUM_HEADS, NUM_CLASSES), jnp.float32) * 0.02
    # Fuse heads into (H, 28) (columns = [h0c0..h0c3, h1c0..h1c3, ...]); pad to (H, 32).
    w_cat = jnp.concatenate([w_heads[i].T for i in range(NUM_HEADS)], axis=1)
    w_pad = jnp.pad(w_cat, ((0, 0), (0, PAD_N - NUM_HEADS * NUM_CLASSES)))
    b_pad = jnp.pad(b_heads.reshape(1, -1), ((0, 0), (0, PAD_N - NUM_HEADS * NUM_CLASSES)))

    # FocalLoss class weights (alphas) with the __init__ rescaling.
    alphas = jax.random.uniform(k_a, (NUM_HEADS, NUM_CLASSES), jnp.float32, 0.5, 2.0)
    scale = jnp.array([1 / 40.0, 1 / 2.0, 1 / 16.0, 1.0, 1.0, 2.0, 2.0], jnp.float32)
    alphas = alphas * scale[:, None]

    # Labels: (B, 7) ints in [0, 4) (module gets y, transposes, zips per head).
    y = jax.random.randint(k_y, (B, NUM_HEADS), 0, NUM_CLASSES, dtype=jnp.int32)

    x_out, losses = sentiment_forward(hidden_states, w_pad, b_pad, alphas, y)
    jax.block_until_ready((x_out, losses))

    # ---- pure-JAX reference ----
    h_ref = jnp.mean(hidden_states, axis=1)
    logits_ref = jnp.stack([h_ref @ w_heads[i].T + b_heads[i]
                            for i in range(NUM_HEADS)], axis=-2)        # (B, 7, 4)
    p_ref = jax.nn.softmax(logits_ref, axis=-1)
    lp_ref = jax.nn.log_softmax(logits_ref, axis=-1)
    oh = jax.nn.one_hot(y, NUM_CLASSES, dtype=jnp.float32)
    p_y = jnp.sum(p_ref * oh, -1)
    lp_y = jnp.sum(lp_ref * oh, -1)
    w_y = jnp.sum(alphas[None] * oh, -1)
    fw_ref = (1.0 - p_y) ** 2
    ce_ref = -w_y * lp_y
    losses_ref = jnp.mean(fw_ref, axis=0) * jnp.mean(ce_ref, axis=0)

    assert x_out.shape == (B, NUM_HEADS, NUM_CLASSES)
    assert losses.shape == (NUM_HEADS,)
    # MXU default precision (bf16 operands) vs XLA reference -> modest tolerances.
    assert jnp.allclose(x_out, logits_ref, atol=2e-3, rtol=2e-3)
    assert jnp.allclose(losses, losses_ref, atol=1e-2, rtol=1e-2)

    print("KERNEL_OK")
</pallas_src>

<mosaic_0001>
module attributes {stable_mosaic.version = 11 : i64} {
  func.func @fused_head_kernel(%arg0: i32, %arg1: i32, %arg2: memref<8x256x768xf32, #tpu.memory_space<vmem>>, %arg3: memref<768x32xf32, #tpu.memory_space<vmem>>, %arg4: memref<1x32xf32, #tpu.memory_space<vmem>>, %arg5: memref<7x4xf32, #tpu.memory_space<vmem>>, %arg6: memref<8x7xi32, #tpu.memory_space<vmem>>, %arg7: memref<8x32xf32, #tpu.memory_space<vmem>>, %arg8: memref<8x16xf32, #tpu.memory_space<vmem>>, %arg9: memref<8x768xf32, #tpu.memory_space<vmem>>) attributes {dimension_semantics = [#tpu.dimension_semantics<parallel>, #tpu.dimension_semantics<arbitrary>], iteration_bounds = array<i64: 2, 1>, scalar_prefetch = 0 : i64, scratch_operands = 1 : i64, tpu.core_type = #tpu.core_type<tc>, window_params = [{transform_indices = @transform_0, window_bounds = array<i64: 8, 256, 768>}, {pipeline_mode = #tpu.pipeline_mode<synchronous>, transform_indices = @transform_1, window_bounds = array<i64: 768, 32>}, {pipeline_mode = #tpu.pipeline_mode<synchronous>, transform_indices = @transform_2, window_bounds = array<i64: 1, 32>}, {pipeline_mode = #tpu.pipeline_mode<synchronous>, transform_indices = @transform_3, window_bounds = array<i64: 7, 4>}, {transform_indices = @transform_4, window_bounds = array<i64: 8, 7>}, {transform_indices = @transform_5, window_bounds = array<i64: 8, 32>}, {transform_indices = @transform_6, window_bounds = array<i64: 8, 16>}]} {
    %c0_i32 = arith.constant 0 : i32
    %0 = arith.cmpi eq, %arg1, %c0_i32 : i32
    %1 = arith.extui %0 : i1 to i32
    %c0_i32_0 = arith.constant 0 : i32
    %2 = arith.cmpi ne, %1, %c0_i32_0 : i32
    scf.if %2 {
      %cst_9 = arith.constant 0.000000e+00 : f32
      %11 = vector.broadcast %cst_9 : f32 to vector<8x768xf32>
      %c0_10 = arith.constant 0 : index
      %c0_11 = arith.constant 0 : index
      %12 = vector.load %arg9[%c0_10, %c0_11] : memref<8x768xf32, #tpu.memory_space<vmem>>, vector<8x768xf32>
      tpu.vector_store %arg9[%c0_10, %c0_11], %11 {strides = array<i32>} : memref<8x768xf32, #tpu.memory_space<vmem>>, vector<8x768xf32>,
    } else {
    }
    %c0 = arith.constant 0 : index
    %c0_1 = arith.constant 0 : index
    %3 = vector.load %arg9[%c0, %c0_1] : memref<8x768xf32, #tpu.memory_space<vmem>>, vector<8x768xf32>
    %c0_2 = arith.constant 0 : index
    %c0_3 = arith.constant 0 : index
    %c0_4 = arith.constant 0 : index
    %4 = vector.load %arg2[%c0_2, %c0_3, %c0_4] : memref<8x256x768xf32, #tpu.memory_space<vmem>>, vector<8x256x768xf32>
    %cst = arith.constant dense<0.000000e+00> : vector<8x768xf32>
    %5 = vector.multi_reduction <add>, %4, %cst [1] : vector<8x256x768xf32> to vector<8x768xf32>
    %6 = arith.addf %3, %5 : vector<8x768xf32>
    %c0_5 = arith.constant 0 : index
    %c0_6 = arith.constant 0 : index
    %7 = vector.load %arg9[%c0_5, %c0_6] : memref<8x768xf32, #tpu.memory_space<vmem>>, vector<8x768xf32>
    tpu.vector_store %arg9[%c0_5, %c0_6], %6 {strides = array<i32>} : memref<8x768xf32, #tpu.memory_space<vmem>>, vector<8x768xf32>,
    %c0_i32_7 = arith.constant 0 : i32
    %8 = arith.cmpi eq, %arg1, %c0_i32_7 : i32
    %9 = arith.extui %8 : i1 to i32
    %c0_i32_8 = arith.constant 0 : i32
    %10 = arith.cmpi ne, %9, %c0_i32_8 : i32
    scf.if %10 {
      %c0_9 = arith.constant 0 : index
      %c0_10 = arith.constant 0 : index
      %11 = vector.load %arg9[%c0_9, %c0_10] : memref<8x768xf32, #tpu.memory_space<vmem>>, vector<8x768xf32>
      %cst_11 = arith.constant 3.906250e-03 : f32
      %12 = vector.broadcast %cst_11 : f32 to vector<8x768xf32>
      %13 = arith.mulf %11, %12 : vector<8x768xf32>
      %c0_12 = arith.constant 0 : index
      %c0_13 = arith.constant 0 : index
      %14 = vector.load %arg3[%c0_12, %c0_13] : memref<768x32xf32, #tpu.memory_space<vmem>>, vector<768x32xf32>
      %cst_14 = arith.constant dense<0.000000e+00> : vector<8x32xf32>
      %15 = tpu.matmul %13, %14, %cst_14 {dimension_numbers = #tpu.dot_dimension_numbers<[1], [0], [0], [1], [0, 0, 1, 1], [], []>} : vector<8x768xf32>, vector<768x32xf32>, vector<8x32xf32> -> vector<8x32xf32>
      %c0_15 = arith.constant 0 : index
      %c0_16 = arith.constant 0 : index
      %16 = vector.load %arg4[%c0_15, %c0_16] : memref<1x32xf32, #tpu.memory_space<vmem>>, vector<1x32xf32>
      %17 = vector.broadcast %16 : vector<1x32xf32> to vector<8x32xf32>
      %18 = arith.addf %15, %17 : vector<8x32xf32>
      %c0_17 = arith.constant 0 : index
      %c0_18 = arith.constant 0 : index
      %19 = vector.load %arg7[%c0_17, %c0_18] : memref<8x32xf32, #tpu.memory_space<vmem>>, vector<8x32xf32>
      tpu.vector_store %arg7[%c0_17, %c0_18], %18 {strides = array<i32>} : memref<8x32xf32, #tpu.memory_space<vmem>>, vector<8x32xf32>,
      %c0_19 = arith.constant 0 : index
      %c0_20 = arith.constant 0 : index
      %20 = vector.load %arg6[%c0_19, %c0_20] : memref<8x7xi32, #tpu.memory_space<vmem>>, vector<8x7xi32>
      %c0_21 = arith.constant 0 : index
      %c0_22 = arith.constant 0 : index
      %21 = vector.load %arg5[%c0_21, %c0_22] : memref<7x4xf32, #tpu.memory_space<vmem>>, vector<7x4xf32>
      %22 = tpu.iota {dimensions = array<i32: 1>} : vector<8x4xi32>
      %23 = vector.extract_strided_slice %18 {offsets = [0, 0], sizes = [8, 4], strides = [1, 1]} : vector<8x32xf32> to vector<8x4xf32>
      %cst_23 = arith.constant dense<0xFF800000> : vector<8xf32>
      %24 = vector.multi_reduction <maximumf>, %23, %cst_23 [1] : vector<8x4xf32> to vector<8xf32>
      %25 = vector.shape_cast %24 : vector<8xf32> to vector<8x1xf32>
      %26 = vector.broadcast %25 : vector<8x1xf32> to vector<8x4xf32>
      %27 = arith.subf %23, %26 : vector<8x4xf32>
      %28 = math.exp %27 : vector<8x4xf32>
      %cst_24 = arith.constant dense<0.000000e+00> : vector<8xf32>
      %29 = vector.multi_reduction <add>, %28, %cst_24 [1] : vector<8x4xf32> to vector<8xf32>
      %30 = vector.shape_cast %29 : vector<8xf32> to vector<8x1xf32>
      %31 = vector.broadcast %25 : vector<8x1xf32> to vector<8x4xf32>
      %32 = arith.subf %23, %31 : vector<8x4xf32>
      %33 = math.log %30 : vector<8x1xf32>
      %34 = vector.broadcast %33 : vector<8x1xf32> to vector<8x4xf32>
      %35 = arith.subf %32, %34 : vector<8x4xf32>
      %36 = vector.extract_strided_slice %20 {offsets = [0, 0], sizes = [8, 1], strides = [1, 1]} : vector<8x7xi32> to vector<8x1xi32>
      %37 = vector.broadcast %36 : vector<8x1xi32> to vector<8x4xi32>
      %38 = arith.cmpi eq, %22, %37 : vector<8x4xi32>
      %39 = arith.extui %38 : vector<8x4xi1> to vector<8x4xi32>
      %40 = arith.sitofp %39 : vector<8x4xi32> to vector<8x4xf32>
      %41 = arith.mulf %35, %40 : vector<8x4xf32>
      %cst_25 = arith.constant dense<0.000000e+00> : vector<8xf32>
      %42 = vector.multi_reduction <add>, %41, %cst_25 [1] : vector<8x4xf32> to vector<8xf32>
      %43 = vector.shape_cast %42 : vector<8xf32> to vector<8x1xf32>
      %44 = math.exp %43 : vector<8x1xf32>
      %45 = vector.extract_strided_slice %21 {offsets = [0, 0], sizes = [1, 4], strides = [1, 1]} : vector<7x4xf32> to vector<1x4xf32>
      %46 = vector.broadcast %45 : vector<1x4xf32> to vector<8x4xf32>
      %47 = arith.mulf %46, %40 : vector<8x4xf32>
      %cst_26 = arith.constant dense<0.000000e+00> : vector<8xf32>
      %48 = vector.multi_reduction <add>, %47, %cst_26 [1] : vector<8x4xf32> to vector<8xf32>
      %49 = vector.shape_cast %48 : vector<8xf32> to vector<8x1xf32>
      %cst_27 = arith.constant 1.000000e+00 : f32
      %50 = vector.broadcast %cst_27 : f32 to vector<8x1xf32>
      %51 = arith.subf %50, %44 : vector<8x1xf32>
      %52 = arith.mulf %51, %51 : vector<8x1xf32>
      %cst_28 = arith.constant 0.000000e+00 : f32
      %53 = vector.broadcast %cst_28 : f32 to vector<8x1xf32>
      %54 = arith.subf %53, %49 : vector<8x1xf32>
      %55 = arith.mulf %54, %43 : vector<8x1xf32>
      %56 = vector.extract_strided_slice %18 {offsets = [0, 4], sizes = [8, 4], strides = [1, 1]} : vector<8x32xf32> to vector<8x4xf32>
      %cst_29 = arith.constant dense<0xFF800000> : vector<8xf32>
      %57 = vector.multi_reduction <maximumf>, %56, %cst_29 [1] : vector<8x4xf32> to vector<8xf32>
      %58 = vector.shape_cast %57 : vector<8xf32> to vector<8x1xf32>
      %59 = vector.broadcast %58 : vector<8x1xf32> to vector<8x4xf32>
      %60 = arith.subf %56, %59 : vector<8x4xf32>
      %61 = math.exp %60 : vector<8x4xf32>
      %cst_30 = arith.constant dense<0.000000e+00> : vector<8xf32>
      %62 = vector.multi_reduction <add>, %61, %cst_30 [1] : vector<8x4xf32> to vector<8xf32>
      %63 = vector.shape_cast %62 : vector<8xf32> to vector<8x1xf32>
      %64 = vector.broadcast %58 : vector<8x1xf32> to vector<8x4xf32>
      %65 = arith.subf %56, %64 : vector<8x4xf32>
      %66 = math.log %63 : vector<8x1xf32>
      %67 = vector.broadcast %66 : vector<8x1xf32> to vector<8x4xf32>
      %68 = arith.subf %65, %67 : vector<8x4xf32>
      %69 = vector.extract_strided_slice %20 {offsets = [0, 1], sizes = [8, 1], strides = [1, 1]} : vector<8x7xi32> to vector<8x1xi32>
      %70 = vector.broadcast %69 : vector<8x1xi32> to vector<8x4xi32>
      %71 = arith.cmpi eq, %22, %70 : vector<8x4xi32>
      %72 = arith.extui %71 : vector<8x4xi1> to vector<8x4xi32>
      %73 = arith.sitofp %72 : vector<8x4xi32> to vector<8x4xf32>
      %74 = arith.mulf %68, %73 : vector<8x4xf32>
      %cst_31 = arith.constant dense<0.000000e+00> : vector<8xf32>
      %75 = vector.multi_reduction <add>, %74, %cst_31 [1] : vector<8x4xf32> to vector<8xf32>
      %76 = vector.shape_cast %75 : vector<8xf32> to vector<8x1xf32>
      %77 = math.exp %76 : vector<8x1xf32>
      %78 = vector.extract_strided_slice %21 {offsets = [1, 0], sizes = [1, 4], strides = [1, 1]} : vector<7x4xf32> to vector<1x4xf32>
      %79 = vector.broadcast %78 : vector<1x4xf32> to vector<8x4xf32>
      %80 = arith.mulf %79, %73 : vector<8x4xf32>
      %cst_32 = arith.constant dense<0.000000e+00> : vector<8xf32>
      %81 = vector.multi_reduction <add>, %80, %cst_32 [1] : vector<8x4xf32> to vector<8xf32>
      %82 = vector.shape_cast %81 : vector<8xf32> to vector<8x1xf32>
      %cst_33 = arith.constant 1.000000e+00 : f32
      %83 = vector.broadcast %cst_33 : f32 to vector<8x1xf32>
      %84 = arith.subf %83, %77 : vector<8x1xf32>
      %85 = arith.mulf %84, %84 : vector<8x1xf32>
      %cst_34 = arith.constant 0.000000e+00 : f32
      %86 = vector.broadcast %cst_34 : f32 to vector<8x1xf32>
      %87 = arith.subf %86, %82 : vector<8x1xf32>
      %88 = arith.mulf %87, %76 : vector<8x1xf32>
      %89 = vector.extract_strided_slice %18 {offsets = [0, 8], sizes = [8, 4], strides = [1, 1]} : vector<8x32xf32> to vector<8x4xf32>
      %cst_35 = arith.constant dense<0xFF800000> : vector<8xf32>
      %90 = vector.multi_reduction <maximumf>, %89, %cst_35 [1] : vector<8x4xf32> to vector<8xf32>
      %91 = vector.shape_cast %90 : vector<8xf32> to vector<8x1xf32>
      %92 = vector.broadcast %91 : vector<8x1xf32> to vector<8x4xf32>
      %93 = arith.subf %89, %92 : vector<8x4xf32>
      %94 = math.exp %93 : vector<8x4xf32>
      %cst_36 = arith.constant dense<0.000000e+00> : vector<8xf32>
      %95 = vector.multi_reduction <add>, %94, %cst_36 [1] : vector<8x4xf32> to vector<8xf32>
      %96 = vector.shape_cast %95 : vector<8xf32> to vector<8x1xf32>
      %97 = vector.broadcast %91 : vector<8x1xf32> to vector<8x4xf32>
      %98 = arith.subf %89, %97 : vector<8x4xf32>
      %99 = math.log %96 : vector<8x1xf32>
      %100 = vector.broadcast %99 : vector<8x1xf32> to vector<8x4xf32>
      %101 = arith.subf %98, %100 : vector<8x4xf32>
      %102 = vector.extract_strided_slice %20 {offsets = [0, 2], sizes = [8, 1], strides = [1, 1]} : vector<8x7xi32> to vector<8x1xi32>
      %103 = vector.broadcast %102 : vector<8x1xi32> to vector<8x4xi32>
      %104 = arith.cmpi eq, %22, %103 : vector<8x4xi32>
      %105 = arith.extui %104 : vector<8x4xi1> to vector<8x4xi32>
      %106 = arith.sitofp %105 : vector<8x4xi32> to vector<8x4xf32>
      %107 = arith.mulf %101, %106 : vector<8x4xf32>
      %cst_37 = arith.constant dense<0.000000e+00> : vector<8xf32>
      %108 = vector.multi_reduction <add>, %107, %cst_37 [1] : vector<8x4xf32> to vector<8xf32>
      %109 = vector.shape_cast %108 : vector<8xf32> to vector<8x1xf32>
      %110 = math.exp %109 : vector<8x1xf32>
      %111 = vector.extract_strided_slice %21 {offsets = [2, 0], sizes = [1, 4], strides = [1, 1]} : vector<7x4xf32> to vector<1x4xf32>
      %112 = vector.broadcast %111 : vector<1x4xf32> to vector<8x4xf32>
      %113 = arith.mulf %112, %106 : vector<8x4xf32>
      %cst_38 = arith.constant dense<0.000000e+00> : vector<8xf32>
      %114 = vector.multi_reduction <add>, %113, %cst_38 [1] : vector<8x4xf32> to vector<8xf32>
      %115 = vector.shape_cast %114 : vector<8xf32> to vector<8x1xf32>
      %cst_39 = arith.constant 1.000000e+00 : f32
      %116 = vector.broadcast %cst_39 : f32 to vector<8x1xf32>
      %117 = arith.subf %116, %110 : vector<8x1xf32>
      %118 = arith.mulf %117, %117 : vector<8x1xf32>
      %cst_40 = arith.constant 0.000000e+00 : f32
      %119 = vector.broadcast %cst_40 : f32 to vector<8x1xf32>
      %120 = arith.subf %119, %115 : vector<8x1xf32>
      %121 = arith.mulf %120, %109 : vector<8x1xf32>
      %122 = vector.extract_strided_slice %18 {offsets = [0, 12], sizes = [8, 4], strides = [1, 1]} : vector<8x32xf32> to vector<8x4xf32>
      %cst_41 = arith.constant dense<0xFF800000> : vector<8xf32>
      %123 = vector.multi_reduction <maximumf>, %122, %cst_41 [1] : vector<8x4xf32> to vector<8xf32>
      %124 = vector.shape_cast %123 : vector<8xf32> to vector<8x1xf32>
      %125 = vector.broadcast %124 : vector<8x1xf32> to vector<8x4xf32>
      %126 = arith.subf %122, %125 : vector<8x4xf32>
      %127 = math.exp %126 : vector<8x4xf32>
      %cst_42 = arith.constant dense<0.000000e+00> : vector<8xf32>
      %128 = vector.multi_reduction <add>, %127, %cst_42 [1] : vector<8x4xf32> to vector<8xf32>
      %129 = vector.shape_cast %128 : vector<8xf32> to vector<8x1xf32>
      %130 = vector.broadcast %124 : vector<8x1xf32> to vector<8x4xf32>
      %131 = arith.subf %122, %130 : vector<8x4xf32>
      %132 = math.log %129 : vector<8x1xf32>
      %133 = vector.broadcast %132 : vector<8x1xf32> to vector<8x4xf32>
      %134 = arith.subf %131, %133 : vector<8x4xf32>
      %135 = vector.extract_strided_slice %20 {offsets = [0, 3], sizes = [8, 1], strides = [1, 1]} : vector<8x7xi32> to vector<8x1xi32>
      %136 = vector.broadcast %135 : vector<8x1xi32> to vector<8x4xi32>
      %137 = arith.cmpi eq, %22, %136 : vector<8x4xi32>
      %138 = arith.extui %137 : vector<8x4xi1> to vector<8x4xi32>
      %139 = arith.sitofp %138 : vector<8x4xi32> to vector<8x4xf32>
      %140 = arith.mulf %134, %139 : vector<8x4xf32>
      %cst_43 = arith.constant dense<0.000000e+00> : vector<8xf32>
      %141 = vector.multi_reduction <add>, %140, %cst_43 [1] : vector<8x4xf32> to vector<8xf32>
      %142 = vector.shape_cast %141 : vector<8xf32> to vector<8x1xf32>
      %143 = math.exp %142 : vector<8x1xf32>
      %144 = vector.extract_strided_slice %21 {offsets = [3, 0], sizes = [1, 4], strides = [1, 1]} : vector<7x4xf32> to vector<1x4xf32>
      %145 = vector.broadcast %144 : vector<1x4xf32> to vector<8x4xf32>
      %146 = arith.mulf %145, %139 : vector<8x4xf32>
      %cst_44 = arith.constant dense<0.000000e+00> : vector<8xf32>
      %147 = vector.multi_reduction <add>, %146, %cst_44 [1] : vector<8x4xf32> to vector<8xf32>
      %148 = vector.shape_cast %147 : vector<8xf32> to vector<8x1xf32>
      %cst_45 = arith.constant 1.000000e+00 : f32
      %149 = vector.broadcast %cst_45 : f32 to vector<8x1xf32>
      %150 = arith.subf %149, %143 : vector<8x1xf32>
      %151 = arith.mulf %150, %150 : vector<8x1xf32>
      %cst_46 = arith.constant 0.000000e+00 : f32
      %152 = vector.broadcast %cst_46 : f32 to vector<8x1xf32>
      %153 = arith.subf %152, %148 : vector<8x1xf32>
      %154 = arith.mulf %153, %142 : vector<8x1xf32>
      %155 = vector.extract_strided_slice %18 {offsets = [0, 16], sizes = [8, 4], strides = [1, 1]} : vector<8x32xf32> to vector<8x4xf32>
      %cst_47 = arith.constant dense<0xFF800000> : vector<8xf32>
      %156 = vector.multi_reduction <maximumf>, %155, %cst_47 [1] : vector<8x4xf32> to vector<8xf32>
      %157 = vector.shape_cast %156 : vector<8xf32> to vector<8x1xf32>
      %158 = vector.broadcast %157 : vector<8x1xf32> to vector<8x4xf32>
      %159 = arith.subf %155, %158 : vector<8x4xf32>
      %160 = math.exp %159 : vector<8x4xf32>
      %cst_48 = arith.constant dense<0.000000e+00> : vector<8xf32>
      %161 = vector.multi_reduction <add>, %160, %cst_48 [1] : vector<8x4xf32> to vector<8xf32>
      %162 = vector.shape_cast %161 : vector<8xf32> to vector<8x1xf32>
      %163 = vector.broadcast %157 : vector<8x1xf32> to vector<8x4xf32>
      %164 = arith.subf %155, %163 : vector<8x4xf32>
      %165 = math.log %162 : vector<8x1xf32>
      %166 = vector.broadcast %165 : vector<8x1xf32> to vector<8x4xf32>
      %167 = arith.subf %164, %166 : vector<8x4xf32>
      %168 = vector.extract_strided_slice %20 {offsets = [0, 4], sizes = [8, 1], strides = [1, 1]} : vector<8x7xi32> to vector<8x1xi32>
      %169 = vector.broadcast %168 : vector<8x1xi32> to vector<8x4xi32>
      %170 = arith.cmpi eq, %22, %169 : vector<8x4xi32>
      %171 = arith.extui %170 : vector<8x4xi1> to vector<8x4xi32>
      %172 = arith.sitofp %171 : vector<8x4xi32> to vector<8x4xf32>
      %173 = arith.mulf %167, %172 : vector<8x4xf32>
      %cst_49 = arith.constant dense<0.000000e+00> : vector<8xf32>
      %174 = vector.multi_reduction <add>, %173, %cst_49 [1] : vector<8x4xf32> to vector<8xf32>
      %175 = vector.shape_cast %174 : vector<8xf32> to vector<8x1xf32>
      %176 = math.exp %175 : vector<8x1xf32>
      %177 = vector.extract_strided_slice %21 {offsets = [4, 0], sizes = [1, 4], strides = [1, 1]} : vector<7x4xf32> to vector<1x4xf32>
      %178 = vector.broadcast %177 : vector<1x4xf32> to vector<8x4xf32>
      %179 = arith.mulf %178, %172 : vector<8x4xf32>
      %cst_50 = arith.constant dense<0.000000e+00> : vector<8xf32>
      %180 = vector.multi_reduction <add>, %179, %cst_50 [1] : vector<8x4xf32> to vector<8xf32>
      %181 = vector.shape_cast %180 : vector<8xf32> to vector<8x1xf32>
      %cst_51 = arith.constant 1.000000e+00 : f32
      %182 = vector.broadcast %cst_51 : f32 to vector<8x1xf32>
      %183 = arith.subf %182, %176 : vector<8x1xf32>
      %184 = arith.mulf %183, %183 : vector<8x1xf32>
      %cst_52 = arith.constant 0.000000e+00 : f32
      %185 = vector.broadcast %cst_52 : f32 to vector<8x1xf32>
      %186 = arith.subf %185, %181 : vector<8x1xf32>
      %187 = arith.mulf %186, %175 : vector<8x1xf32>
      %188 = vector.extract_strided_slice %18 {offsets = [0, 20], sizes = [8, 4], strides = [1, 1]} : vector<8x32xf32> to vector<8x4xf32>
      %cst_53 = arith.constant dense<0xFF800000> : vector<8xf32>
      %189 = vector.multi_reduction <maximumf>, %188, %cst_53 [1] : vector<8x4xf32> to vector<8xf32>
      %190 = vector.shape_cast %189 : vector<8xf32> to vector<8x1xf32>
      %191 = vector.broadcast %190 : vector<8x1xf32> to vector<8x4xf32>
      %192 = arith.subf %188, %191 : vector<8x4xf32>
      %193 = math.exp %192 : vector<8x4xf32>
      %cst_54 = arith.constant dense<0.000000e+00> : vector<8xf32>
      %194 = vector.multi_reduction <add>, %193, %cst_54 [1] : vector<8x4xf32> to vector<8xf32>
      %195 = vector.shape_cast %194 : vector<8xf32> to vector<8x1xf32>
      %196 = vector.broadcast %190 : vector<8x1xf32> to vector<8x4xf32>
      %197 = arith.subf %188, %196 : vector<8x4xf32>
      %198 = math.log %195 : vector<8x1xf32>
      %199 = vector.broadcast %198 : vector<8x1xf32> to vector<8x4xf32>
      %200 = arith.subf %197, %199 : vector<8x4xf32>
      %201 = vector.extract_strided_slice %20 {offsets = [0, 5], sizes = [8, 1], strides = [1, 1]} : vector<8x7xi32> to vector<8x1xi32>
      %202 = vector.broadcast %201 : vector<8x1xi32> to vector<8x4xi32>
      %203 = arith.cmpi eq, %22, %202 : vector<8x4xi32>
      %204 = arith.extui %203 : vector<8x4xi1> to vector<8x4xi32>
      %205 = arith.sitofp %204 : vector<8x4xi32> to vector<8x4xf32>
      %206 = arith.mulf %200, %205 : vector<8x4xf32>
      %cst_55 = arith.constant dense<0.000000e+00> : vector<8xf32>
      %207 = vector.multi_reduction <add>, %206, %cst_55 [1] : vector<8x4xf32> to vector<8xf32>
      %208 = vector.shape_cast %207 : vector<8xf32> to vector<8x1xf32>
      %209 = math.exp %208 : vector<8x1xf32>
      %210 = vector.extract_strided_slice %21 {offsets = [5, 0], sizes = [1, 4], strides = [1, 1]} : vector<7x4xf32> to vector<1x4xf32>
      %211 = vector.broadcast %210 : vector<1x4xf32> to vector<8x4xf32>
      %212 = arith.mulf %211, %205 : vector<8x4xf32>
      %cst_56 = arith.constant dense<0.000000e+00> : vector<8xf32>
      %213 = vector.multi_reduction <add>, %212, %cst_56 [1] : vector<8x4xf32> to vector<8xf32>
      %214 = vector.shape_cast %213 : vector<8xf32> to vector<8x1xf32>
      %cst_57 = arith.constant 1.000000e+00 : f32
      %215 = vector.broadcast %cst_57 : f32 to vector<8x1xf32>
      %216 = arith.subf %215, %209 : vector<8x1xf32>
      %217 = arith.mulf %216, %216 : vector<8x1xf32>
      %cst_58 = arith.constant 0.000000e+00 : f32
      %218 = vector.broadcast %cst_58 : f32 to vector<8x1xf32>
      %219 = arith.subf %218, %214 : vector<8x1xf32>
      %220 = arith.mulf %219, %208 : vector<8x1xf32>
      %221 = vector.extract_strided_slice %18 {offsets = [0, 24], sizes = [8, 4], strides = [1, 1]} : vector<8x32xf32> to vector<8x4xf32>
      %cst_59 = arith.constant dense<0xFF800000> : vector<8xf32>
      %222 = vector.multi_reduction <maximumf>, %221, %cst_59 [1] : vector<8x4xf32> to vector<8xf32>
      %223 = vector.shape_cast %222 : vector<8xf32> to vector<8x1xf32>
      %224 = vector.broadcast %223 : vector<8x1xf32> to vector<8x4xf32>
      %225 = arith.subf %221, %224 : vector<8x4xf32>
      %226 = math.exp %225 : vector<8x4xf32>
      %cst_60 = arith.constant dense<0.000000e+00> : vector<8xf32>
      %227 = vector.multi_reduction <add>, %226, %cst_60 [1] : vector<8x4xf32> to vector<8xf32>
      %228 = vector.shape_cast %227 : vector<8xf32> to vector<8x1xf32>
      %229 = vector.broadcast %223 : vector<8x1xf32> to vector<8x4xf32>
      %230 = arith.subf %221, %229 : vector<8x4xf32>
      %231 = math.log %228 : vector<8x1xf32>
      %232 = vector.broadcast %231 : vector<8x1xf32> to vector<8x4xf32>
      %233 = arith.subf %230, %232 : vector<8x4xf32>
      %234 = vector.extract_strided_slice %20 {offsets = [0, 6], sizes = [8, 1], strides = [1, 1]} : vector<8x7xi32> to vector<8x1xi32>
      %235 = vector.broadcast %234 : vector<8x1xi32> to vector<8x4xi32>
      %236 = arith.cmpi eq, %22, %235 : vector<8x4xi32>
      %237 = arith.extui %236 : vector<8x4xi1> to vector<8x4xi32>
      %238 = arith.sitofp %237 : vector<8x4xi32> to vector<8x4xf32>
      %239 = arith.mulf %233, %238 : vector<8x4xf32>
      %cst_61 = arith.constant dense<0.000000e+00> : vector<8xf32>
      %240 = vector.multi_reduction <add>, %239, %cst_61 [1] : vector<8x4xf32> to vector<8xf32>
      %241 = vector.shape_cast %240 : vector<8xf32> to vector<8x1xf32>
      %242 = math.exp %241 : vector<8x1xf32>
      %243 = vector.extract_strided_slice %21 {offsets = [6, 0], sizes = [1, 4], strides = [1, 1]} : vector<7x4xf32> to vector<1x4xf32>
      %244 = vector.broadcast %243 : vector<1x4xf32> to vector<8x4xf32>
      %245 = arith.mulf %244, %238 : vector<8x4xf32>
      %cst_62 = arith.constant dense<0.000000e+00> : vector<8xf32>
      %246 = vector.multi_reduction <add>, %245, %cst_62 [1] : vector<8x4xf32> to vector<8xf32>
      %247 = vector.shape_cast %246 : vector<8xf32> to vector<8x1xf32>
      %cst_63 = arith.constant 1.000000e+00 : f32
      %248 = vector.broadcast %cst_63 : f32 to vector<8x1xf32>
      %249 = arith.subf %248, %242 : vector<8x1xf32>
      %250 = arith.mulf %249, %249 : vector<8x1xf32>
      %cst_64 = arith.constant 0.000000e+00 : f32
      %251 = vector.broadcast %cst_64 : f32 to vector<8x1xf32>
      %252 = arith.subf %251, %247 : vector<8x1xf32>
      %253 = arith.mulf %252, %241 : vector<8x1xf32>
      %cst_65 = arith.constant 0.000000e+00 : f32
      %254 = vector.broadcast %cst_65 : f32 to vector<8x1xf32>
      %255 = tpu.concatenate %52, %85, %118, %151, %184, %217, %250, %254, %55, %88, %121, %154, %187, %220, %253, %254 in 1 : vector<8x1xf32>, vector<8x1xf32>, vector<8x1xf32>, vector<8x1xf32>, vector<8x1xf32>, vector<8x1xf32>, vector<8x1xf32>, vector<8x1xf32>, vector<8x1xf32>, vector<8x1xf32>, vector<8x1xf32>, vector<8x1xf32>, vector<8x1xf32>, vector<8x1xf32>, vector<8x1xf32>, vector<8x1xf32> -> vector<8x16xf32>
      %c0_66 = arith.constant 0 : index
      %c0_67 = arith.constant 0 : index
      %256 = vector.load %arg8[%c0_66, %c0_67] : memref<8x16xf32, #tpu.memory_space<vmem>>, vector<8x16xf32>
      tpu.vector_store %arg8[%c0_66, %c0_67], %255 {strides = array<i32>} : memref<8x16xf32, #tpu.memory_space<vmem>>, vector<8x16xf32>,
    } else {
    }
    return
  }
  func.func @transform_0(%arg0: i32, %arg1: i32) -> (i32, i32, i32) {
    %c0_i32 = arith.constant 0 : i32
    %c0_i32_0 = arith.constant 0 : i32
    return %arg0, %arg1, %c0_i32 : i32, i32, i32
  }
  func.func @transform_1(%arg0: i32, %arg1: i32) -> (i32, i32) {
    %c0_i32 = arith.constant 0 : i32
    %c0_i32_0 = arith.constant 0 : i32
    %c0_i32_1 = arith.constant 0 : i32
    return %c0_i32, %c0_i32_0 : i32, i32
  }
  func.func @transform_2(%arg0: i32, %arg1: i32) -> (i32, i32) {
    %c0_i32 = arith.constant 0 : i32
    %c0_i32_0 = arith.constant 0 : i32
    %c0_i32_1 = arith.constant 0 : i32
    return %c0_i32, %c0_i32_0 : i32, i32
  }
  func.func @transform_3(%arg0: i32, %arg1: i32) -> (i32, i32) {
    %c0_i32 = arith.constant 0 : i32
    %c0_i32_0 = arith.constant 0 : i32
    %c0_i32_1 = arith.constant 0 : i32
    return %c0_i32, %c0_i32_0 : i32, i32
  }
  func.func @transform_4(%arg0: i32, %arg1: i32) -> (i32, i32) {
    %c0_i32 = arith.constant 0 : i32
    %c0_i32_0 = arith.constant 0 : i32
    return %arg0, %c0_i32 : i32, i32
  }
  func.func @transform_5(%arg0: i32, %arg1: i32) -> (i32, i32) {
    %c0_i32 = arith.constant 0 : i32
    %c0_i32_0 = arith.constant 0 : i32
    return %arg0, %c0_i32 : i32, i32
  }
  func.func @transform_6(%arg0: i32, %arg1: i32) -> (i32, i32) {
    %c0_i32 = arith.constant 0 : i32
    %c0_i32_0 = arith.constant 0 : i32
    return %arg0, %c0_i32 : i32, i32
  }
}

</mosaic_0001>

<bundles_post_ra>
// kernel: sentiment_forward.1
= control target key start
LH: loop header
LB: loop body
LE: loop exit
PB: predicated region body
PF: predicated region fallthrough
CT: control target
= control target key end

     0   :  { %s7019_s0 = inlined_call_operand.hbm [shape: f32[16,256,768], index: 0, kind: input, shape index: {}]   ;;  %s7020_s1 = inlined_call_operand.vmem [shape: f32[768,32], index: 1, kind: input, shape index: {}]   ;;  %s7021_s2 = inlined_call_operand.hbm [shape: f32[1,32], index: 2, kind: input, shape index: {}]   ;;  %s7022_s3 = inlined_call_operand.vmem [shape: f32[7,4], index: 3, kind: input, shape index: {}]   ;;  %s7023_s4 = inlined_call_operand.vmem [shape: s32[16,7], index: 4, kind: input, shape index: {}]   ;;  %s7024_s5 = inlined_call_operand.vmem [shape: f32[16,32], index: 5, kind: output, shape index: {0}]   ;;  %s7025_s6 = inlined_call_operand.vmem [shape: f32[16,16], index: 6, kind: output, shape index: {1}]  }
   0x1   :  { %7026 = sst [smem:[#allocation9_spill]] %s7021_s2 }
   0x2   :  { %12 = vsyncpa [#allocation4], 0 }
   0x3   :  { %14 = vsyncpa [#allocation4 + $0x1], 0 }
   0x4   :  { %15 = vsyncpa [#allocation6], 0  ;;  %s4828_s21 = smov 0   ;;  %s4830_s22 = smov 0  }
   0x5   :  { %s4832_s23 = smov 0   ;;  %s4834_s24 = smov 0  }
   0x6   :  { %s4836_s25 = smov 0   ;;  %s4838_s26 = smov 0  }
   0x7 LB: > { %s4489_s27 = sadd.s32 4294967295, %s4768_s26   ;;  %s42_s28 = sadd.s32 1, %s4756_s23  ;;  %s4768_s26 = sphi %s4838_s26, %s21_s26   ;;  %s4764_s25 = sphi %s4836_s25, %s7037_s25   ;;  %s4760_s24 = sphi %s4834_s24, %s7036_s24   ;;  %s4756_s23 = sphi %s4832_s23, %s7035_s23   ;;  %s4752_s22 = sphi %s4830_s22, %s7034_s22   ;;  %s4748_s21 = sphi %s4828_s21, %s7033_s21  }
   0x8   : > { %p49_p0 = scmp.ne.s32.totalorder %s4756_s23, %s4752_s22  ;;  %p50_p1 = scmp.eq.s32.totalorder %s4768_s26, 0 }
   0x9   : > { %p55_p2 = scmp.ne.s32.totalorder %s4752_s22, %s4748_s21  ;;  %p4862_p3 = scmp.eq.s32.totalorder %s4489_s27, 0 }
   0xa   : > { %p4866_p4 = por %p50_p1, %p49_p0  ;;  %p4491_p5 = scmp.ge.s32.totalorder %s4768_s26, 1 }
   0xb   : > { %p4873_p6 = por %p4862_p3, %p55_p2  ;;  %p207_p7 = scmp.lt.s32.totalorder %s4768_s26, 3 }
   0xc   : > { %s7030_s2 = sld [smem:[#allocation9_spill]]  ;;  %s4770_s12 = smov [#allocation5]  }
   0xd   : > { %p4881_p8 = pnand %p4491_p5, %p207_p7  ;;  %s224_s13 = sshll.u32 %s4770_s12, 4  ;;  %s225_s13 = int_to_ptr.vmem [resolvable:$true] %s224_s13 }
   0xe   : > { %p4529_p10 = scmp.lt.s32.totalorder %s4768_s26, 2  ;;  %s33_s15 = sadd.s32 1, %s4764_s25 }
   0xf   : > { %p4520_p9 = pneg %p4881_p8  ;;  %p35_p13 = scmp.ge.s32.totalorder %s33_s15, 2 }
  0x10   : > { %p4892_p12 = pnand %p4529_p10, %p4866_p4  ;;  %s238_s16 = sand.u32 1, %s4756_s23  }
  0x11   : > { %p4521_p11 = pnand %p4520_p9, %p4862_p3  ;;  %s4512_s17 = smul.u32 12288, %s4764_s25 }
  0x12   : > { %s222_s10 = sshll.u32 %s7030_s2, 4  ;;  %s7039_s15 = smov (%p35_p13, %s33_s15), 0  ;;  %s223_s10 = int_to_ptr.hbm [resolvable:$true] %s222_s10 }
  0x13   : > { %4523 = dma.hbm_to_vmem [thread:$0]  (!%p4521_p11), %s223_s10, 16, %s225_s13, [#allocation6]  }
  0x14   : > { %s4511_s18 = smul.u32 12288, %s238_s16  ;;  %s37_s19 = ssub.s32 %s4764_s25, %s7039_s15 }
  0x15   : > { %s251_s27 = scalar_lea.hbm %s7019_s0, %s4512_s17  ;;  %p40_p0 = scmp.eq.s32.totalorder %s37_s19, 0 }
  0x16   : > { %s252_s30 = sshll.u32 %s251_s27, 4  ;;  %s242_s8 = scalar_lea.vmem [#allocation3], %s4511_s18  ;;  %s253_s30 = int_to_ptr.hbm [resolvable:$true] %s252_s30 }
  0x17   : > { %s254_s9 = sshll.u32 %s242_s8, 4  ;;  %s239_s10 = scalar_lea.sflag [#allocation4], %s238_s16  ;;  %s255_s9 = int_to_ptr.vmem [resolvable:$true] %s254_s9 }
  0x18   : > { %s4909_s12 = scalar_select %p40_p0, %s4756_s23, %s42_s28  }
  0x19   : > { %s4771_s13 = smov 768   ;;  %s4772_s2 = smov 48  }
  0x1a   : > { %4527 = dma.hbm_to_vmem [thread:$0]  (!%p4892_p12), %s253_s30, 196608, %s255_s9, %s239_s10, %s4771_s13, %s4771_s13, %s4772_s2  }
  0x1b   : > { %273 = sbr.rel (%p4881_p8) target bundleno = 1730 (0x6c2), region = 40  ;;  %s275_s17 = sand.u32 (!%p4881_p8), 1, %s4752_s22  }
  0x1c   : > { %s4513_s19 = smul.u32 (!%p4881_p8), 12288, %s275_s17  ;;  %s276_s20 = scalar_lea.sflag (!%p4881_p8), [#allocation4], %s275_s17 }
  0x1e   : > { %s4916_s18 = scalar_lea.vmem (!%p4881_p8), [#allocation3], %s4513_s19 }
  0x20   : > { %4739 = dma.done.wait (%p4873_p6), %s276_s20, 196608  }
  0x21   : > { %4741 = vsyncadd (%p4873_p6), %s276_s20, 4294770688 }
  0x22   : > { %4743 = dma.done.wait (%p4862_p3), [#allocation6], 16  }
  0x23   : > { %4745 = vsyncadd (%p4862_p3), [#allocation6], 4294967280  ;;  %p323_p1 = scmp.lt.s32.totalorder %s4760_s24, 1  ;;  %v4773_v0 = vmov 1   ;;  %v4774_v1 = vmov 0   ;;  %v3808_v2 = vld [vmem:[%s7020_s1 + $0x78] sm:$0xff] }
  0x24   : > { %4603 = vset.pattern.permute.xlu2 %v4773_v0  ;;  %4602 = vset.pattern.permute.xlu1 %v4774_v1  ;;  %v3807_v3 = vld [vmem:[%s7020_s1 + $0x70] sm:$0xff]  ;;  %v3824_v4 = vld [vmem:[%s7020_s1 + $0xf8] sm:$0xff]  ;;  %v3806_v6 = vld [vmem:[%s7020_s1 + $0x68] sm:$0xff]  ;;  %v4775_v32 = vmov 2   ;;  %v4776_v43 = vmov 4   ;;  %vm3711_vm0 = vcmask 1041409  }
  0x25   : > { %s7041_s24 = smov (!%p323_p1, %s4760_s24), 1  ;;  %3893 = vmatpush.msra.mxu0 %v3808_v2  ;;  %3913 = vmatpush.msra.mxu1 %v3824_v4  ;;  %v3823_v5 = vld [vmem:[%s7020_s1 + $0xf0] sm:$0xff]  ;;  %v3822_v7 = vld [vmem:[%s7020_s1 + $0xe8] sm:$0xff]  ;;  %v3805_v8 = vld [vmem:[%s7020_s1 + $0x60] sm:$0xff]  ;;  %vm3713_vm1 = vcmask 1042434   ;;  %vm3715_vm2 = vcmask 1043459  }
  0x26   : > { %s4940_s27 = sshll.u32 %s7041_s24, 3  ;;  %v3821_v9 = vld [vmem:[%s7020_s1 + $0xe0] sm:$0xff]  ;;  %v3804_v10 = vld [vmem:[%s7020_s1 + $0x58] sm:$0xff]  ;;  %v3803_v12 = vld [vmem:[%s7020_s1 + $0x50] sm:$0xff]  ;;  %vm3717_vm3 = vcmask 1044484   ;;  %vm3719_vm4 = vcmask 1045509  }
  0x27   : > { %3894 = vmatpush.msra.mxu0 %v3807_v3  ;;  %3914 = vmatpush.msra.mxu1 %v3823_v5  ;;  %s4958_s28 = scalar_lea.vmem %s7023_s4, %s4940_s27  ;;  %v3820_v11 = vld [vmem:[%s7020_s1 + $0xd8] sm:$0xff]  ;;  %v3819_v15 = vld [vmem:[%s7020_s1 + $0xd0] sm:$0xff]  ;;  %v3838_v18 = vld [vmem:[%s7020_s1 + $0x168] sm:$0xff]  ;;  %vm3721_vm5 = vcmask 1046534   ;;  %vm3723_vm6 = vcmask 1047559   ;;  %vm4019_vm8 = vcmask 31744   ;;  %s330_s30 = scalar_lea.vmem %s7024_s5, %s4940_s27 }
  0x28   : > { %v4970_v13 = vld [vmem:[%s4958_s28] sm:$0xff]  ;;  %v3840_v14 = vld [vmem:[%s7020_s1 + $0x178] sm:$0xff]  ;;  %v3839_v16 = vld [vmem:[%s7020_s1 + $0x170] sm:$0xff]  ;;  %s4782_s14 = smov 12   ;;  %s4783_s16 = smov 16   ;;  %vm4013_vm13 = vcmask 261120  }
  0x29   : > { %3895 = vmatpush.msra.mxu0 %v3806_v6  ;;  %3915 = vmatpush.msra.mxu1 %v3822_v7  ;;  %v3856_v17 = vld [vmem:[%s7020_s1 + $0x1f8] sm:$0xff]  ;;  %v3802_v19 = vld [vmem:[%s7020_s1 + $0x48] sm:$0xff]  ;;  %v3855_v21 = vld [vmem:[%s7020_s1 + $0x1f0] sm:$0xff]  ;;  %vm4191_vm14 = vcmask 162944   ;;  %vm4053_vm15 = vcmask 64544   ;;  %s4784_s8 = smov 124   ;;  %s334_s11 = scalar_lea.vmem %s7025_s6, %s4940_s27 }
  0x2a   : > { %4071 = vperm.xlu2 %4603, %v4970_v13   ;;  %3933 = vmatpush.msra.mxu2 %v3840_v14  ;;  %v3818_v20 = vld [vmem:[%s7020_s1 + $0xc8] sm:$0xff]  ;;  %v3837_v22 = vld [vmem:[%s7020_s1 + $0x160] sm:$0xff]  ;;  %v3800_v26 = vld [vmem:[%s7020_s1 + $0x38] sm:$0xff]  ;;  %s4785_s9 = smov 116   ;;  %s4786_s10 = smov 120  }
  0x2b   : > { %3896 = vmatpush.msra.mxu0 %v3805_v8  ;;  %3916 = vmatpush.msra.mxu1 %v3821_v9  ;;  %v3801_v23 = vld [vmem:[%s7020_s1 + $0x40] sm:$0xff]  ;;  %v3854_v25 = vld [vmem:[%s7020_s1 + $0x1e8] sm:$0xff]  ;;  %v3816_v27 = vld [vmem:[%s7020_s1 + $0xb8] sm:$0xff]  ;;  %s4787_s13 = smov 108   ;;  %s4788_s17 = smov 112  }
  0x2c   : > { %3934 = vmatpush.msra.mxu2 %v3839_v16  ;;  %3953 = vmatpush.msra.mxu3 %v3856_v17  ;;  %v3817_v24 = vld [vmem:[%s7020_s1 + $0xc0] sm:$0xff]  ;;  %v3836_v28 = vld [vmem:[%s7020_s1 + $0x158] sm:$0xff]  ;;  %v3799_v30 = vld [vmem:[%s7020_s1 + $0x30] sm:$0xff]  ;;  %s4789_s19 = smov 104   ;;  %s4791_s20 = smov 20  }
  0x2d   : > { %3897 = vmatpush.msra.mxu0 %v3804_v10  ;;  %3917 = vmatpush.msra.mxu1 %v3820_v11  ;;  %v3853_v29 = vld [vmem:[%s7020_s1 + $0x1e0] sm:$0xff]  ;;  %v3815_v31 = vld [vmem:[%s7020_s1 + $0xb0] sm:$0xff]  ;;  %v3798_v34 = vld [vmem:[%s7020_s1 + $0x28] sm:$0xff]  ;;  %s4792_s24 = smov 24  }
  0x2e   : > { %4033 = vperm.xlu1 %4602, %v4970_v13   ;;  %3935 = vmatpush.msra.mxu2 %v3838_v18  ;;  %v3835_v33 = vld [vmem:[%s7020_s1 + $0x150] sm:$0xff]  ;;  %v3814_v35 = vld [vmem:[%s7020_s1 + $0xa8] sm:$0xff]  ;;  %v3852_v36 = vld [vmem:[%s7020_s1 + $0x1d8] sm:$0xff] }
  0x2f   : > { %3898 = vmatpush.msra.mxu0 %v3803_v12  ;;  %3918 = vmatpush.msra.mxu1 %v3819_v15  ;;  %v3797_v37 = vld [vmem:[%s7020_s1 + $0x20] sm:$0xff]  ;;  %v3834_v39 = vld [vmem:[%s7020_s1 + $0x148] sm:$0xff]  ;;  %v3851_v40 = vld [vmem:[%s7020_s1 + $0x1d0] sm:$0xff] }
  0x30   : > { %3954 = vmatpush.msra.mxu3 %v3855_v21  ;;  %3936 = vmatpush.msra.mxu2 %v3837_v22  ;;  %v3813_v38 = vld [vmem:[%s7020_s1 + $0xa0] sm:$0xff]  ;;  %v3796_v41 = vld [vmem:[%s7020_s1 + $0x18] sm:$0xff]  ;;  %v3795_v45 = vld [vmem:[%s7020_s1 + $0x10] sm:$0xff] }
  0x31   : > { %3899 = vmatpush.msra.mxu0 %v3802_v19  ;;  %3919 = vmatpush.msra.mxu1 %v3818_v20  ;;  %v3812_v42 = vld [vmem:[%s7020_s1 + $0x98] sm:$0xff]  ;;  %v3833_v44 = vld [vmem:[%s7020_s1 + $0x140] sm:$0xff]  ;;  %v3811_v46 = vld [vmem:[%s7020_s1 + $0x90] sm:$0xff]  ;;  %v4777_v20 = vmov 3  }
  0x32   : > { %3955 = vmatpush.msra.mxu3 %v3854_v25  ;;  %4604 = vset.pattern.permute.xlu2 %v4775_v32  ;;  %v3850_v47 = vld [vmem:[%s7020_s1 + $0x1c8] sm:$0xff]  ;;  %v3832_v48 = vld [vmem:[%s7020_s1 + $0x138] sm:$0xff]  ;;  %v3849_v51 = vld [vmem:[%s7020_s1 + $0x1c0] sm:$0xff] }
  0x33   : > { %3900 = vmatpush.msra.mxu0 %v3801_v23  ;;  %3920 = vmatpush.msra.mxu1 %v3817_v24  ;;  %v3794_v49 = vld [vmem:[%s7020_s1 + $0x8] sm:$0xff]  ;;  %v3831_v52 = vld [vmem:[%s7020_s1 + $0x130] sm:$0xff]  ;;  %v3793_v53 = vld [vmem:[%s7020_s1] sm:$0xff] }
  0x34   : > { %3937 = vmatpush.msra.mxu2 %v3836_v28  ;;  %3956 = vmatpush.msra.mxu3 %v3853_v29  ;;  %v3810_v50 = vld [vmem:[%s7020_s1 + $0x88] sm:$0xff]  ;;  %v3809_v54 = vld [vmem:[%s7020_s1 + $0x80] sm:$0xff]  ;;  %v3872_v55 = vld [vmem:[%s7020_s1 + $0x278] sm:$0xff] }
  0x35   : > { %3901 = vmatpush.msra.mxu0 %v3800_v26  ;;  %3921 = vmatpush.msra.mxu1 %v3816_v27  ;;  %v3888_v56 = vld [vmem:[%s7020_s1 + $0x2f8] sm:$0xff]  ;;  %v3830_v58 = vld [vmem:[%s7020_s1 + $0x128] sm:$0xff]  ;;  %v3871_v59 = vld [vmem:[%s7020_s1 + $0x270] sm:$0xff] }
  0x36   : > { %4117 = vperm.xlu2 %4604, %v4970_v13   ;;  %3938 = vmatpush.msra.mxu2 %v3835_v33  ;;  %v3848_v57 = vld [vmem:[%s7020_s1 + $0x1b8] sm:$0xff]  ;;  %v3887_v60 = vld [vmem:[%s7020_s1 + $0x2f0] sm:$0xff]  ;;  %v3829_v62 = vld [vmem:[%s7020_s1 + $0x120] sm:$0xff] }
  0x37   : > { %3902 = vmatpush.msra.mxu0 %v3799_v30  ;;  %3922 = vmatpush.msra.mxu1 %v3815_v31  ;;  %v3847_v61 = vld [vmem:[%s7020_s1 + $0x1b0] sm:$0xff]  ;;  %v3870_v63 = vld [vmem:[%s7020_s1 + $0x268] sm:$0xff]  ;;  %v3828_v2 = vld [vmem:[%s7020_s1 + $0x118] sm:$0xff] }
  0x38   : > { %3957 = vmatpush.msra.mxu3 %v3852_v36  ;;  %4606 = vset.pattern.permute.xlu1 %v4776_v43  ;;  %v3886_v0 = vld [vmem:[%s7020_s1 + $0x2e8] sm:$0xff]  ;;  %v3869_v3 = vld [vmem:[%s7020_s1 + $0x260] sm:$0xff]  ;;  %v3827_v6 = vld [vmem:[%s7020_s1 + $0x110] sm:$0xff] }
  0x39   : > { %3903 = vmatpush.msra.mxu0 %v3798_v34  ;;  %3923 = vmatpush.msra.mxu1 %v3814_v35  ;;  %v3846_v1 = vld [vmem:[%s7020_s1 + $0x1a8] sm:$0xff]  ;;  %v3885_v4 = vld [vmem:[%s7020_s1 + $0x2e0] sm:$0xff]  ;;  %v3868_v7 = vld [vmem:[%s7020_s1 + $0x258] sm:$0xff] }
  0x3a   : > { %3939 = vmatpush.msra.mxu2 %v3834_v39  ;;  %3958 = vmatpush.msra.mxu3 %v3851_v40  ;;  %v3845_v5 = vld [vmem:[%s7020_s1 + $0x1a0] sm:$0xff]  ;;  %v3884_v8 = vld [vmem:[%s7020_s1 + $0x2d8] sm:$0xff]  ;;  %v3826_v10 = vld [vmem:[%s7020_s1 + $0x108] sm:$0xff] }
  0x3b   : > { %3904 = vmatpush.msra.mxu0 %v3797_v37  ;;  %3924 = vmatpush.msra.mxu1 %v3813_v38  ;;  %v3844_v9 = vld [vmem:[%s7020_s1 + $0x198] sm:$0xff]  ;;  %v3867_v11 = vld [vmem:[%s7020_s1 + $0x250] sm:$0xff]  ;;  %v3866_v15 = vld [vmem:[%s7020_s1 + $0x248] sm:$0xff] }
  0x3c   : > { %4209 = vperm.xlu1 %4606, %v4970_v13   ;;  %3940 = vmatpush.msra.mxu2 %v3833_v44  ;;  %v3883_v12 = vld [vmem:[%s7020_s1 + $0x2d0] sm:$0xff]  ;;  %v3882_v16 = vld [vmem:[%s7020_s1 + $0x2c8] sm:$0xff]  ;;  %v3825_v17 = vld [vmem:[%s7020_s1 + $0x100] sm:$0xff] }
  0x3d   : > { %3905 = vmatpush.msra.mxu0 %v3796_v41  ;;  %3925 = vmatpush.msra.mxu1 %v3812_v42  ;;  %v3843_v14 = vld [vmem:[%s7020_s1 + $0x190] sm:$0xff]  ;;  %v3865_v18 = vld [vmem:[%s7020_s1 + $0x240] sm:$0xff]  ;;  %v3842_v21 = vld [vmem:[%s7020_s1 + $0x188] sm:$0xff] }
  0x3e   : > { %3959 = vmatpush.msra.mxu3 %v3850_v47  ;;  %3941 = vmatpush.msra.mxu2 %v3832_v48  ;;  %v3881_v19 = vld [vmem:[%s7020_s1 + $0x2c0] sm:$0xff]  ;;  %v3864_v22 = vld [vmem:[%s7020_s1 + $0x238] sm:$0xff]  ;;  %v3863_v24 = vld [vmem:[%s7020_s1 + $0x230] sm:$0xff] }
  0x3f   : > { %3906 = vmatpush.msra.mxu0 %v3795_v45  ;;  %3926 = vmatpush.msra.mxu1 %v3811_v46  ;;  %v3880_v23 = vld [vmem:[%s7020_s1 + $0x2b8] sm:$0xff]  ;;  %v3879_v25 = vld [vmem:[%s7020_s1 + $0x2b0] sm:$0xff]  ;;  %v359_v27 = vld [vmem:[%s4916_s18 + $0x40] sm:$0xff] }
  0x40   : > { %3960 = vmatpush.msra.mxu3 %v3849_v51  ;;  %3942 = vmatpush.msra.mxu2 %v3831_v52  ;;  %v353_v26 = vld [vmem:[%s4916_s18 + $0x10] sm:$0xff]  ;;  %v551_v29 = vld [vmem:[%s4916_s18 + $0x640] sm:$0xff] }
  0x41   : > { %3907 = vmatpush.msra.mxu0 %v3794_v49  ;;  %3927 = vmatpush.msra.mxu1 %v3810_v50  ;;  %v545_v28 = vld [vmem:[%s4916_s18 + $0x610] sm:$0xff]  ;;  %v743_v32 = vld [vmem:[%s4916_s18 + $0xc40] sm:$0xff]  ;;  %v1961_v37 = vadd.f32 %v359_v27, %v353_v26 }
  0x42   : > { %3961 = vmatpush.msra.mxu3 %v3848_v57  ;;  %3943 = vmatpush.msra.mxu2 %v3830_v58  ;;  %v365_v30 = vld [vmem:[%s4916_s18 + $0x70] sm:$0xff]  ;;  %v935_v35 = vld [vmem:[%s4916_s18 + $0x1240] sm:$0xff]  ;;  %v2183_v38 = vadd.f32 %v551_v29, %v545_v28 }
  0x43   : > { %3908 = vmatpush.msra.mxu0 %v3793_v53  ;;  %3928 = vmatpush.msra.mxu1 %v3809_v54  ;;  %v737_v31 = vld [vmem:[%s4916_s18 + $0xc10] sm:$0xff]  ;;  %v371_v39 = vld [vmem:[%s4916_s18 + $0xa0] sm:$0xff]  ;;  %v1962_v45 = vadd.f32 %v1961_v37, %v365_v30 }
  0x44   : > { %3962 = vmatpush.msra.mxu3 %v3847_v61  ;;  %3944 = vmatpush.msra.mxu2 %v3829_v62  ;;  %v557_v33 = vld [vmem:[%s4916_s18 + $0x670] sm:$0xff]  ;;  %v563_v40 = vld [vmem:[%s4916_s18 + $0x6a0] sm:$0xff]  ;;  %v2405_v42 = vadd.f32 %v743_v32, %v737_v31 }
  0x45   : > { %3973 = vmatpush.msrb.mxu0 %v3872_v55  ;;  %3993 = vmatpush.msrb.mxu1 %v3888_v56  ;;  %v929_v34 = vld [vmem:[%s4916_s18 + $0x1210] sm:$0xff]  ;;  %v755_v44 = vld [vmem:[%s4916_s18 + $0xca0] sm:$0xff]  ;;  %v2184_v46 = vadd.f32 %v2183_v38, %v557_v33  ;;  %v1963_v55 = vadd.f32 %v1962_v45, %v371_v39 }
  0x46   : > { %3963 = vmatpush.msra.mxu3 %v3846_v1  ;;  %3945 = vmatpush.msra.mxu2 %v3828_v2  ;;  %v749_v36 = vld [vmem:[%s4916_s18 + $0xc70] sm:$0xff]  ;;  %v2627_v47 = vadd.f32 %v935_v35, %v929_v34  ;;  %v383_v48 = vld [vmem:[%s4916_s18 + $0x100] sm:$0xff] }
  0x47   : > { %3974 = vmatpush.msrb.mxu0 %v3871_v59  ;;  %3994 = vmatpush.msrb.mxu1 %v3887_v60  ;;  %v941_v41 = vld [vmem:[%s4916_s18 + $0x1270] sm:$0xff]  ;;  %v947_v50 = vld [vmem:[%s4916_s18 + $0x12a0] sm:$0xff]  ;;  %v2406_v51 = vadd.f32 %v2405_v42, %v749_v36  ;;  %v2185_v56 = vadd.f32 %v2184_v46, %v563_v40 }
  0x48   : > { %3964 = vmatpush.msra.mxu3 %v3845_v5  ;;  %3946 = vmatpush.msra.mxu2 %v3827_v6  ;;  %v377_v43 = vld [vmem:[%s4916_s18 + $0xd0] sm:$0xff]  ;;  %v575_v52 = vld [vmem:[%s4916_s18 + $0x700] sm:$0xff]  ;;  %v2628_v57 = vadd.f32 %v2627_v47, %v941_v41 }
  0x49   : > { %3975 = vmatpush.msrb.mxu0 %v3870_v63  ;;  %3995 = vmatpush.msrb.mxu1 %v3886_v0  ;;  %v569_v49 = vld [vmem:[%s4916_s18 + $0x6d0] sm:$0xff]  ;;  %v1127_v59 = vld [vmem:[%s4916_s18 + $0x1840] sm:$0xff]  ;;  %v2407_v61 = vadd.f32 %v2406_v51, %v755_v44  ;;  %v1964_v0 = vadd.f32 %v1963_v55, %v377_v43 }
  0x4a   : > { %3965 = vmatpush.msra.mxu3 %v3844_v9  ;;  %3947 = vmatpush.msra.mxu2 %v3826_v10  ;;  %v761_v53 = vld [vmem:[%s4916_s18 + $0xcd0] sm:$0xff]  ;;  %v767_v63 = vld [vmem:[%s4916_s18 + $0xd00] sm:$0xff]  ;;  %v2186_v1 = vadd.f32 %v2185_v56, %v569_v49  ;;  %v2629_v2 = vadd.f32 %v2628_v57, %v947_v50 }
  0x4b   : > { %3976 = vmatpush.msrb.mxu0 %v3869_v3  ;;  %3996 = vmatpush.msrb.mxu1 %v3885_v4  ;;  %v953_v54 = vld [vmem:[%s4916_s18 + $0x12d0] sm:$0xff]  ;;  %v959_v5 = vld [vmem:[%s4916_s18 + $0x1300] sm:$0xff]  ;;  %v1965_v10 = vadd.f32 %v1964_v0, %v383_v48 }
  0x4c   : > { %3966 = vmatpush.msra.mxu3 %v3843_v14  ;;  %4605 = vset.pattern.permute.xlu2 %v4777_v20  ;;  %v1121_v58 = vld [vmem:[%s4916_s18 + $0x1810] sm:$0xff]  ;;  %v1139_v6 = vld [vmem:[%s4916_s18 + $0x18a0] sm:$0xff] }
  0x4d   : > { %3977 = vmatpush.msrb.mxu0 %v3868_v7  ;;  %3997 = vmatpush.msrb.mxu1 %v3884_v8  ;;  %v1133_v60 = vld [vmem:[%s4916_s18 + $0x1870] sm:$0xff]  ;;  %v2849_v3 = vadd.f32 %v1127_v59, %v1121_v58  ;;  %v2408_v7 = vadd.f32 %v2407_v61, %v761_v53  ;;  %v395_v8 = vld [vmem:[%s4916_s18 + $0x160] sm:$0xff] }
  0x4e   : > { %4163 = vperm.xlu2 %4605, %v4970_v13   ;;  %3948 = vmatpush.msra.mxu2 %v3825_v17  ;;  %v3862_v13 = vld [vmem:[%s7020_s1 + $0x228] sm:$0xff]  ;;  %v389_v62 = vld [vmem:[%s4916_s18 + $0x130] sm:$0xff]  ;;  %v779_v20 = vld [vmem:[%s4916_s18 + $0xd60] sm:$0xff] }
  0x4f   : > { %3978 = vmatpush.msrb.mxu0 %v3867_v11  ;;  %3998 = vmatpush.msrb.mxu1 %v3883_v12  ;;  %v581_v4 = vld [vmem:[%s4916_s18 + $0x730] sm:$0xff]  ;;  %v2187_v11 = vadd.f32 %v2186_v1, %v575_v52  ;;  %v2630_v12 = vadd.f32 %v2629_v2, %v953_v54  ;;  %v2850_v14 = vadd.f32 %v2849_v3, %v1133_v60  ;;  %v1151_v26 = vld [vmem:[%s4916_s18 + $0x1900] sm:$0xff] }
  0x50   : > { %3967 = vmatpush.msra.mxu3 %v3842_v21  ;;  %v773_v9 = vld [vmem:[%s4916_s18 + $0xd30] sm:$0xff]  ;;  %v1966_v21 = vadd.f32 %v1965_v10, %v389_v62  ;;  %v407_v28 = vld [vmem:[%s4916_s18 + $0x1c0] sm:$0xff] }
  0x51   : > { %3979 = vmatpush.msrb.mxu0 %v3866_v15  ;;  %3999 = vmatpush.msrb.mxu1 %v3882_v16  ;;  %v587_v15 = vld [vmem:[%s4916_s18 + $0x760] sm:$0xff]  ;;  %v965_v16 = vld [vmem:[%s4916_s18 + $0x1330] sm:$0xff] }
  0x52   : > { %v1145_v17 = vld [vmem:[%s4916_s18 + $0x18d0] sm:$0xff]  ;;  %v1967_v30 = vadd.f32 %v1966_v21, %v395_v8  ;;  %v599_v34 = vld [vmem:[%s4916_s18 + $0x7c0] sm:$0xff] }
  0x53   : > { %3980 = vmatpush.msrb.mxu0 %v3865_v18  ;;  %4000 = vmatpush.msrb.mxu1 %v3881_v19  ;;  %v2409_v18 = vadd.f32 %v2408_v7, %v767_v63  ;;  %v401_v19 = vld [vmem:[%s4916_s18 + $0x190] sm:$0xff]  ;;  %v791_v40 = vld [vmem:[%s4916_s18 + $0xdc0] sm:$0xff] }
  0x54   : > { %v785_v29 = vld [vmem:[%s4916_s18 + $0xd90] sm:$0xff]  ;;  %v1968_v41 = vadd.f32 %v1967_v30, %v401_v19  ;;  %v419_v45 = vld [vmem:[%s4916_s18 + $0x220] sm:$0xff] }
  0x55   : > { %3981 = vmatpush.msrb.mxu0 %v3864_v22  ;;  %4001 = vmatpush.msrb.mxu1 %v3880_v23  ;;  %v2188_v22 = vadd.f32 %v2187_v11, %v581_v4  ;;  %v2631_v23 = vadd.f32 %v2630_v12, %v959_v5  ;;  %v2410_v27 = vadd.f32 %v2409_v18, %v773_v9  ;;  %v977_v35 = vld [vmem:[%s4916_s18 + $0x1390] sm:$0xff]  ;;  %v983_v46 = vld [vmem:[%s4916_s18 + $0x13c0] sm:$0xff] }
  0x56   : > { %v1157_v36 = vld [vmem:[%s4916_s18 + $0x1930] sm:$0xff]  ;;  %v1163_v47 = vld [vmem:[%s4916_s18 + $0x1960] sm:$0xff]  ;;  %v1969_v53 = vadd.f32 %v1968_v41, %v407_v28 }
  0x57   : > { %3982 = vmatpush.msrb.mxu0 %v3863_v24  ;;  %4002 = vmatpush.msrb.mxu1 %v3879_v25  ;;  %v2851_v24 = vadd.f32 %v2850_v14, %v1139_v6  ;;  %v593_v25 = vld [vmem:[%s4916_s18 + $0x790] sm:$0xff]  ;;  %v2189_v31 = vadd.f32 %v2188_v22, %v587_v15  ;;  %v2632_v32 = vadd.f32 %v2631_v23, %v965_v16  ;;  %v1319_v51 = vld [vmem:[%s4916_s18 + $0x1e40] sm:$0xff] }
  0x58   : > { %v2411_v37 = vadd.f32 %v2410_v27, %v779_v20  ;;  %v413_v38 = vld [vmem:[%s4916_s18 + $0x1f0] sm:$0xff]  ;;  %v611_v57 = vld [vmem:[%s4916_s18 + $0x820] sm:$0xff] }
  0x59   : > { %3983 = vmatpush.msrb.mxu0 %v3862_v13  ;;  %v971_v13 = vld [vmem:[%s4916_s18 + $0x1360] sm:$0xff]  ;;  %v2852_v33 = vadd.f32 %v2851_v24, %v1145_v17  ;;  %v605_v39 = vld [vmem:[%s4916_s18 + $0x7f0] sm:$0xff]  ;;  %v2190_v42 = vadd.f32 %v2189_v31, %v593_v25  ;;  %v1970_v1 = vadd.f32 %v1969_v53, %v413_v38 }
  0x5a   : > { %v2633_v43 = vadd.f32 %v2632_v32, %v971_v13  ;;  %v1313_v48 = vld [vmem:[%s4916_s18 + $0x1e10] sm:$0xff]  ;;  %v2412_v49 = vadd.f32 %v2411_v37, %v785_v29  ;;  %v803_v63 = vld [vmem:[%s4916_s18 + $0xe20] sm:$0xff] }
  0x5b   : > { %v2853_v44 = vadd.f32 %v2852_v33, %v1151_v26  ;;  %v797_v50 = vld [vmem:[%s4916_s18 + $0xdf0] sm:$0xff]  ;;  %v2191_v54 = vadd.f32 %v2190_v42, %v599_v34  ;;  %v3071_v61 = vadd.f32 %v1319_v51, %v1313_v48  ;;  %v1331_v0 = vld [vmem:[%s4916_s18 + $0x1ea0] sm:$0xff]  ;;  %v1971_v14 = vadd.f32 %v1970_v1, %v419_v45 }
  0x5c   : > { %v1325_v52 = vld [vmem:[%s4916_s18 + $0x1e70] sm:$0xff]  ;;  %v2634_v55 = vadd.f32 %v2633_v43, %v977_v35  ;;  %v2413_v60 = vadd.f32 %v2412_v49, %v791_v40  ;;  %v995_v6 = vld [vmem:[%s4916_s18 + $0x1420] sm:$0xff] }
  0x5d   : > { %v2854_v56 = vadd.f32 %v2853_v44, %v1157_v36  ;;  %v989_v58 = vld [vmem:[%s4916_s18 + $0x13f0] sm:$0xff]  ;;  %v2192_v2 = vadd.f32 %v2191_v54, %v605_v39  ;;  %v1175_v7 = vld [vmem:[%s4916_s18 + $0x19c0] sm:$0xff]  ;;  %v3072_v9 = vadd.f32 %v3071_v61, %v1325_v52 }
  0x5e   : > { %v1169_v59 = vld [vmem:[%s4916_s18 + $0x1990] sm:$0xff]  ;;  %v2635_v3 = vadd.f32 %v2634_v55, %v983_v46  ;;  %v2414_v8 = vadd.f32 %v2413_v60, %v797_v50  ;;  %v431_v10 = vld [vmem:[%s4916_s18 + $0x280] sm:$0xff] }
  0x5f   : > { %v425_v62 = vld [vmem:[%s4916_s18 + $0x250] sm:$0xff]  ;;  %v2855_v4 = vadd.f32 %v2854_v56, %v1163_v47  ;;  %v2193_v15 = vadd.f32 %v2192_v2, %v611_v57  ;;  %v623_v18 = vld [vmem:[%s4916_s18 + $0x880] sm:$0xff]  ;;  %v3073_v22 = vadd.f32 %v3072_v9, %v1331_v0 }
  0x60   : > { %v617_v5 = vld [vmem:[%s4916_s18 + $0x850] sm:$0xff]  ;;  %v2636_v16 = vadd.f32 %v2635_v3, %v989_v58  ;;  %v2415_v21 = vadd.f32 %v2414_v8, %v803_v63  ;;  %v815_v24 = vld [vmem:[%s4916_s18 + $0xe80] sm:$0xff]  ;;  %v1972_v13 = vadd.f32 %v1971_v14, %v425_v62 }
  0x61   : > { %v809_v11 = vld [vmem:[%s4916_s18 + $0xe50] sm:$0xff]  ;;  %v2856_v17 = vadd.f32 %v2855_v4, %v1169_v59  ;;  %v1343_v25 = vld [vmem:[%s4916_s18 + $0x1f00] sm:$0xff]  ;;  %v2194_v26 = vadd.f32 %v2193_v15, %v617_v5 }
  0x62   : > { %v1337_v12 = vld [vmem:[%s4916_s18 + $0x1ed0] sm:$0xff]  ;;  %v2637_v27 = vadd.f32 %v2636_v16, %v995_v6  ;;  %v443_v29 = vld [vmem:[%s4916_s18 + $0x2e0] sm:$0xff]  ;;  %v2416_v33 = vadd.f32 %v2415_v21, %v809_v11  ;;  %v1973_v38 = vadd.f32 %v1972_v13, %v431_v10 }
  0x63   : > { %v1001_v19 = vld [vmem:[%s4916_s18 + $0x1450] sm:$0xff]  ;;  %v2857_v28 = vadd.f32 %v2856_v17, %v1175_v7  ;;  %v1007_v31 = vld [vmem:[%s4916_s18 + $0x1480] sm:$0xff]  ;;  %v3074_v34 = vadd.f32 %v3073_v22, %v1337_v12  ;;  %v2195_v39 = vadd.f32 %v2194_v26, %v623_v18 }
  0x64   : > { %v1181_v20 = vld [vmem:[%s4916_s18 + $0x19f0] sm:$0xff]  ;;  %v1187_v32 = vld [vmem:[%s4916_s18 + $0x1a20] sm:$0xff]  ;;  %v2638_v40 = vadd.f32 %v2637_v27, %v1001_v19  ;;  %v2417_v47 = vadd.f32 %v2416_v33, %v815_v24 }
  0x65   : > { %v437_v23 = vld [vmem:[%s4916_s18 + $0x2b0] sm:$0xff]  ;;  %v635_v35 = vld [vmem:[%s4916_s18 + $0x8e0] sm:$0xff]  ;;  %v2858_v41 = vadd.f32 %v2857_v28, %v1181_v20  ;;  %v3075_v48 = vadd.f32 %v3074_v34, %v1343_v25 }
  0x66   : > { %v629_v30 = vld [vmem:[%s4916_s18 + $0x8b0] sm:$0xff]  ;;  %v827_v44 = vld [vmem:[%s4916_s18 + $0xee0] sm:$0xff]  ;;  %v1974_v52 = vadd.f32 %v1973_v38, %v437_v23  ;;  %v2639_v54 = vadd.f32 %v2638_v40, %v1007_v31 }
  0x67   : > { %v821_v36 = vld [vmem:[%s4916_s18 + $0xeb0] sm:$0xff]  ;;  %v1355_v49 = vld [vmem:[%s4916_s18 + $0x1f60] sm:$0xff]  ;;  %v2196_v53 = vadd.f32 %v2195_v39, %v629_v30  ;;  %v2859_v55 = vadd.f32 %v2858_v41, %v1187_v32 }
  0x68   : > { %v1349_v37 = vld [vmem:[%s4916_s18 + $0x1f30] sm:$0xff]  ;;  %v1511_v51 = vld [vmem:[%s4916_s18 + $0x2440] sm:$0xff]  ;;  %v2418_v61 = vadd.f32 %v2417_v47, %v821_v36  ;;  %v1975_v3 = vadd.f32 %v1974_v52, %v443_v29 }
  0x69   : > { %v449_v42 = vld [vmem:[%s4916_s18 + $0x310] sm:$0xff]  ;;  %v455_v56 = vld [vmem:[%s4916_s18 + $0x340] sm:$0xff]  ;;  %v3076_v62 = vadd.f32 %v3075_v48, %v1349_v37  ;;  %v2197_v4 = vadd.f32 %v2196_v53, %v635_v35 }
  0x6a   : > { %v641_v43 = vld [vmem:[%s4916_s18 + $0x910] sm:$0xff]  ;;  %v647_v57 = vld [vmem:[%s4916_s18 + $0x940] sm:$0xff]  ;;  %v2419_v11 = vadd.f32 %v2418_v61, %v827_v44  ;;  %v1976_v18 = vadd.f32 %v1975_v3, %v449_v42 }
  0x6b   : > { %v1013_v45 = vld [vmem:[%s4916_s18 + $0x14b0] sm:$0xff]  ;;  %v1019_v58 = vld [vmem:[%s4916_s18 + $0x14e0] sm:$0xff]  ;;  %v3077_v12 = vadd.f32 %v3076_v62, %v1355_v49  ;;  %v2198_v19 = vadd.f32 %v2197_v4, %v641_v43 }
  0x6c   : > { %v1193_v46 = vld [vmem:[%s4916_s18 + $0x1a50] sm:$0xff]  ;;  %v1199_v59 = vld [vmem:[%s4916_s18 + $0x1a80] sm:$0xff]  ;;  %v2640_v5 = vadd.f32 %v2639_v54, %v1013_v45  ;;  %v1977_v31 = vadd.f32 %v1976_v18, %v455_v56 }
  0x6d   : > { %v1505_v50 = vld [vmem:[%s4916_s18 + $0x2410] sm:$0xff]  ;;  %v1523_v2 = vld [vmem:[%s4916_s18 + $0x24a0] sm:$0xff]  ;;  %v2860_v6 = vadd.f32 %v2859_v55, %v1193_v46  ;;  %v2199_v32 = vadd.f32 %v2198_v19, %v647_v57 }
  0x6e   : > { %v1517_v60 = vld [vmem:[%s4916_s18 + $0x2470] sm:$0xff]  ;;  %v3293_v63 = vadd.f32 %v1511_v51, %v1505_v50  ;;  %v839_v15 = vld [vmem:[%s4916_s18 + $0xf40] sm:$0xff]  ;;  %v2641_v20 = vadd.f32 %v2640_v5, %v1019_v58 }
  0x6f   : > { %v833_v0 = vld [vmem:[%s4916_s18 + $0xf10] sm:$0xff]  ;;  %v1367_v16 = vld [vmem:[%s4916_s18 + $0x1fc0] sm:$0xff]  ;;  %v2861_v21 = vadd.f32 %v2860_v6, %v1199_v59 }
  0x70   : > { %v1361_v1 = vld [vmem:[%s4916_s18 + $0x1f90] sm:$0xff]  ;;  %v3294_v14 = vadd.f32 %v3293_v63, %v1517_v60  ;;  %v467_v22 = vld [vmem:[%s4916_s18 + $0x3a0] sm:$0xff]  ;;  %v2420_v13 = vadd.f32 %v2419_v11, %v833_v0 }
  0x71   : > { %v461_v7 = vld [vmem:[%s4916_s18 + $0x370] sm:$0xff]  ;;  %v659_v23 = vld [vmem:[%s4916_s18 + $0x9a0] sm:$0xff]  ;;  %v3078_v26 = vadd.f32 %v3077_v12, %v1361_v1 }
  0x72   : > { %v653_v8 = vld [vmem:[%s4916_s18 + $0x970] sm:$0xff]  ;;  %v1031_v24 = vld [vmem:[%s4916_s18 + $0x1540] sm:$0xff]  ;;  %v3295_v27 = vadd.f32 %v3294_v14, %v1523_v2  ;;  %v2421_v39 = vadd.f32 %v2420_v13, %v839_v15  ;;  %v1978_v45 = vadd.f32 %v1977_v31, %v461_v7 }
  0x73   : > { %v1025_v9 = vld [vmem:[%s4916_s18 + $0x1510] sm:$0xff]  ;;  %v1211_v25 = vld [vmem:[%s4916_s18 + $0x1ae0] sm:$0xff]  ;;  %v3079_v40 = vadd.f32 %v3078_v26, %v1367_v16  ;;  %v2200_v46 = vadd.f32 %v2199_v32, %v653_v8 }
  0x74   : > { %v1205_v10 = vld [vmem:[%s4916_s18 + $0x1ab0] sm:$0xff]  ;;  %v1535_v30 = vld [vmem:[%s4916_s18 + $0x2500] sm:$0xff]  ;;  %v2642_v33 = vadd.f32 %v2641_v20, %v1025_v9  ;;  %v1979_v61 = vadd.f32 %v1978_v45, %v467_v22 }
  0x75   : > { %v1529_v17 = vld [vmem:[%s4916_s18 + $0x24d0] sm:$0xff]  ;;  %v2862_v34 = vadd.f32 %v2861_v21, %v1205_v10  ;;  %v851_v42 = vld [vmem:[%s4916_s18 + $0xfa0] sm:$0xff]  ;;  %v2201_v62 = vadd.f32 %v2200_v46, %v659_v23 }
  0x76   : > { %v845_v28 = vld [vmem:[%s4916_s18 + $0xf70] sm:$0xff]  ;;  %v3296_v41 = vadd.f32 %v3295_v27, %v1529_v17  ;;  %v1379_v43 = vld [vmem:[%s4916_s18 + $0x2020] sm:$0xff]  ;;  %v2643_v47 = vadd.f32 %v2642_v33, %v1031_v24 }
  0x77   : > { %v1373_v29 = vld [vmem:[%s4916_s18 + $0x1ff0] sm:$0xff]  ;;  %v2863_v48 = vadd.f32 %v2862_v34, %v1211_v25  ;;  %v479_v49 = vld [vmem:[%s4916_s18 + $0x400] sm:$0xff]  ;;  %v2422_v54 = vadd.f32 %v2421_v39, %v845_v28 }
  0x78   : > { %v473_v35 = vld [vmem:[%s4916_s18 + $0x3d0] sm:$0xff]  ;;  %v671_v50 = vld [vmem:[%s4916_s18 + $0xa00] sm:$0xff]  ;;  %v3080_v55 = vadd.f32 %v3079_v40, %v1373_v29  ;;  %v3297_v56 = vadd.f32 %v3296_v41, %v1535_v30 }
  0x79   : > { %v665_v36 = vld [vmem:[%s4916_s18 + $0x9d0] sm:$0xff]  ;;  %v1043_v52 = vld [vmem:[%s4916_s18 + $0x15a0] sm:$0xff]  ;;  %v2423_v6 = vadd.f32 %v2422_v54, %v851_v42  ;;  %v1980_v12 = vadd.f32 %v1979_v61, %v473_v35 }
  0x7a   : > { %v1037_v37 = vld [vmem:[%s4916_s18 + $0x1570] sm:$0xff]  ;;  %v1223_v53 = vld [vmem:[%s4916_s18 + $0x1b40] sm:$0xff]  ;;  %v3081_v7 = vadd.f32 %v3080_v55, %v1379_v43  ;;  %v2202_v14 = vadd.f32 %v2201_v62, %v665_v36 }
  0x7b   : > { %v1217_v38 = vld [vmem:[%s4916_s18 + $0x1b10] sm:$0xff]  ;;  %v863_v57 = vld [vmem:[%s4916_s18 + $0x1000] sm:$0xff]  ;;  %v2644_v63 = vadd.f32 %v2643_v47, %v1037_v37  ;;  %v1981_v28 = vadd.f32 %v1980_v12, %v479_v49 }
  0x7c   : > { %v1541_v44 = vld [vmem:[%s4916_s18 + $0x2530] sm:$0xff]  ;;  %v1547_v60 = vld [vmem:[%s4916_s18 + $0x2560] sm:$0xff]  ;;  %v2864_v0 = vadd.f32 %v2863_v48, %v1217_v38  ;;  %v2203_v29 = vadd.f32 %v2202_v14, %v671_v50 }
  0x7d   : > { %v857_v51 = vld [vmem:[%s4916_s18 + $0xfd0] sm:$0xff]  ;;  %v1703_v5 = vld [vmem:[%s4916_s18 + $0x2a40] sm:$0xff]  ;;  %v3298_v8 = vadd.f32 %v3297_v56, %v1541_v44  ;;  %v2645_v15 = vadd.f32 %v2644_v63, %v1043_v52 }
  0x7e   : > { %v1049_v58 = vld [vmem:[%s4916_s18 + $0x15d0] sm:$0xff]  ;;  %v1391_v9 = vld [vmem:[%s4916_s18 + $0x2080] sm:$0xff]  ;;  %v2865_v16 = vadd.f32 %v2864_v0, %v1223_v53  ;;  %v2424_v22 = vadd.f32 %v2423_v6, %v857_v51 }
  0x7f   : > { %v1385_v59 = vld [vmem:[%s4916_s18 + $0x2050] sm:$0xff]  ;;  %v491_v17 = vld [vmem:[%s4916_s18 + $0x460] sm:$0xff]  ;;  %v3299_v24 = vadd.f32 %v3298_v8, %v1547_v60  ;;  %v2646_v30 = vadd.f32 %v2645_v15, %v1049_v58 }
  0x80   : > { %v485_v1 = vld [vmem:[%s4916_s18 + $0x430] sm:$0xff]  ;;  %v683_v18 = vld [vmem:[%s4916_s18 + $0xa60] sm:$0xff]  ;;  %v3082_v23 = vadd.f32 %v3081_v7, %v1385_v59  ;;  %v2425_v37 = vadd.f32 %v2424_v22, %v863_v57 }
  0x81   : > { %v677_v2 = vld [vmem:[%s4916_s18 + $0xa30] sm:$0xff]  ;;  %v1055_v20 = vld [vmem:[%s4916_s18 + $0x1600] sm:$0xff]  ;;  %v1982_v44 = vadd.f32 %v1981_v28, %v485_v1 }
  0x82   : > { %v1229_v3 = vld [vmem:[%s4916_s18 + $0x1b70] sm:$0xff]  ;;  %v1235_v21 = vld [vmem:[%s4916_s18 + $0x1ba0] sm:$0xff]  ;;  %v3083_v38 = vadd.f32 %v3082_v23, %v1391_v9  ;;  %v2204_v45 = vadd.f32 %v2203_v29, %v677_v2  ;;  %v2647_v46 = vadd.f32 %v2646_v30, %v1055_v20 }
  0x83   : > { %v1697_v4 = vld [vmem:[%s4916_s18 + $0x2a10] sm:$0xff]  ;;  %v1559_v26 = vld [vmem:[%s4916_s18 + $0x25c0] sm:$0xff]  ;;  %v2866_v31 = vadd.f32 %v2865_v16, %v1229_v3  ;;  %v1983_v60 = vadd.f32 %v1982_v44, %v491_v17 }
  0x84   : > { %v1553_v10 = vld [vmem:[%s4916_s18 + $0x2590] sm:$0xff]  ;;  %v3515_v25 = vadd.f32 %v1703_v5, %v1697_v4  ;;  %v1715_v27 = vld [vmem:[%s4916_s18 + $0x2aa0] sm:$0xff]  ;;  %v2205_v61 = vadd.f32 %v2204_v45, %v683_v18 }
  0x85   : > { %v1709_v11 = vld [vmem:[%s4916_s18 + $0x2a70] sm:$0xff]  ;;  %v875_v34 = vld [vmem:[%s4916_s18 + $0x1060] sm:$0xff]  ;;  %v3300_v39 = vadd.f32 %v3299_v24, %v1553_v10  ;;  %v2867_v47 = vadd.f32 %v2866_v31, %v1235_v21 }
  0x86   : > { %v869_v19 = vld [vmem:[%s4916_s18 + $0x1030] sm:$0xff]  ;;  %v3516_v40 = vadd.f32 %v3515_v25, %v1709_v11  ;;  %v1403_v41 = vld [vmem:[%s4916_s18 + $0x20e0] sm:$0xff] }
  0x87   : > { %v1397_v13 = vld [vmem:[%s4916_s18 + $0x20b0] sm:$0xff]  ;;  %v503_v48 = vld [vmem:[%s4916_s18 + $0x4c0] sm:$0xff]  ;;  %v2426_v53 = vadd.f32 %v2425_v37, %v869_v19  ;;  %v3301_v55 = vadd.f32 %v3300_v39, %v1559_v26 }
  0x88   : > { %v497_v32 = vld [vmem:[%s4916_s18 + $0x490] sm:$0xff]  ;;  %v695_v49 = vld [vmem:[%s4916_s18 + $0xac0] sm:$0xff]  ;;  %v3084_v54 = vadd.f32 %v3083_v38, %v1397_v13  ;;  %v3517_v56 = vadd.f32 %v3516_v40, %v1715_v27 }
  0x89   : > { %v689_v33 = vld [vmem:[%s4916_s18 + $0xa90] sm:$0xff]  ;;  %v1067_v51 = vld [vmem:[%s4916_s18 + $0x1660] sm:$0xff]  ;;  %v2427_v5 = vadd.f32 %v2426_v53, %v875_v34  ;;  %v1984_v12 = vadd.f32 %v1983_v60, %v497_v32 }
  0x8a   : > { %v1061_v35 = vld [vmem:[%s4916_s18 + $0x1630] sm:$0xff]  ;;  %v1247_v52 = vld [vmem:[%s4916_s18 + $0x1c00] sm:$0xff]  ;;  %v3085_v6 = vadd.f32 %v3084_v54, %v1403_v41  ;;  %v2206_v14 = vadd.f32 %v2205_v61, %v689_v33 }
  0x8b   : > { %v1241_v36 = vld [vmem:[%s4916_s18 + $0x1bd0] sm:$0xff]  ;;  %v1571_v58 = vld [vmem:[%s4916_s18 + $0x2620] sm:$0xff]  ;;  %v2648_v62 = vadd.f32 %v2647_v46, %v1061_v35  ;;  %v1985_v28 = vadd.f32 %v1984_v12, %v503_v48 }
  0x8c   : > { %v1565_v42 = vld [vmem:[%s4916_s18 + $0x25f0] sm:$0xff]  ;;  %v1727_v59 = vld [vmem:[%s4916_s18 + $0x2b00] sm:$0xff]  ;;  %v2868_v63 = vadd.f32 %v2867_v47, %v1241_v36  ;;  %v2207_v29 = vadd.f32 %v2206_v14, %v695_v49 }
  0x8d   : > { %v1721_v43 = vld [vmem:[%s4916_s18 + $0x2ad0] sm:$0xff]  ;;  %v887_v2 = vld [vmem:[%s4916_s18 + $0x10c0] sm:$0xff]  ;;  %v3302_v7 = vadd.f32 %v3301_v55, %v1565_v42  ;;  %v2649_v15 = vadd.f32 %v2648_v62, %v1067_v51 }
  0x8e   : > { %v881_v50 = vld [vmem:[%s4916_s18 + $0x1090] sm:$0xff]  ;;  %v3518_v8 = vadd.f32 %v3517_v56, %v1721_v43  ;;  %v1415_v9 = vld [vmem:[%s4916_s18 + $0x2140] sm:$0xff]  ;;  %v2869_v16 = vadd.f32 %v2868_v63, %v1247_v52 }
  0x8f   : > { %v1409_v57 = vld [vmem:[%s4916_s18 + $0x2110] sm:$0xff]  ;;  %v515_v17 = vld [vmem:[%s4916_s18 + $0x520] sm:$0xff]  ;;  %v2428_v22 = vadd.f32 %v2427_v5, %v881_v50  ;;  %v3303_v24 = vadd.f32 %v3302_v7, %v1571_v58 }
  0x90   : > { %v509_v0 = vld [vmem:[%s4916_s18 + $0x4f0] sm:$0xff]  ;;  %v707_v18 = vld [vmem:[%s4916_s18 + $0xb20] sm:$0xff]  ;;  %v3086_v23 = vadd.f32 %v3085_v6, %v1409_v57  ;;  %v3519_v25 = vadd.f32 %v3518_v8, %v1727_v59 }
  0x91   : > { %v701_v1 = vld [vmem:[%s4916_s18 + $0xaf0] sm:$0xff]  ;;  %v1079_v20 = vld [vmem:[%s4916_s18 + $0x16c0] sm:$0xff]  ;;  %v2429_v37 = vadd.f32 %v2428_v22, %v887_v2  ;;  %v1986_v44 = vadd.f32 %v1985_v28, %v509_v0 }
  0x92   : > { %v1073_v3 = vld [vmem:[%s4916_s18 + $0x1690] sm:$0xff]  ;;  %v1259_v21 = vld [vmem:[%s4916_s18 + $0x1c60] sm:$0xff]  ;;  %v3087_v38 = vadd.f32 %v3086_v23, %v1415_v9  ;;  %v2208_v45 = vadd.f32 %v2207_v29, %v701_v1 }
  0x93   : > { %v1253_v4 = vld [vmem:[%s4916_s18 + $0x1c30] sm:$0xff]  ;;  %v1583_v26 = vld [vmem:[%s4916_s18 + $0x2680] sm:$0xff]  ;;  %v2650_v30 = vadd.f32 %v2649_v15, %v1073_v3  ;;  %v1987_v60 = vadd.f32 %v1986_v44, %v515_v17 }
  0x94   : > { %v1577_v10 = vld [vmem:[%s4916_s18 + $0x2650] sm:$0xff]  ;;  %v1739_v27 = vld [vmem:[%s4916_s18 + $0x2b60] sm:$0xff]  ;;  %v2870_v31 = vadd.f32 %v2869_v16, %v1253_v4  ;;  %v2209_v61 = vadd.f32 %v2208_v45, %v707_v18 }
  0x95   : > { %v1733_v11 = vld [vmem:[%s4916_s18 + $0x2b30] sm:$0xff]  ;;  %v899_v34 = vld [vmem:[%s4916_s18 + $0x1120] sm:$0xff]  ;;  %v3304_v39 = vadd.f32 %v3303_v24, %v1577_v10  ;;  %v2651_v46 = vadd.f32 %v2650_v30, %v1079_v20 }
  0x96   : > { %v893_v19 = vld [vmem:[%s4916_s18 + $0x10f0] sm:$0xff]  ;;  %v3520_v40 = vadd.f32 %v3519_v25, %v1733_v11  ;;  %v1427_v41 = vld [vmem:[%s4916_s18 + $0x21a0] sm:$0xff]  ;;  %v2871_v47 = vadd.f32 %v2870_v31, %v1259_v21 }
  0x97   : > { %v1421_v13 = vld [vmem:[%s4916_s18 + $0x2170] sm:$0xff]  ;;  %v527_v48 = vld [vmem:[%s4916_s18 + $0x580] sm:$0xff]  ;;  %v2430_v53 = vadd.f32 %v2429_v37, %v893_v19  ;;  %v3305_v55 = vadd.f32 %v3304_v39, %v1583_v26 }
  0x98   : > { %v521_v32 = vld [vmem:[%s4916_s18 + $0x550] sm:$0xff]  ;;  %v719_v49 = vld [vmem:[%s4916_s18 + $0xb80] sm:$0xff]  ;;  %v3088_v54 = vadd.f32 %v3087_v38, %v1421_v13  ;;  %v3521_v56 = vadd.f32 %v3520_v40, %v1739_v27 }
  0x99   : > { %v713_v33 = vld [vmem:[%s4916_s18 + $0xb50] sm:$0xff]  ;;  %v1091_v51 = vld [vmem:[%s4916_s18 + $0x1720] sm:$0xff]  ;;  %v2431_v5 = vadd.f32 %v2430_v53, %v899_v34  ;;  %v1988_v12 = vadd.f32 %v1987_v60, %v521_v32 }
  0x9a   : > { %v1085_v35 = vld [vmem:[%s4916_s18 + $0x16f0] sm:$0xff]  ;;  %v1271_v52 = vld [vmem:[%s4916_s18 + $0x1cc0] sm:$0xff]  ;;  %v3089_v6 = vadd.f32 %v3088_v54, %v1427_v41  ;;  %v2210_v14 = vadd.f32 %v2209_v61, %v713_v33 }
  0x9b   : > { %v1265_v36 = vld [vmem:[%s4916_s18 + $0x1c90] sm:$0xff]  ;;  %v1595_v58 = vld [vmem:[%s4916_s18 + $0x26e0] sm:$0xff]  ;;  %v2652_v62 = vadd.f32 %v2651_v46, %v1085_v35  ;;  %v1989_v28 = vadd.f32 %v1988_v12, %v527_v48 }
  0x9c   : > { %v1589_v42 = vld [vmem:[%s4916_s18 + $0x26b0] sm:$0xff]  ;;  %v1751_v59 = vld [vmem:[%s4916_s18 + $0x2bc0] sm:$0xff]  ;;  %v2872_v63 = vadd.f32 %v2871_v47, %v1265_v36  ;;  %v2211_v29 = vadd.f32 %v2210_v14, %v719_v49 }
  0x9d   : > { %v1745_v43 = vld [vmem:[%s4916_s18 + $0x2b90] sm:$0xff]  ;;  %v911_v2 = vld [vmem:[%s4916_s18 + $0x1180] sm:$0xff]  ;;  %v3306_v7 = vadd.f32 %v3305_v55, %v1589_v42  ;;  %v2653_v15 = vadd.f32 %v2652_v62, %v1091_v51 }
  0x9e   : > { %v905_v50 = vld [vmem:[%s4916_s18 + $0x1150] sm:$0xff]  ;;  %v3522_v8 = vadd.f32 %v3521_v56, %v1745_v43  ;;  %v1439_v9 = vld [vmem:[%s4916_s18 + $0x2200] sm:$0xff]  ;;  %v2873_v16 = vadd.f32 %v2872_v63, %v1271_v52 }
  0x9f   : > { %v1433_v57 = vld [vmem:[%s4916_s18 + $0x21d0] sm:$0xff]  ;;  %v539_v17 = vld [vmem:[%s4916_s18 + $0x5e0] sm:$0xff]  ;;  %v2432_v22 = vadd.f32 %v2431_v5, %v905_v50  ;;  %v3307_v24 = vadd.f32 %v3306_v7, %v1595_v58 }
  0xa0   : > { %v533_v0 = vld [vmem:[%s4916_s18 + $0x5b0] sm:$0xff]  ;;  %v731_v18 = vld [vmem:[%s4916_s18 + $0xbe0] sm:$0xff]  ;;  %v3090_v23 = vadd.f32 %v3089_v6, %v1433_v57  ;;  %v3523_v25 = vadd.f32 %v3522_v8, %v1751_v59 }
  0xa1   : > { %v725_v1 = vld [vmem:[%s4916_s18 + $0xbb0] sm:$0xff]  ;;  %v1103_v20 = vld [vmem:[%s4916_s18 + $0x1780] sm:$0xff]  ;;  %v2433_v35 = vadd.f32 %v2432_v22, %v911_v2  ;;  %v1990_v42 = vadd.f32 %v1989_v28, %v533_v0 }
  0xa2   : > { %v1097_v3 = vld [vmem:[%s4916_s18 + $0x1750] sm:$0xff]  ;;  %v1283_v21 = vld [vmem:[%s4916_s18 + $0x1d20] sm:$0xff]  ;;  %v3091_v36 = vadd.f32 %v3090_v23, %v1439_v9  ;;  %v2212_v43 = vadd.f32 %v2211_v29, %v725_v1 }
  0xa3   : > { %v1277_v4 = vld [vmem:[%s4916_s18 + $0x1cf0] sm:$0xff]  ;;  %v1607_v26 = vld [vmem:[%s4916_s18 + $0x2740] sm:$0xff]  ;;  %v2654_v30 = vadd.f32 %v2653_v15, %v1097_v3  ;;  %v1991_v55 = vadd.f32 %v1990_v42, %v539_v17 }
  0xa4   : > { %v1601_v10 = vld [vmem:[%s4916_s18 + $0x2710] sm:$0xff]  ;;  %v1763_v27 = vld [vmem:[%s4916_s18 + $0x2c20] sm:$0xff]  ;;  %v2874_v31 = vadd.f32 %v2873_v16, %v1277_v4  ;;  %v2213_v56 = vadd.f32 %v2212_v43, %v731_v18 }
  0xa5   : > { %v1757_v11 = vld [vmem:[%s4916_s18 + $0x2bf0] sm:$0xff]  ;;  %v923_v32 = vld [vmem:[%s4916_s18 + $0x11e0] sm:$0xff]  ;;  %v3308_v37 = vadd.f32 %v3307_v24, %v1601_v10  ;;  %v2655_v44 = vadd.f32 %v2654_v30, %v1103_v20  ;;  %v1992_v3 = vrot.slane %v1991_v55, 4 }
  0xa6   : > { %v917_v19 = vld [vmem:[%s4916_s18 + $0x11b0] sm:$0xff]  ;;  %v3524_v38 = vadd.f32 %v3523_v25, %v1757_v11  ;;  %v1451_v39 = vld [vmem:[%s4916_s18 + $0x2260] sm:$0xff]  ;;  %v2875_v45 = vadd.f32 %v2874_v31, %v1283_v21  ;;  %v2214_v4 = vrot.slane %v2213_v56, 4 }
  0xa7   : > { %v1445_v13 = vld [vmem:[%s4916_s18 + $0x2230] sm:$0xff]  ;;  %v1115_v46 = vld [vmem:[%s4916_s18 + $0x17e0] sm:$0xff]  ;;  %v2434_v48 = vadd.f32 %v2433_v35, %v917_v19  ;;  %v3309_v50 = vadd.f32 %v3308_v37, %v1607_v26  ;;  %v1993_v24 = vadd.f32 %v1992_v3, %v1991_v55 }
  0xa8   : > { %v1109_v33 = vld [vmem:[%s4916_s18 + $0x17b0] sm:$0xff]  ;;  %v1295_v47 = vld [vmem:[%s4916_s18 + $0x1d80] sm:$0xff]  ;;  %v3092_v49 = vadd.f32 %v3091_v36, %v1445_v13  ;;  %v3525_v51 = vadd.f32 %v3524_v38, %v1763_v27  ;;  %v2215_v25 = vadd.f32 %v2214_v4, %v2213_v56 }
  0xa9   : > { %v1289_v34 = vld [vmem:[%s4916_s18 + $0x1d50] sm:$0xff]  ;;  %v1619_v53 = vld [vmem:[%s4916_s18 + $0x27a0] sm:$0xff]  ;;  %v2656_v57 = vadd.f32 %v2655_v44, %v1109_v33  ;;  %v2435_v60 = vadd.f32 %v2434_v48, %v923_v32 }
  0xaa   : > { %v1613_v40 = vld [vmem:[%s4916_s18 + $0x2770] sm:$0xff]  ;;  %v1775_v54 = vld [vmem:[%s4916_s18 + $0x2c80] sm:$0xff]  ;;  %v2876_v58 = vadd.f32 %v2875_v45, %v1289_v34  ;;  %v3093_v61 = vadd.f32 %v3092_v49, %v1451_v39 }
  0xab   : > { %v1769_v41 = vld [vmem:[%s4916_s18 + $0x2c50] sm:$0xff]  ;;  %v3310_v62 = vadd.f32 %v3309_v50, %v1613_v40  ;;  %v1463_v0 = vld [vmem:[%s4916_s18 + $0x22c0] sm:$0xff]  ;;  %v2657_v5 = vadd.f32 %v2656_v57, %v1115_v46  ;;  %v2436_v15 = vrot.slane %v2435_v60, 4  ;;  %v1994_v40 = vrot.slane %v1993_v24, 2 }
  0xac   : > { %v1457_v52 = vld [vmem:[%s4916_s18 + $0x2290] sm:$0xff]  ;;  %v3526_v63 = vadd.f32 %v3525_v51, %v1769_v41  ;;  %v2877_v6 = vadd.f32 %v2876_v58, %v1295_v47  ;;  %v1307_v7 = vld [vmem:[%s4916_s18 + $0x1de0] sm:$0xff]  ;;  %v2216_v41 = vrot.slane %v2215_v25, 2 }
  0xad   : > { %v1301_v59 = vld [vmem:[%s4916_s18 + $0x1db0] sm:$0xff]  ;;  %v3094_v8 = vadd.f32 %v3093_v61, %v1457_v52  ;;  %v3311_v9 = vadd.f32 %v3310_v62, %v1619_v53  ;;  %v1631_v12 = vld [vmem:[%s4916_s18 + $0x2800] sm:$0xff]  ;;  %v2658_v17 = vrot.slane %v2657_v5, 4  ;;  %v2437_v32 = vadd.f32 %v2436_v15, %v2435_v60 }
  0xae   : > { %v1625_v1 = vld [vmem:[%s4916_s18 + $0x27d0] sm:$0xff]  ;;  %v3527_v10 = vadd.f32 %v3526_v63, %v1775_v54  ;;  %v1787_v14 = vld [vmem:[%s4916_s18 + $0x2ce0] sm:$0xff]  ;;  %v2878_v16 = vadd.f32 %v2877_v6, %v1301_v59  ;;  %v1995_v57 = vadd.f32 %v1994_v40, %v1993_v24  ;;  %v2217_v58 = vadd.f32 %v2216_v41, %v2215_v25  ;;  %v3878_v40 = vld [vmem:[%s7020_s1 + $0x2a8] sm:$0xff] }
  0xaf   : > { %v1781_v2 = vld [vmem:[%s4916_s18 + $0x2cb0] sm:$0xff]  ;;  %v3095_v18 = vadd.f32 %v3094_v8, %v1463_v0  ;;  %v3312_v19 = vadd.f32 %v3311_v9, %v1625_v1  ;;  %v1475_v21 = vld [vmem:[%s4916_s18 + $0x2320] sm:$0xff]  ;;  %v2659_v33 = vadd.f32 %v2658_v17, %v2657_v5  ;;  %v2438_v49 = vrot.slane %v2437_v32, 2  ;;  %4003 = vmatpush.msrb.mxu1 %v3878_v40 }
  0xb0   : > { %v1469_v11 = vld [vmem:[%s4916_s18 + $0x22f0] sm:$0xff]  ;;  %v3528_v20 = vadd.f32 %v3527_v10, %v1781_v2  ;;  %v2879_v13 = vadd.f32 %v2878_v16, %v1307_v7  ;;  %v1643_v30 = vld [vmem:[%s4916_s18 + $0x2860] sm:$0xff]  ;;  %v1996_v8 = vrot.slane %v1995_v57, 1  ;;  %v2218_v9 = vrot.slane %v2217_v58, 1 }
  0xb1   : > { %v1637_v22 = vld [vmem:[%s4916_s18 + $0x2830] sm:$0xff]  ;;  %v3096_v26 = vadd.f32 %v3095_v18, %v1469_v11  ;;  %v3313_v27 = vadd.f32 %v3312_v19, %v1631_v12  ;;  %v1799_v31 = vld [vmem:[%s4916_s18 + $0x2d40] sm:$0xff]  ;;  %v2660_v50 = vrot.slane %v2659_v33, 2  ;;  %v2439_v1 = vadd.f32 %v2438_v49, %v2437_v32 }
  0xb2   : > { %v1793_v23 = vld [vmem:[%s4916_s18 + $0x2d10] sm:$0xff]  ;;  %v3529_v28 = vadd.f32 %v3528_v20, %v1787_v14  ;;  %v1487_v37 = vld [vmem:[%s4916_s18 + $0x2380] sm:$0xff]  ;;  %v2880_v42 = vrot.slane %v2879_v13, 4  ;;  %v1997_v25 = vadd.f32 %v1996_v8, %v1995_v57 }
  0xb3   : > { %v1481_v29 = vld [vmem:[%s4916_s18 + $0x2350] sm:$0xff]  ;;  %v3097_v34 = vadd.f32 %v3096_v26, %v1475_v21  ;;  %v3314_v35 = vadd.f32 %v3313_v27, %v1637_v22  ;;  %v1655_v47 = vld [vmem:[%s4916_s18 + $0x28c0] sm:$0xff]  ;;  %v2661_v2 = vadd.f32 %v2660_v50, %v2659_v33  ;;  %v2440_v17 = vrot.slane %v2439_v1, 1 }
  0xb4   : > { %v3530_v36 = vadd.f32 %v3529_v28, %v1793_v23  ;;  %v1649_v38 = vld [vmem:[%s4916_s18 + $0x2890] sm:$0xff]  ;;  %v1811_v48 = vld [vmem:[%s4916_s18 + $0x2da0] sm:$0xff]  ;;  %v2881_v59 = vadd.f32 %v2880_v42, %v2879_v13  ;;  %v2219_v13 = vadd.f32 %v2218_v9, %v2217_v58 }
  0xb5   : > { %v1805_v39 = vld [vmem:[%s4916_s18 + $0x2d70] sm:$0xff]  ;;  %v3098_v43 = vadd.f32 %v3097_v34, %v1481_v29  ;;  %v3315_v44 = vadd.f32 %v3314_v35, %v1643_v30  ;;  %v1499_v54 = vld [vmem:[%s4916_s18 + $0x23e0] sm:$0xff]  ;;  %v2662_v20 = vrot.slane %v2661_v2, 1 }
  0xb6   : > { %v3531_v45 = vadd.f32 %v3530_v36, %v1799_v31  ;;  %v1493_v46 = vld [vmem:[%s4916_s18 + $0x23b0] sm:$0xff]  ;;  %v1667_v63 = vld [vmem:[%s4916_s18 + $0x2920] sm:$0xff]  ;;  %v2882_v10 = vrot.slane %v2881_v59, 2  ;;  %v3732_v49 = vsel %vm3711_vm0, %v2219_v13, %v1997_v25 }
  0xb7   : > { %v3099_v51 = vadd.f32 %v3098_v43, %v1487_v37  ;;  %v3316_v52 = vadd.f32 %v3315_v44, %v1649_v38  ;;  %v1661_v55 = vld [vmem:[%s4916_s18 + $0x28f0] sm:$0xff]  ;;  %v1823_v0 = vld [vmem:[%s4916_s18 + $0x2e00] sm:$0xff]  ;;  %v2441_v37 = vadd.f32 %v2440_v17, %v2439_v1  ;;  %v5464_v41 = vadd.f32 %v2662_v20, %v2661_v2 }
  0xb8   : > { %v3532_v53 = vadd.f32 %v3531_v45, %v1805_v39  ;;  %v1817_v56 = vld [vmem:[%s4916_s18 + $0x2dd0] sm:$0xff]  ;;  %v1679_v15 = vld [vmem:[%s4916_s18 + $0x2980] sm:$0xff]  ;;  %v5446_v26 = vadd.f32 %v2882_v10, %v2881_v59 }
  0xb9   : > { %v3100_v60 = vadd.f32 %v3099_v51, %v1493_v46  ;;  %v3317_v61 = vadd.f32 %v3316_v52, %v1655_v47  ;;  %v1673_v6 = vld [vmem:[%s4916_s18 + $0x2950] sm:$0xff]  ;;  %v1835_v16 = vld [vmem:[%s4916_s18 + $0x2e60] sm:$0xff]  ;;  %v3733_v9 = vsel %vm3713_vm1, %v2441_v37, %v3732_v49 }
  0xba   : > { %v3533_v62 = vadd.f32 %v3532_v53, %v1811_v48  ;;  %v1829_v7 = vld [vmem:[%s4916_s18 + $0x2e30] sm:$0xff]  ;;  %v1691_v23 = vld [vmem:[%s4916_s18 + $0x29e0] sm:$0xff]  ;;  %v2884_v48 = vrot.slane %v5446_v26, 1 }
  0xbb   : > { %v3101_v3 = vadd.f32 %v3100_v60, %v1499_v54  ;;  %v3318_v4 = vadd.f32 %v3317_v61, %v1661_v55  ;;  %v1685_v18 = vld [vmem:[%s4916_s18 + $0x29b0] sm:$0xff]  ;;  %v1847_v24 = vld [vmem:[%s4916_s18 + $0x2ec0] sm:$0xff] }
  0xbc   : > { %v3534_v5 = vadd.f32 %v3533_v62, %v1817_v56  ;;  %v1841_v19 = vld [vmem:[%s4916_s18 + $0x2e90] sm:$0xff]  ;;  %v351_v27 = vld [vmem:[%s4916_s18] sm:$0xff] }
  0xbd   : > { %v3102_v11 = vrot.slane %v3101_v3, 4  ;;  %v3319_v12 = vadd.f32 %v3318_v4, %v1667_v63  ;;  %v357_v28 = vld [vmem:[%s4916_s18 + $0x30] sm:$0xff]  ;;  %v543_v29 = vld [vmem:[%s4916_s18 + $0x600] sm:$0xff] }
  0xbe   : > { %v3535_v14 = vadd.f32 %v3534_v5, %v1823_v0  ;;  %v363_v33 = vld [vmem:[%s4916_s18 + $0x60] sm:$0xff]  ;;  %v549_v34 = vld [vmem:[%s4916_s18 + $0x630] sm:$0xff]  ;;  %v1887_v51 = vadd.f32 %v357_v28, %v351_v27 }
  0xbf   : > { %v3320_v21 = vadd.f32 %v3319_v12, %v1673_v6  ;;  %v3103_v30 = vadd.f32 %v3102_v11, %v3101_v3  ;;  %v735_v35 = vld [vmem:[%s4916_s18 + $0xc00] sm:$0xff]  ;;  %v741_v36 = vld [vmem:[%s4916_s18 + $0xc30] sm:$0xff]  ;;  %v2109_v52 = vadd.f32 %v549_v34, %v543_v29 }
  0xc0   : > { %v3536_v22 = vadd.f32 %v3535_v14, %v1829_v7  ;;  %v3841_v38 = vld [vmem:[%s7020_s1 + $0x180] sm:$0xff]  ;;  %v933_v46 = vld [vmem:[%s4916_s18 + $0x1230] sm:$0xff]  ;;  %v2331_v59 = vadd.f32 %v741_v36, %v735_v35  ;;  %v1888_v63 = vadd.f32 %v1887_v51, %v363_v33 }
  0xc1   : > { %v3321_v31 = vadd.f32 %v3320_v21, %v1679_v15  ;;  %v3861_v39 = vld [vmem:[%s7020_s1 + $0x220] sm:$0xff]  ;;  %3968 = vmatpush.msra.mxu3 %v3841_v38  ;;  %v1853_v47 = vld [vmem:[%s4916_s18 + $0x2ef0] sm:$0xff]  ;;  %v3104_v53 = vrot.slane %v3103_v30, 2 }
  0xc2   : > { %v3537_v32 = vadd.f32 %v3536_v22, %v1835_v16  ;;  %3984 = vmatpush.msrb.mxu0 %v3861_v39  ;;  %v555_v44 = vld [vmem:[%s4916_s18 + $0x660] sm:$0xff]  ;;  %v369_v56 = vld [vmem:[%s4916_s18 + $0x90] sm:$0xff] }
  0xc3   : > { %v3322_v42 = vadd.f32 %v3321_v31, %v1685_v18  ;;  %v927_v45 = vld [vmem:[%s4916_s18 + $0x1200] sm:$0xff]  ;;  %v561_v57 = vld [vmem:[%s4916_s18 + $0x690] sm:$0xff]  ;;  %v2110_v0 = vadd.f32 %v2109_v52, %v555_v44  ;;  %v1889_v14 = vadd.f32 %v1888_v63, %v369_v56  ;;  %v3105_v17 = vadd.f32 %v3104_v53, %v3103_v30 }
  0xc4   : > { %v3538_v43 = vadd.f32 %v3537_v32, %v1841_v19  ;;  %v747_v50 = vld [vmem:[%s4916_s18 + $0xc60] sm:$0xff]  ;;  %v1865_v61 = vld [vmem:[%s4916_s18 + $0x2f50] sm:$0xff]  ;;  %v2553_v1 = vadd.f32 %v933_v46, %v927_v45  ;;  %v2885_v30 = vadd.f32 %v2884_v48, %v5446_v26 }
  0xc5   : > { %v3323_v54 = vadd.f32 %v3322_v42, %v1691_v23  ;;  %v939_v58 = vld [vmem:[%s4916_s18 + $0x1260] sm:$0xff]  ;;  %v753_v62 = vld [vmem:[%s4916_s18 + $0xc90] sm:$0xff]  ;;  %v2332_v7 = vadd.f32 %v2331_v59, %v747_v50  ;;  %v2111_v15 = vadd.f32 %v2110_v0, %v561_v57  ;;  %v3106_v26 = vrot.slane %v3105_v17, 1 }
  0xc6   : > { %v3539_v55 = vadd.f32 %v3538_v43, %v1847_v24  ;;  %v1859_v60 = vld [vmem:[%s4916_s18 + $0x2f20] sm:$0xff]  ;;  %v945_v6 = vld [vmem:[%s4916_s18 + $0x1290] sm:$0xff]  ;;  %v2554_v16 = vadd.f32 %v2553_v1, %v939_v58 }
  0xc7   : > { %v3324_v2 = vrot.slane %v3323_v54, 4  ;;  %v375_v4 = vld [vmem:[%s4916_s18 + $0xc0] sm:$0xff]  ;;  %v381_v10 = vld [vmem:[%s4916_s18 + $0xf0] sm:$0xff]  ;;  %v2333_v23 = vadd.f32 %v2332_v7, %v753_v62 }
  0xc8   : > { %v3540_v3 = vadd.f32 %v3539_v55, %v1853_v47  ;;  %v567_v5 = vld [vmem:[%s4916_s18 + $0x6c0] sm:$0xff]  ;;  %v573_v11 = vld [vmem:[%s4916_s18 + $0x6f0] sm:$0xff]  ;;  %v1890_v27 = vadd.f32 %v1889_v14, %v375_v4  ;;  %v2555_v29 = vadd.f32 %v2554_v16, %v945_v6  ;;  %v3734_v47 = vsel %vm3715_vm2, %v5464_v41, %v3733_v9 }
  0xc9   : > { %v1871_v8 = vld [vmem:[%s4916_s18 + $0x2f80] sm:$0xff]  ;;  %v3325_v18 = vadd.f32 %v3324_v2, %v3323_v54  ;;  %v1125_v22 = vld [vmem:[%s4916_s18 + $0x1830] sm:$0xff]  ;;  %v2112_v28 = vadd.f32 %v2111_v15, %v567_v5  ;;  %v3107_v6 = vadd.f32 %v3106_v26, %v3105_v17 }
  0xca   : > { %v759_v12 = vld [vmem:[%s4916_s18 + $0xcc0] sm:$0xff]  ;;  %v3541_v19 = vadd.f32 %v3540_v3, %v1859_v60  ;;  %v765_v25 = vld [vmem:[%s4916_s18 + $0xcf0] sm:$0xff]  ;;  %v1891_v42 = vadd.f32 %v1890_v27, %v381_v10 }
  0xcb   : > { %v951_v20 = vld [vmem:[%s4916_s18 + $0x12c0] sm:$0xff]  ;;  %v3326_v32 = vrot.slane %v3325_v18, 2  ;;  %v957_v35 = vld [vmem:[%s4916_s18 + $0x12f0] sm:$0xff]  ;;  %v2334_v37 = vadd.f32 %v2333_v23, %v759_v12  ;;  %v2113_v43 = vadd.f32 %v2112_v28, %v573_v11 }
  0xcc   : > { %v1119_v21 = vld [vmem:[%s4916_s18 + $0x1800] sm:$0xff]  ;;  %v3542_v33 = vadd.f32 %v3541_v19, %v1865_v61  ;;  %v1137_v36 = vld [vmem:[%s4916_s18 + $0x1890] sm:$0xff]  ;;  %v2556_v44 = vadd.f32 %v2555_v29, %v951_v20 }
  0xcd   : > { %v387_v24 = vld [vmem:[%s4916_s18 + $0x120] sm:$0xff]  ;;  %v2775_v31 = vadd.f32 %v1125_v22, %v1119_v21  ;;  %v1877_v38 = vld [vmem:[%s4916_s18 + $0x2fb0] sm:$0xff]  ;;  %v2335_v51 = vadd.f32 %v2334_v37, %v765_v25  ;;  %v3327_v59 = vadd.f32 %v3326_v32, %v3325_v18 }
  0xce   : > { %v1131_v13 = vld [vmem:[%s4916_s18 + $0x1860] sm:$0xff]  ;;  %v393_v39 = vld [vmem:[%s4916_s18 + $0x150] sm:$0xff]  ;;  %v3543_v46 = vadd.f32 %v3542_v33, %v1871_v8  ;;  %v1892_v55 = vadd.f32 %v1891_v42, %v387_v24  ;;  %v2557_v57 = vadd.f32 %v2556_v44, %v957_v35  ;;  %v3735_v8 = vsel %vm3717_vm3, %v2885_v30, %v3734_v47 }
  0xcf   : > { %v579_v34 = vld [vmem:[%s4916_s18 + $0x720] sm:$0xff]  ;;  %v2776_v45 = vadd.f32 %v2775_v31, %v1131_v13  ;;  %v585_v48 = vld [vmem:[%s4916_s18 + $0x750] sm:$0xff]  ;;  %v3328_v21 = vrot.slane %v3327_v59, 1 }
  0xd0   : > { %v771_v40 = vld [vmem:[%s4916_s18 + $0xd20] sm:$0xff]  ;;  %v777_v54 = vld [vmem:[%s4916_s18 + $0xd50] sm:$0xff]  ;;  %v2114_v56 = vadd.f32 %v2113_v43, %v579_v34  ;;  %v3544_v60 = vadd.f32 %v3543_v46, %v1877_v38  ;;  %v1893_v2 = vadd.f32 %v1892_v55, %v393_v39 }
  0xd1   : > { %v963_v49 = vld [vmem:[%s4916_s18 + $0x1320] sm:$0xff]  ;;  %v2777_v58 = vadd.f32 %v2776_v45, %v1137_v36  ;;  %v969_v61 = vld [vmem:[%s4916_s18 + $0x1350] sm:$0xff]  ;;  %v2336_v63 = vadd.f32 %v2335_v51, %v771_v40  ;;  %v3736_v36 = vsel %vm3719_vm4, %v3107_v6, %v3735_v8 }
  0xd2   : > { %v1143_v50 = vld [vmem:[%s4916_s18 + $0x18c0] sm:$0xff]  ;;  %v1149_v62 = vld [vmem:[%s4916_s18 + $0x18f0] sm:$0xff]  ;;  %v2115_v3 = vadd.f32 %v2114_v56, %v585_v48  ;;  %v2558_v4 = vadd.f32 %v2557_v57, %v963_v49  ;;  %v3329_v49 = vadd.f32 %v3328_v21, %v3327_v59 }
  0xd3   : > { %v1883_v52 = vld [vmem:[%s4916_s18 + $0x2fe0] sm:$0xff]  ;;  %v405_v0 = vld [vmem:[%s4916_s18 + $0x1b0] sm:$0xff]  ;;  %v2778_v5 = vadd.f32 %v2777_v58, %v1143_v50  ;;  %v2337_v12 = vadd.f32 %v2336_v63, %v777_v54 }
  0xd4   : > { %v399_v53 = vld [vmem:[%s4916_s18 + $0x180] sm:$0xff]  ;;  %v3545_v7 = vadd.f32 %v3544_v60, %v1883_v52  ;;  %v597_v9 = vld [vmem:[%s4916_s18 + $0x7b0] sm:$0xff]  ;;  %v2559_v17 = vadd.f32 %v2558_v4, %v969_v61 }
  0xd5   : > { %v591_v41 = vld [vmem:[%s4916_s18 + $0x780] sm:$0xff]  ;;  %v789_v16 = vld [vmem:[%s4916_s18 + $0xdb0] sm:$0xff]  ;;  %v1894_v18 = vadd.f32 %v1893_v2, %v399_v53  ;;  %v2779_v20 = vadd.f32 %v2778_v5, %v1149_v62 }
  0xd6   : > { %v783_v1 = vld [vmem:[%s4916_s18 + $0xd80] sm:$0xff]  ;;  %v2116_v19 = vadd.f32 %v2115_v3, %v591_v41  ;;  %v3546_v22 = vrot.slane %v3545_v7, 4  ;;  %v417_v23 = vld [vmem:[%s4916_s18 + $0x210] sm:$0xff] }
  0xd7   : > { %v975_v10 = vld [vmem:[%s4916_s18 + $0x1380] sm:$0xff]  ;;  %v981_v25 = vld [vmem:[%s4916_s18 + $0x13b0] sm:$0xff]  ;;  %v2338_v27 = vadd.f32 %v2337_v12, %v783_v1  ;;  %v1895_v30 = vadd.f32 %v1894_v18, %v405_v0  ;;  %v3737_v12 = vsel %vm3721_vm5, %v3329_v49, %v3736_v36 }
  0xd8   : > { %v1155_v11 = vld [vmem:[%s4916_s18 + $0x1920] sm:$0xff]  ;;  %v1161_v13 = vld [vmem:[%s4916_s18 + $0x1950] sm:$0xff]  ;;  %v2117_v32 = vadd.f32 %v2116_v19, %v597_v9  ;;  %v2560_v33 = vadd.f32 %v2559_v17, %v975_v10  ;;  %v3547_v35 = vadd.f32 %v3546_v22, %v3545_v7 }
  0xd9   : > { %v411_v14 = vld [vmem:[%s4916_s18 + $0x1e0] sm:$0xff]  ;;  %v1317_v29 = vld [vmem:[%s4916_s18 + $0x1e30] sm:$0xff]  ;;  %v2780_v34 = vadd.f32 %v2779_v20, %v1155_v11  ;;  %v2339_v40 = vadd.f32 %v2338_v27, %v789_v16 }
  0xda   : > { %v603_v15 = vld [vmem:[%s4916_s18 + $0x7e0] sm:$0xff]  ;;  %v609_v37 = vld [vmem:[%s4916_s18 + $0x810] sm:$0xff]  ;;  %v1896_v26 = vadd.f32 %v1895_v30, %v411_v14  ;;  %v2561_v47 = vadd.f32 %v2560_v33, %v981_v25  ;;  %v3548_v50 = vrot.slane %v3547_v35, 2 }
  0xdb   : > { %v795_v24 = vld [vmem:[%s4916_s18 + $0xde0] sm:$0xff]  ;;  %v801_v44 = vld [vmem:[%s4916_s18 + $0xe10] sm:$0xff]  ;;  %v2118_v46 = vadd.f32 %v2117_v32, %v603_v15  ;;  %v2781_v48 = vadd.f32 %v2780_v34, %v1161_v13 }
  0xdc   : > { %v1311_v28 = vld [vmem:[%s4916_s18 + $0x1e00] sm:$0xff]  ;;  %v1329_v45 = vld [vmem:[%s4916_s18 + $0x1e90] sm:$0xff]  ;;  %v2340_v54 = vadd.f32 %v2339_v40, %v795_v24  ;;  %v1897_v60 = vadd.f32 %v1896_v26, %v417_v23  ;;  %v3549_v59 = vadd.f32 %v3548_v50, %v3547_v35 }
  0xdd   : > { %v1323_v31 = vld [vmem:[%s4916_s18 + $0x1e60] sm:$0xff]  ;;  %v2997_v42 = vadd.f32 %v1317_v29, %v1311_v28  ;;  %v993_v52 = vld [vmem:[%s4916_s18 + $0x1410] sm:$0xff]  ;;  %v2119_v41 = vadd.f32 %v2118_v46, %v609_v37 }
  0xde   : > { %v987_v38 = vld [vmem:[%s4916_s18 + $0x13e0] sm:$0xff]  ;;  %v1173_v53 = vld [vmem:[%s4916_s18 + $0x19b0] sm:$0xff]  ;;  %v2341_v2 = vadd.f32 %v2340_v54, %v801_v44  ;;  %v3550_v11 = vrot.slane %v3549_v59, 1 }
  0xdf   : > { %v1167_v39 = vld [vmem:[%s4916_s18 + $0x1980] sm:$0xff]  ;;  %v2998_v55 = vadd.f32 %v2997_v42, %v1323_v31  ;;  %v429_v56 = vld [vmem:[%s4916_s18 + $0x270] sm:$0xff]  ;;  %v2562_v61 = vadd.f32 %v2561_v47, %v987_v38 }
  0xe0   : > { %v423_v43 = vld [vmem:[%s4916_s18 + $0x240] sm:$0xff]  ;;  %v2782_v62 = vadd.f32 %v2781_v48, %v1167_v39  ;;  %v621_v63 = vld [vmem:[%s4916_s18 + $0x870] sm:$0xff]  ;;  %v3551_v27 = vadd.f32 %v3550_v11, %v3549_v59 }
  0xe1   : > { %v615_v51 = vld [vmem:[%s4916_s18 + $0x840] sm:$0xff]  ;;  %v2999_v3 = vadd.f32 %v2998_v55, %v1329_v45  ;;  %v813_v5 = vld [vmem:[%s4916_s18 + $0xe70] sm:$0xff]  ;;  %v1898_v7 = vadd.f32 %v1897_v60, %v423_v43  ;;  %v2563_v9 = vadd.f32 %v2562_v61, %v993_v52 }
  0xe2   : > { %v807_v57 = vld [vmem:[%s4916_s18 + $0xe40] sm:$0xff]  ;;  %v1341_v6 = vld [vmem:[%s4916_s18 + $0x1ef0] sm:$0xff]  ;;  %v2120_v8 = vadd.f32 %v2119_v41, %v615_v51  ;;  %v2783_v10 = vadd.f32 %v2782_v62, %v1173_v53  ;;  %v3738_v42 = vsel %vm3723_vm6, %v3551_v27, %v3737_v12 }
  0xe3   : > { %v1335_v58 = vld [vmem:[%s4916_s18 + $0x1ec0] sm:$0xff]  ;;  %v441_v14 = vld [vmem:[%s4916_s18 + $0x2d0] sm:$0xff]  ;;  %v2342_v19 = vadd.f32 %v2341_v2, %v807_v57  ;;  %v1899_v23 = vadd.f32 %v1898_v7, %v429_v56  ;;  %v3789_v49 = vmul.f32 0.00390625, %v3738_v42 }
  0xe4   : > { %v999_v0 = vld [vmem:[%s4916_s18 + $0x1440] sm:$0xff]  ;;  %v1005_v16 = vld [vmem:[%s4916_s18 + $0x1470] sm:$0xff]  ;;  %v3000_v17 = vadd.f32 %v2999_v3, %v1335_v58  ;;  %v2121_v24 = vadd.f32 %v2120_v8, %v621_v63 }
  0xe5   : > { %v1179_v1 = vld [vmem:[%s4916_s18 + $0x19e0] sm:$0xff]  ;;  %v1185_v18 = vld [vmem:[%s4916_s18 + $0x1a10] sm:$0xff]  ;;  %v2564_v25 = vadd.f32 %v2563_v9, %v999_v0  ;;  %v2343_v32 = vadd.f32 %v2342_v19, %v813_v5  ;;  %3949 = vmatmul.f32.vlgmr.msra.gmra.mxu2 %v3789_v49 }
  0xe6   : > { %v435_v4 = vld [vmem:[%s4916_s18 + $0x2a0] sm:$0xff]  ;;  %v633_v20 = vld [vmem:[%s4916_s18 + $0x8d0] sm:$0xff]  ;;  %v2784_v13 = vadd.f32 %v2783_v10, %v1179_v1  ;;  %v3001_v33 = vadd.f32 %v3000_v17, %v1341_v6 }
  0xe7   : > { %v627_v15 = vld [vmem:[%s4916_s18 + $0x8a0] sm:$0xff]  ;;  %v825_v31 = vld [vmem:[%s4916_s18 + $0xed0] sm:$0xff]  ;;  %v1900_v37 = vadd.f32 %v1899_v23, %v435_v4  ;;  %v2565_v39 = vadd.f32 %v2564_v25, %v1005_v16 }
  0xe8   : > { %v819_v21 = vld [vmem:[%s4916_s18 + $0xea0] sm:$0xff]  ;;  %v1353_v35 = vld [vmem:[%s4916_s18 + $0x1f50] sm:$0xff]  ;;  %v2122_v38 = vadd.f32 %v2121_v24, %v627_v15  ;;  %v2785_v40 = vadd.f32 %v2784_v13, %v1185_v18 }
  0xe9   : > { %v1347_v22 = vld [vmem:[%s4916_s18 + $0x1f20] sm:$0xff]  ;;  %v453_v43 = vld [vmem:[%s4916_s18 + $0x330] sm:$0xff]  ;;  %v2344_v47 = vadd.f32 %v2343_v32, %v819_v21  ;;  %v1901_v53 = vadd.f32 %v1900_v37, %v441_v14 }
  0xea   : > { %v447_v28 = vld [vmem:[%s4916_s18 + $0x300] sm:$0xff]  ;;  %v645_v44 = vld [vmem:[%s4916_s18 + $0x930] sm:$0xff]  ;;  %v3002_v48 = vadd.f32 %v3001_v33, %v1347_v22  ;;  %v2123_v54 = vadd.f32 %v2122_v38, %v633_v20 }
  0xeb   : > { %v639_v29 = vld [vmem:[%s4916_s18 + $0x900] sm:$0xff]  ;;  %v1017_v26 = vld [vmem:[%s4916_s18 + $0x14d0] sm:$0xff]  ;;  %v2345_v41 = vadd.f32 %v2344_v47, %v825_v31  ;;  %v1902_v2 = vadd.f32 %v1901_v53, %v447_v28 }
  0xec   : > { %v1011_v30 = vld [vmem:[%s4916_s18 + $0x14a0] sm:$0xff]  ;;  %v1509_v46 = vld [vmem:[%s4916_s18 + $0x2430] sm:$0xff]  ;;  %v3003_v62 = vadd.f32 %v3002_v48, %v1353_v35  ;;  %v2124_v3 = vadd.f32 %v2123_v54, %v639_v29 }
  0xed   : > { %v1191_v34 = vld [vmem:[%s4916_s18 + $0x1a40] sm:$0xff]  ;;  %v1197_v50 = vld [vmem:[%s4916_s18 + $0x1a70] sm:$0xff]  ;;  %v2566_v55 = vadd.f32 %v2565_v39, %v1011_v30  ;;  %v1903_v18 = vadd.f32 %v1902_v2, %v453_v43 }
  0xee   : > { %v1503_v36 = vld [vmem:[%s4916_s18 + $0x2400] sm:$0xff]  ;;  %v837_v58 = vld [vmem:[%s4916_s18 + $0xf30] sm:$0xff]  ;;  %v2786_v61 = vadd.f32 %v2785_v40, %v1191_v34  ;;  %v2125_v19 = vadd.f32 %v2124_v3, %v645_v44 }
  0xef   : > { %v831_v45 = vld [vmem:[%s4916_s18 + $0xf00] sm:$0xff]  ;;  %v3219_v59 = vadd.f32 %v1509_v46, %v1503_v36  ;;  %v1365_v0 = vld [vmem:[%s4916_s18 + $0x1fb0] sm:$0xff]  ;;  %v2567_v4 = vadd.f32 %v2566_v55, %v1017_v26 }
  0xf0   : > { %v1359_v51 = vld [vmem:[%s4916_s18 + $0x1f80] sm:$0xff]  ;;  %v1521_v1 = vld [vmem:[%s4916_s18 + $0x2490] sm:$0xff]  ;;  %v2346_v9 = vadd.f32 %v2345_v41, %v831_v45  ;;  %v2787_v10 = vadd.f32 %v2786_v61, %v1197_v50 }
  0xf1   : > { %v1515_v52 = vld [vmem:[%s4916_s18 + $0x2460] sm:$0xff]  ;;  %v465_v5 = vld [vmem:[%s4916_s18 + $0x390] sm:$0xff]  ;;  %v3004_v11 = vadd.f32 %v3003_v62, %v1359_v51 }
  0xf2   : > { %v459_v56 = vld [vmem:[%s4916_s18 + $0x360] sm:$0xff]  ;;  %v657_v6 = vld [vmem:[%s4916_s18 + $0x990] sm:$0xff]  ;;  %v3220_v12 = vadd.f32 %v3219_v59, %v1515_v52  ;;  %v2347_v24 = vadd.f32 %v2346_v9, %v837_v58 }
  0xf3   : > { %v651_v57 = vld [vmem:[%s4916_s18 + $0x960] sm:$0xff]  ;;  %v1029_v8 = vld [vmem:[%s4916_s18 + $0x1530] sm:$0xff]  ;;  %v3005_v13 = vadd.f32 %v3004_v11, %v1365_v0  ;;  %v1904_v30 = vadd.f32 %v1903_v18, %v459_v56 }
  0xf4   : > { %v1023_v60 = vld [vmem:[%s4916_s18 + $0x1500] sm:$0xff]  ;;  %v1209_v14 = vld [vmem:[%s4916_s18 + $0x1ad0] sm:$0xff]  ;;  %v3221_v27 = vadd.f32 %v3220_v12, %v1521_v1  ;;  %v2126_v32 = vadd.f32 %v2125_v19, %v651_v57 }
  0xf5   : > { %v1203_v63 = vld [vmem:[%s4916_s18 + $0x1aa0] sm:$0xff]  ;;  %v2568_v17 = vadd.f32 %v2567_v4, %v1023_v60  ;;  %v849_v22 = vld [vmem:[%s4916_s18 + $0xf90] sm:$0xff]  ;;  %v1905_v47 = vadd.f32 %v1904_v30, %v465_v5 }
  0xf6   : > { %v843_v7 = vld [vmem:[%s4916_s18 + $0xf60] sm:$0xff]  ;;  %v2788_v25 = vadd.f32 %v2787_v10, %v1203_v63  ;;  %v1377_v29 = vld [vmem:[%s4916_s18 + $0x2010] sm:$0xff]  ;;  %v2127_v48 = vadd.f32 %v2126_v32, %v657_v6 }
  0xf7   : > { %v1371_v15 = vld [vmem:[%s4916_s18 + $0x1fe0] sm:$0xff]  ;;  %v1533_v31 = vld [vmem:[%s4916_s18 + $0x24f0] sm:$0xff]  ;;  %v2569_v33 = vadd.f32 %v2568_v17, %v1029_v8  ;;  %v2348_v39 = vadd.f32 %v2347_v24, %v843_v7 }
  0xf8   : > { %v1527_v16 = vld [vmem:[%s4916_s18 + $0x24c0] sm:$0xff]  ;;  %v477_v34 = vld [vmem:[%s4916_s18 + $0x3f0] sm:$0xff]  ;;  %v2789_v40 = vadd.f32 %v2788_v25, %v1209_v14  ;;  %v3006_v42 = vadd.f32 %v3005_v13, %v1371_v15 }
  0xf9   : > { %v471_v20 = vld [vmem:[%s4916_s18 + $0x3c0] sm:$0xff]  ;;  %v669_v35 = vld [vmem:[%s4916_s18 + $0x9f0] sm:$0xff]  ;;  %v3222_v43 = vadd.f32 %v3221_v27, %v1527_v16  ;;  %v2349_v55 = vadd.f32 %v2348_v39, %v849_v22 }
  0xfa   : > { %v663_v21 = vld [vmem:[%s4916_s18 + $0x9c0] sm:$0xff]  ;;  %v1041_v37 = vld [vmem:[%s4916_s18 + $0x1590] sm:$0xff]  ;;  %v3007_v57 = vadd.f32 %v3006_v42, %v1377_v29  ;;  %v1906_v62 = vadd.f32 %v1905_v47, %v471_v20 }
  0xfb   : > { %v1035_v23 = vld [vmem:[%s4916_s18 + $0x1560] sm:$0xff]  ;;  %v861_v44 = vld [vmem:[%s4916_s18 + $0xff0] sm:$0xff]  ;;  %v3223_v58 = vadd.f32 %v3222_v43, %v1533_v31  ;;  %v2128_v59 = vadd.f32 %v2127_v48, %v663_v21 }
  0xfc   : > { %v1215_v28 = vld [vmem:[%s4916_s18 + $0x1b00] sm:$0xff]  ;;  %v1221_v45 = vld [vmem:[%s4916_s18 + $0x1b30] sm:$0xff]  ;;  %v2570_v49 = vadd.f32 %v2569_v33, %v1035_v23  ;;  %v1907_v14 = vadd.f32 %v1906_v62, %v477_v34 }
  0xfd   : > { %v855_v36 = vld [vmem:[%s4916_s18 + $0xfc0] sm:$0xff]  ;;  %v1701_v54 = vld [vmem:[%s4916_s18 + $0x2a30] sm:$0xff]  ;;  %v2790_v56 = vadd.f32 %v2789_v40, %v1215_v28  ;;  %v2129_v15 = vadd.f32 %v2128_v59, %v669_v35 }
  0xfe   : > { %v1047_v38 = vld [vmem:[%s4916_s18 + $0x15c0] sm:$0xff]  ;;  %v1389_v60 = vld [vmem:[%s4916_s18 + $0x2070] sm:$0xff]  ;;  %v2571_v63 = vadd.f32 %v2570_v49, %v1041_v37  ;;  %v2350_v6 = vadd.f32 %v2349_v55, %v855_v36 }
  0xff   : > { %v1383_v26 = vld [vmem:[%s4916_s18 + $0x2040] sm:$0xff]  ;;  %v1545_v41 = vld [vmem:[%s4916_s18 + $0x2550] sm:$0xff]  ;;  %v2791_v7 = vadd.f32 %v2790_v56, %v1221_v45 }
 0x100   : > { %v1539_v46 = vld [vmem:[%s4916_s18 + $0x2520] sm:$0xff]  ;;  %v489_v1 = vld [vmem:[%s4916_s18 + $0x450] sm:$0xff]  ;;  %v3008_v8 = vadd.f32 %v3007_v57, %v1383_v26  ;;  %v2572_v16 = vadd.f32 %v2571_v63, %v1047_v38  ;;  %v2351_v23 = vadd.f32 %v2350_v6, %v861_v44 }
 0x101   : > { %v483_v50 = vld [vmem:[%s4916_s18 + $0x420] sm:$0xff]  ;;  %v681_v2 = vld [vmem:[%s4916_s18 + $0xa50] sm:$0xff]  ;;  %v3224_v9 = vadd.f32 %v3223_v58, %v1539_v46 }
 0x102   : > { %v675_v51 = vld [vmem:[%s4916_s18 + $0xa20] sm:$0xff]  ;;  %v1053_v4 = vld [vmem:[%s4916_s18 + $0x15f0] sm:$0xff]  ;;  %v3009_v25 = vadd.f32 %v3008_v8, %v1389_v60  ;;  %v1908_v31 = vadd.f32 %v1907_v14, %v483_v50 }
 0x103   : > { %v1227_v52 = vld [vmem:[%s4916_s18 + $0x1b60] sm:$0xff]  ;;  %v1713_v5 = vld [vmem:[%s4916_s18 + $0x2a90] sm:$0xff]  ;;  %v3225_v13 = vadd.f32 %v3224_v9, %v1545_v41  ;;  %v2130_v30 = vadd.f32 %v2129_v15, %v675_v51  ;;  %v2573_v32 = vadd.f32 %v2572_v16, %v1053_v4 }
 0x104   : > { %v1695_v53 = vld [vmem:[%s4916_s18 + $0x2a00] sm:$0xff]  ;;  %v1233_v10 = vld [vmem:[%s4916_s18 + $0x1b90] sm:$0xff]  ;;  %v2792_v24 = vadd.f32 %v2791_v7, %v1227_v52  ;;  %v1909_v46 = vadd.f32 %v1908_v31, %v489_v1 }
 0x105   : > { %v1707_v61 = vld [vmem:[%s4916_s18 + $0x2a60] sm:$0xff]  ;;  %v3441_v0 = vadd.f32 %v1701_v54, %v1695_v53  ;;  %v873_v20 = vld [vmem:[%s4916_s18 + $0x1050] sm:$0xff]  ;;  %v2131_v47 = vadd.f32 %v2130_v30, %v681_v2 }
 0x106   : > { %v867_v3 = vld [vmem:[%s4916_s18 + $0x1020] sm:$0xff]  ;;  %v1401_v28 = vld [vmem:[%s4916_s18 + $0x20d0] sm:$0xff]  ;;  %v2793_v40 = vadd.f32 %v2792_v24, %v1233_v10 }
 0x107   : > { %v1395_v11 = vld [vmem:[%s4916_s18 + $0x20a0] sm:$0xff]  ;;  %v3442_v18 = vadd.f32 %v3441_v0, %v1707_v61  ;;  %v1557_v29 = vld [vmem:[%s4916_s18 + $0x25b0] sm:$0xff]  ;;  %v2352_v39 = vadd.f32 %v2351_v23, %v867_v3 }
 0x108   : > { %v1551_v12 = vld [vmem:[%s4916_s18 + $0x2580] sm:$0xff]  ;;  %v501_v34 = vld [vmem:[%s4916_s18 + $0x4b0] sm:$0xff]  ;;  %v3010_v42 = vadd.f32 %v3009_v25, %v1395_v11 }
 0x109   : > { %v495_v19 = vld [vmem:[%s4916_s18 + $0x480] sm:$0xff]  ;;  %v3443_v33 = vadd.f32 %v3442_v18, %v1713_v5  ;;  %v693_v35 = vld [vmem:[%s4916_s18 + $0xab0] sm:$0xff]  ;;  %v3226_v43 = vadd.f32 %v3225_v13, %v1551_v12  ;;  %v2353_v55 = vadd.f32 %v2352_v39, %v873_v20 }
 0x10a   : > { %v687_v17 = vld [vmem:[%s4916_s18 + $0xa80] sm:$0xff]  ;;  %v1065_v37 = vld [vmem:[%s4916_s18 + $0x1650] sm:$0xff]  ;;  %v3011_v57 = vadd.f32 %v3010_v42, %v1401_v28  ;;  %v1910_v62 = vadd.f32 %v1909_v46, %v495_v19 }
 0x10b   : > { %v1059_v21 = vld [vmem:[%s4916_s18 + $0x1620] sm:$0xff]  ;;  %v1725_v38 = vld [vmem:[%s4916_s18 + $0x2af0] sm:$0xff]  ;;  %v3227_v58 = vadd.f32 %v3226_v43, %v1557_v29  ;;  %v2132_v59 = vadd.f32 %v2131_v47, %v687_v17 }
 0x10c   : > { %v1719_v22 = vld [vmem:[%s4916_s18 + $0x2ac0] sm:$0xff]  ;;  %v1245_v44 = vld [vmem:[%s4916_s18 + $0x1bf0] sm:$0xff]  ;;  %v2574_v48 = vadd.f32 %v2573_v32, %v1059_v21  ;;  %v1911_v14 = vadd.f32 %v1910_v62, %v501_v34 }
 0x10d   : > { %v1239_v27 = vld [vmem:[%s4916_s18 + $0x1bc0] sm:$0xff]  ;;  %v3444_v49 = vadd.f32 %v3443_v33, %v1719_v22  ;;  %v885_v52 = vld [vmem:[%s4916_s18 + $0x10b0] sm:$0xff]  ;;  %v2133_v15 = vadd.f32 %v2132_v59, %v693_v35 }
 0x10e   : > { %v879_v36 = vld [vmem:[%s4916_s18 + $0x1080] sm:$0xff]  ;;  %v2794_v56 = vadd.f32 %v2793_v40, %v1239_v27  ;;  %v1413_v41 = vld [vmem:[%s4916_s18 + $0x2130] sm:$0xff]  ;;  %v2575_v63 = vadd.f32 %v2574_v48, %v1065_v37 }
 0x10f   : > { %v1407_v45 = vld [vmem:[%s4916_s18 + $0x2100] sm:$0xff]  ;;  %v1569_v61 = vld [vmem:[%s4916_s18 + $0x2610] sm:$0xff]  ;;  %v3445_v0 = vadd.f32 %v3444_v49, %v1725_v38  ;;  %v2354_v6 = vadd.f32 %v2353_v55, %v879_v36 }
 0x110   : > { %v1563_v26 = vld [vmem:[%s4916_s18 + $0x25e0] sm:$0xff]  ;;  %v513_v1 = vld [vmem:[%s4916_s18 + $0x510] sm:$0xff]  ;;  %v2795_v7 = vadd.f32 %v2794_v56, %v1245_v44  ;;  %v3012_v8 = vadd.f32 %v3011_v57, %v1407_v45 }
 0x111   : > { %v507_v50 = vld [vmem:[%s4916_s18 + $0x4e0] sm:$0xff]  ;;  %v705_v2 = vld [vmem:[%s4916_s18 + $0xb10] sm:$0xff]  ;;  %v3228_v9 = vadd.f32 %v3227_v58, %v1563_v26  ;;  %v2355_v23 = vadd.f32 %v2354_v6, %v885_v52 }
 0x112   : > { %v699_v51 = vld [vmem:[%s4916_s18 + $0xae0] sm:$0xff]  ;;  %v1077_v4 = vld [vmem:[%s4916_s18 + $0x16b0] sm:$0xff]  ;;  %v3013_v25 = vadd.f32 %v3012_v8, %v1413_v41  ;;  %v1912_v31 = vadd.f32 %v1911_v14, %v507_v50 }
 0x113   : > { %v1071_v53 = vld [vmem:[%s4916_s18 + $0x1680] sm:$0xff]  ;;  %v1737_v5 = vld [vmem:[%s4916_s18 + $0x2b50] sm:$0xff]  ;;  %v3229_v13 = vadd.f32 %v3228_v9, %v1569_v61  ;;  %v2134_v30 = vadd.f32 %v2133_v15, %v699_v51 }
 0x114   : > { %v1731_v54 = vld [vmem:[%s4916_s18 + $0x2b20] sm:$0xff]  ;;  %v1257_v10 = vld [vmem:[%s4916_s18 + $0x1c50] sm:$0xff]  ;;  %v2576_v16 = vadd.f32 %v2575_v63, %v1071_v53  ;;  %v1913_v46 = vadd.f32 %v1912_v31, %v513_v1 }
 0x115   : > { %v1251_v60 = vld [vmem:[%s4916_s18 + $0x1c20] sm:$0xff]  ;;  %v3446_v18 = vadd.f32 %v3445_v0, %v1731_v54  ;;  %v897_v20 = vld [vmem:[%s4916_s18 + $0x1110] sm:$0xff]  ;;  %v2135_v47 = vadd.f32 %v2134_v30, %v705_v2 }
 0x116   : > { %v891_v3 = vld [vmem:[%s4916_s18 + $0x10e0] sm:$0xff]  ;;  %v2796_v24 = vadd.f32 %v2795_v7, %v1251_v60  ;;  %v1425_v28 = vld [vmem:[%s4916_s18 + $0x2190] sm:$0xff]  ;;  %v2577_v32 = vadd.f32 %v2576_v16, %v1077_v4 }
 0x117   : > { %v1419_v11 = vld [vmem:[%s4916_s18 + $0x2160] sm:$0xff]  ;;  %v1581_v29 = vld [vmem:[%s4916_s18 + $0x2670] sm:$0xff]  ;;  %v3447_v33 = vadd.f32 %v3446_v18, %v1737_v5  ;;  %v2356_v39 = vadd.f32 %v2355_v23, %v891_v3 }
 0x118   : > { %v1575_v12 = vld [vmem:[%s4916_s18 + $0x2640] sm:$0xff]  ;;  %v525_v34 = vld [vmem:[%s4916_s18 + $0x570] sm:$0xff]  ;;  %v2797_v40 = vadd.f32 %v2796_v24, %v1257_v10  ;;  %v3014_v42 = vadd.f32 %v3013_v25, %v1419_v11 }
 0x119   : > { %v519_v19 = vld [vmem:[%s4916_s18 + $0x540] sm:$0xff]  ;;  %v717_v35 = vld [vmem:[%s4916_s18 + $0xb70] sm:$0xff]  ;;  %v3230_v43 = vadd.f32 %v3229_v13, %v1575_v12  ;;  %v2357_v55 = vadd.f32 %v2356_v39, %v897_v20 }
 0x11a   : > { %v711_v17 = vld [vmem:[%s4916_s18 + $0xb40] sm:$0xff]  ;;  %v1089_v37 = vld [vmem:[%s4916_s18 + $0x1710] sm:$0xff]  ;;  %v3015_v57 = vadd.f32 %v3014_v42, %v1425_v28  ;;  %v1914_v62 = vadd.f32 %v1913_v46, %v519_v19 }
 0x11b   : > { %v1083_v21 = vld [vmem:[%s4916_s18 + $0x16e0] sm:$0xff]  ;;  %v1749_v38 = vld [vmem:[%s4916_s18 + $0x2bb0] sm:$0xff]  ;;  %v3231_v58 = vadd.f32 %v3230_v43, %v1581_v29  ;;  %v2136_v59 = vadd.f32 %v2135_v47, %v711_v17 }
 0x11c   : > { %v1743_v22 = vld [vmem:[%s4916_s18 + $0x2b80] sm:$0xff]  ;;  %v1269_v44 = vld [vmem:[%s4916_s18 + $0x1cb0] sm:$0xff]  ;;  %v2578_v48 = vadd.f32 %v2577_v32, %v1083_v21  ;;  %v1915_v14 = vadd.f32 %v1914_v62, %v525_v34 }
 0x11d   : > { %v1263_v27 = vld [vmem:[%s4916_s18 + $0x1c80] sm:$0xff]  ;;  %v3448_v49 = vadd.f32 %v3447_v33, %v1743_v22  ;;  %v909_v52 = vld [vmem:[%s4916_s18 + $0x1170] sm:$0xff]  ;;  %v2137_v15 = vadd.f32 %v2136_v59, %v717_v35 }
 0x11e   : > { %v903_v36 = vld [vmem:[%s4916_s18 + $0x1140] sm:$0xff]  ;;  %v2798_v56 = vadd.f32 %v2797_v40, %v1263_v27  ;;  %v1437_v41 = vld [vmem:[%s4916_s18 + $0x21f0] sm:$0xff]  ;;  %v2579_v63 = vadd.f32 %v2578_v48, %v1089_v37 }
 0x11f   : > { %v1431_v45 = vld [vmem:[%s4916_s18 + $0x21c0] sm:$0xff]  ;;  %v1593_v61 = vld [vmem:[%s4916_s18 + $0x26d0] sm:$0xff]  ;;  %v3449_v0 = vadd.f32 %v3448_v49, %v1749_v38  ;;  %v2358_v6 = vadd.f32 %v2357_v55, %v903_v36 }
 0x120   : > { %v1587_v26 = vld [vmem:[%s4916_s18 + $0x26a0] sm:$0xff]  ;;  %v537_v1 = vld [vmem:[%s4916_s18 + $0x5d0] sm:$0xff]  ;;  %v2799_v7 = vadd.f32 %v2798_v56, %v1269_v44  ;;  %v3016_v8 = vadd.f32 %v3015_v57, %v1431_v45 }
 0x121   : > { %v531_v50 = vld [vmem:[%s4916_s18 + $0x5a0] sm:$0xff]  ;;  %v729_v2 = vld [vmem:[%s4916_s18 + $0xbd0] sm:$0xff]  ;;  %v3232_v9 = vadd.f32 %v3231_v58, %v1587_v26  ;;  %v2359_v21 = vadd.f32 %v2358_v6, %v909_v52 }
 0x122   : > { %v723_v51 = vld [vmem:[%s4916_s18 + $0xba0] sm:$0xff]  ;;  %v1101_v4 = vld [vmem:[%s4916_s18 + $0x1770] sm:$0xff]  ;;  %v3017_v23 = vadd.f32 %v3016_v8, %v1437_v41  ;;  %v1916_v28 = vadd.f32 %v1915_v14, %v531_v50 }
 0x123   : > { %v1095_v53 = vld [vmem:[%s4916_s18 + $0x1740] sm:$0xff]  ;;  %v1761_v5 = vld [vmem:[%s4916_s18 + $0x2c10] sm:$0xff]  ;;  %v3233_v24 = vadd.f32 %v3232_v9, %v1593_v61  ;;  %v2138_v29 = vadd.f32 %v2137_v15, %v723_v51 }
 0x124   : > { %v1755_v54 = vld [vmem:[%s4916_s18 + $0x2be0] sm:$0xff]  ;;  %v1281_v10 = vld [vmem:[%s4916_s18 + $0x1d10] sm:$0xff]  ;;  %v2580_v16 = vadd.f32 %v2579_v63, %v1095_v53  ;;  %v1917_v42 = vadd.f32 %v1916_v28, %v537_v1 }
 0x125   : > { %v1275_v60 = vld [vmem:[%s4916_s18 + $0x1ce0] sm:$0xff]  ;;  %v3450_v18 = vadd.f32 %v3449_v0, %v1755_v54  ;;  %v921_v19 = vld [vmem:[%s4916_s18 + $0x11d0] sm:$0xff]  ;;  %v2139_v43 = vadd.f32 %v2138_v29, %v729_v2 }
 0x126   : > { %v915_v3 = vld [vmem:[%s4916_s18 + $0x11a0] sm:$0xff]  ;;  %v2800_v22 = vadd.f32 %v2799_v7, %v1275_v60  ;;  %v1449_v13 = vld [vmem:[%s4916_s18 + $0x2250] sm:$0xff]  ;;  %v2581_v31 = vadd.f32 %v2580_v16, %v1101_v4  ;;  %v1918_v53 = vrot.slane %v1917_v42, 4 }
 0x127   : > { %v1443_v11 = vld [vmem:[%s4916_s18 + $0x2220] sm:$0xff]  ;;  %v1605_v27 = vld [vmem:[%s4916_s18 + $0x2730] sm:$0xff]  ;;  %v3451_v30 = vadd.f32 %v3450_v18, %v1761_v5  ;;  %v2360_v34 = vadd.f32 %v2359_v21, %v915_v3  ;;  %v2140_v54 = vrot.slane %v2139_v43, 4 }
 0x128   : > { %v1599_v12 = vld [vmem:[%s4916_s18 + $0x2700] sm:$0xff]  ;;  %v1113_v32 = vld [vmem:[%s4916_s18 + $0x17d0] sm:$0xff]  ;;  %v2801_v35 = vadd.f32 %v2800_v22, %v1281_v10  ;;  %v3018_v36 = vadd.f32 %v3017_v23, %v1443_v11  ;;  %v1919_v63 = vadd.f32 %v1918_v53, %v1917_v42 }
 0x129   : > { %v1107_v17 = vld [vmem:[%s4916_s18 + $0x17a0] sm:$0xff]  ;;  %v1773_v33 = vld [vmem:[%s4916_s18 + $0x2c70] sm:$0xff]  ;;  %v3234_v37 = vadd.f32 %v3233_v24, %v1599_v12  ;;  %v2361_v46 = vadd.f32 %v2360_v34, %v921_v19  ;;  %v2141_v0 = vadd.f32 %v2140_v54, %v2139_v43 }
 0x12a   : > { %v1767_v20 = vld [vmem:[%s4916_s18 + $0x2c40] sm:$0xff]  ;;  %v1293_v38 = vld [vmem:[%s4916_s18 + $0x1d70] sm:$0xff]  ;;  %v2582_v44 = vadd.f32 %v2581_v31, %v1107_v17  ;;  %v3019_v48 = vadd.f32 %v3018_v36, %v1449_v13  ;;  %v1920_v19 = vrot.slane %v1919_v63, 2 }
 0x12b   : > { %v1287_v25 = vld [vmem:[%s4916_s18 + $0x1d40] sm:$0xff]  ;;  %v3452_v45 = vadd.f32 %v3451_v30, %v1767_v20  ;;  %v3235_v49 = vadd.f32 %v3234_v37, %v1605_v27  ;;  %v1461_v51 = vld [vmem:[%s4916_s18 + $0x22b0] sm:$0xff]  ;;  %v2362_v58 = vrot.slane %v2361_v46, 4  ;;  %v2142_v17 = vrot.slane %v2141_v0, 2 }
 0x12c   : > { %v1455_v39 = vld [vmem:[%s4916_s18 + $0x2280] sm:$0xff]  ;;  %v2802_v47 = vadd.f32 %v2801_v35, %v1287_v25  ;;  %v1617_v52 = vld [vmem:[%s4916_s18 + $0x2790] sm:$0xff]  ;;  %v2583_v55 = vadd.f32 %v2582_v44, %v1113_v32  ;;  %v1921_v35 = vadd.f32 %v1920_v19, %v1919_v63  ;;  %v360_v19 = vld [vmem:[%s4916_s18 + $0x48] sm:$0xff] }
 0x12d   : > { %v1611_v40 = vld [vmem:[%s4916_s18 + $0x2760] sm:$0xff]  ;;  %v3453_v56 = vadd.f32 %v3452_v45, %v1773_v33  ;;  %v1785_v57 = vld [vmem:[%s4916_s18 + $0x2cd0] sm:$0xff]  ;;  %v3020_v41 = vadd.f32 %v3019_v48, %v1455_v39  ;;  %v2363_v12 = vadd.f32 %v2362_v58, %v2361_v46  ;;  %v2143_v36 = vadd.f32 %v2142_v17, %v2141_v0  ;;  %v546_v17 = vld [vmem:[%s4916_s18 + $0x618] sm:$0xff] }
 0x12e   : > { %v1779_v26 = vld [vmem:[%s4916_s18 + $0x2ca0] sm:$0xff]  ;;  %v2803_v60 = vadd.f32 %v2802_v47, %v1293_v38  ;;  %v3236_v61 = vadd.f32 %v3235_v49, %v1611_v40  ;;  %v1305_v6 = vld [vmem:[%s4916_s18 + $0x1dd0] sm:$0xff]  ;;  %v2584_v9 = vrot.slane %v2583_v55, 4 }
 0x12f   : > { %v1299_v50 = vld [vmem:[%s4916_s18 + $0x1da0] sm:$0xff]  ;;  %v3454_v1 = vadd.f32 %v3453_v56, %v1779_v26  ;;  %v3021_v4 = vadd.f32 %v3020_v41, %v1461_v51  ;;  %v1473_v7 = vld [vmem:[%s4916_s18 + $0x2310] sm:$0xff]  ;;  %v2364_v31 = vrot.slane %v2363_v12, 2  ;;  %v1922_v51 = vrot.slane %v1921_v35, 1 }
 0x130   : > { %v1467_v62 = vld [vmem:[%s4916_s18 + $0x22e0] sm:$0xff]  ;;  %v2804_v3 = vadd.f32 %v2803_v60, %v1299_v50  ;;  %v3237_v5 = vadd.f32 %v3236_v61, %v1617_v52  ;;  %v1629_v8 = vld [vmem:[%s4916_s18 + $0x27f0] sm:$0xff]  ;;  %v2585_v27 = vadd.f32 %v2584_v9, %v2583_v55  ;;  %v2144_v52 = vrot.slane %v2143_v36, 1 }
 0x131   : > { %v1623_v59 = vld [vmem:[%s4916_s18 + $0x27c0] sm:$0xff]  ;;  %v3455_v10 = vadd.f32 %v3454_v1, %v1785_v57  ;;  %v1797_v11 = vld [vmem:[%s4916_s18 + $0x2d30] sm:$0xff]  ;;  %v3022_v14 = vadd.f32 %v3021_v4, %v1467_v62  ;;  %v2365_v47 = vadd.f32 %v2364_v31, %v2363_v12  ;;  %v1923_v1 = vadd.f32 %v1922_v51, %v1921_v35  ;;  %v354_v12 = vld [vmem:[%s4916_s18 + $0x18] sm:$0xff] }
 0x132   : > { %v1791_v2 = vld [vmem:[%s4916_s18 + $0x2d00] sm:$0xff]  ;;  %v3238_v15 = vadd.f32 %v3237_v5, %v1623_v59  ;;  %v2805_v22 = vadd.f32 %v2804_v3, %v1305_v6  ;;  %v1485_v25 = vld [vmem:[%s4916_s18 + $0x2370] sm:$0xff]  ;;  %v2586_v45 = vrot.slane %v2585_v27, 2  ;;  %v936_v31 = vld [vmem:[%s4916_s18 + $0x1248] sm:$0xff] }
 0x133   : > { %v1479_v16 = vld [vmem:[%s4916_s18 + $0x2340] sm:$0xff]  ;;  %v3456_v20 = vadd.f32 %v3455_v10, %v1791_v2  ;;  %v3023_v23 = vadd.f32 %v3022_v14, %v1473_v7  ;;  %v1641_v13 = vld [vmem:[%s4916_s18 + $0x2850] sm:$0xff]  ;;  %v2366_v62 = vrot.slane %v2365_v47, 1  ;;  %v2145_v2 = vadd.f32 %v2144_v52, %v2143_v36  ;;  %v750_v35 = vld [vmem:[%s4916_s18 + $0xc78] sm:$0xff] }
 0x134   : > { %v1635_v18 = vld [vmem:[%s4916_s18 + $0x2820] sm:$0xff]  ;;  %v3239_v24 = vadd.f32 %v3238_v15, %v1629_v8  ;;  %v1809_v29 = vld [vmem:[%s4916_s18 + $0x2d90] sm:$0xff]  ;;  %v2806_v39 = vrot.slane %v2805_v22, 4  ;;  %v2587_v60 = vadd.f32 %v2586_v45, %v2585_v27  ;;  %v1998_v36 = vadd.f32 %v360_v19, %v354_v12  ;;  %v582_v19 = vld [vmem:[%s4916_s18 + $0x738] sm:$0xff] }
 0x135   : > { %v1803_v21 = vld [vmem:[%s4916_s18 + $0x2d60] sm:$0xff]  ;;  %v3457_v28 = vadd.f32 %v3456_v20, %v1797_v11  ;;  %v3024_v30 = vadd.f32 %v3023_v23, %v1479_v16  ;;  %v1497_v43 = vld [vmem:[%s4916_s18 + $0x23d0] sm:$0xff]  ;;  %v2367_v15 = vadd.f32 %v2366_v62, %v2365_v47  ;;  %v552_v20 = vld [vmem:[%s4916_s18 + $0x648] sm:$0xff] }
 0x136   : > { %v3240_v32 = vadd.f32 %v3239_v24, %v1635_v18  ;;  %v1491_v33 = vld [vmem:[%s4916_s18 + $0x23a0] sm:$0xff]  ;;  %v1653_v44 = vld [vmem:[%s4916_s18 + $0x28b0] sm:$0xff]  ;;  %v2807_v55 = vadd.f32 %v2806_v39, %v2805_v22  ;;  %v2588_v10 = vrot.slane %v2587_v60, 1  ;;  %v3712_v22 = vsel %vm3711_vm0, %v2145_v2, %v1923_v1  ;;  %v366_v23 = vld [vmem:[%s4916_s18 + $0x78] sm:$0xff] }
 0x137   : > { %v1647_v34 = vld [vmem:[%s4916_s18 + $0x2880] sm:$0xff]  ;;  %v3458_v37 = vadd.f32 %v3457_v28, %v1803_v21  ;;  %v3025_v40 = vadd.f32 %v3024_v30, %v1485_v25  ;;  %v1821_v46 = vld [vmem:[%s4916_s18 + $0x2df0] sm:$0xff]  ;;  %v738_v24 = vld [vmem:[%s4916_s18 + $0xc18] sm:$0xff] }
 0x138   : > { %v1815_v38 = vld [vmem:[%s4916_s18 + $0x2dc0] sm:$0xff]  ;;  %v3241_v42 = vadd.f32 %v3240_v32, %v1641_v13  ;;  %v1665_v58 = vld [vmem:[%s4916_s18 + $0x2910] sm:$0xff]  ;;  %v2808_v6 = vrot.slane %v2807_v55, 2  ;;  %v744_v25 = vld [vmem:[%s4916_s18 + $0xc48] sm:$0xff] }
 0x139   : > { %v3459_v26 = vadd.f32 %v3458_v37, %v1809_v29  ;;  %v3026_v48 = vadd.f32 %v3025_v40, %v1491_v33  ;;  %v1659_v50 = vld [vmem:[%s4916_s18 + $0x28e0] sm:$0xff]  ;;  %v1833_v61 = vld [vmem:[%s4916_s18 + $0x2e50] sm:$0xff]  ;;  %v558_v28 = vld [vmem:[%s4916_s18 + $0x678] sm:$0xff]  ;;  %v2589_v33 = vadd.f32 %v2588_v10, %v2587_v60  ;;  %v2220_v37 = vadd.f32 %v552_v20, %v546_v17 }
 0x13a   : > { %v3242_v49 = vadd.f32 %v3241_v42, %v1647_v34  ;;  %v1827_v54 = vld [vmem:[%s4916_s18 + $0x2e20] sm:$0xff]  ;;  %v1677_v4 = vld [vmem:[%s4916_s18 + $0x2970] sm:$0xff]  ;;  %v2809_v13 = vadd.f32 %v2808_v6, %v2807_v55  ;;  %v930_v29 = vld [vmem:[%s4916_s18 + $0x1218] sm:$0xff]  ;;  %v3714_v40 = vsel %vm3713_vm1, %v2367_v15, %v3712_v22  ;;  %v2442_v45 = vadd.f32 %v744_v25, %v738_v24 }
 0x13b   : > { %v3460_v53 = vadd.f32 %v3459_v26, %v1815_v38  ;;  %v3027_v56 = vadd.f32 %v3026_v48, %v1497_v43  ;;  %v1671_v0 = vld [vmem:[%s4916_s18 + $0x2940] sm:$0xff]  ;;  %v1845_v9 = vld [vmem:[%s4916_s18 + $0x2eb0] sm:$0xff]  ;;  %v372_v42 = vld [vmem:[%s4916_s18 + $0xa8] sm:$0xff]  ;;  %v1999_v48 = vadd.f32 %v1998_v36, %v366_v23  ;;  %v3716_v2 = vsel %vm3715_vm2, %v2589_v33, %v3714_v40 }
 0x13c   : > { %v3243_v57 = vadd.f32 %v3242_v49, %v1653_v44  ;;  %v1839_v5 = vld [vmem:[%s4916_s18 + $0x2e80] sm:$0xff]  ;;  %v1689_v30 = vld [vmem:[%s4916_s18 + $0x29d0] sm:$0xff]  ;;  %v564_v43 = vld [vmem:[%s4916_s18 + $0x6a8] sm:$0xff]  ;;  %v2221_v49 = vadd.f32 %v2220_v37, %v558_v28  ;;  %v2810_v52 = vrot.slane %v2809_v13, 1 }
 0x13d   : > { %v3461_v41 = vadd.f32 %v3460_v53, %v1821_v46  ;;  %v3028_v59 = vrot.slane %v3027_v56, 4  ;;  %v1683_v8 = vld [vmem:[%s4916_s18 + $0x29a0] sm:$0xff]  ;;  %v1857_v32 = vld [vmem:[%s4916_s18 + $0x2f10] sm:$0xff]  ;;  %v942_v44 = vld [vmem:[%s4916_s18 + $0x1278] sm:$0xff]  ;;  %v2000_v62 = vadd.f32 %v1999_v48, %v372_v42 }
 0x13e   : > { %v3244_v63 = vadd.f32 %v3243_v57, %v1659_v50  ;;  %v1851_v14 = vld [vmem:[%s4916_s18 + $0x2ee0] sm:$0xff]  ;;  %v756_v47 = vld [vmem:[%s4916_s18 + $0xca8] sm:$0xff]  ;;  %v2664_v50 = vadd.f32 %v936_v31, %v930_v29  ;;  %v1869_v51 = vld [vmem:[%s4916_s18 + $0x2f70] sm:$0xff]  ;;  %v2443_v57 = vadd.f32 %v2442_v45, %v750_v35  ;;  %v2811_v15 = vadd.f32 %v2810_v52, %v2809_v13 }
 0x13f   : > { %v3462_v3 = vadd.f32 %v3461_v41, %v1827_v54  ;;  %v3029_v16 = vadd.f32 %v3028_v59, %v3027_v56  ;;  %v1863_v26 = vld [vmem:[%s4916_s18 + $0x2f40] sm:$0xff]  ;;  %v378_v54 = vld [vmem:[%s4916_s18 + $0xd8] sm:$0xff]  ;;  %v948_v56 = vld [vmem:[%s4916_s18 + $0x12a8] sm:$0xff]  ;;  %v2222_v59 = vadd.f32 %v2221_v49, %v564_v43 }
 0x140   : > { %v3245_v7 = vadd.f32 %v3244_v63, %v1665_v58  ;;  %v570_v55 = vld [vmem:[%s4916_s18 + $0x6d8] sm:$0xff]  ;;  %v384_v60 = vld [vmem:[%s4916_s18 + $0x108] sm:$0xff]  ;;  %v2665_v63 = vadd.f32 %v2664_v50, %v942_v44  ;;  %v2444_v6 = vadd.f32 %v2443_v57, %v756_v47  ;;  %v1881_v22 = vld [vmem:[%s4916_s18 + $0x2fd0] sm:$0xff] }
 0x141   : > { %v3463_v11 = vadd.f32 %v3462_v3, %v1833_v61  ;;  %v3030_v38 = vrot.slane %v3029_v16, 2  ;;  %v762_v41 = vld [vmem:[%s4916_s18 + $0xcd8] sm:$0xff]  ;;  %v576_v3 = vld [vmem:[%s4916_s18 + $0x708] sm:$0xff]  ;;  %v2223_v12 = vadd.f32 %v2222_v59, %v570_v55 }
 0x142   : > { %v3246_v18 = vadd.f32 %v3245_v7, %v1671_v0  ;;  %v1122_v61 = vld [vmem:[%s4916_s18 + $0x1818] sm:$0xff]  ;;  %v1875_v7 = vld [vmem:[%s4916_s18 + $0x2fa0] sm:$0xff]  ;;  %v960_v17 = vld [vmem:[%s4916_s18 + $0x1308] sm:$0xff]  ;;  %v2445_v20 = vadd.f32 %v2444_v6, %v762_v41 }
 0x143   : > { %v3464_v21 = vadd.f32 %v3463_v11, %v1839_v5  ;;  %v3031_v0 = vadd.f32 %v3030_v38, %v3029_v16  ;;  %v1128_v5 = vld [vmem:[%s4916_s18 + $0x1848] sm:$0xff]  ;;  %v1134_v10 = vld [vmem:[%s4916_s18 + $0x1878] sm:$0xff]  ;;  %v2001_v11 = vadd.f32 %v2000_v62, %v378_v54  ;;  %v2224_v28 = vadd.f32 %v2223_v12, %v576_v3 }
 0x144   : > { %v3247_v27 = vadd.f32 %v3246_v18, %v1677_v4  ;;  %v954_v4 = vld [vmem:[%s4916_s18 + $0x12d8] sm:$0xff]  ;;  %v1140_v25 = vld [vmem:[%s4916_s18 + $0x18a8] sm:$0xff] }
 0x145   : > { %v3465_v34 = vadd.f32 %v3464_v21, %v1845_v9  ;;  %v768_v9 = vld [vmem:[%s4916_s18 + $0xd08] sm:$0xff]  ;;  %v390_v18 = vld [vmem:[%s4916_s18 + $0x138] sm:$0xff]  ;;  %v2886_v21 = vadd.f32 %v1128_v5, %v1122_v61  ;;  %v3032_v13 = vrot.slane %v3031_v0, 1  ;;  %v2225_v40 = vadd.f32 %v2224_v28, %v582_v19 }
 0x146   : > { %v3248_v39 = vadd.f32 %v3247_v27, %v1683_v8  ;;  %v774_v24 = vld [vmem:[%s4916_s18 + $0xd38] sm:$0xff]  ;;  %v2002_v27 = vadd.f32 %v2001_v11, %v384_v60  ;;  %v780_v37 = vld [vmem:[%s4916_s18 + $0xd68] sm:$0xff] }
 0x147   : > { %v3466_v46 = vadd.f32 %v3465_v34, %v1851_v14  ;;  %v2666_v14 = vadd.f32 %v2665_v63, %v948_v56  ;;  %v966_v33 = vld [vmem:[%s4916_s18 + $0x1338] sm:$0xff]  ;;  %v2446_v34 = vadd.f32 %v2445_v20, %v768_v9  ;;  %v2887_v35 = vadd.f32 %v2886_v21, %v1134_v10  ;;  %v408_v49 = vld [vmem:[%s4916_s18 + $0x1c8] sm:$0xff] }
 0x148   : > { %v3249_v53 = vadd.f32 %v3248_v39, %v1689_v30  ;;  %v396_v30 = vld [vmem:[%s4916_s18 + $0x168] sm:$0xff]  ;;  %v1146_v38 = vld [vmem:[%s4916_s18 + $0x18d8] sm:$0xff]  ;;  %v2003_v39 = vadd.f32 %v2002_v27, %v390_v18  ;;  %v3033_v55 = vadd.f32 %v3032_v13, %v3031_v0  ;;  %v3718_v56 = vsel %vm3717_vm3, %v2811_v15, %v3716_v2 }
 0x149   : > { %v3467_v58 = vadd.f32 %v3466_v46, %v1857_v32  ;;  %v2667_v29 = vadd.f32 %v2666_v14, %v954_v4  ;;  %v588_v32 = vld [vmem:[%s4916_s18 + $0x768] sm:$0xff]  ;;  %v402_v44 = vld [vmem:[%s4916_s18 + $0x198] sm:$0xff]  ;;  %v2447_v46 = vadd.f32 %v2446_v34, %v774_v24  ;;  %v2888_v47 = vadd.f32 %v2887_v35, %v1140_v25 }
 0x14a   : > { %v3250_v1 = vrot.slane %v3249_v53, 4  ;;  %v594_v45 = vld [vmem:[%s4916_s18 + $0x798] sm:$0xff]  ;;  %v2004_v52 = vadd.f32 %v2003_v39, %v396_v30  ;;  %v792_v63 = vld [vmem:[%s4916_s18 + $0xdc8] sm:$0xff] }
 0x14b   : > { %v3468_v8 = vadd.f32 %v3467_v58, %v1863_v26  ;;  %v2668_v42 = vadd.f32 %v2667_v29, %v960_v17  ;;  %v972_v26 = vld [vmem:[%s4916_s18 + $0x1368] sm:$0xff]  ;;  %v786_v50 = vld [vmem:[%s4916_s18 + $0xd98] sm:$0xff]  ;;  %v2448_v41 = vadd.f32 %v2447_v46, %v780_v37  ;;  %v2889_v61 = vadd.f32 %v2888_v47, %v1146_v38 }
 0x14c   : > { %v3251_v16 = vadd.f32 %v3250_v1, %v3249_v53  ;;  %v2226_v53 = vadd.f32 %v2225_v40, %v588_v32  ;;  %v414_v57 = vld [vmem:[%s4916_s18 + $0x1f8] sm:$0xff]  ;;  %v600_v58 = vld [vmem:[%s4916_s18 + $0x7c8] sm:$0xff]  ;;  %v2005_v3 = vadd.f32 %v2004_v52, %v402_v44  ;;  %v3720_v17 = vsel %vm3719_vm4, %v3033_v55, %v3718_v56 }
 0x14d   : > { %v3469_v23 = vadd.f32 %v3468_v8, %v1869_v51  ;;  %v1152_v51 = vld [vmem:[%s4916_s18 + $0x1908] sm:$0xff]  ;;  %v2669_v54 = vadd.f32 %v2668_v42, %v966_v33  ;;  %v978_v60 = vld [vmem:[%s4916_s18 + $0x1398] sm:$0xff]  ;;  %v2449_v9 = vadd.f32 %v2448_v41, %v786_v50 }
 0x14e   : > { %v3252_v31 = vrot.slane %v3251_v16, 2  ;;  %v606_v59 = vld [vmem:[%s4916_s18 + $0x7f8] sm:$0xff]  ;;  %v2227_v4 = vadd.f32 %v2226_v53, %v594_v45  ;;  %v420_v2 = vld [vmem:[%s4916_s18 + $0x228] sm:$0xff]  ;;  %v2890_v10 = vadd.f32 %v2889_v61, %v1152_v51 }
 0x14f   : > { %v3470_v36 = vadd.f32 %v3469_v23, %v1875_v7  ;;  %v1158_v1 = vld [vmem:[%s4916_s18 + $0x1938] sm:$0xff]  ;;  %v2670_v0 = vadd.f32 %v2669_v54, %v972_v26  ;;  %v984_v6 = vld [vmem:[%s4916_s18 + $0x13c8] sm:$0xff]  ;;  %v2450_v23 = vadd.f32 %v2449_v9, %v792_v63 }
 0x150   : > { %v3253_v43 = vadd.f32 %v3252_v31, %v3251_v16  ;;  %v1314_v7 = vld [vmem:[%s4916_s18 + $0x1e18] sm:$0xff]  ;;  %v1320_v8 = vld [vmem:[%s4916_s18 + $0x1e48] sm:$0xff]  ;;  %v2006_v16 = vadd.f32 %v2005_v3, %v408_v49  ;;  %v2228_v18 = vadd.f32 %v2227_v4, %v600_v58  ;;  %v2891_v24 = vadd.f32 %v2890_v10, %v1158_v1 }
 0x151   : > { %v3471_v48 = vadd.f32 %v3470_v36, %v1881_v22  ;;  %v798_v12 = vld [vmem:[%s4916_s18 + $0xdf8] sm:$0xff]  ;;  %v1164_v14 = vld [vmem:[%s4916_s18 + $0x1968] sm:$0xff]  ;;  %v2671_v19 = vadd.f32 %v2670_v0, %v978_v60  ;;  %v3108_v25 = vadd.f32 %v1320_v8, %v1314_v7 }
 0x152   : > { %v3254_v5 = vrot.slane %v3253_v43, 1  ;;  %v1326_v15 = vld [vmem:[%s4916_s18 + $0x1e78] sm:$0xff]  ;;  %v612_v21 = vld [vmem:[%s4916_s18 + $0x828] sm:$0xff]  ;;  %v2007_v31 = vadd.f32 %v2006_v16, %v414_v57  ;;  %v2229_v30 = vadd.f32 %v2228_v18, %v606_v59  ;;  %v2451_v37 = vadd.f32 %v2450_v23, %v798_v12 }
 0x153   : > { %v3472_v62 = vrot.slane %v3471_v48, 4  ;;  %v426_v20 = vld [vmem:[%s4916_s18 + $0x258] sm:$0xff]  ;;  %v804_v28 = vld [vmem:[%s4916_s18 + $0xe28] sm:$0xff]  ;;  %v2672_v32 = vadd.f32 %v2671_v19, %v984_v6  ;;  %v2892_v38 = vadd.f32 %v2891_v24, %v1164_v14  ;;  %v3109_v39 = vadd.f32 %v3108_v25, %v1326_v15 }
 0x154   : > { %v990_v22 = vld [vmem:[%s4916_s18 + $0x13f8] sm:$0xff]  ;;  %v1332_v13 = vld [vmem:[%s4916_s18 + $0x1ea8] sm:$0xff]  ;;  %v3255_v33 = vadd.f32 %v3254_v5, %v3253_v43  ;;  %v2008_v26 = vadd.f32 %v2007_v31, %v420_v2  ;;  %v2230_v46 = vadd.f32 %v2229_v30, %v612_v21  ;;  %v2452_v50 = vadd.f32 %v2451_v37, %v804_v28 }
 0x155   : > { %v3473_v11 = vadd.f32 %v3472_v62, %v3471_v48  ;;  %v1170_v29 = vld [vmem:[%s4916_s18 + $0x1998] sm:$0xff]  ;;  %v432_v34 = vld [vmem:[%s4916_s18 + $0x288] sm:$0xff]  ;;  %v2673_v47 = vadd.f32 %v2672_v32, %v990_v22  ;;  %v3110_v52 = vadd.f32 %v3109_v39, %v1332_v13 }
 0x156   : > { %v618_v35 = vld [vmem:[%s4916_s18 + $0x858] sm:$0xff]  ;;  %v996_v36 = vld [vmem:[%s4916_s18 + $0x1428] sm:$0xff]  ;;  %v2893_v51 = vadd.f32 %v2892_v38, %v1170_v29  ;;  %v2009_v57 = vadd.f32 %v2008_v26, %v426_v20  ;;  %v3722_v41 = vsel %vm3721_vm5, %v3255_v33, %v3720_v17 }
 0x157   : > { %v3474_v27 = vrot.slane %v3473_v11, 2  ;;  %v810_v42 = vld [vmem:[%s4916_s18 + $0xe58] sm:$0xff]  ;;  %v1176_v44 = vld [vmem:[%s4916_s18 + $0x19c8] sm:$0xff]  ;;  %v2231_v58 = vadd.f32 %v2230_v46, %v618_v35  ;;  %v2674_v60 = vadd.f32 %v2673_v47, %v996_v36 }
 0x158   : > { %v1338_v45 = vld [vmem:[%s4916_s18 + $0x1ed8] sm:$0xff]  ;;  %v624_v48 = vld [vmem:[%s4916_s18 + $0x888] sm:$0xff]  ;;  %v2453_v1 = vadd.f32 %v2452_v50, %v810_v42  ;;  %v2894_v3 = vadd.f32 %v2893_v51, %v1176_v44  ;;  %v2010_v7 = vadd.f32 %v2009_v57, %v432_v34 }
 0x159   : > { %v3475_v40 = vadd.f32 %v3474_v27, %v3473_v11  ;;  %v438_v43 = vld [vmem:[%s4916_s18 + $0x2b8] sm:$0xff]  ;;  %v816_v54 = vld [vmem:[%s4916_s18 + $0xe88] sm:$0xff]  ;;  %v3111_v4 = vadd.f32 %v3110_v52, %v1338_v45  ;;  %v2232_v8 = vadd.f32 %v2231_v58, %v624_v48 }
 0x15a   : > { %v1002_v49 = vld [vmem:[%s4916_s18 + $0x1458] sm:$0xff]  ;;  %v1344_v56 = vld [vmem:[%s4916_s18 + $0x1f08] sm:$0xff]  ;;  %v2454_v16 = vadd.f32 %v2453_v1, %v816_v54  ;;  %v2011_v23 = vadd.f32 %v2010_v7, %v438_v43 }
 0x15b   : > { %v3476_v53 = vrot.slane %v3475_v40, 1  ;;  %v1182_v55 = vld [vmem:[%s4916_s18 + $0x19f8] sm:$0xff]  ;;  %v444_v61 = vld [vmem:[%s4916_s18 + $0x2e8] sm:$0xff]  ;;  %v2675_v9 = vadd.f32 %v2674_v60, %v1002_v49  ;;  %v3112_v19 = vadd.f32 %v3111_v4, %v1344_v56 }
 0x15c   : > { %v630_v62 = vld [vmem:[%s4916_s18 + $0x8b8] sm:$0xff]  ;;  %v636_v59 = vld [vmem:[%s4916_s18 + $0x8e8] sm:$0xff]  ;;  %v2895_v18 = vadd.f32 %v2894_v3, %v1182_v55  ;;  %v2012_v37 = vadd.f32 %v2011_v23, %v444_v61 }
 0x15d   : > { %v1008_v63 = vld [vmem:[%s4916_s18 + $0x1488] sm:$0xff]  ;;  %v3477_v0 = vadd.f32 %v3476_v53, %v3475_v40  ;;  %v822_v5 = vld [vmem:[%s4916_s18 + $0xeb8] sm:$0xff]  ;;  %v2233_v24 = vadd.f32 %v2232_v8, %v630_v62 }
 0x15e   : > { %v1188_v2 = vld [vmem:[%s4916_s18 + $0x1a28] sm:$0xff]  ;;  %v1350_v6 = vld [vmem:[%s4916_s18 + $0x1f38] sm:$0xff]  ;;  %v2676_v25 = vadd.f32 %v2675_v9, %v1008_v63  ;;  %v2455_v30 = vadd.f32 %v2454_v16, %v822_v5 }
 0x15f   : > { %v450_v10 = vld [vmem:[%s4916_s18 + $0x318] sm:$0xff]  ;;  %v828_v12 = vld [vmem:[%s4916_s18 + $0xee8] sm:$0xff]  ;;  %v3724_v17 = vsel %vm3723_vm6, %v3477_v0, %v3722_v41  ;;  %v2896_v32 = vadd.f32 %v2895_v18, %v1188_v2  ;;  %v3113_v33 = vadd.f32 %v3112_v19, %v1350_v6  ;;  %v2234_v38 = vadd.f32 %v2233_v24, %v636_v59 }
 0x160   : > { %v642_v11 = vld [vmem:[%s4916_s18 + $0x918] sm:$0xff]  ;;  %v1356_v20 = vld [vmem:[%s4916_s18 + $0x1f68] sm:$0xff]  ;;  %v3787_v27 = vmul.f32 0.00390625, %v3724_v17  ;;  %v2456_v46 = vadd.f32 %v2455_v30, %v828_v12  ;;  %v2013_v51 = vadd.f32 %v2012_v37, %v450_v10 }
 0x161   : > { %v1014_v14 = vld [vmem:[%s4916_s18 + $0x14b8] sm:$0xff]  ;;  %v1512_v22 = vld [vmem:[%s4916_s18 + $0x2448] sm:$0xff]  ;;  %v3114_v43 = vadd.f32 %v3113_v33, %v1356_v20  ;;  %v2235_v52 = vadd.f32 %v2234_v38, %v642_v11 }
 0x162   : > { %v1194_v15 = vld [vmem:[%s4916_s18 + $0x1a58] sm:$0xff]  ;;  %v456_v28 = vld [vmem:[%s4916_s18 + $0x348] sm:$0xff]  ;;  %v2677_v39 = vadd.f32 %v2676_v25, %v1014_v14  ;;  %3909 = vmatmul.f32.vlgmr.msra.gmra.mxu0 %v3787_v27 }
 0x163   : > { %v1506_v21 = vld [vmem:[%s4916_s18 + $0x2418] sm:$0xff]  ;;  %v648_v29 = vld [vmem:[%s4916_s18 + $0x948] sm:$0xff]  ;;  %v2897_v47 = vadd.f32 %v2896_v32, %v1194_v15  ;;  %v2014_v1 = vadd.f32 %v2013_v51, %v456_v28 }
 0x164   : > { %v1020_v13 = vld [vmem:[%s4916_s18 + $0x14e8] sm:$0xff]  ;;  %v1518_v31 = vld [vmem:[%s4916_s18 + $0x2478] sm:$0xff]  ;;  %v3330_v40 = vadd.f32 %v1512_v22, %v1506_v21  ;;  %v2236_v3 = vadd.f32 %v2235_v52, %v648_v29 }
 0x165   : > { %v834_v34 = vld [vmem:[%s4916_s18 + $0xf18] sm:$0xff]  ;;  %v1200_v35 = vld [vmem:[%s4916_s18 + $0x1a88] sm:$0xff]  ;;  %v2678_v53 = vadd.f32 %v2677_v39, %v1020_v13 }
 0x166   : > { %v1362_v36 = vld [vmem:[%s4916_s18 + $0x1f98] sm:$0xff]  ;;  %v1524_v26 = vld [vmem:[%s4916_s18 + $0x24a8] sm:$0xff]  ;;  %v3331_v54 = vadd.f32 %v3330_v40, %v1518_v31  ;;  %v2457_v60 = vadd.f32 %v2456_v46, %v834_v34  ;;  %v2898_v41 = vadd.f32 %v2897_v47, %v1200_v35 }
 0x167   : > { %v462_v42 = vld [vmem:[%s4916_s18 + $0x378] sm:$0xff]  ;;  %v840_v48 = vld [vmem:[%s4916_s18 + $0xf48] sm:$0xff]  ;;  %v3115_v61 = vadd.f32 %v3114_v43, %v1362_v36 }
 0x168   : > { %v654_v44 = vld [vmem:[%s4916_s18 + $0x978] sm:$0xff]  ;;  %v1368_v50 = vld [vmem:[%s4916_s18 + $0x1fc8] sm:$0xff]  ;;  %v3332_v0 = vadd.f32 %v3331_v54, %v1524_v26  ;;  %v2458_v8 = vadd.f32 %v2457_v60, %v840_v48  ;;  %v2015_v15 = vadd.f32 %v2014_v1, %v462_v42 }
 0x169   : > { %v1026_v45 = vld [vmem:[%s4916_s18 + $0x1518] sm:$0xff]  ;;  %v468_v55 = vld [vmem:[%s4916_s18 + $0x3a8] sm:$0xff]  ;;  %v3116_v10 = vadd.f32 %v3115_v61, %v1368_v50  ;;  %v2237_v16 = vadd.f32 %v2236_v3, %v654_v44 }
 0x16a   : > { %v1206_v49 = vld [vmem:[%s4916_s18 + $0x1ab8] sm:$0xff]  ;;  %v660_v56 = vld [vmem:[%s4916_s18 + $0x9a8] sm:$0xff]  ;;  %v2679_v4 = vadd.f32 %v2678_v53, %v1026_v45  ;;  %v2016_v30 = vadd.f32 %v2015_v15, %v468_v55 }
 0x16b   : > { %v1032_v57 = vld [vmem:[%s4916_s18 + $0x1548] sm:$0xff]  ;;  %v1530_v58 = vld [vmem:[%s4916_s18 + $0x24d8] sm:$0xff]  ;;  %v2899_v9 = vadd.f32 %v2898_v41, %v1206_v49  ;;  %v2238_v32 = vadd.f32 %v2237_v16, %v660_v56 }
 0x16c   : > { %v846_v62 = vld [vmem:[%s4916_s18 + $0xf78] sm:$0xff]  ;;  %v1212_v59 = vld [vmem:[%s4916_s18 + $0x1ae8] sm:$0xff]  ;;  %v2680_v18 = vadd.f32 %v2679_v4, %v1032_v57  ;;  %v3333_v19 = vadd.f32 %v3332_v0, %v1530_v58 }
 0x16d   : > { %v1374_v63 = vld [vmem:[%s4916_s18 + $0x1ff8] sm:$0xff]  ;;  %v1536_v7 = vld [vmem:[%s4916_s18 + $0x2508] sm:$0xff]  ;;  %v2459_v24 = vadd.f32 %v2458_v8, %v846_v62  ;;  %v2900_v25 = vadd.f32 %v2899_v9, %v1212_v59 }
 0x16e   : > { %v474_v5 = vld [vmem:[%s4916_s18 + $0x3d8] sm:$0xff]  ;;  %v852_v11 = vld [vmem:[%s4916_s18 + $0xfa8] sm:$0xff]  ;;  %v3117_v27 = vadd.f32 %v3116_v10, %v1374_v63  ;;  %v3334_v34 = vadd.f32 %v3333_v19, %v1536_v7 }
 0x16f   : > { %v666_v2 = vld [vmem:[%s4916_s18 + $0x9d8] sm:$0xff]  ;;  %v1380_v14 = vld [vmem:[%s4916_s18 + $0x2028] sm:$0xff]  ;;  %v2460_v40 = vadd.f32 %v2459_v24, %v852_v11  ;;  %v2017_v47 = vadd.f32 %v2016_v30, %v474_v5 }
 0x170   : > { %v1038_v6 = vld [vmem:[%s4916_s18 + $0x1578] sm:$0xff]  ;;  %v480_v17 = vld [vmem:[%s4916_s18 + $0x408] sm:$0xff]  ;;  %v3118_v44 = vadd.f32 %v3117_v27, %v1380_v14  ;;  %v2239_v43 = vadd.f32 %v2238_v32, %v666_v2 }
 0x171   : > { %v1218_v12 = vld [vmem:[%s4916_s18 + $0x1b18] sm:$0xff]  ;;  %v672_v20 = vld [vmem:[%s4916_s18 + $0xa08] sm:$0xff]  ;;  %v2681_v33 = vadd.f32 %v2680_v18, %v1038_v6  ;;  %v2018_v62 = vadd.f32 %v2017_v47, %v480_v17 }
 0x172   : > { %v858_v21 = vld [vmem:[%s4916_s18 + $0xfd8] sm:$0xff]  ;;  %v1044_v22 = vld [vmem:[%s4916_s18 + $0x15a8] sm:$0xff]  ;;  %v2901_v42 = vadd.f32 %v2900_v25, %v1218_v12  ;;  %v2240_v59 = vadd.f32 %v2239_v43, %v672_v20 }
 0x173   : > { %v1542_v23 = vld [vmem:[%s4916_s18 + $0x2538] sm:$0xff]  ;;  %v864_v28 = vld [vmem:[%s4916_s18 + $0x1008] sm:$0xff]  ;;  %v2682_v48 = vadd.f32 %v2681_v33, %v1044_v22  ;;  %v2461_v55 = vadd.f32 %v2460_v40, %v858_v21 }
 0x174   : > { %v1224_v29 = vld [vmem:[%s4916_s18 + $0x1b48] sm:$0xff]  ;;  %v1386_v13 = vld [vmem:[%s4916_s18 + $0x2058] sm:$0xff]  ;;  %v3335_v49 = vadd.f32 %v3334_v34, %v1542_v23 }
 0x175   : > { %v1698_v31 = vld [vmem:[%s4916_s18 + $0x2a18] sm:$0xff]  ;;  %v1548_v38 = vld [vmem:[%s4916_s18 + $0x2568] sm:$0xff]  ;;  %v2902_v56 = vadd.f32 %v2901_v42, %v1224_v29  ;;  %v3119_v57 = vadd.f32 %v3118_v44, %v1386_v13  ;;  %v2462_v6 = vadd.f32 %v2461_v55, %v864_v28 }
 0x176   : > { %v486_v35 = vld [vmem:[%s4916_s18 + $0x438] sm:$0xff]  ;;  %v1704_v39 = vld [vmem:[%s4916_s18 + $0x2a48] sm:$0xff]  ;;  %v3336_v1 = vadd.f32 %v3335_v49, %v1548_v38 }
 0x177   : > { %v678_v36 = vld [vmem:[%s4916_s18 + $0xa38] sm:$0xff]  ;;  %v1392_v26 = vld [vmem:[%s4916_s18 + $0x2088] sm:$0xff]  ;;  %v3552_v58 = vadd.f32 %v1704_v39, %v1698_v31  ;;  %v2019_v14 = vadd.f32 %v2018_v62, %v486_v35 }
 0x178   : > { %v1050_v37 = vld [vmem:[%s4916_s18 + $0x15d8] sm:$0xff]  ;;  %v492_v50 = vld [vmem:[%s4916_s18 + $0x468] sm:$0xff]  ;;  %v3120_v8 = vadd.f32 %v3119_v57, %v1392_v26  ;;  %v2241_v15 = vadd.f32 %v2240_v59, %v678_v36 }
 0x179   : > { %v1230_v45 = vld [vmem:[%s4916_s18 + $0x1b78] sm:$0xff]  ;;  %v684_v51 = vld [vmem:[%s4916_s18 + $0xa68] sm:$0xff]  ;;  %v2683_v63 = vadd.f32 %v2682_v48, %v1050_v37  ;;  %v2020_v31 = vadd.f32 %v2019_v14, %v492_v50 }
 0x17a   : > { %v1710_v46 = vld [vmem:[%s4916_s18 + $0x2a78] sm:$0xff]  ;;  %v1056_v53 = vld [vmem:[%s4916_s18 + $0x1608] sm:$0xff]  ;;  %v2903_v7 = vadd.f32 %v2902_v56, %v1230_v45  ;;  %v2242_v30 = vadd.f32 %v2241_v15, %v684_v51 }
 0x17b   : > { %v870_v52 = vld [vmem:[%s4916_s18 + $0x1038] sm:$0xff]  ;;  %v1236_v60 = vld [vmem:[%s4916_s18 + $0x1ba8] sm:$0xff]  ;;  %v3553_v9 = vadd.f32 %v3552_v58, %v1710_v46  ;;  %v2684_v16 = vadd.f32 %v2683_v63, %v1056_v53 }
 0x17c   : > { %v1554_v54 = vld [vmem:[%s4916_s18 + $0x2598] sm:$0xff]  ;;  %v1716_v61 = vld [vmem:[%s4916_s18 + $0x2aa8] sm:$0xff]  ;;  %v2463_v23 = vadd.f32 %v2462_v6, %v870_v52  ;;  %v2904_v24 = vadd.f32 %v2903_v7, %v1236_v60 }
 0x17d   : > { %v1398_v41 = vld [vmem:[%s4916_s18 + $0x20b8] sm:$0xff]  ;;  %v876_v0 = vld [vmem:[%s4916_s18 + $0x1068] sm:$0xff]  ;;  %v3337_v18 = vadd.f32 %v3336_v1, %v1554_v54  ;;  %v3554_v27 = vadd.f32 %v3553_v9, %v1716_v61 }
 0x17e   : > { %v498_v3 = vld [vmem:[%s4916_s18 + $0x498] sm:$0xff]  ;;  %v1560_v2 = vld [vmem:[%s4916_s18 + $0x25c8] sm:$0xff]  ;;  %v3121_v25 = vadd.f32 %v3120_v8, %v1398_v41  ;;  %v2464_v39 = vadd.f32 %v2463_v23, %v876_v0 }
 0x17f   : > { %v690_v4 = vld [vmem:[%s4916_s18 + $0xa98] sm:$0xff]  ;;  %v1404_v11 = vld [vmem:[%s4916_s18 + $0x20e8] sm:$0xff]  ;;  %v3338_v33 = vadd.f32 %v3337_v18, %v1560_v2  ;;  %v2021_v47 = vadd.f32 %v2020_v31, %v498_v3 }
 0x180   : > { %v1062_v5 = vld [vmem:[%s4916_s18 + $0x1638] sm:$0xff]  ;;  %v504_v19 = vld [vmem:[%s4916_s18 + $0x4c8] sm:$0xff]  ;;  %v3122_v42 = vadd.f32 %v3121_v25, %v1404_v11  ;;  %v2243_v43 = vadd.f32 %v2242_v30, %v690_v4 }
 0x181   : > { %v1242_v10 = vld [vmem:[%s4916_s18 + $0x1bd8] sm:$0xff]  ;;  %v696_v17 = vld [vmem:[%s4916_s18 + $0xac8] sm:$0xff]  ;;  %v2685_v32 = vadd.f32 %v2684_v16, %v1062_v5  ;;  %v2022_v62 = vadd.f32 %v2021_v47, %v504_v19 }
 0x182   : > { %v1722_v12 = vld [vmem:[%s4916_s18 + $0x2ad8] sm:$0xff]  ;;  %v1068_v21 = vld [vmem:[%s4916_s18 + $0x1668] sm:$0xff]  ;;  %v2905_v40 = vadd.f32 %v2904_v24, %v1242_v10  ;;  %v2244_v59 = vadd.f32 %v2243_v43, %v696_v17 }
 0x183   : > { %v882_v20 = vld [vmem:[%s4916_s18 + $0x1098] sm:$0xff]  ;;  %v1248_v28 = vld [vmem:[%s4916_s18 + $0x1c08] sm:$0xff]  ;;  %v3555_v44 = vadd.f32 %v3554_v27, %v1722_v12  ;;  %v2686_v48 = vadd.f32 %v2685_v32, %v1068_v21 }
 0x184   : > { %v1566_v22 = vld [vmem:[%s4916_s18 + $0x25f8] sm:$0xff]  ;;  %v1728_v13 = vld [vmem:[%s4916_s18 + $0x2b08] sm:$0xff]  ;;  %v2465_v55 = vadd.f32 %v2464_v39, %v882_v20  ;;  %v2906_v56 = vadd.f32 %v2905_v40, %v1248_v28 }
 0x185   : > { %v1410_v29 = vld [vmem:[%s4916_s18 + $0x2118] sm:$0xff]  ;;  %v888_v36 = vld [vmem:[%s4916_s18 + $0x10c8] sm:$0xff]  ;;  %v3339_v49 = vadd.f32 %v3338_v33, %v1566_v22  ;;  %v3556_v58 = vadd.f32 %v3555_v44, %v1728_v13 }
 0x186   : > { %v510_v34 = vld [vmem:[%s4916_s18 + $0x4f8] sm:$0xff]  ;;  %v1572_v38 = vld [vmem:[%s4916_s18 + $0x2628] sm:$0xff]  ;;  %v3123_v57 = vadd.f32 %v3122_v42, %v1410_v29  ;;  %v2466_v6 = vadd.f32 %v2465_v55, %v888_v36 }
 0x187   : > { %v702_v35 = vld [vmem:[%s4916_s18 + $0xaf8] sm:$0xff]  ;;  %v1416_v26 = vld [vmem:[%s4916_s18 + $0x2148] sm:$0xff]  ;;  %v3340_v1 = vadd.f32 %v3339_v49, %v1572_v38  ;;  %v2023_v14 = vadd.f32 %v2022_v62, %v510_v34 }
 0x188   : > { %v1074_v37 = vld [vmem:[%s4916_s18 + $0x1698] sm:$0xff]  ;;  %v516_v50 = vld [vmem:[%s4916_s18 + $0x528] sm:$0xff]  ;;  %v3124_v8 = vadd.f32 %v3123_v57, %v1416_v26  ;;  %v2245_v15 = vadd.f32 %v2244_v59, %v702_v35 }
 0x189   : > { %v1254_v45 = vld [vmem:[%s4916_s18 + $0x1c38] sm:$0xff]  ;;  %v708_v51 = vld [vmem:[%s4916_s18 + $0xb28] sm:$0xff]  ;;  %v2687_v63 = vadd.f32 %v2686_v48, %v1074_v37  ;;  %v2024_v31 = vadd.f32 %v2023_v14, %v516_v50 }
 0x18a   : > { %v1734_v46 = vld [vmem:[%s4916_s18 + $0x2b38] sm:$0xff]  ;;  %v1080_v53 = vld [vmem:[%s4916_s18 + $0x16c8] sm:$0xff]  ;;  %v2907_v7 = vadd.f32 %v2906_v56, %v1254_v45  ;;  %v2246_v30 = vadd.f32 %v2245_v15, %v708_v51 }
 0x18b   : > { %v894_v52 = vld [vmem:[%s4916_s18 + $0x10f8] sm:$0xff]  ;;  %v1260_v60 = vld [vmem:[%s4916_s18 + $0x1c68] sm:$0xff]  ;;  %v3557_v9 = vadd.f32 %v3556_v58, %v1734_v46  ;;  %v2688_v16 = vadd.f32 %v2687_v63, %v1080_v53 }
 0x18c   : > { %v1578_v54 = vld [vmem:[%s4916_s18 + $0x2658] sm:$0xff]  ;;  %v1740_v61 = vld [vmem:[%s4916_s18 + $0x2b68] sm:$0xff]  ;;  %v2467_v23 = vadd.f32 %v2466_v6, %v894_v52  ;;  %v2908_v24 = vadd.f32 %v2907_v7, %v1260_v60 }
 0x18d   : > { %v1422_v41 = vld [vmem:[%s4916_s18 + $0x2178] sm:$0xff]  ;;  %v900_v0 = vld [vmem:[%s4916_s18 + $0x1128] sm:$0xff]  ;;  %v3341_v18 = vadd.f32 %v3340_v1, %v1578_v54  ;;  %v3558_v27 = vadd.f32 %v3557_v9, %v1740_v61 }
 0x18e   : > { %v522_v3 = vld [vmem:[%s4916_s18 + $0x558] sm:$0xff]  ;;  %v1584_v2 = vld [vmem:[%s4916_s18 + $0x2688] sm:$0xff]  ;;  %v3125_v25 = vadd.f32 %v3124_v8, %v1422_v41  ;;  %v2468_v39 = vadd.f32 %v2467_v23, %v900_v0 }
 0x18f   : > { %v714_v4 = vld [vmem:[%s4916_s18 + $0xb58] sm:$0xff]  ;;  %v1428_v11 = vld [vmem:[%s4916_s18 + $0x21a8] sm:$0xff]  ;;  %v3342_v33 = vadd.f32 %v3341_v18, %v1584_v2  ;;  %v2025_v47 = vadd.f32 %v2024_v31, %v522_v3 }
 0x190   : > { %v1086_v5 = vld [vmem:[%s4916_s18 + $0x16f8] sm:$0xff]  ;;  %v528_v19 = vld [vmem:[%s4916_s18 + $0x588] sm:$0xff]  ;;  %v3126_v42 = vadd.f32 %v3125_v25, %v1428_v11  ;;  %v2247_v43 = vadd.f32 %v2246_v30, %v714_v4 }
 0x191   : > { %v1266_v10 = vld [vmem:[%s4916_s18 + $0x1c98] sm:$0xff]  ;;  %v720_v17 = vld [vmem:[%s4916_s18 + $0xb88] sm:$0xff]  ;;  %v2689_v32 = vadd.f32 %v2688_v16, %v1086_v5  ;;  %v2026_v61 = vadd.f32 %v2025_v47, %v528_v19 }
 0x192   : > { %v1746_v12 = vld [vmem:[%s4916_s18 + $0x2b98] sm:$0xff]  ;;  %v1092_v21 = vld [vmem:[%s4916_s18 + $0x1728] sm:$0xff]  ;;  %v2909_v40 = vadd.f32 %v2908_v24, %v1266_v10  ;;  %v2248_v62 = vadd.f32 %v2247_v43, %v720_v17 }
 0x193   : > { %v906_v20 = vld [vmem:[%s4916_s18 + $0x1158] sm:$0xff]  ;;  %v1272_v28 = vld [vmem:[%s4916_s18 + $0x1cc8] sm:$0xff]  ;;  %v3559_v44 = vadd.f32 %v3558_v27, %v1746_v12  ;;  %v2690_v48 = vadd.f32 %v2689_v32, %v1092_v21 }
 0x194   : > { %v1590_v22 = vld [vmem:[%s4916_s18 + $0x26b8] sm:$0xff]  ;;  %v1752_v13 = vld [vmem:[%s4916_s18 + $0x2bc8] sm:$0xff]  ;;  %v2469_v54 = vadd.f32 %v2468_v39, %v906_v20  ;;  %v2910_v55 = vadd.f32 %v2909_v40, %v1272_v28 }
 0x195   : > { %v1434_v29 = vld [vmem:[%s4916_s18 + $0x21d8] sm:$0xff]  ;;  %v912_v36 = vld [vmem:[%s4916_s18 + $0x1188] sm:$0xff]  ;;  %v3343_v49 = vadd.f32 %v3342_v33, %v1590_v22  ;;  %v3560_v57 = vadd.f32 %v3559_v44, %v1752_v13 }
 0x196   : > { %v534_v34 = vld [vmem:[%s4916_s18 + $0x5b8] sm:$0xff]  ;;  %v1596_v38 = vld [vmem:[%s4916_s18 + $0x26e8] sm:$0xff]  ;;  %v3127_v56 = vadd.f32 %v3126_v42, %v1434_v29  ;;  %v2470_v0 = vadd.f32 %v2469_v54, %v912_v36 }
 0x197   : > { %v726_v35 = vld [vmem:[%s4916_s18 + $0xbb8] sm:$0xff]  ;;  %v1440_v26 = vld [vmem:[%s4916_s18 + $0x2208] sm:$0xff]  ;;  %v3344_v63 = vadd.f32 %v3343_v49, %v1596_v38  ;;  %v2027_v10 = vadd.f32 %v2026_v61, %v534_v34 }
 0x198   : > { %v1098_v37 = vld [vmem:[%s4916_s18 + $0x1758] sm:$0xff]  ;;  %v540_v50 = vld [vmem:[%s4916_s18 + $0x5e8] sm:$0xff]  ;;  %v3128_v2 = vadd.f32 %v3127_v56, %v1440_v26  ;;  %v2249_v11 = vadd.f32 %v2248_v62, %v726_v35 }
 0x199   : > { %v1278_v45 = vld [vmem:[%s4916_s18 + $0x1cf8] sm:$0xff]  ;;  %v1104_v52 = vld [vmem:[%s4916_s18 + $0x1788] sm:$0xff]  ;;  %v2691_v59 = vadd.f32 %v2690_v48, %v1098_v37  ;;  %v2028_v23 = vadd.f32 %v2027_v10, %v540_v50 }
 0x19a   : > { %v1758_v46 = vld [vmem:[%s4916_s18 + $0x2bf8] sm:$0xff]  ;;  %v1284_v58 = vld [vmem:[%s4916_s18 + $0x1d28] sm:$0xff]  ;;  %v2911_v5 = vadd.f32 %v2910_v55, %v1278_v45 }
 0x19b   : > { %v918_v51 = vld [vmem:[%s4916_s18 + $0x11b8] sm:$0xff]  ;;  %v1764_v41 = vld [vmem:[%s4916_s18 + $0x2c28] sm:$0xff]  ;;  %v3561_v6 = vadd.f32 %v3560_v57, %v1758_v46  ;;  %v2692_v12 = vadd.f32 %v2691_v59, %v1104_v52  ;;  %v2029_v38 = vrot.slane %v2028_v23, 4 }
 0x19c   : > { %v1602_v53 = vld [vmem:[%s4916_s18 + $0x2718] sm:$0xff]  ;;  %v732_v1 = vld [vmem:[%s4916_s18 + $0xbe8] sm:$0xff]  ;;  %v2471_v18 = vadd.f32 %v2470_v0, %v918_v51  ;;  %v2912_v19 = vadd.f32 %v2911_v5, %v1284_v58 }
 0x19d   : > { %v1446_v60 = vld [vmem:[%s4916_s18 + $0x2238] sm:$0xff]  ;;  %v1608_v4 = vld [vmem:[%s4916_s18 + $0x2748] sm:$0xff]  ;;  %v3345_v14 = vadd.f32 %v3344_v63, %v1602_v53  ;;  %v3562_v20 = vadd.f32 %v3561_v6, %v1764_v41  ;;  %v2250_v24 = vadd.f32 %v2249_v11, %v732_v1  ;;  %v2030_v56 = vadd.f32 %v2029_v38, %v2028_v23 }
 0x19e   : > { %v1110_v3 = vld [vmem:[%s4916_s18 + $0x17b8] sm:$0xff]  ;;  %v1452_v8 = vld [vmem:[%s4916_s18 + $0x2268] sm:$0xff]  ;;  %v3129_v17 = vadd.f32 %v3128_v2, %v1446_v60 }
 0x19f   : > { %v1290_v7 = vld [vmem:[%s4916_s18 + $0x1d58] sm:$0xff]  ;;  %v924_v15 = vld [vmem:[%s4916_s18 + $0x11e8] sm:$0xff]  ;;  %v3346_v25 = vadd.f32 %v3345_v14, %v1608_v4  ;;  %v2693_v29 = vadd.f32 %v2692_v12, %v1110_v3  ;;  %v2251_v39 = vrot.slane %v2250_v24, 4 }
 0x1a0   : > { %v1770_v9 = vld [vmem:[%s4916_s18 + $0x2c58] sm:$0xff]  ;;  %v1776_v22 = vld [vmem:[%s4916_s18 + $0x2c88] sm:$0xff]  ;;  %v2913_v13 = vadd.f32 %v2912_v19, %v1290_v7  ;;  %v3130_v31 = vadd.f32 %v3129_v17, %v1452_v8  ;;  %v2472_v35 = vadd.f32 %v2471_v18, %v924_v15 }
 0x1a1   : > { %v1614_v16 = vld [vmem:[%s4916_s18 + $0x2778] sm:$0xff]  ;;  %v1116_v27 = vld [vmem:[%s4916_s18 + $0x17e8] sm:$0xff]  ;;  %v3563_v30 = vadd.f32 %v3562_v20, %v1770_v9  ;;  %v2252_v57 = vadd.f32 %v2251_v39, %v2250_v24  ;;  %v2031_v9 = vrot.slane %v2030_v56, 2 }
 0x1a2   : > { %v1458_v21 = vld [vmem:[%s4916_s18 + $0x2298] sm:$0xff]  ;;  %v1620_v28 = vld [vmem:[%s4916_s18 + $0x27a8] sm:$0xff]  ;;  %v3347_v36 = vadd.f32 %v3346_v25, %v1614_v16  ;;  %v2694_v47 = vadd.f32 %v2693_v29, %v1116_v27  ;;  %v2473_v53 = vrot.slane %v2472_v35, 4 }
 0x1a3   : > { %v1296_v32 = vld [vmem:[%s4916_s18 + $0x1d88] sm:$0xff]  ;;  %v1782_v34 = vld [vmem:[%s4916_s18 + $0x2cb8] sm:$0xff]  ;;  %v3131_v40 = vadd.f32 %v3130_v31, %v1458_v21  ;;  %v3564_v42 = vadd.f32 %v3563_v30, %v1776_v22  ;;  %v2253_v10 = vrot.slane %v2252_v57, 2 }
 0x1a4   : > { %v1464_v33 = vld [vmem:[%s4916_s18 + $0x22c8] sm:$0xff]  ;;  %v1626_v37 = vld [vmem:[%s4916_s18 + $0x27d8] sm:$0xff]  ;;  %v3348_v26 = vadd.f32 %v3347_v36, %v1620_v28  ;;  %v2914_v43 = vadd.f32 %v2913_v13, %v1296_v32  ;;  %v2695_v63 = vrot.slane %v2694_v47, 4  ;;  %v2474_v6 = vadd.f32 %v2473_v53, %v2472_v35 }
 0x1a5   : > { %v1470_v44 = vld [vmem:[%s4916_s18 + $0x22f8] sm:$0xff]  ;;  %v1788_v45 = vld [vmem:[%s4916_s18 + $0x2ce8] sm:$0xff]  ;;  %v3132_v48 = vadd.f32 %v3131_v40, %v1464_v33  ;;  %v3565_v49 = vadd.f32 %v3564_v42, %v1782_v34  ;;  %v2032_v28 = vadd.f32 %v2031_v9, %v2030_v56  ;;  %v2254_v29 = vadd.f32 %v2253_v10, %v2252_v57 }
 0x1a6   : > { %v1632_v46 = vld [vmem:[%s4916_s18 + $0x2808] sm:$0xff]  ;;  %v1302_v50 = vld [vmem:[%s4916_s18 + $0x1db8] sm:$0xff]  ;;  %v3349_v54 = vadd.f32 %v3348_v26, %v1626_v37  ;;  %v2696_v19 = vadd.f32 %v2695_v63, %v2694_v47  ;;  %v2475_v24 = vrot.slane %v2474_v6, 2 }
 0x1a7   : > { %v1476_v51 = vld [vmem:[%s4916_s18 + $0x2328] sm:$0xff]  ;;  %v1794_v52 = vld [vmem:[%s4916_s18 + $0x2d18] sm:$0xff]  ;;  %v3133_v58 = vadd.f32 %v3132_v48, %v1470_v44  ;;  %v3566_v60 = vadd.f32 %v3565_v49, %v1788_v45  ;;  %v2915_v1 = vadd.f32 %v2914_v43, %v1302_v50  ;;  %v2033_v44 = vrot.slane %v2032_v28, 1 }
 0x1a8   : > { %v1638_v55 = vld [vmem:[%s4916_s18 + $0x2838] sm:$0xff]  ;;  %v1800_v61 = vld [vmem:[%s4916_s18 + $0x2d48] sm:$0xff]  ;;  %v3350_v62 = vadd.f32 %v3349_v54, %v1632_v46  ;;  %v2697_v34 = vrot.slane %v2696_v19, 2  ;;  %v2476_v39 = vadd.f32 %v2475_v24, %v2474_v6  ;;  %v2255_v45 = vrot.slane %v2254_v29, 1 }
 0x1a9   : > { %v1482_v41 = vld [vmem:[%s4916_s18 + $0x2358] sm:$0xff]  ;;  %v1644_v59 = vld [vmem:[%s4916_s18 + $0x2868] sm:$0xff]  ;;  %v3134_v3 = vadd.f32 %v3133_v58, %v1476_v51  ;;  %v3567_v4 = vadd.f32 %v3566_v60, %v1794_v52 }
 0x1aa   : > { %v1308_v0 = vld [vmem:[%s4916_s18 + $0x1de8] sm:$0xff]  ;;  %v1806_v2 = vld [vmem:[%s4916_s18 + $0x2d78] sm:$0xff]  ;;  %v3351_v7 = vadd.f32 %v3350_v62, %v1638_v55  ;;  %v2698_v51 = vadd.f32 %v2697_v34, %v2696_v19  ;;  %v2477_v55 = vrot.slane %v2476_v39, 1 }
 0x1ab   : > { %v1488_v5 = vld [vmem:[%s4916_s18 + $0x2388] sm:$0xff]  ;;  %v1650_v8 = vld [vmem:[%s4916_s18 + $0x2898] sm:$0xff]  ;;  %v3135_v11 = vadd.f32 %v3134_v3, %v1482_v41  ;;  %v3568_v12 = vadd.f32 %v3567_v4, %v1800_v61  ;;  %v2916_v17 = vadd.f32 %v2915_v1, %v1308_v0  ;;  %v2034_v41 = vadd.f32 %v2033_v44, %v2032_v28 }
 0x1ac   : > { %v1494_v14 = vld [vmem:[%s4916_s18 + $0x23b8] sm:$0xff]  ;;  %v1812_v15 = vld [vmem:[%s4916_s18 + $0x2da8] sm:$0xff]  ;;  %v3352_v16 = vadd.f32 %v3351_v7, %v1644_v59  ;;  %v2256_v61 = vadd.f32 %v2255_v45, %v2254_v29  ;;  %v2699_v7 = vrot.slane %v2698_v51, 1 }
 0x1ad   : > { %v1656_v18 = vld [vmem:[%s4916_s18 + $0x28c8] sm:$0xff]  ;;  %v3136_v20 = vadd.f32 %v3135_v11, %v1488_v5  ;;  %v3569_v21 = vadd.f32 %v3568_v12, %v1806_v2  ;;  %v1818_v23 = vld [vmem:[%s4916_s18 + $0x2dd8] sm:$0xff]  ;;  %v2917_v35 = vrot.slane %v2916_v17, 4  ;;  %v3877_v2 = vld [vmem:[%s7020_s1 + $0x2a0] sm:$0xff] }
 0x1ae   : > { %v1500_v22 = vld [vmem:[%s4916_s18 + $0x23e8] sm:$0xff]  ;;  %v3353_v25 = vadd.f32 %v3352_v16, %v1650_v8  ;;  %v1662_v27 = vld [vmem:[%s4916_s18 + $0x28f8] sm:$0xff]  ;;  %4004 = vmatpush.msrb.mxu1 %v3877_v2  ;;  %v2700_v34 = vadd.f32 %v2699_v7, %v2698_v51 }
 0x1af   : > { %v3137_v13 = vadd.f32 %v3136_v20, %v1494_v14  ;;  %v3570_v31 = vadd.f32 %v3569_v21, %v1812_v15  ;;  %v1824_v30 = vld [vmem:[%s4916_s18 + $0x2e08] sm:$0xff]  ;;  %v1830_v38 = vld [vmem:[%s4916_s18 + $0x2e38] sm:$0xff]  ;;  %v2918_v52 = vadd.f32 %v2917_v35, %v2916_v17  ;;  %v2478_v15 = vadd.f32 %v2477_v55, %v2476_v39 }
 0x1b0   : > { %v3354_v32 = vadd.f32 %v3353_v25, %v1656_v18  ;;  %v1668_v33 = vld [vmem:[%s4916_s18 + $0x2928] sm:$0xff]  ;;  %v1674_v42 = vld [vmem:[%s4916_s18 + $0x2958] sm:$0xff] }
 0x1b1   : > { %v3138_v36 = vadd.f32 %v3137_v13, %v1500_v22  ;;  %v3571_v37 = vadd.f32 %v3570_v31, %v1818_v23  ;;  %v1836_v47 = vld [vmem:[%s4916_s18 + $0x2e68] sm:$0xff]  ;;  %v1686_v49 = vld [vmem:[%s4916_s18 + $0x29b8] sm:$0xff]  ;;  %v2919_v8 = vrot.slane %v2918_v52, 2  ;;  %v3739_v22 = vsel %vm3711_vm0, %v2256_v61, %v2034_v41 }
 0x1b2   : > { %v3355_v40 = vadd.f32 %v3354_v32, %v1662_v27  ;;  %v1680_v48 = vld [vmem:[%s4916_s18 + $0x2988] sm:$0xff]  ;;  %v1842_v50 = vld [vmem:[%s4916_s18 + $0x2e98] sm:$0xff] }
 0x1b3   : > { %v3139_v26 = vrot.slane %v3138_v36, 4  ;;  %v3572_v46 = vadd.f32 %v3571_v37, %v1824_v30  ;;  %v1848_v54 = vld [vmem:[%s4916_s18 + $0x2ec8] sm:$0xff]  ;;  %v358_v58 = vld [vmem:[%s4916_s18 + $0x38] sm:$0xff]  ;;  %v2920_v35 = vadd.f32 %v2919_v8, %v2918_v52 }
 0x1b4   : > { %v3356_v43 = vadd.f32 %v3355_v40, %v1668_v33  ;;  %v352_v57 = vld [vmem:[%s4916_s18 + $0x8] sm:$0xff]  ;;  %v550_v3 = vld [vmem:[%s4916_s18 + $0x638] sm:$0xff] }
 0x1b5   : > { %v3573_v53 = vadd.f32 %v3572_v46, %v1830_v38  ;;  %v1692_v60 = vld [vmem:[%s4916_s18 + $0x29e8] sm:$0xff]  ;;  %v3140_v62 = vadd.f32 %v3139_v26, %v3138_v36  ;;  %v3860_v5 = vld [vmem:[%s7020_s1 + $0x218] sm:$0xff]  ;;  %v1924_v19 = vadd.f32 %v358_v58, %v352_v57 }
 0x1b6   : > { %v3357_v56 = vadd.f32 %v3356_v43, %v1674_v42  ;;  %v364_v63 = vld [vmem:[%s4916_s18 + $0x68] sm:$0xff]  ;;  %v742_v6 = vld [vmem:[%s4916_s18 + $0xc38] sm:$0xff]  ;;  %3985 = vmatpush.msrb.mxu0 %v3860_v5 }
 0x1b7   : > { %v3574_v59 = vadd.f32 %v3573_v53, %v1836_v47  ;;  %v544_v1 = vld [vmem:[%s4916_s18 + $0x608] sm:$0xff]  ;;  %v934_v12 = vld [vmem:[%s4916_s18 + $0x1238] sm:$0xff]  ;;  %v3141_v20 = vrot.slane %v3140_v62, 2  ;;  %v1925_v30 = vadd.f32 %v1924_v19, %v364_v63 }
 0x1b8   : > { %v736_v4 = vld [vmem:[%s4916_s18 + $0xc08] sm:$0xff]  ;;  %v3358_v0 = vadd.f32 %v3357_v56, %v1680_v48  ;;  %v1854_v14 = vld [vmem:[%s4916_s18 + $0x2ef8] sm:$0xff]  ;;  %v2146_v17 = vadd.f32 %v550_v3, %v544_v1 }
 0x1b9   : > { %v3575_v9 = vadd.f32 %v3574_v59, %v1842_v50  ;;  %v556_v10 = vld [vmem:[%s4916_s18 + $0x668] sm:$0xff]  ;;  %v370_v23 = vld [vmem:[%s4916_s18 + $0x98] sm:$0xff]  ;;  %v2368_v27 = vadd.f32 %v742_v6, %v736_v4  ;;  %v3142_v48 = vadd.f32 %v3141_v20, %v3140_v62  ;;  %v3740_v50 = vsel %vm3713_vm1, %v2478_v15, %v3739_v22 }
 0x1ba   : > { %v928_v11 = vld [vmem:[%s4916_s18 + $0x1208] sm:$0xff]  ;;  %v3359_v16 = vadd.f32 %v3358_v0, %v1686_v49  ;;  %v562_v24 = vld [vmem:[%s4916_s18 + $0x698] sm:$0xff]  ;;  %v2147_v32 = vadd.f32 %v2146_v17, %v556_v10  ;;  %v1926_v46 = vadd.f32 %v1925_v30, %v370_v23  ;;  %v2921_v62 = vrot.slane %v2920_v35, 1 }
 0x1bb   : > { %v748_v18 = vld [vmem:[%s4916_s18 + $0xc68] sm:$0xff]  ;;  %v3576_v21 = vadd.f32 %v3575_v9, %v1848_v54  ;;  %v1866_v29 = vld [vmem:[%s4916_s18 + $0x2f58] sm:$0xff]  ;;  %v2590_v33 = vadd.f32 %v934_v12, %v928_v11  ;;  %v3741_v12 = vsel %vm3715_vm2, %v2700_v34, %v3740_v50  ;;  %v3143_v20 = vrot.slane %v3142_v48, 1 }
 0x1bc   : > { %v940_v25 = vld [vmem:[%s4916_s18 + $0x1268] sm:$0xff]  ;;  %v3360_v13 = vadd.f32 %v3359_v16, %v1692_v60  ;;  %v754_v31 = vld [vmem:[%s4916_s18 + $0xc98] sm:$0xff]  ;;  %v2369_v40 = vadd.f32 %v2368_v27, %v748_v18  ;;  %v2148_v47 = vadd.f32 %v2147_v32, %v562_v24  ;;  %v2922_v27 = vadd.f32 %v2921_v62, %v2920_v35 }
 0x1bd   : > { %v1860_v28 = vld [vmem:[%s4916_s18 + $0x2f28] sm:$0xff]  ;;  %v3577_v36 = vadd.f32 %v3576_v21, %v1854_v14  ;;  %v946_v39 = vld [vmem:[%s4916_s18 + $0x1298] sm:$0xff]  ;;  %v2591_v43 = vadd.f32 %v2590_v33, %v940_v25 }
 0x1be   : > { %v376_v37 = vld [vmem:[%s4916_s18 + $0xc8] sm:$0xff]  ;;  %v3361_v42 = vrot.slane %v3360_v13, 4  ;;  %v382_v44 = vld [vmem:[%s4916_s18 + $0xf8] sm:$0xff]  ;;  %v2370_v54 = vadd.f32 %v2369_v40, %v754_v31 }
 0x1bf   : > { %v568_v38 = vld [vmem:[%s4916_s18 + $0x6c8] sm:$0xff]  ;;  %v3578_v49 = vadd.f32 %v3577_v36, %v1860_v28  ;;  %v574_v51 = vld [vmem:[%s4916_s18 + $0x6f8] sm:$0xff]  ;;  %v1927_v60 = vadd.f32 %v1926_v46, %v376_v37  ;;  %v2592_v61 = vadd.f32 %v2591_v43, %v946_v39 }
 0x1c0   : > { %v760_v45 = vld [vmem:[%s4916_s18 + $0xcc8] sm:$0xff]  ;;  %v1126_v53 = vld [vmem:[%s4916_s18 + $0x1838] sm:$0xff]  ;;  %v3362_v56 = vadd.f32 %v3361_v42, %v3360_v13  ;;  %v2149_v41 = vadd.f32 %v2148_v47, %v568_v38  ;;  %v3144_v47 = vadd.f32 %v3143_v20, %v3142_v48 }
 0x1c1   : > { %v1120_v26 = vld [vmem:[%s4916_s18 + $0x1808] sm:$0xff]  ;;  %v766_v57 = vld [vmem:[%s4916_s18 + $0xcf8] sm:$0xff]  ;;  %v3579_v59 = vadd.f32 %v3578_v49, %v1866_v29  ;;  %v2371_v4 = vadd.f32 %v2370_v54, %v760_v45  ;;  %v1928_v8 = vadd.f32 %v1927_v60, %v382_v44 }
 0x1c2   : > { %v952_v52 = vld [vmem:[%s4916_s18 + $0x12c8] sm:$0xff]  ;;  %v958_v3 = vld [vmem:[%s4916_s18 + $0x12f8] sm:$0xff]  ;;  %v2812_v0 = vadd.f32 %v1126_v53, %v1120_v26  ;;  %v3363_v2 = vrot.slane %v3362_v56, 2  ;;  %v2150_v9 = vadd.f32 %v2149_v41, %v574_v51 }
 0x1c3   : > { %v1872_v55 = vld [vmem:[%s4916_s18 + $0x2f88] sm:$0xff]  ;;  %v1878_v5 = vld [vmem:[%s4916_s18 + $0x2fb8] sm:$0xff]  ;;  %v2593_v10 = vadd.f32 %v2592_v61, %v952_v52  ;;  %v2372_v18 = vadd.f32 %v2371_v4, %v766_v57 }
 0x1c4   : > { %v1132_v58 = vld [vmem:[%s4916_s18 + $0x1868] sm:$0xff]  ;;  %v1138_v7 = vld [vmem:[%s4916_s18 + $0x1898] sm:$0xff]  ;;  %v3580_v11 = vadd.f32 %v3579_v59, %v1872_v55  ;;  %v3364_v33 = vadd.f32 %v3363_v2, %v3362_v56  ;;  %v3742_v55 = vsel %vm3717_vm3, %v2922_v27, %v3741_v12 }
 0x1c5   : > { %v388_v63 = vld [vmem:[%s4916_s18 + $0x128] sm:$0xff]  ;;  %v394_v14 = vld [vmem:[%s4916_s18 + $0x158] sm:$0xff]  ;;  %v2813_v19 = vadd.f32 %v2812_v0, %v1132_v58  ;;  %v2594_v25 = vadd.f32 %v2593_v10, %v958_v3  ;;  %v3743_v10 = vsel %vm3719_vm4, %v3144_v47, %v3742_v55 }
 0x1c6   : > { %v580_v1 = vld [vmem:[%s4916_s18 + $0x728] sm:$0xff]  ;;  %v586_v15 = vld [vmem:[%s4916_s18 + $0x758] sm:$0xff]  ;;  %v1929_v23 = vadd.f32 %v1928_v8, %v388_v63  ;;  %v3581_v28 = vadd.f32 %v3580_v11, %v1878_v5  ;;  %v3365_v61 = vrot.slane %v3364_v33, 1 }
 0x1c7   : > { %v772_v6 = vld [vmem:[%s4916_s18 + $0xd28] sm:$0xff]  ;;  %v778_v21 = vld [vmem:[%s4916_s18 + $0xd58] sm:$0xff]  ;;  %v2151_v24 = vadd.f32 %v2150_v9, %v580_v1  ;;  %v2814_v32 = vadd.f32 %v2813_v19, %v1138_v7 }
 0x1c8   : > { %v964_v16 = vld [vmem:[%s4916_s18 + $0x1328] sm:$0xff]  ;;  %v970_v31 = vld [vmem:[%s4916_s18 + $0x1358] sm:$0xff]  ;;  %v2373_v30 = vadd.f32 %v2372_v18, %v772_v6  ;;  %v1930_v38 = vadd.f32 %v1929_v23, %v394_v14 }
 0x1c9   : > { %v1884_v17 = vld [vmem:[%s4916_s18 + $0x2fe8] sm:$0xff]  ;;  %v406_v34 = vld [vmem:[%s4916_s18 + $0x1b8] sm:$0xff]  ;;  %v2152_v39 = vadd.f32 %v2151_v24, %v586_v15  ;;  %v2595_v40 = vadd.f32 %v2594_v25, %v964_v16  ;;  %v3366_v25 = vadd.f32 %v3365_v61, %v3364_v33 }
 0x1ca   : > { %v1144_v22 = vld [vmem:[%s4916_s18 + $0x18c8] sm:$0xff]  ;;  %v1150_v37 = vld [vmem:[%s4916_s18 + $0x18f8] sm:$0xff]  ;;  %v3582_v35 = vadd.f32 %v3581_v28, %v1884_v17  ;;  %v2374_v26 = vadd.f32 %v2373_v30, %v778_v21 }
 0x1cb   : > { %v400_v29 = vld [vmem:[%s4916_s18 + $0x188] sm:$0xff]  ;;  %v598_v44 = vld [vmem:[%s4916_s18 + $0x7b8] sm:$0xff]  ;;  %v2815_v46 = vadd.f32 %v2814_v32, %v1144_v22  ;;  %v2596_v53 = vadd.f32 %v2595_v40, %v970_v31 }
 0x1cc   : > { %v592_v13 = vld [vmem:[%s4916_s18 + $0x788] sm:$0xff]  ;;  %v790_v49 = vld [vmem:[%s4916_s18 + $0xdb8] sm:$0xff]  ;;  %v1931_v51 = vadd.f32 %v1930_v38, %v400_v29  ;;  %v3583_v54 = vrot.slane %v3582_v35, 4 }
 0x1cd   : > { %v784_v36 = vld [vmem:[%s4916_s18 + $0xd88] sm:$0xff]  ;;  %v2153_v52 = vadd.f32 %v2152_v39, %v592_v13  ;;  %v418_v56 = vld [vmem:[%s4916_s18 + $0x218] sm:$0xff]  ;;  %v2816_v41 = vadd.f32 %v2815_v46, %v1150_v37 }
 0x1ce   : > { %v412_v42 = vld [vmem:[%s4916_s18 + $0x1e8] sm:$0xff]  ;;  %v982_v57 = vld [vmem:[%s4916_s18 + $0x13b8] sm:$0xff]  ;;  %v2375_v48 = vadd.f32 %v2374_v26, %v784_v36  ;;  %v1932_v1 = vadd.f32 %v1931_v51, %v406_v34  ;;  %v3584_v0 = vadd.f32 %v3583_v54, %v3582_v35  ;;  %v3744_v54 = vsel %vm3721_vm5, %v3366_v25, %v3743_v10 }
 0x1cf   : > { %v976_v45 = vld [vmem:[%s4916_s18 + $0x1388] sm:$0xff]  ;;  %v1318_v60 = vld [vmem:[%s4916_s18 + $0x1e38] sm:$0xff]  ;;  %v2154_v3 = vadd.f32 %v2153_v52, %v598_v44 }
 0x1d0   : > { %v604_v43 = vld [vmem:[%s4916_s18 + $0x7e8] sm:$0xff]  ;;  %v1162_v59 = vld [vmem:[%s4916_s18 + $0x1958] sm:$0xff]  ;;  %v2597_v4 = vadd.f32 %v2596_v53, %v976_v45  ;;  %v2376_v7 = vadd.f32 %v2375_v48, %v790_v49  ;;  %v1933_v15 = vadd.f32 %v1932_v1, %v412_v42  ;;  %v3585_v19 = vrot.slane %v3584_v0, 2 }
 0x1d1   : > { %v1156_v50 = vld [vmem:[%s4916_s18 + $0x1928] sm:$0xff]  ;;  %v610_v2 = vld [vmem:[%s4916_s18 + $0x818] sm:$0xff]  ;;  %v2155_v16 = vadd.f32 %v2154_v3, %v604_v43 }
 0x1d2   : > { %v1312_v58 = vld [vmem:[%s4916_s18 + $0x1e08] sm:$0xff]  ;;  %v2817_v8 = vadd.f32 %v2816_v41, %v1156_v50  ;;  %v802_v11 = vld [vmem:[%s4916_s18 + $0xe18] sm:$0xff]  ;;  %v2598_v18 = vadd.f32 %v2597_v4, %v982_v57  ;;  %v1934_v13 = vadd.f32 %v1933_v15, %v418_v56  ;;  %v3586_v32 = vadd.f32 %v3585_v19, %v3584_v0 }
 0x1d3   : > { %v796_v62 = vld [vmem:[%s4916_s18 + $0xde8] sm:$0xff]  ;;  %v3034_v9 = vadd.f32 %v1318_v60, %v1312_v58  ;;  %v1330_v14 = vld [vmem:[%s4916_s18 + $0x1e98] sm:$0xff]  ;;  %v2156_v31 = vadd.f32 %v2155_v16, %v610_v2 }
 0x1d4   : > { %v1324_v63 = vld [vmem:[%s4916_s18 + $0x1e68] sm:$0xff]  ;;  %v430_v17 = vld [vmem:[%s4916_s18 + $0x278] sm:$0xff]  ;;  %v2377_v22 = vadd.f32 %v2376_v7, %v796_v62  ;;  %v2818_v23 = vadd.f32 %v2817_v8, %v1162_v59  ;;  %v3587_v46 = vrot.slane %v3586_v32, 1 }
 0x1d5   : > { %v424_v5 = vld [vmem:[%s4916_s18 + $0x248] sm:$0xff]  ;;  %v994_v21 = vld [vmem:[%s4916_s18 + $0x1418] sm:$0xff]  ;;  %v3035_v24 = vadd.f32 %v3034_v9, %v1324_v63 }
 0x1d6   : > { %v988_v6 = vld [vmem:[%s4916_s18 + $0x13e8] sm:$0xff]  ;;  %v1174_v28 = vld [vmem:[%s4916_s18 + $0x19b8] sm:$0xff]  ;;  %v2378_v38 = vadd.f32 %v2377_v22, %v802_v11  ;;  %v1935_v44 = vadd.f32 %v1934_v13, %v424_v5  ;;  %v3588_v41 = vadd.f32 %v3587_v46, %v3586_v32 }
 0x1d7   : > { %v1168_v12 = vld [vmem:[%s4916_s18 + $0x1988] sm:$0xff]  ;;  %v2599_v30 = vadd.f32 %v2598_v18, %v988_v6  ;;  %v622_v36 = vld [vmem:[%s4916_s18 + $0x878] sm:$0xff]  ;;  %v3036_v40 = vadd.f32 %v3035_v24, %v1330_v14 }
 0x1d8   : > { %v616_v20 = vld [vmem:[%s4916_s18 + $0x848] sm:$0xff]  ;;  %v2819_v39 = vadd.f32 %v2818_v23, %v1168_v12  ;;  %v814_v33 = vld [vmem:[%s4916_s18 + $0xe78] sm:$0xff]  ;;  %v1936_v58 = vadd.f32 %v1935_v44, %v430_v17  ;;  %v3745_v10 = vsel %vm3723_vm6, %v3588_v41, %v3744_v54 }
 0x1d9   : > { %v808_v27 = vld [vmem:[%s4916_s18 + $0xe48] sm:$0xff]  ;;  %v1342_v42 = vld [vmem:[%s4916_s18 + $0x1ef8] sm:$0xff]  ;;  %v2157_v45 = vadd.f32 %v2156_v31, %v616_v20  ;;  %v2600_v26 = vadd.f32 %v2599_v30, %v994_v21  ;;  %v3790_v17 = vmul.f32 0.00390625, %v3745_v10 }
 0x1da   : > { %v1336_v29 = vld [vmem:[%s4916_s18 + $0x1ec8] sm:$0xff]  ;;  %v442_v47 = vld [vmem:[%s4916_s18 + $0x2d8] sm:$0xff]  ;;  %v2379_v51 = vadd.f32 %v2378_v38, %v808_v27  ;;  %v2820_v52 = vadd.f32 %v2819_v39, %v1174_v28 }
 0x1db   : > { %v436_v34 = vld [vmem:[%s4916_s18 + $0x2a8] sm:$0xff]  ;;  %v634_v49 = vld [vmem:[%s4916_s18 + $0x8d8] sm:$0xff]  ;;  %v3037_v53 = vadd.f32 %v3036_v40, %v1336_v29  ;;  %v2158_v60 = vadd.f32 %v2157_v45, %v622_v36  ;;  %3969 = vmatmul.f32.vlgmr.msra.gmra.mxu3 %v3790_v17 }
 0x1dc   : > { %v1000_v37 = vld [vmem:[%s4916_s18 + $0x1448] sm:$0xff]  ;;  %v1006_v50 = vld [vmem:[%s4916_s18 + $0x1478] sm:$0xff]  ;;  %v2380_v3 = vadd.f32 %v2379_v51, %v814_v33  ;;  %v1937_v7 = vadd.f32 %v1936_v58, %v436_v34 }
 0x1dd   : > { %v1180_v35 = vld [vmem:[%s4916_s18 + $0x19e8] sm:$0xff]  ;;  %v1186_v56 = vld [vmem:[%s4916_s18 + $0x1a18] sm:$0xff]  ;;  %v2601_v48 = vadd.f32 %v2600_v26, %v1000_v37  ;;  %v3038_v0 = vadd.f32 %v3037_v53, %v1342_v42 }
 0x1de   : > { %v628_v43 = vld [vmem:[%s4916_s18 + $0x8a8] sm:$0xff]  ;;  %v826_v59 = vld [vmem:[%s4916_s18 + $0xed8] sm:$0xff]  ;;  %v2821_v4 = vadd.f32 %v2820_v52, %v1180_v35  ;;  %v1938_v23 = vadd.f32 %v1937_v7, %v442_v47 }
 0x1df   : > { %v820_v55 = vld [vmem:[%s4916_s18 + $0xea8] sm:$0xff]  ;;  %v1354_v5 = vld [vmem:[%s4916_s18 + $0x1f58] sm:$0xff]  ;;  %v2159_v8 = vadd.f32 %v2158_v60, %v628_v43  ;;  %v2602_v9 = vadd.f32 %v2601_v48, %v1006_v50 }
 0x1e0   : > { %v1348_v57 = vld [vmem:[%s4916_s18 + $0x1f28] sm:$0xff]  ;;  %v1510_v6 = vld [vmem:[%s4916_s18 + $0x2438] sm:$0xff]  ;;  %v2381_v16 = vadd.f32 %v2380_v3, %v820_v55  ;;  %v2822_v18 = vadd.f32 %v2821_v4, %v1186_v56 }
 0x1e1   : > { %v448_v61 = vld [vmem:[%s4916_s18 + $0x308] sm:$0xff]  ;;  %v454_v11 = vld [vmem:[%s4916_s18 + $0x338] sm:$0xff]  ;;  %v3039_v19 = vadd.f32 %v3038_v0, %v1348_v57  ;;  %v2160_v24 = vadd.f32 %v2159_v8, %v634_v49 }
 0x1e2   : > { %v640_v62 = vld [vmem:[%s4916_s18 + $0x908] sm:$0xff]  ;;  %v646_v12 = vld [vmem:[%s4916_s18 + $0x938] sm:$0xff]  ;;  %v2382_v31 = vadd.f32 %v2381_v16, %v826_v59  ;;  %v1939_v39 = vadd.f32 %v1938_v23, %v448_v61 }
 0x1e3   : > { %v1012_v63 = vld [vmem:[%s4916_s18 + $0x14a8] sm:$0xff]  ;;  %v1018_v15 = vld [vmem:[%s4916_s18 + $0x14d8] sm:$0xff]  ;;  %v3040_v32 = vadd.f32 %v3039_v19, %v1354_v5  ;;  %v2161_v40 = vadd.f32 %v2160_v24, %v640_v62 }
 0x1e4   : > { %v1192_v1 = vld [vmem:[%s4916_s18 + $0x1a48] sm:$0xff]  ;;  %v1198_v20 = vld [vmem:[%s4916_s18 + $0x1a78] sm:$0xff]  ;;  %v2603_v25 = vadd.f32 %v2602_v9, %v1012_v63  ;;  %v1940_v52 = vadd.f32 %v1939_v39, %v454_v11 }
 0x1e5   : > { %v1504_v2 = vld [vmem:[%s4916_s18 + $0x2408] sm:$0xff]  ;;  %v838_v29 = vld [vmem:[%s4916_s18 + $0xf38] sm:$0xff]  ;;  %v2823_v30 = vadd.f32 %v2822_v18, %v1192_v1  ;;  %v2162_v53 = vadd.f32 %v2161_v40, %v646_v12 }
 0x1e6   : > { %v832_v14 = vld [vmem:[%s4916_s18 + $0xf08] sm:$0xff]  ;;  %v3256_v34 = vadd.f32 %v1510_v6, %v1504_v2  ;;  %v1366_v37 = vld [vmem:[%s4916_s18 + $0x1fb8] sm:$0xff]  ;;  %v2604_v33 = vadd.f32 %v2603_v25, %v1018_v15 }
 0x1e7   : > { %v1360_v21 = vld [vmem:[%s4916_s18 + $0x1f88] sm:$0xff]  ;;  %v1522_v38 = vld [vmem:[%s4916_s18 + $0x2498] sm:$0xff]  ;;  %v2383_v26 = vadd.f32 %v2382_v31, %v832_v14  ;;  %v2824_v46 = vadd.f32 %v2823_v30, %v1198_v20 }
 0x1e8   : > { %v1516_v22 = vld [vmem:[%s4916_s18 + $0x2468] sm:$0xff]  ;;  %v466_v35 = vld [vmem:[%s4916_s18 + $0x398] sm:$0xff]  ;;  %v3041_v47 = vadd.f32 %v3040_v32, %v1360_v21 }
 0x1e9   : > { %v460_v27 = vld [vmem:[%s4916_s18 + $0x368] sm:$0xff]  ;;  %v658_v42 = vld [vmem:[%s4916_s18 + $0x998] sm:$0xff]  ;;  %v3257_v43 = vadd.f32 %v3256_v34, %v1516_v22  ;;  %v2384_v60 = vadd.f32 %v2383_v26, %v838_v29 }
 0x1ea   : > { %v652_v28 = vld [vmem:[%s4916_s18 + $0x968] sm:$0xff]  ;;  %v1030_v45 = vld [vmem:[%s4916_s18 + $0x1538] sm:$0xff]  ;;  %v3042_v41 = vadd.f32 %v3041_v47, %v1366_v37  ;;  %v1941_v1 = vadd.f32 %v1940_v52, %v460_v27 }
 0x1eb   : > { %v1024_v13 = vld [vmem:[%s4916_s18 + $0x1508] sm:$0xff]  ;;  %v1210_v49 = vld [vmem:[%s4916_s18 + $0x1ad8] sm:$0xff]  ;;  %v3258_v61 = vadd.f32 %v3257_v43, %v1522_v38  ;;  %v2163_v3 = vadd.f32 %v2162_v53, %v652_v28 }
 0x1ec   : > { %v1204_v36 = vld [vmem:[%s4916_s18 + $0x1aa8] sm:$0xff]  ;;  %v2605_v54 = vadd.f32 %v2604_v33, %v1024_v13  ;;  %v850_v57 = vld [vmem:[%s4916_s18 + $0xf98] sm:$0xff]  ;;  %v1942_v18 = vadd.f32 %v1941_v1, %v466_v35 }
 0x1ed   : > { %v844_v44 = vld [vmem:[%s4916_s18 + $0xf68] sm:$0xff]  ;;  %v2825_v48 = vadd.f32 %v2824_v46, %v1204_v36  ;;  %v1378_v59 = vld [vmem:[%s4916_s18 + $0x2018] sm:$0xff]  ;;  %v2164_v19 = vadd.f32 %v2163_v3, %v658_v42 }
 0x1ee   : > { %v1372_v50 = vld [vmem:[%s4916_s18 + $0x1fe8] sm:$0xff]  ;;  %v1534_v63 = vld [vmem:[%s4916_s18 + $0x24f8] sm:$0xff]  ;;  %v2606_v4 = vadd.f32 %v2605_v54, %v1030_v45  ;;  %v2385_v8 = vadd.f32 %v2384_v60, %v844_v44 }
 0x1ef   : > { %v1528_v51 = vld [vmem:[%s4916_s18 + $0x24c8] sm:$0xff]  ;;  %v478_v0 = vld [vmem:[%s4916_s18 + $0x3f8] sm:$0xff]  ;;  %v2826_v9 = vadd.f32 %v2825_v48, %v1210_v49  ;;  %v3043_v10 = vadd.f32 %v3042_v41, %v1372_v50 }
 0x1f0   : > { %v472_v55 = vld [vmem:[%s4916_s18 + $0x3c8] sm:$0xff]  ;;  %v670_v5 = vld [vmem:[%s4916_s18 + $0x9f8] sm:$0xff]  ;;  %v3259_v11 = vadd.f32 %v3258_v61, %v1528_v51  ;;  %v2386_v25 = vadd.f32 %v2385_v8, %v850_v57 }
 0x1f1   : > { %v664_v56 = vld [vmem:[%s4916_s18 + $0x9c8] sm:$0xff]  ;;  %v1042_v6 = vld [vmem:[%s4916_s18 + $0x1598] sm:$0xff]  ;;  %v3044_v28 = vadd.f32 %v3043_v10, %v1378_v59  ;;  %v1943_v32 = vadd.f32 %v1942_v18, %v472_v55 }
 0x1f2   : > { %v1036_v58 = vld [vmem:[%s4916_s18 + $0x1568] sm:$0xff]  ;;  %v1222_v7 = vld [vmem:[%s4916_s18 + $0x1b38] sm:$0xff]  ;;  %v3260_v29 = vadd.f32 %v3259_v11, %v1534_v63  ;;  %v2165_v34 = vadd.f32 %v2164_v19, %v664_v56 }
 0x1f3   : > { %v1216_v62 = vld [vmem:[%s4916_s18 + $0x1b08] sm:$0xff]  ;;  %v862_v12 = vld [vmem:[%s4916_s18 + $0xff8] sm:$0xff]  ;;  %v2607_v17 = vadd.f32 %v2606_v4, %v1036_v58  ;;  %v1944_v49 = vadd.f32 %v1943_v32, %v478_v0 }
 0x1f4   : > { %v856_v2 = vld [vmem:[%s4916_s18 + $0xfc8] sm:$0xff]  ;;  %v1702_v23 = vld [vmem:[%s4916_s18 + $0x2a38] sm:$0xff]  ;;  %v2827_v27 = vadd.f32 %v2826_v9, %v1216_v62  ;;  %v2166_v50 = vadd.f32 %v2165_v34, %v670_v5 }
 0x1f5   : > { %v1384_v14 = vld [vmem:[%s4916_s18 + $0x2048] sm:$0xff]  ;;  %v1390_v31 = vld [vmem:[%s4916_s18 + $0x2078] sm:$0xff]  ;;  %v2608_v36 = vadd.f32 %v2607_v17, %v1042_v6  ;;  %v2387_v42 = vadd.f32 %v2386_v25, %v856_v2 }
 0x1f6   : > { %v1540_v15 = vld [vmem:[%s4916_s18 + $0x2528] sm:$0xff]  ;;  %v1546_v30 = vld [vmem:[%s4916_s18 + $0x2558] sm:$0xff]  ;;  %v2828_v44 = vadd.f32 %v2827_v27, %v1222_v7  ;;  %v3045_v45 = vadd.f32 %v3044_v28, %v1384_v14 }
 0x1f7   : > { %v1696_v16 = vld [vmem:[%s4916_s18 + $0x2a08] sm:$0xff]  ;;  %v490_v38 = vld [vmem:[%s4916_s18 + $0x458] sm:$0xff]  ;;  %v3261_v26 = vadd.f32 %v3260_v29, %v1540_v15  ;;  %v2388_v58 = vadd.f32 %v2387_v42, %v862_v12 }
 0x1f8   : > { %v484_v20 = vld [vmem:[%s4916_s18 + $0x428] sm:$0xff]  ;;  %v3478_v37 = vadd.f32 %v1702_v23, %v1696_v16  ;;  %v682_v39 = vld [vmem:[%s4916_s18 + $0xa58] sm:$0xff]  ;;  %v3046_v48 = vadd.f32 %v3045_v45, %v1390_v31 }
 0x1f9   : > { %v676_v21 = vld [vmem:[%s4916_s18 + $0xa28] sm:$0xff]  ;;  %v1054_v33 = vld [vmem:[%s4916_s18 + $0x15f8] sm:$0xff]  ;;  %v3262_v41 = vadd.f32 %v3261_v26, %v1546_v30  ;;  %v1945_v63 = vadd.f32 %v1944_v49, %v484_v20 }
 0x1fa   : > { %v1048_v22 = vld [vmem:[%s4916_s18 + $0x15c8] sm:$0xff]  ;;  %v1714_v35 = vld [vmem:[%s4916_s18 + $0x2a98] sm:$0xff]  ;;  %v2167_v1 = vadd.f32 %v2166_v50, %v676_v21 }
 0x1fb   : > { %v1708_v24 = vld [vmem:[%s4916_s18 + $0x2a68] sm:$0xff]  ;;  %v1234_v46 = vld [vmem:[%s4916_s18 + $0x1b98] sm:$0xff]  ;;  %v2609_v51 = vadd.f32 %v2608_v36, %v1048_v22  ;;  %v1946_v16 = vadd.f32 %v1945_v63, %v490_v38 }
 0x1fc   : > { %v1228_v13 = vld [vmem:[%s4916_s18 + $0x1b68] sm:$0xff]  ;;  %v3479_v52 = vadd.f32 %v3478_v37, %v1708_v24  ;;  %v874_v55 = vld [vmem:[%s4916_s18 + $0x1058] sm:$0xff]  ;;  %v2168_v18 = vadd.f32 %v2167_v1, %v682_v39 }
 0x1fd   : > { %v868_v40 = vld [vmem:[%s4916_s18 + $0x1028] sm:$0xff]  ;;  %v2829_v60 = vadd.f32 %v2828_v44, %v1228_v13  ;;  %v1402_v62 = vld [vmem:[%s4916_s18 + $0x20d8] sm:$0xff]  ;;  %v2610_v3 = vadd.f32 %v2609_v51, %v1054_v33 }
 0x1fe   : > { %v1396_v47 = vld [vmem:[%s4916_s18 + $0x20a8] sm:$0xff]  ;;  %v1558_v59 = vld [vmem:[%s4916_s18 + $0x25b8] sm:$0xff]  ;;  %v3480_v4 = vadd.f32 %v3479_v52, %v1714_v35  ;;  %v2389_v8 = vadd.f32 %v2388_v58, %v868_v40 }
 0x1ff   : > { %v1552_v43 = vld [vmem:[%s4916_s18 + $0x2588] sm:$0xff]  ;;  %v502_v0 = vld [vmem:[%s4916_s18 + $0x4b8] sm:$0xff]  ;;  %v2830_v9 = vadd.f32 %v2829_v60, %v1234_v46  ;;  %v3047_v10 = vadd.f32 %v3046_v48, %v1396_v47 }
 0x200   : > { %v496_v53 = vld [vmem:[%s4916_s18 + $0x488] sm:$0xff]  ;;  %v694_v5 = vld [vmem:[%s4916_s18 + $0xab8] sm:$0xff]  ;;  %v3263_v11 = vadd.f32 %v3262_v41, %v1552_v43  ;;  %v2390_v25 = vadd.f32 %v2389_v8, %v874_v55 }
 0x201   : > { %v688_v54 = vld [vmem:[%s4916_s18 + $0xa88] sm:$0xff]  ;;  %v1066_v6 = vld [vmem:[%s4916_s18 + $0x1658] sm:$0xff]  ;;  %v3048_v28 = vadd.f32 %v3047_v10, %v1402_v62  ;;  %v1947_v32 = vadd.f32 %v1946_v16, %v496_v53 }
 0x202   : > { %v1060_v56 = vld [vmem:[%s4916_s18 + $0x1628] sm:$0xff]  ;;  %v1726_v7 = vld [vmem:[%s4916_s18 + $0x2af8] sm:$0xff]  ;;  %v3264_v29 = vadd.f32 %v3263_v11, %v1558_v59  ;;  %v2169_v34 = vadd.f32 %v2168_v18, %v688_v54 }
 0x203   : > { %v1720_v57 = vld [vmem:[%s4916_s18 + $0x2ac8] sm:$0xff]  ;;  %v1246_v12 = vld [vmem:[%s4916_s18 + $0x1bf8] sm:$0xff]  ;;  %v2611_v19 = vadd.f32 %v2610_v3, %v1060_v56  ;;  %v1948_v49 = vadd.f32 %v1947_v32, %v502_v0 }
 0x204   : > { %v1240_v61 = vld [vmem:[%s4916_s18 + $0x1bc8] sm:$0xff]  ;;  %v3481_v17 = vadd.f32 %v3480_v4, %v1720_v57  ;;  %v886_v22 = vld [vmem:[%s4916_s18 + $0x10b8] sm:$0xff]  ;;  %v2170_v50 = vadd.f32 %v2169_v34, %v694_v5 }
 0x205   : > { %v880_v2 = vld [vmem:[%s4916_s18 + $0x1088] sm:$0xff]  ;;  %v2831_v27 = vadd.f32 %v2830_v9, %v1240_v61  ;;  %v1414_v31 = vld [vmem:[%s4916_s18 + $0x2138] sm:$0xff]  ;;  %v2612_v36 = vadd.f32 %v2611_v19, %v1066_v6 }
 0x206   : > { %v1408_v14 = vld [vmem:[%s4916_s18 + $0x2108] sm:$0xff]  ;;  %v1570_v30 = vld [vmem:[%s4916_s18 + $0x2618] sm:$0xff]  ;;  %v3482_v37 = vadd.f32 %v3481_v17, %v1726_v7  ;;  %v2391_v42 = vadd.f32 %v2390_v25, %v880_v2 }
 0x207   : > { %v1564_v15 = vld [vmem:[%s4916_s18 + $0x25e8] sm:$0xff]  ;;  %v514_v38 = vld [vmem:[%s4916_s18 + $0x518] sm:$0xff]  ;;  %v2832_v44 = vadd.f32 %v2831_v27, %v1246_v12  ;;  %v3049_v45 = vadd.f32 %v3048_v28, %v1408_v14 }
 0x208   : > { %v508_v20 = vld [vmem:[%s4916_s18 + $0x4e8] sm:$0xff]  ;;  %v706_v39 = vld [vmem:[%s4916_s18 + $0xb18] sm:$0xff]  ;;  %v3265_v26 = vadd.f32 %v3264_v29, %v1564_v15  ;;  %v2392_v58 = vadd.f32 %v2391_v42, %v886_v22 }
 0x209   : > { %v700_v21 = vld [vmem:[%s4916_s18 + $0xae8] sm:$0xff]  ;;  %v1078_v33 = vld [vmem:[%s4916_s18 + $0x16b8] sm:$0xff]  ;;  %v3050_v48 = vadd.f32 %v3049_v45, %v1414_v31  ;;  %v1949_v63 = vadd.f32 %v1948_v49, %v508_v20 }
 0x20a   : > { %v1072_v23 = vld [vmem:[%s4916_s18 + $0x1688] sm:$0xff]  ;;  %v1738_v35 = vld [vmem:[%s4916_s18 + $0x2b58] sm:$0xff]  ;;  %v3266_v41 = vadd.f32 %v3265_v26, %v1570_v30  ;;  %v2171_v1 = vadd.f32 %v2170_v50, %v700_v21 }
 0x20b   : > { %v1732_v24 = vld [vmem:[%s4916_s18 + $0x2b28] sm:$0xff]  ;;  %v1258_v46 = vld [vmem:[%s4916_s18 + $0x1c58] sm:$0xff]  ;;  %v2613_v51 = vadd.f32 %v2612_v36, %v1072_v23  ;;  %v1950_v16 = vadd.f32 %v1949_v63, %v514_v38 }
 0x20c   : > { %v1252_v13 = vld [vmem:[%s4916_s18 + $0x1c28] sm:$0xff]  ;;  %v3483_v52 = vadd.f32 %v3482_v37, %v1732_v24  ;;  %v898_v55 = vld [vmem:[%s4916_s18 + $0x1118] sm:$0xff]  ;;  %v2172_v18 = vadd.f32 %v2171_v1, %v706_v39 }
 0x20d   : > { %v892_v40 = vld [vmem:[%s4916_s18 + $0x10e8] sm:$0xff]  ;;  %v2833_v60 = vadd.f32 %v2832_v44, %v1252_v13  ;;  %v1426_v62 = vld [vmem:[%s4916_s18 + $0x2198] sm:$0xff]  ;;  %v2614_v3 = vadd.f32 %v2613_v51, %v1078_v33 }
 0x20e   : > { %v1420_v47 = vld [vmem:[%s4916_s18 + $0x2168] sm:$0xff]  ;;  %v1582_v59 = vld [vmem:[%s4916_s18 + $0x2678] sm:$0xff]  ;;  %v3484_v4 = vadd.f32 %v3483_v52, %v1738_v35  ;;  %v2393_v8 = vadd.f32 %v2392_v58, %v892_v40 }
 0x20f   : > { %v1576_v43 = vld [vmem:[%s4916_s18 + $0x2648] sm:$0xff]  ;;  %v526_v0 = vld [vmem:[%s4916_s18 + $0x578] sm:$0xff]  ;;  %v2834_v9 = vadd.f32 %v2833_v60, %v1258_v46  ;;  %v3051_v10 = vadd.f32 %v3050_v48, %v1420_v47 }
 0x210   : > { %v520_v53 = vld [vmem:[%s4916_s18 + $0x548] sm:$0xff]  ;;  %v718_v5 = vld [vmem:[%s4916_s18 + $0xb78] sm:$0xff]  ;;  %v3267_v11 = vadd.f32 %v3266_v41, %v1576_v43  ;;  %v2394_v25 = vadd.f32 %v2393_v8, %v898_v55 }
 0x211   : > { %v712_v54 = vld [vmem:[%s4916_s18 + $0xb48] sm:$0xff]  ;;  %v1090_v6 = vld [vmem:[%s4916_s18 + $0x1718] sm:$0xff]  ;;  %v3052_v28 = vadd.f32 %v3051_v10, %v1426_v62  ;;  %v1951_v32 = vadd.f32 %v1950_v16, %v520_v53 }
 0x212   : > { %v1084_v56 = vld [vmem:[%s4916_s18 + $0x16e8] sm:$0xff]  ;;  %v1750_v7 = vld [vmem:[%s4916_s18 + $0x2bb8] sm:$0xff]  ;;  %v3268_v29 = vadd.f32 %v3267_v11, %v1582_v59  ;;  %v2173_v34 = vadd.f32 %v2172_v18, %v712_v54 }
 0x213   : > { %v1744_v57 = vld [vmem:[%s4916_s18 + $0x2b88] sm:$0xff]  ;;  %v1270_v12 = vld [vmem:[%s4916_s18 + $0x1cb8] sm:$0xff]  ;;  %v2615_v19 = vadd.f32 %v2614_v3, %v1084_v56  ;;  %v1952_v49 = vadd.f32 %v1951_v32, %v526_v0 }
 0x214   : > { %v1264_v61 = vld [vmem:[%s4916_s18 + $0x1c88] sm:$0xff]  ;;  %v3485_v17 = vadd.f32 %v3484_v4, %v1744_v57  ;;  %v910_v22 = vld [vmem:[%s4916_s18 + $0x1178] sm:$0xff]  ;;  %v2174_v50 = vadd.f32 %v2173_v34, %v718_v5 }
 0x215   : > { %v904_v2 = vld [vmem:[%s4916_s18 + $0x1148] sm:$0xff]  ;;  %v2835_v27 = vadd.f32 %v2834_v9, %v1264_v61  ;;  %v1438_v31 = vld [vmem:[%s4916_s18 + $0x21f8] sm:$0xff]  ;;  %v2616_v36 = vadd.f32 %v2615_v19, %v1090_v6 }
 0x216   : > { %v1432_v14 = vld [vmem:[%s4916_s18 + $0x21c8] sm:$0xff]  ;;  %v1594_v30 = vld [vmem:[%s4916_s18 + $0x26d8] sm:$0xff]  ;;  %v3486_v37 = vadd.f32 %v3485_v17, %v1750_v7  ;;  %v2395_v42 = vadd.f32 %v2394_v25, %v904_v2 }
 0x217   : > { %v1588_v15 = vld [vmem:[%s4916_s18 + $0x26a8] sm:$0xff]  ;;  %v538_v38 = vld [vmem:[%s4916_s18 + $0x5d8] sm:$0xff]  ;;  %v2836_v44 = vadd.f32 %v2835_v27, %v1270_v12  ;;  %v3053_v45 = vadd.f32 %v3052_v28, %v1432_v14 }
 0x218   : > { %v532_v20 = vld [vmem:[%s4916_s18 + $0x5a8] sm:$0xff]  ;;  %v730_v39 = vld [vmem:[%s4916_s18 + $0xbd8] sm:$0xff]  ;;  %v3269_v26 = vadd.f32 %v3268_v29, %v1588_v15  ;;  %v2396_v56 = vadd.f32 %v2395_v42, %v910_v22 }
 0x219   : > { %v724_v21 = vld [vmem:[%s4916_s18 + $0xba8] sm:$0xff]  ;;  %v1102_v33 = vld [vmem:[%s4916_s18 + $0x1778] sm:$0xff]  ;;  %v3054_v58 = vadd.f32 %v3053_v45, %v1438_v31  ;;  %v1953_v62 = vadd.f32 %v1952_v49, %v532_v20 }
 0x21a   : > { %v1096_v23 = vld [vmem:[%s4916_s18 + $0x1748] sm:$0xff]  ;;  %v1762_v35 = vld [vmem:[%s4916_s18 + $0x2c18] sm:$0xff]  ;;  %v3270_v60 = vadd.f32 %v3269_v26, %v1594_v30  ;;  %v2175_v59 = vadd.f32 %v2174_v50, %v724_v21 }
 0x21b   : > { %v1756_v24 = vld [vmem:[%s4916_s18 + $0x2be8] sm:$0xff]  ;;  %v1282_v46 = vld [vmem:[%s4916_s18 + $0x1d18] sm:$0xff]  ;;  %v2617_v51 = vadd.f32 %v2616_v36, %v1096_v23  ;;  %v1954_v10 = vadd.f32 %v1953_v62, %v538_v38 }
 0x21c   : > { %v1276_v13 = vld [vmem:[%s4916_s18 + $0x1ce8] sm:$0xff]  ;;  %v3487_v52 = vadd.f32 %v3486_v37, %v1756_v24  ;;  %v922_v53 = vld [vmem:[%s4916_s18 + $0x11d8] sm:$0xff]  ;;  %v2176_v11 = vadd.f32 %v2175_v59, %v730_v39 }
 0x21d   : > { %v916_v40 = vld [vmem:[%s4916_s18 + $0x11a8] sm:$0xff]  ;;  %v2837_v57 = vadd.f32 %v2836_v44, %v1276_v13  ;;  %v1450_v41 = vld [vmem:[%s4916_s18 + $0x2258] sm:$0xff]  ;;  %v2618_v63 = vadd.f32 %v2617_v51, %v1102_v33  ;;  %v1955_v22 = vrot.slane %v1954_v10, 4 }
 0x21e   : > { %v1444_v47 = vld [vmem:[%s4916_s18 + $0x2228] sm:$0xff]  ;;  %v1606_v61 = vld [vmem:[%s4916_s18 + $0x2738] sm:$0xff]  ;;  %v3488_v1 = vadd.f32 %v3487_v52, %v1762_v35  ;;  %v2397_v0 = vadd.f32 %v2396_v56, %v916_v40  ;;  %v2177_v23 = vrot.slane %v2176_v11, 4 }
 0x21f   : > { %v1600_v43 = vld [vmem:[%s4916_s18 + $0x2708] sm:$0xff]  ;;  %v1114_v3 = vld [vmem:[%s4916_s18 + $0x17d8] sm:$0xff]  ;;  %v2838_v5 = vadd.f32 %v2837_v57, %v1282_v46  ;;  %v3055_v2 = vadd.f32 %v3054_v58, %v1444_v47  ;;  %v1956_v38 = vadd.f32 %v1955_v22, %v1954_v10 }
 0x220   : > { %v1108_v54 = vld [vmem:[%s4916_s18 + $0x17a8] sm:$0xff]  ;;  %v1774_v4 = vld [vmem:[%s4916_s18 + $0x2c78] sm:$0xff]  ;;  %v3271_v6 = vadd.f32 %v3270_v60, %v1600_v43  ;;  %v2398_v16 = vadd.f32 %v2397_v0, %v922_v53  ;;  %v2178_v39 = vadd.f32 %v2177_v23, %v2176_v11 }
 0x221   : > { %v1768_v55 = vld [vmem:[%s4916_s18 + $0x2c48] sm:$0xff]  ;;  %v1294_v7 = vld [vmem:[%s4916_s18 + $0x1d78] sm:$0xff]  ;;  %v2619_v12 = vadd.f32 %v2618_v63, %v1108_v54  ;;  %v3056_v19 = vadd.f32 %v3055_v2, %v1450_v41 }
 0x222   : > { %v1288_v48 = vld [vmem:[%s4916_s18 + $0x1d48] sm:$0xff]  ;;  %v3489_v14 = vadd.f32 %v3488_v1, %v1768_v55  ;;  %v3272_v17 = vadd.f32 %v3271_v6, %v1606_v61  ;;  %v1462_v20 = vld [vmem:[%s4916_s18 + $0x22b8] sm:$0xff]  ;;  %v2399_v34 = vrot.slane %v2398_v16, 4  ;;  %v1957_v55 = vrot.slane %v1956_v38, 2 }
 0x223   : > { %v1456_v8 = vld [vmem:[%s4916_s18 + $0x2288] sm:$0xff]  ;;  %v2839_v18 = vadd.f32 %v2838_v5, %v1288_v48  ;;  %v1618_v21 = vld [vmem:[%s4916_s18 + $0x2798] sm:$0xff]  ;;  %v2620_v24 = vadd.f32 %v2619_v12, %v1114_v3  ;;  %v2179_v56 = vrot.slane %v2178_v39, 2 }
 0x224   : > { %v1612_v9 = vld [vmem:[%s4916_s18 + $0x2768] sm:$0xff]  ;;  %v3490_v25 = vadd.f32 %v3489_v14, %v1774_v4  ;;  %v1786_v27 = vld [vmem:[%s4916_s18 + $0x2cd8] sm:$0xff]  ;;  %v3057_v29 = vadd.f32 %v3056_v19, %v1456_v8  ;;  %v2400_v52 = vadd.f32 %v2399_v34, %v2398_v16  ;;  %v1958_v6 = vadd.f32 %v1957_v55, %v1956_v38 }
 0x225   : > { %v1780_v15 = vld [vmem:[%s4916_s18 + $0x2ca8] sm:$0xff]  ;;  %v2840_v28 = vadd.f32 %v2839_v18, %v1294_v7  ;;  %v3273_v13 = vadd.f32 %v3272_v17, %v1612_v9  ;;  %v1474_v35 = vld [vmem:[%s4916_s18 + $0x2318] sm:$0xff]  ;;  %v2621_v44 = vrot.slane %v2620_v24, 4  ;;  %v2180_v7 = vadd.f32 %v2179_v56, %v2178_v39 }
 0x226   : > { %v1300_v31 = vld [vmem:[%s4916_s18 + $0x1da8] sm:$0xff]  ;;  %v3491_v36 = vadd.f32 %v3490_v25, %v1780_v15  ;;  %v3058_v40 = vadd.f32 %v3057_v29, %v1462_v20  ;;  %v1630_v42 = vld [vmem:[%s4916_s18 + $0x27f8] sm:$0xff]  ;;  %v2401_v0 = vrot.slane %v2400_v52, 2  ;;  %v1959_v23 = vrot.slane %v1958_v6, 1 }
 0x227   : > { %v1468_v30 = vld [vmem:[%s4916_s18 + $0x22e8] sm:$0xff]  ;;  %v3274_v33 = vadd.f32 %v3273_v13, %v1618_v21  ;;  %v1798_v26 = vld [vmem:[%s4916_s18 + $0x2d38] sm:$0xff]  ;;  %v2841_v46 = vadd.f32 %v2840_v28, %v1300_v31  ;;  %v2622_v41 = vadd.f32 %v2621_v44, %v2620_v24  ;;  %v2181_v24 = vrot.slane %v2180_v7, 1 }
 0x228   : > { %v1624_v32 = vld [vmem:[%s4916_s18 + $0x27c8] sm:$0xff]  ;;  %v3492_v45 = vadd.f32 %v3491_v36, %v1786_v27  ;;  %v3059_v47 = vadd.f32 %v3058_v40, %v1468_v30  ;;  %v1306_v49 = vld [vmem:[%s4916_s18 + $0x1dd8] sm:$0xff]  ;;  %v2402_v20 = vadd.f32 %v2401_v0, %v2400_v52 }
 0x229   : > { %v1792_v37 = vld [vmem:[%s4916_s18 + $0x2d08] sm:$0xff]  ;;  %v3275_v43 = vadd.f32 %v3274_v33, %v1624_v32  ;;  %v1486_v60 = vld [vmem:[%s4916_s18 + $0x2378] sm:$0xff]  ;;  %v2842_v59 = vadd.f32 %v2841_v46, %v1306_v49  ;;  %v2623_v12 = vrot.slane %v2622_v41, 2  ;;  %v361_v49 = vld [vmem:[%s4916_s18 + $0x50] sm:$0xff] }
 0x22a   : > { %v1480_v50 = vld [vmem:[%s4916_s18 + $0x2348] sm:$0xff]  ;;  %v3493_v53 = vadd.f32 %v3492_v45, %v1792_v37  ;;  %v3060_v57 = vadd.f32 %v3059_v47, %v1474_v35  ;;  %v1642_v48 = vld [vmem:[%s4916_s18 + $0x2858] sm:$0xff]  ;;  %v2403_v37 = vrot.slane %v2402_v20, 1  ;;  %v1960_v35 = vadd.f32 %v1959_v23, %v1958_v6  ;;  %v367_v6 = vld [vmem:[%s4916_s18 + $0x80] sm:$0xff] }
 0x22b   : > { %v1636_v51 = vld [vmem:[%s4916_s18 + $0x2828] sm:$0xff]  ;;  %v3276_v58 = vadd.f32 %v3275_v43, %v1630_v42  ;;  %v1810_v62 = vld [vmem:[%s4916_s18 + $0x2d98] sm:$0xff]  ;;  %v2843_v16 = vrot.slane %v2842_v59, 4  ;;  %v2624_v29 = vadd.f32 %v2623_v12, %v2622_v41  ;;  %v2182_v42 = vadd.f32 %v2181_v24, %v2180_v7  ;;  %v355_v43 = vld [vmem:[%s4916_s18 + $0x20] sm:$0xff] }
 0x22c   : > { %v1804_v54 = vld [vmem:[%s4916_s18 + $0x2d68] sm:$0xff]  ;;  %v3494_v61 = vadd.f32 %v3493_v53, %v1798_v26  ;;  %v3061_v63 = vadd.f32 %v3060_v57, %v1480_v50  ;;  %v1498_v10 = vld [vmem:[%s4916_s18 + $0x23d8] sm:$0xff]  ;;  %v547_v50 = vld [vmem:[%s4916_s18 + $0x620] sm:$0xff] }
 0x22d   : > { %v3277_v1 = vadd.f32 %v3276_v58, %v1636_v51  ;;  %v1492_v3 = vld [vmem:[%s4916_s18 + $0x23a8] sm:$0xff]  ;;  %v1654_v11 = vld [vmem:[%s4916_s18 + $0x28b8] sm:$0xff]  ;;  %v2844_v30 = vadd.f32 %v2843_v16, %v2842_v59  ;;  %v2625_v26 = vrot.slane %v2624_v29, 1  ;;  %v2404_v58 = vadd.f32 %v2403_v37, %v2402_v20  ;;  %v553_v41 = vld [vmem:[%s4916_s18 + $0x650] sm:$0xff] }
 0x22e   : > { %v1648_v4 = vld [vmem:[%s4916_s18 + $0x2888] sm:$0xff]  ;;  %v3495_v5 = vadd.f32 %v3494_v61, %v1804_v54  ;;  %v3062_v8 = vadd.f32 %v3061_v63, %v1486_v60  ;;  %v1822_v15 = vld [vmem:[%s4916_s18 + $0x2df8] sm:$0xff]  ;;  %v3859_v54 = vld [vmem:[%s7020_s1 + $0x210] sm:$0xff]  ;;  %v3725_v59 = vsel %vm3711_vm0, %v2182_v42, %v1960_v35 }
 0x22f   : > { %v1816_v2 = vld [vmem:[%s4916_s18 + $0x2dc8] sm:$0xff]  ;;  %v3278_v9 = vadd.f32 %v3277_v1, %v1642_v48  ;;  %v1666_v28 = vld [vmem:[%s4916_s18 + $0x2918] sm:$0xff]  ;;  %v2845_v52 = vrot.slane %v2844_v30, 2  ;;  %3986 = vmatpush.msrb.mxu0 %v3859_v54  ;;  %v3875_v48 = vld [vmem:[%s7020_s1 + $0x290] sm:$0xff]  ;;  %v2626_v0 = vadd.f32 %v2625_v26, %v2624_v29 }
 0x230   : > { %v3496_v14 = vadd.f32 %v3495_v5, %v1810_v62  ;;  %v3063_v18 = vadd.f32 %v3062_v8, %v1492_v3  ;;  %v1660_v17 = vld [vmem:[%s4916_s18 + $0x28e8] sm:$0xff]  ;;  %v1834_v31 = vld [vmem:[%s4916_s18 + $0x2e58] sm:$0xff]  ;;  %v739_v61 = vld [vmem:[%s4916_s18 + $0xc20] sm:$0xff] }
 0x231   : > { %v3279_v19 = vadd.f32 %v3278_v9, %v1648_v4  ;;  %v1828_v22 = vld [vmem:[%s4916_s18 + $0x2e28] sm:$0xff]  ;;  %v1678_v39 = vld [vmem:[%s4916_s18 + $0x2978] sm:$0xff]  ;;  %v3857_v63 = vld [vmem:[%s7020_s1 + $0x200] sm:$0xff]  ;;  %v6286_v8 = vadd.f32 %v2845_v52, %v2844_v30 }
 0x232   : > { %v3497_v21 = vadd.f32 %v3496_v14, %v1816_v2  ;;  %v3064_v25 = vadd.f32 %v3063_v18, %v1498_v10  ;;  %v1672_v36 = vld [vmem:[%s4916_s18 + $0x2948] sm:$0xff]  ;;  %v1846_v33 = vld [vmem:[%s4916_s18 + $0x2eb8] sm:$0xff]  ;;  %v745_v3 = vld [vmem:[%s4916_s18 + $0xc50] sm:$0xff]  ;;  %v2035_v14 = vadd.f32 %v361_v49, %v355_v43 }
 0x233   : > { %v3280_v27 = vadd.f32 %v3279_v19, %v1654_v11  ;;  %v1840_v40 = vld [vmem:[%s4916_s18 + $0x2e88] sm:$0xff]  ;;  %v3876_v55 = vld [vmem:[%s7020_s1 + $0x298] sm:$0xff]  ;;  %v559_v7 = vld [vmem:[%s4916_s18 + $0x680] sm:$0xff]  ;;  %v3726_v19 = vsel %vm3713_vm1, %v2404_v58, %v3725_v59 }
 0x234   : > { %v3498_v13 = vadd.f32 %v3497_v21, %v1822_v15  ;;  %v3065_v32 = vrot.slane %v3064_v25, 4  ;;  %v1684_v45 = vld [vmem:[%s4916_s18 + $0x29a8] sm:$0xff]  ;;  %v1690_v57 = vld [vmem:[%s4916_s18 + $0x29d8] sm:$0xff]  ;;  %4005 = vmatpush.msrb.mxu1 %v3876_v55  ;;  %v751_v10 = vld [vmem:[%s4916_s18 + $0xc80] sm:$0xff]  ;;  %v2257_v15 = vadd.f32 %v553_v41, %v547_v50  ;;  %v2479_v21 = vadd.f32 %v745_v3, %v739_v61 }
 0x235   : > { %v3281_v34 = vadd.f32 %v3280_v27, %v1660_v17  ;;  %v1852_v51 = vld [vmem:[%s4916_s18 + $0x2ee8] sm:$0xff]  ;;  %v1858_v4 = vld [vmem:[%s4916_s18 + $0x2f18] sm:$0xff]  ;;  %v931_v11 = vld [vmem:[%s4916_s18 + $0x1220] sm:$0xff]  ;;  %v2036_v27 = vadd.f32 %v2035_v14, %v367_v6 }
 0x236   : > { %v3499_v38 = vadd.f32 %v3498_v13, %v1828_v22  ;;  %v3066_v46 = vadd.f32 %v3065_v32, %v3064_v25  ;;  %v3858_v56 = vld [vmem:[%s7020_s1 + $0x208] sm:$0xff]  ;;  %4006 = vmatpush.msrb.mxu1 %v3875_v48  ;;  %v937_v12 = vld [vmem:[%s4916_s18 + $0x1250] sm:$0xff]  ;;  %v1870_v22 = vld [vmem:[%s4916_s18 + $0x2f78] sm:$0xff] }
 0x237   : > { %v3282_v44 = vadd.f32 %v3281_v34, %v1666_v28  ;;  %v3874_v1 = vld [vmem:[%s7020_s1 + $0x288] sm:$0xff]  ;;  %3987 = vmatpush.msrb.mxu0 %v3858_v56  ;;  %v373_v17 = vld [vmem:[%s4916_s18 + $0xb0] sm:$0xff]  ;;  %v943_v25 = vld [vmem:[%s4916_s18 + $0x1280] sm:$0xff]  ;;  %v2258_v28 = vadd.f32 %v2257_v15, %v559_v7  ;;  %v2480_v34 = vadd.f32 %v2479_v21, %v751_v10 }
 0x238   : > { %v3500_v47 = vadd.f32 %v3499_v38, %v1834_v31  ;;  %v3067_v5 = vrot.slane %v3066_v46, 2  ;;  %v1864_v16 = vld [vmem:[%s4916_s18 + $0x2f48] sm:$0xff]  ;;  %4007 = vmatpush.msrb.mxu1 %v3874_v1  ;;  %v565_v20 = vld [vmem:[%s4916_s18 + $0x6b0] sm:$0xff]  ;;  %v379_v31 = vld [vmem:[%s4916_s18 + $0xe0] sm:$0xff]  ;;  %v3727_v38 = vsel %vm3715_vm2, %v2626_v0, %v3726_v19  ;;  %v2037_v35 = vadd.f32 %v2036_v27, %v373_v17 }
 0x239   : > { %v3283_v53 = vadd.f32 %v3282_v44, %v1672_v36  ;;  %3988 = vmatpush.msrb.mxu0 %v3857_v63  ;;  %v757_v24 = vld [vmem:[%s4916_s18 + $0xcb0] sm:$0xff]  ;;  %v571_v32 = vld [vmem:[%s4916_s18 + $0x6e0] sm:$0xff]  ;;  %v2701_v36 = vadd.f32 %v937_v12, %v931_v11  ;;  %v2259_v42 = vadd.f32 %v2258_v28, %v565_v20  ;;  %v2847_v44 = vrot.slane %v6286_v8, 1  ;;  %v1876_v50 = vld [vmem:[%s4916_s18 + $0x2fa8] sm:$0xff] }
 0x23a   : > { %v3501_v60 = vadd.f32 %v3500_v47, %v1840_v40  ;;  %v3068_v29 = vadd.f32 %v3067_v5, %v3066_v46  ;;  %v385_v30 = vld [vmem:[%s4916_s18 + $0x110] sm:$0xff]  ;;  %v763_v40 = vld [vmem:[%s4916_s18 + $0xce0] sm:$0xff]  ;;  %v2481_v43 = vadd.f32 %v2480_v34, %v757_v24  ;;  %v2038_v54 = vadd.f32 %v2037_v35, %v379_v31  ;;  %v1882_v59 = vld [vmem:[%s4916_s18 + $0x2fd8] sm:$0xff] }
 0x23b   : > { %v3284_v62 = vadd.f32 %v3283_v53, %v1678_v39  ;;  %v577_v39 = vld [vmem:[%s4916_s18 + $0x710] sm:$0xff]  ;;  %v1123_v26 = vld [vmem:[%s4916_s18 + $0x1820] sm:$0xff]  ;;  %v2702_v49 = vadd.f32 %v2701_v36, %v943_v25  ;;  %v2260_v55 = vadd.f32 %v2259_v42, %v571_v32 }
 0x23c   : > { %v3502_v2 = vadd.f32 %v3501_v60, %v1846_v33  ;;  %v949_v33 = vld [vmem:[%s4916_s18 + $0x12b0] sm:$0xff]  ;;  %v1135_v47 = vld [vmem:[%s4916_s18 + $0x1880] sm:$0xff]  ;;  %v2482_v61 = vadd.f32 %v2481_v43, %v763_v40 }
 0x23d   : > { %v3285_v9 = vadd.f32 %v3284_v62, %v1684_v45  ;;  %v1129_v46 = vld [vmem:[%s4916_s18 + $0x1850] sm:$0xff]  ;;  %v955_v53 = vld [vmem:[%s4916_s18 + $0x12e0] sm:$0xff]  ;;  %v2703_v62 = vadd.f32 %v2702_v49, %v949_v33  ;;  %v2261_v0 = vadd.f32 %v2260_v55, %v577_v39 }
 0x23e   : > { %v3503_v18 = vadd.f32 %v3502_v2, %v1852_v51  ;;  %v769_v52 = vld [vmem:[%s4916_s18 + $0xd10] sm:$0xff]  ;;  %v2923_v56 = vadd.f32 %v1129_v46, %v1123_v26  ;;  %v391_v60 = vld [vmem:[%s4916_s18 + $0x140] sm:$0xff]  ;;  %v2848_v2 = vadd.f32 %v2847_v44, %v6286_v8 }
 0x23f   : > { %v3286_v23 = vadd.f32 %v3285_v9, %v1690_v57  ;;  %v3069_v57 = vrot.slane %v3068_v29, 1  ;;  %v583_v48 = vld [vmem:[%s4916_s18 + $0x740] sm:$0xff]  ;;  %v1141_v41 = vld [vmem:[%s4916_s18 + $0x18b0] sm:$0xff]  ;;  %v2483_v11 = vadd.f32 %v2482_v61, %v769_v52  ;;  %v2704_v12 = vadd.f32 %v2703_v62, %v955_v53 }
 0x240   : > { %v3504_v13 = vadd.f32 %v3503_v18, %v1858_v4  ;;  %v775_v1 = vld [vmem:[%s4916_s18 + $0xd40] sm:$0xff]  ;;  %v961_v3 = vld [vmem:[%s4916_s18 + $0x1310] sm:$0xff]  ;;  %v2039_v4 = vadd.f32 %v2038_v54, %v385_v30  ;;  %v2924_v5 = vadd.f32 %v2923_v56, %v1135_v47  ;;  %v2262_v19 = vadd.f32 %v2261_v0, %v583_v48 }
 0x241   : > { %v3287_v37 = vrot.slane %v3286_v23, 4  ;;  %v397_v7 = vld [vmem:[%s4916_s18 + $0x170] sm:$0xff]  ;;  %v1147_v10 = vld [vmem:[%s4916_s18 + $0x18e0] sm:$0xff]  ;;  %v2705_v24 = vadd.f32 %v2704_v12, %v961_v3  ;;  %v3070_v25 = vadd.f32 %v3069_v57, %v3068_v29  ;;  %v3728_v36 = vsel %vm3717_vm3, %v2848_v2, %v3727_v38 }
 0x242   : > { %v3505_v45 = vadd.f32 %v3504_v13, %v1864_v16  ;;  %v589_v9 = vld [vmem:[%s4916_s18 + $0x770] sm:$0xff]  ;;  %v967_v16 = vld [vmem:[%s4916_s18 + $0x1340] sm:$0xff]  ;;  %v2040_v18 = vadd.f32 %v2039_v4, %v391_v60  ;;  %v2925_v17 = vadd.f32 %v2924_v5, %v1141_v41 }
 0x243   : > { %v3288_v51 = vadd.f32 %v3287_v37, %v3286_v23  ;;  %v781_v15 = vld [vmem:[%s4916_s18 + $0xd70] sm:$0xff]  ;;  %v403_v8 = vld [vmem:[%s4916_s18 + $0x1a0] sm:$0xff]  ;;  %v2484_v23 = vadd.f32 %v2483_v11, %v775_v1  ;;  %v2263_v30 = vadd.f32 %v2262_v19, %v589_v9  ;;  %v2706_v29 = vadd.f32 %v2705_v24, %v967_v16 }
 0x244   : > { %v3506_v58 = vadd.f32 %v3505_v45, %v1870_v22  ;;  %v595_v21 = vld [vmem:[%s4916_s18 + $0x7a0] sm:$0xff]  ;;  %v1153_v22 = vld [vmem:[%s4916_s18 + $0x1910] sm:$0xff]  ;;  %v2041_v31 = vadd.f32 %v2040_v18, %v397_v7  ;;  %v2926_v32 = vadd.f32 %v2925_v17, %v1147_v10  ;;  %v3729_v54 = vsel %vm3719_vm4, %v3070_v25, %v3728_v36 }
 0x245   : > { %v3289_v63 = vrot.slane %v3288_v51, 2  ;;  %v409_v27 = vld [vmem:[%s4916_s18 + $0x1d0] sm:$0xff]  ;;  %v787_v28 = vld [vmem:[%s4916_s18 + $0xda0] sm:$0xff]  ;;  %v2485_v33 = vadd.f32 %v2484_v23, %v781_v15  ;;  %v2264_v46 = vadd.f32 %v2263_v30, %v595_v21 }
 0x246   : > { %v3507_v6 = vadd.f32 %v3506_v58, %v1876_v50  ;;  %v973_v13 = vld [vmem:[%s4916_s18 + $0x1370] sm:$0xff]  ;;  %v415_v37 = vld [vmem:[%s4916_s18 + $0x200] sm:$0xff]  ;;  %v2042_v26 = vadd.f32 %v2041_v31, %v403_v8  ;;  %v2927_v47 = vadd.f32 %v2926_v32, %v1153_v22 }
 0x247   : > { %v3290_v14 = vadd.f32 %v3289_v63, %v3288_v51  ;;  %v601_v39 = vld [vmem:[%s4916_s18 + $0x7d0] sm:$0xff]  ;;  %v1159_v40 = vld [vmem:[%s4916_s18 + $0x1940] sm:$0xff]  ;;  %v2486_v52 = vadd.f32 %v2485_v33, %v787_v28  ;;  %v2707_v53 = vadd.f32 %v2706_v29, %v973_v13 }
 0x248   : > { %v3508_v20 = vadd.f32 %v3507_v6, %v1882_v59  ;;  %v607_v42 = vld [vmem:[%s4916_s18 + $0x800] sm:$0xff]  ;;  %v793_v44 = vld [vmem:[%s4916_s18 + $0xdd0] sm:$0xff]  ;;  %v2043_v58 = vadd.f32 %v2042_v26, %v409_v27  ;;  %v2265_v60 = vadd.f32 %v2264_v46, %v601_v39  ;;  %v2928_v48 = vadd.f32 %v2927_v47, %v1159_v40 }
 0x249   : > { %v3291_v35 = vrot.slane %v3290_v14, 1  ;;  %v979_v45 = vld [vmem:[%s4916_s18 + $0x13a0] sm:$0xff]  ;;  %v421_v38 = vld [vmem:[%s4916_s18 + $0x230] sm:$0xff]  ;;  %v2487_v63 = vadd.f32 %v2486_v52, %v793_v44 }
 0x24a   : > { %v3509_v34 = vrot.slane %v3508_v20, 4  ;;  %v799_v49 = vld [vmem:[%s4916_s18 + $0xe00] sm:$0xff]  ;;  %v1165_v50 = vld [vmem:[%s4916_s18 + $0x1970] sm:$0xff]  ;;  %v2708_v1 = vadd.f32 %v2707_v53, %v979_v45  ;;  %v2044_v6 = vadd.f32 %v2043_v58, %v415_v37  ;;  %v2266_v7 = vadd.f32 %v2265_v60, %v607_v42 }
 0x24b   : > { %v1315_v51 = vld [vmem:[%s4916_s18 + $0x1e20] sm:$0xff]  ;;  %v985_v55 = vld [vmem:[%s4916_s18 + $0x13d0] sm:$0xff]  ;;  %v3292_v4 = vadd.f32 %v3291_v35, %v3290_v14  ;;  %v2929_v9 = vadd.f32 %v2928_v48, %v1165_v50  ;;  %v2488_v16 = vadd.f32 %v2487_v63, %v799_v49 }
 0x24c   : > { %v3510_v43 = vadd.f32 %v3509_v34, %v3508_v20  ;;  %v1321_v56 = vld [vmem:[%s4916_s18 + $0x1e50] sm:$0xff]  ;;  %v1327_v57 = vld [vmem:[%s4916_s18 + $0x1e80] sm:$0xff]  ;;  %v2709_v18 = vadd.f32 %v2708_v1, %v985_v55  ;;  %v2045_v8 = vadd.f32 %v2044_v6, %v421_v38 }
 0x24d   : > { %v427_v61 = vld [vmem:[%s4916_s18 + $0x260] sm:$0xff]  ;;  %v613_v62 = vld [vmem:[%s4916_s18 + $0x830] sm:$0xff]  ;;  %v3145_v3 = vadd.f32 %v1321_v56, %v1315_v51  ;;  %v3730_v30 = vsel %vm3721_vm5, %v3292_v4, %v3729_v54 }
 0x24e   : > { %v3511_v41 = vrot.slane %v3510_v43, 2  ;;  %v1171_v59 = vld [vmem:[%s4916_s18 + $0x19a0] sm:$0xff]  ;;  %v805_v0 = vld [vmem:[%s4916_s18 + $0xe30] sm:$0xff]  ;;  %v2267_v21 = vadd.f32 %v2266_v7, %v613_v62  ;;  %v2046_v37 = vadd.f32 %v2045_v8, %v427_v61 }
 0x24f   : > { %v991_v5 = vld [vmem:[%s4916_s18 + $0x1400] sm:$0xff]  ;;  %v1333_v2 = vld [vmem:[%s4916_s18 + $0x1eb0] sm:$0xff]  ;;  %v3146_v19 = vadd.f32 %v3145_v3, %v1327_v57  ;;  %v2930_v22 = vadd.f32 %v2929_v9, %v1171_v59  ;;  %v2489_v28 = vadd.f32 %v2488_v16, %v805_v0 }
 0x250   : > { %v3512_v10 = vadd.f32 %v3511_v41, %v3510_v43  ;;  %v433_v11 = vld [vmem:[%s4916_s18 + $0x290] sm:$0xff]  ;;  %v619_v12 = vld [vmem:[%s4916_s18 + $0x860] sm:$0xff]  ;;  %v2710_v13 = vadd.f32 %v2709_v18, %v991_v5 }
 0x251   : > { %v1177_v15 = vld [vmem:[%s4916_s18 + $0x19d0] sm:$0xff]  ;;  %v811_v14 = vld [vmem:[%s4916_s18 + $0xe60] sm:$0xff]  ;;  %v3147_v31 = vadd.f32 %v3146_v19, %v1333_v2  ;;  %v2268_v39 = vadd.f32 %v2267_v21, %v619_v12  ;;  %v2047_v49 = vadd.f32 %v2046_v37, %v433_v11 }
 0x252   : > { %v997_v17 = vld [vmem:[%s4916_s18 + $0x1430] sm:$0xff]  ;;  %v1339_v20 = vld [vmem:[%s4916_s18 + $0x1ee0] sm:$0xff]  ;;  %v3513_v23 = vrot.slane %v3512_v10, 1  ;;  %v2931_v40 = vadd.f32 %v2930_v22, %v1177_v15  ;;  %v2490_v45 = vadd.f32 %v2489_v28, %v811_v14 }
 0x253   : > { %v439_v24 = vld [vmem:[%s4916_s18 + $0x2c0] sm:$0xff]  ;;  %v625_v25 = vld [vmem:[%s4916_s18 + $0x890] sm:$0xff]  ;;  %v2711_v26 = vadd.f32 %v2710_v13, %v997_v17  ;;  %v3148_v46 = vadd.f32 %v3147_v31, %v1339_v20 }
 0x254   : > { %v1183_v27 = vld [vmem:[%s4916_s18 + $0x1a00] sm:$0xff]  ;;  %v817_v32 = vld [vmem:[%s4916_s18 + $0xe90] sm:$0xff]  ;;  %v3514_v33 = vadd.f32 %v3513_v23, %v3512_v10  ;;  %v2269_v50 = vadd.f32 %v2268_v39, %v625_v25  ;;  %v2048_v63 = vadd.f32 %v2047_v49, %v439_v24 }
 0x255   : > { %v1003_v34 = vld [vmem:[%s4916_s18 + $0x1460] sm:$0xff]  ;;  %v1345_v36 = vld [vmem:[%s4916_s18 + $0x1f10] sm:$0xff]  ;;  %v2932_v51 = vadd.f32 %v2931_v40, %v1183_v27  ;;  %v2491_v58 = vadd.f32 %v2490_v45, %v817_v32 }
 0x256   : > { %v445_v29 = vld [vmem:[%s4916_s18 + $0x2f0] sm:$0xff]  ;;  %v631_v35 = vld [vmem:[%s4916_s18 + $0x8c0] sm:$0xff]  ;;  %v3731_v52 = vsel %vm3723_vm6, %v3514_v33, %v3730_v30  ;;  %v2712_v60 = vadd.f32 %v2711_v26, %v1003_v34  ;;  %v3149_v48 = vadd.f32 %v3148_v46, %v1345_v36 }
 0x257   : > { %v637_v42 = vld [vmem:[%s4916_s18 + $0x8f0] sm:$0xff]  ;;  %v823_v47 = vld [vmem:[%s4916_s18 + $0xec0] sm:$0xff]  ;;  %v3788_v41 = vmul.f32 0.00390625, %v3731_v52  ;;  %v2270_v1 = vadd.f32 %v2269_v50, %v631_v35  ;;  %v2049_v18 = vadd.f32 %v2048_v63, %v445_v29 }
 0x258   : > { %v1189_v44 = vld [vmem:[%s4916_s18 + $0x1a30] sm:$0xff]  ;;  %v1351_v38 = vld [vmem:[%s4916_s18 + $0x1f40] sm:$0xff]  ;;  %v2492_v7 = vadd.f32 %v2491_v58, %v823_v47 }
 0x259   : > { %v1009_v43 = vld [vmem:[%s4916_s18 + $0x1490] sm:$0xff]  ;;  %v451_v53 = vld [vmem:[%s4916_s18 + $0x320] sm:$0xff]  ;;  %v2933_v3 = vadd.f32 %v2932_v51, %v1189_v44  ;;  %v3150_v10 = vadd.f32 %v3149_v48, %v1351_v38  ;;  %3929 = vmatmul.f32.vlgmr.msra.gmra.mxu1 %v3788_v41  ;;  %v2271_v19 = vadd.f32 %v2270_v1, %v637_v42 }
 0x25a   : > { %v643_v54 = vld [vmem:[%s4916_s18 + $0x920] sm:$0xff]  ;;  %v829_v55 = vld [vmem:[%s4916_s18 + $0xef0] sm:$0xff]  ;;  %v2713_v9 = vadd.f32 %v2712_v60, %v1009_v43  ;;  %v2050_v31 = vadd.f32 %v2049_v18, %v451_v53 }
 0x25b   : > { %v1015_v56 = vld [vmem:[%s4916_s18 + $0x14c0] sm:$0xff]  ;;  %v1357_v61 = vld [vmem:[%s4916_s18 + $0x1f70] sm:$0xff]  ;;  %v2493_v22 = vadd.f32 %v2492_v7, %v829_v55  ;;  %v2272_v30 = vadd.f32 %v2271_v19, %v643_v54 }
 0x25c   : > { %v1195_v57 = vld [vmem:[%s4916_s18 + $0x1a60] sm:$0xff]  ;;  %v1513_v59 = vld [vmem:[%s4916_s18 + $0x2450] sm:$0xff]  ;;  %v2714_v23 = vadd.f32 %v2713_v9, %v1015_v56  ;;  %v3151_v24 = vadd.f32 %v3150_v10, %v1357_v61 }
 0x25d   : > { %v1507_v62 = vld [vmem:[%s4916_s18 + $0x2420] sm:$0xff]  ;;  %v457_v4 = vld [vmem:[%s4916_s18 + $0x350] sm:$0xff]  ;;  %v2934_v14 = vadd.f32 %v2933_v3, %v1195_v57 }
 0x25e   : > { %v649_v0 = vld [vmem:[%s4916_s18 + $0x950] sm:$0xff]  ;;  %v835_v5 = vld [vmem:[%s4916_s18 + $0xf20] sm:$0xff]  ;;  %v3367_v11 = vadd.f32 %v1513_v59, %v1507_v62  ;;  %v2051_v26 = vadd.f32 %v2050_v31, %v457_v4 }
 0x25f   : > { %v1201_v2 = vld [vmem:[%s4916_s18 + $0x1a90] sm:$0xff]  ;;  %v1519_v6 = vld [vmem:[%s4916_s18 + $0x2480] sm:$0xff]  ;;  %v2494_v40 = vadd.f32 %v2493_v22, %v835_v5  ;;  %v2273_v46 = vadd.f32 %v2272_v30, %v649_v0 }
 0x260   : > { %v1021_v12 = vld [vmem:[%s4916_s18 + $0x14f0] sm:$0xff]  ;;  %v1363_v15 = vld [vmem:[%s4916_s18 + $0x1fa0] sm:$0xff]  ;;  %v3368_v25 = vadd.f32 %v3367_v11, %v1519_v6  ;;  %v2935_v32 = vadd.f32 %v2934_v14, %v1201_v2 }
 0x261   : > { %v1525_v16 = vld [vmem:[%s4916_s18 + $0x24b0] sm:$0xff]  ;;  %v463_v17 = vld [vmem:[%s4916_s18 + $0x380] sm:$0xff]  ;;  %v2715_v33 = vadd.f32 %v2714_v23, %v1021_v12  ;;  %v3152_v29 = vadd.f32 %v3151_v24, %v1363_v15 }
 0x262   : > { %v655_v20 = vld [vmem:[%s4916_s18 + $0x980] sm:$0xff]  ;;  %v841_v8 = vld [vmem:[%s4916_s18 + $0xf50] sm:$0xff]  ;;  %v3369_v35 = vadd.f32 %v3368_v25, %v1525_v16  ;;  %v2052_v58 = vadd.f32 %v2051_v26, %v463_v17 }
 0x263   : > { %v1207_v21 = vld [vmem:[%s4916_s18 + $0x1ac0] sm:$0xff]  ;;  %v1369_v28 = vld [vmem:[%s4916_s18 + $0x1fd0] sm:$0xff]  ;;  %v2495_v51 = vadd.f32 %v2494_v40, %v841_v8  ;;  %v2274_v60 = vadd.f32 %v2273_v46, %v655_v20 }
 0x264   : > { %v1027_v27 = vld [vmem:[%s4916_s18 + $0x1520] sm:$0xff]  ;;  %v469_v34 = vld [vmem:[%s4916_s18 + $0x3b0] sm:$0xff]  ;;  %v2936_v47 = vadd.f32 %v2935_v32, %v1207_v21  ;;  %v3153_v53 = vadd.f32 %v3152_v29, %v1369_v28 }
 0x265   : > { %v1531_v13 = vld [vmem:[%s4916_s18 + $0x24e0] sm:$0xff]  ;;  %v661_v36 = vld [vmem:[%s4916_s18 + $0x9b0] sm:$0xff]  ;;  %v2716_v52 = vadd.f32 %v2715_v33, %v1027_v27  ;;  %v2053_v9 = vadd.f32 %v2052_v58, %v469_v34 }
 0x266   : > { %v847_v37 = vld [vmem:[%s4916_s18 + $0xf80] sm:$0xff]  ;;  %v1213_v39 = vld [vmem:[%s4916_s18 + $0x1af0] sm:$0xff]  ;;  %v3370_v54 = vadd.f32 %v3369_v35, %v1531_v13  ;;  %v2275_v10 = vadd.f32 %v2274_v60, %v661_v36 }
 0x267   : > { %v1033_v42 = vld [vmem:[%s4916_s18 + $0x1550] sm:$0xff]  ;;  %v1375_v44 = vld [vmem:[%s4916_s18 + $0x2000] sm:$0xff]  ;;  %v2937_v48 = vadd.f32 %v2936_v47, %v1213_v39  ;;  %v2496_v1 = vadd.f32 %v2495_v51, %v847_v37 }
 0x268   : > { %v1537_v45 = vld [vmem:[%s4916_s18 + $0x2510] sm:$0xff]  ;;  %v475_v43 = vld [vmem:[%s4916_s18 + $0x3e0] sm:$0xff]  ;;  %v2717_v3 = vadd.f32 %v2716_v52, %v1033_v42  ;;  %v3154_v4 = vadd.f32 %v3153_v53, %v1375_v44 }
 0x269   : > { %v667_v38 = vld [vmem:[%s4916_s18 + $0x9e0] sm:$0xff]  ;;  %v853_v49 = vld [vmem:[%s4916_s18 + $0xfb0] sm:$0xff]  ;;  %v3371_v0 = vadd.f32 %v3370_v54, %v1537_v45  ;;  %v2054_v24 = vadd.f32 %v2053_v9, %v475_v43 }
 0x26a   : > { %v1219_v50 = vld [vmem:[%s4916_s18 + $0x1b20] sm:$0xff]  ;;  %v1381_v56 = vld [vmem:[%s4916_s18 + $0x2030] sm:$0xff]  ;;  %v2497_v14 = vadd.f32 %v2496_v1, %v853_v49  ;;  %v2276_v25 = vadd.f32 %v2275_v10, %v667_v38 }
 0x26b   : > { %v1039_v55 = vld [vmem:[%s4916_s18 + $0x1580] sm:$0xff]  ;;  %v481_v41 = vld [vmem:[%s4916_s18 + $0x410] sm:$0xff]  ;;  %v2938_v11 = vadd.f32 %v2937_v48, %v1219_v50  ;;  %v3155_v20 = vadd.f32 %v3154_v4, %v1381_v56 }
 0x26c   : > { %v1543_v57 = vld [vmem:[%s4916_s18 + $0x2540] sm:$0xff]  ;;  %v673_v61 = vld [vmem:[%s4916_s18 + $0xa10] sm:$0xff]  ;;  %v2718_v17 = vadd.f32 %v2717_v3, %v1039_v55  ;;  %v2055_v42 = vadd.f32 %v2054_v24, %v481_v41 }
 0x26d   : > { %v859_v62 = vld [vmem:[%s4916_s18 + $0xfe0] sm:$0xff]  ;;  %v1045_v59 = vld [vmem:[%s4916_s18 + $0x15b0] sm:$0xff]  ;;  %v3372_v8 = vadd.f32 %v3371_v0, %v1543_v57  ;;  %v2277_v44 = vadd.f32 %v2276_v25, %v673_v61 }
 0x26e   : > { %v1225_v63 = vld [vmem:[%s4916_s18 + $0x1b50] sm:$0xff]  ;;  %v1231_v2 = vld [vmem:[%s4916_s18 + $0x1b80] sm:$0xff]  ;;  %v2498_v36 = vadd.f32 %v2497_v14, %v859_v62  ;;  %v2719_v37 = vadd.f32 %v2718_v17, %v1045_v59 }
 0x26f   : > { %v865_v5 = vld [vmem:[%s4916_s18 + $0x1010] sm:$0xff]  ;;  %v1387_v6 = vld [vmem:[%s4916_s18 + $0x2060] sm:$0xff]  ;;  %v2939_v27 = vadd.f32 %v2938_v11, %v1225_v63 }
 0x270   : > { %v1549_v7 = vld [vmem:[%s4916_s18 + $0x2570] sm:$0xff]  ;;  %v487_v12 = vld [vmem:[%s4916_s18 + $0x440] sm:$0xff]  ;;  %v3156_v39 = vadd.f32 %v3155_v20, %v1387_v6  ;;  %v2499_v50 = vadd.f32 %v2498_v36, %v865_v5 }
 0x271   : > { %v679_v15 = vld [vmem:[%s4916_s18 + $0xa40] sm:$0xff]  ;;  %v1705_v18 = vld [vmem:[%s4916_s18 + $0x2a50] sm:$0xff]  ;;  %v3373_v40 = vadd.f32 %v3372_v8, %v1549_v7  ;;  %v2940_v45 = vadd.f32 %v2939_v27, %v1231_v2  ;;  %v2056_v57 = vadd.f32 %v2055_v42, %v487_v12 }
 0x272   : > { %v1699_v16 = vld [vmem:[%s4916_s18 + $0x2a20] sm:$0xff]  ;;  %v1393_v22 = vld [vmem:[%s4916_s18 + $0x2090] sm:$0xff]  ;;  %v2278_v58 = vadd.f32 %v2277_v44, %v679_v15 }
 0x273   : > { %v1711_v19 = vld [vmem:[%s4916_s18 + $0x2a80] sm:$0xff]  ;;  %v3589_v28 = vadd.f32 %v1705_v18, %v1699_v16  ;;  %v493_v13 = vld [vmem:[%s4916_s18 + $0x470] sm:$0xff]  ;;  %v3157_v52 = vadd.f32 %v3156_v39, %v1393_v22 }
 0x274   : > { %v1051_v21 = vld [vmem:[%s4916_s18 + $0x15e0] sm:$0xff]  ;;  %v685_v31 = vld [vmem:[%s4916_s18 + $0xa70] sm:$0xff]  ;;  %v2057_v7 = vadd.f32 %v2056_v57, %v493_v13 }
 0x275   : > { %v1555_v23 = vld [vmem:[%s4916_s18 + $0x25a0] sm:$0xff]  ;;  %v1237_v32 = vld [vmem:[%s4916_s18 + $0x1bb0] sm:$0xff]  ;;  %v3590_v26 = vadd.f32 %v3589_v28, %v1711_v19  ;;  %v2720_v51 = vadd.f32 %v2719_v37, %v1051_v21  ;;  %v2279_v9 = vadd.f32 %v2278_v58, %v685_v31 }
 0x276   : > { %v871_v30 = vld [vmem:[%s4916_s18 + $0x1040] sm:$0xff]  ;;  %v1717_v34 = vld [vmem:[%s4916_s18 + $0x2ab0] sm:$0xff]  ;;  %v3374_v53 = vadd.f32 %v3373_v40, %v1555_v23  ;;  %v2941_v60 = vadd.f32 %v2940_v45, %v1237_v32 }
 0x277   : > { %v1057_v33 = vld [vmem:[%s4916_s18 + $0x1610] sm:$0xff]  ;;  %v1399_v29 = vld [vmem:[%s4916_s18 + $0x20c0] sm:$0xff]  ;;  %v3591_v48 = vadd.f32 %v3590_v26, %v1717_v34  ;;  %v2500_v1 = vadd.f32 %v2499_v50, %v871_v30 }
 0x278   : > { %v1561_v35 = vld [vmem:[%s4916_s18 + $0x25d0] sm:$0xff]  ;;  %v499_v46 = vld [vmem:[%s4916_s18 + $0x4a0] sm:$0xff]  ;;  %v2721_v3 = vadd.f32 %v2720_v51, %v1057_v33  ;;  %v3158_v4 = vadd.f32 %v3157_v52, %v1399_v29 }
 0x279   : > { %v691_v47 = vld [vmem:[%s4916_s18 + $0xaa0] sm:$0xff]  ;;  %v877_v43 = vld [vmem:[%s4916_s18 + $0x1070] sm:$0xff]  ;;  %v3375_v0 = vadd.f32 %v3374_v53, %v1561_v35  ;;  %v2058_v24 = vadd.f32 %v2057_v7, %v499_v46 }
 0x27a   : > { %v1243_v38 = vld [vmem:[%s4916_s18 + $0x1be0] sm:$0xff]  ;;  %v1405_v55 = vld [vmem:[%s4916_s18 + $0x20f0] sm:$0xff]  ;;  %v2501_v14 = vadd.f32 %v2500_v1, %v877_v43  ;;  %v2280_v25 = vadd.f32 %v2279_v9, %v691_v47 }
 0x27b   : > { %v1723_v49 = vld [vmem:[%s4916_s18 + $0x2ae0] sm:$0xff]  ;;  %v505_v41 = vld [vmem:[%s4916_s18 + $0x4d0] sm:$0xff]  ;;  %v2942_v10 = vadd.f32 %v2941_v60, %v1243_v38  ;;  %v3159_v20 = vadd.f32 %v3158_v4, %v1405_v55 }
 0x27c   : > { %v1063_v54 = vld [vmem:[%s4916_s18 + $0x1640] sm:$0xff]  ;;  %v697_v61 = vld [vmem:[%s4916_s18 + $0xad0] sm:$0xff]  ;;  %v3592_v11 = vadd.f32 %v3591_v48, %v1723_v49  ;;  %v2059_v42 = vadd.f32 %v2058_v24, %v505_v41 }
 0x27d   : > { %v1567_v56 = vld [vmem:[%s4916_s18 + $0x2600] sm:$0xff]  ;;  %v1249_v59 = vld [vmem:[%s4916_s18 + $0x1c10] sm:$0xff]  ;;  %v2722_v17 = vadd.f32 %v2721_v3, %v1063_v54  ;;  %v2281_v44 = vadd.f32 %v2280_v25, %v697_v61 }
 0x27e   : > { %v883_v62 = vld [vmem:[%s4916_s18 + $0x10a0] sm:$0xff]  ;;  %v1729_v63 = vld [vmem:[%s4916_s18 + $0x2b10] sm:$0xff]  ;;  %v3376_v8 = vadd.f32 %v3375_v0, %v1567_v56  ;;  %v2943_v27 = vadd.f32 %v2942_v10, %v1249_v59 }
 0x27f   : > { %v1069_v5 = vld [vmem:[%s4916_s18 + $0x1670] sm:$0xff]  ;;  %v1411_v2 = vld [vmem:[%s4916_s18 + $0x2120] sm:$0xff]  ;;  %v3593_v28 = vadd.f32 %v3592_v11, %v1729_v63  ;;  %v2502_v36 = vadd.f32 %v2501_v14, %v883_v62 }
 0x280   : > { %v1573_v6 = vld [vmem:[%s4916_s18 + $0x2630] sm:$0xff]  ;;  %v511_v12 = vld [vmem:[%s4916_s18 + $0x500] sm:$0xff]  ;;  %v2723_v37 = vadd.f32 %v2722_v17, %v1069_v5  ;;  %v3160_v39 = vadd.f32 %v3159_v20, %v1411_v2 }
 0x281   : > { %v703_v15 = vld [vmem:[%s4916_s18 + $0xb00] sm:$0xff]  ;;  %v889_v16 = vld [vmem:[%s4916_s18 + $0x10d0] sm:$0xff]  ;;  %v3377_v40 = vadd.f32 %v3376_v8, %v1573_v6  ;;  %v2060_v57 = vadd.f32 %v2059_v42, %v511_v12 }
 0x282   : > { %v1255_v18 = vld [vmem:[%s4916_s18 + $0x1c40] sm:$0xff]  ;;  %v1417_v22 = vld [vmem:[%s4916_s18 + $0x2150] sm:$0xff]  ;;  %v2503_v50 = vadd.f32 %v2502_v36, %v889_v16  ;;  %v2282_v58 = vadd.f32 %v2281_v44, %v703_v15 }
 0x283   : > { %v1735_v19 = vld [vmem:[%s4916_s18 + $0x2b40] sm:$0xff]  ;;  %v517_v13 = vld [vmem:[%s4916_s18 + $0x530] sm:$0xff]  ;;  %v2944_v45 = vadd.f32 %v2943_v27, %v1255_v18  ;;  %v3161_v52 = vadd.f32 %v3160_v39, %v1417_v22 }
 0x284   : > { %v1075_v21 = vld [vmem:[%s4916_s18 + $0x16a0] sm:$0xff]  ;;  %v709_v31 = vld [vmem:[%s4916_s18 + $0xb30] sm:$0xff]  ;;  %v3594_v26 = vadd.f32 %v3593_v28, %v1735_v19  ;;  %v2061_v7 = vadd.f32 %v2060_v57, %v517_v13 }
 0x285   : > { %v1579_v23 = vld [vmem:[%s4916_s18 + $0x2660] sm:$0xff]  ;;  %v1261_v32 = vld [vmem:[%s4916_s18 + $0x1c70] sm:$0xff]  ;;  %v2724_v51 = vadd.f32 %v2723_v37, %v1075_v21  ;;  %v2283_v9 = vadd.f32 %v2282_v58, %v709_v31 }
 0x286   : > { %v895_v30 = vld [vmem:[%s4916_s18 + $0x1100] sm:$0xff]  ;;  %v1741_v34 = vld [vmem:[%s4916_s18 + $0x2b70] sm:$0xff]  ;;  %v3378_v53 = vadd.f32 %v3377_v40, %v1579_v23  ;;  %v2945_v60 = vadd.f32 %v2944_v45, %v1261_v32 }
 0x287   : > { %v1081_v33 = vld [vmem:[%s4916_s18 + $0x16d0] sm:$0xff]  ;;  %v1423_v29 = vld [vmem:[%s4916_s18 + $0x2180] sm:$0xff]  ;;  %v3595_v48 = vadd.f32 %v3594_v26, %v1741_v34  ;;  %v2504_v1 = vadd.f32 %v2503_v50, %v895_v30 }
 0x288   : > { %v1585_v35 = vld [vmem:[%s4916_s18 + $0x2690] sm:$0xff]  ;;  %v523_v46 = vld [vmem:[%s4916_s18 + $0x560] sm:$0xff]  ;;  %v2725_v3 = vadd.f32 %v2724_v51, %v1081_v33  ;;  %v3162_v4 = vadd.f32 %v3161_v52, %v1423_v29 }
 0x289   : > { %v715_v47 = vld [vmem:[%s4916_s18 + $0xb60] sm:$0xff]  ;;  %v901_v43 = vld [vmem:[%s4916_s18 + $0x1130] sm:$0xff]  ;;  %v3379_v0 = vadd.f32 %v3378_v53, %v1585_v35  ;;  %v2062_v24 = vadd.f32 %v2061_v7, %v523_v46 }
 0x28a   : > { %v1267_v38 = vld [vmem:[%s4916_s18 + $0x1ca0] sm:$0xff]  ;;  %v1429_v55 = vld [vmem:[%s4916_s18 + $0x21b0] sm:$0xff]  ;;  %v2505_v14 = vadd.f32 %v2504_v1, %v901_v43  ;;  %v2284_v25 = vadd.f32 %v2283_v9, %v715_v47 }
 0x28b   : > { %v1747_v49 = vld [vmem:[%s4916_s18 + $0x2ba0] sm:$0xff]  ;;  %v529_v41 = vld [vmem:[%s4916_s18 + $0x590] sm:$0xff]  ;;  %v2946_v10 = vadd.f32 %v2945_v60, %v1267_v38  ;;  %v3163_v20 = vadd.f32 %v3162_v4, %v1429_v55 }
 0x28c   : > { %v1087_v54 = vld [vmem:[%s4916_s18 + $0x1700] sm:$0xff]  ;;  %v721_v61 = vld [vmem:[%s4916_s18 + $0xb90] sm:$0xff]  ;;  %v3596_v11 = vadd.f32 %v3595_v48, %v1747_v49  ;;  %v2063_v42 = vadd.f32 %v2062_v24, %v529_v41 }
 0x28d   : > { %v1591_v56 = vld [vmem:[%s4916_s18 + $0x26c0] sm:$0xff]  ;;  %v1273_v59 = vld [vmem:[%s4916_s18 + $0x1cd0] sm:$0xff]  ;;  %v2726_v17 = vadd.f32 %v2725_v3, %v1087_v54  ;;  %v2285_v44 = vadd.f32 %v2284_v25, %v721_v61 }
 0x28e   : > { %v907_v62 = vld [vmem:[%s4916_s18 + $0x1160] sm:$0xff]  ;;  %v1753_v63 = vld [vmem:[%s4916_s18 + $0x2bd0] sm:$0xff]  ;;  %v3380_v8 = vadd.f32 %v3379_v0, %v1591_v56  ;;  %v2947_v27 = vadd.f32 %v2946_v10, %v1273_v59 }
 0x28f   : > { %v1093_v5 = vld [vmem:[%s4916_s18 + $0x1730] sm:$0xff]  ;;  %v1435_v2 = vld [vmem:[%s4916_s18 + $0x21e0] sm:$0xff]  ;;  %v3597_v28 = vadd.f32 %v3596_v11, %v1753_v63  ;;  %v2506_v36 = vadd.f32 %v2505_v14, %v907_v62 }
 0x290   : > { %v1597_v6 = vld [vmem:[%s4916_s18 + $0x26f0] sm:$0xff]  ;;  %v535_v12 = vld [vmem:[%s4916_s18 + $0x5c0] sm:$0xff]  ;;  %v2727_v37 = vadd.f32 %v2726_v17, %v1093_v5  ;;  %v3164_v39 = vadd.f32 %v3163_v20, %v1435_v2 }
 0x291   : > { %v727_v15 = vld [vmem:[%s4916_s18 + $0xbc0] sm:$0xff]  ;;  %v913_v16 = vld [vmem:[%s4916_s18 + $0x1190] sm:$0xff]  ;;  %v3381_v40 = vadd.f32 %v3380_v8, %v1597_v6  ;;  %v2064_v55 = vadd.f32 %v2063_v42, %v535_v12 }
 0x292   : > { %v1279_v18 = vld [vmem:[%s4916_s18 + $0x1d00] sm:$0xff]  ;;  %v1441_v22 = vld [vmem:[%s4916_s18 + $0x2210] sm:$0xff]  ;;  %v2507_v38 = vadd.f32 %v2506_v36, %v913_v16  ;;  %v2286_v56 = vadd.f32 %v2285_v44, %v727_v15 }
 0x293   : > { %v1759_v19 = vld [vmem:[%s4916_s18 + $0x2c00] sm:$0xff]  ;;  %v541_v13 = vld [vmem:[%s4916_s18 + $0x5f0] sm:$0xff]  ;;  %v2948_v45 = vadd.f32 %v2947_v27, %v1279_v18  ;;  %v3165_v50 = vadd.f32 %v3164_v39, %v1441_v22 }
 0x294   : > { %v1099_v21 = vld [vmem:[%s4916_s18 + $0x1760] sm:$0xff]  ;;  %v733_v31 = vld [vmem:[%s4916_s18 + $0xbf0] sm:$0xff]  ;;  %v3598_v26 = vadd.f32 %v3597_v28, %v1759_v19  ;;  %v2065_v3 = vadd.f32 %v2064_v55, %v541_v13 }
 0x295   : > { %v1603_v23 = vld [vmem:[%s4916_s18 + $0x2720] sm:$0xff]  ;;  %v1285_v32 = vld [vmem:[%s4916_s18 + $0x1d30] sm:$0xff]  ;;  %v2728_v49 = vadd.f32 %v2727_v37, %v1099_v21  ;;  %v2287_v4 = vadd.f32 %v2286_v56, %v733_v31 }
 0x296   : > { %v919_v30 = vld [vmem:[%s4916_s18 + $0x11c0] sm:$0xff]  ;;  %v1765_v34 = vld [vmem:[%s4916_s18 + $0x2c30] sm:$0xff]  ;;  %v3382_v51 = vadd.f32 %v3381_v40, %v1603_v23  ;;  %v2949_v57 = vadd.f32 %v2948_v45, %v1285_v32  ;;  %v2066_v16 = vrot.slane %v2065_v3, 4 }
 0x297   : > { %v1105_v33 = vld [vmem:[%s4916_s18 + $0x1790] sm:$0xff]  ;;  %v1447_v29 = vld [vmem:[%s4916_s18 + $0x2240] sm:$0xff]  ;;  %v3599_v58 = vadd.f32 %v3598_v26, %v1765_v34  ;;  %v2508_v48 = vadd.f32 %v2507_v38, %v919_v30  ;;  %v2288_v18 = vrot.slane %v2287_v4, 4 }
 0x298   : > { %v1609_v35 = vld [vmem:[%s4916_s18 + $0x2750] sm:$0xff]  ;;  %v1291_v47 = vld [vmem:[%s4916_s18 + $0x1d60] sm:$0xff]  ;;  %v2729_v41 = vadd.f32 %v2728_v49, %v1105_v33  ;;  %v3166_v61 = vadd.f32 %v3165_v50, %v1447_v29  ;;  %v2067_v34 = vadd.f32 %v2066_v16, %v2065_v3 }
 0x299   : > { %v925_v46 = vld [vmem:[%s4916_s18 + $0x11f0] sm:$0xff]  ;;  %v1771_v43 = vld [vmem:[%s4916_s18 + $0x2c60] sm:$0xff]  ;;  %v3383_v62 = vadd.f32 %v3382_v51, %v1609_v35  ;;  %v2950_v0 = vadd.f32 %v2949_v57, %v1291_v47  ;;  %v2289_v36 = vadd.f32 %v2288_v18, %v2287_v4 }
 0x29a   : > { %v1111_v52 = vld [vmem:[%s4916_s18 + $0x17c0] sm:$0xff]  ;;  %v1453_v53 = vld [vmem:[%s4916_s18 + $0x2270] sm:$0xff]  ;;  %v3600_v5 = vadd.f32 %v3599_v58, %v1771_v43  ;;  %v2509_v6 = vadd.f32 %v2508_v48, %v925_v46  ;;  %v2068_v51 = vrot.slane %v2067_v34, 2 }
 0x29b   : > { %v1615_v54 = vld [vmem:[%s4916_s18 + $0x2780] sm:$0xff]  ;;  %v1777_v60 = vld [vmem:[%s4916_s18 + $0x2c90] sm:$0xff]  ;;  %v2730_v7 = vadd.f32 %v2729_v41, %v1111_v52  ;;  %v3167_v9 = vadd.f32 %v3166_v61, %v1453_v53  ;;  %v2290_v52 = vrot.slane %v2289_v36, 2 }
 0x29c   : > { %v1297_v59 = vld [vmem:[%s4916_s18 + $0x1d90] sm:$0xff]  ;;  %v1459_v63 = vld [vmem:[%s4916_s18 + $0x22a0] sm:$0xff]  ;;  %v3384_v10 = vadd.f32 %v3383_v62, %v1615_v54  ;;  %v3601_v19 = vadd.f32 %v3600_v5, %v1777_v60  ;;  %v2510_v27 = vrot.slane %v2509_v6, 4  ;;  %v2069_v4 = vadd.f32 %v2068_v51, %v2067_v34 }
 0x29d   : > { %v1621_v1 = vld [vmem:[%s4916_s18 + $0x27b0] sm:$0xff]  ;;  %v1783_v2 = vld [vmem:[%s4916_s18 + $0x2cc0] sm:$0xff]  ;;  %v2951_v17 = vadd.f32 %v2950_v0, %v1297_v59  ;;  %v3168_v20 = vadd.f32 %v3167_v9, %v1459_v63  ;;  %v2291_v0 = vadd.f32 %v2290_v52, %v2289_v36 }
 0x29e   : > { %v1117_v11 = vld [vmem:[%s4916_s18 + $0x17f0] sm:$0xff]  ;;  %v1627_v15 = vld [vmem:[%s4916_s18 + $0x27e0] sm:$0xff]  ;;  %v3385_v8 = vadd.f32 %v3384_v10, %v1621_v1  ;;  %v3602_v24 = vadd.f32 %v3601_v19, %v1783_v2  ;;  %v2511_v46 = vadd.f32 %v2510_v27, %v2509_v6 }
 0x29f   : > { %v1465_v12 = vld [vmem:[%s4916_s18 + $0x22d0] sm:$0xff]  ;;  %v1303_v21 = vld [vmem:[%s4916_s18 + $0x1dc0] sm:$0xff]  ;;  %v2731_v28 = vadd.f32 %v2730_v7, %v1117_v11 }
 0x2a0   : > { %v1789_v14 = vld [vmem:[%s4916_s18 + $0x2cf0] sm:$0xff]  ;;  %v1471_v22 = vld [vmem:[%s4916_s18 + $0x2300] sm:$0xff]  ;;  %v3169_v13 = vadd.f32 %v3168_v20, %v1465_v12  ;;  %v3386_v31 = vadd.f32 %v3385_v8, %v1627_v15  ;;  %v2952_v40 = vadd.f32 %v2951_v17, %v1303_v21  ;;  %v2512_v61 = vrot.slane %v2511_v46, 2 }
 0x2a1   : > { %v1633_v23 = vld [vmem:[%s4916_s18 + $0x2810] sm:$0xff]  ;;  %v1795_v25 = vld [vmem:[%s4916_s18 + $0x2d20] sm:$0xff]  ;;  %v3603_v37 = vadd.f32 %v3602_v24, %v1789_v14  ;;  %v2732_v47 = vrot.slane %v2731_v28, 4  ;;  %v2070_v17 = vrot.slane %v2069_v4, 1  ;;  %v2292_v20 = vrot.slane %v2291_v0, 1 }
 0x2a2   : > { %v1477_v30 = vld [vmem:[%s4916_s18 + $0x2330] sm:$0xff]  ;;  %v1639_v32 = vld [vmem:[%s4916_s18 + $0x2840] sm:$0xff]  ;;  %v3170_v33 = vadd.f32 %v3169_v13, %v1471_v22  ;;  %v3387_v29 = vadd.f32 %v3386_v31, %v1633_v23  ;;  %v2513_v15 = vadd.f32 %v2512_v61, %v2511_v46  ;;  %v548_v46 = vld [vmem:[%s4916_s18 + $0x628] sm:$0xff] }
 0x2a3   : > { %v1801_v39 = vld [vmem:[%s4916_s18 + $0x2d50] sm:$0xff]  ;;  %v1483_v42 = vld [vmem:[%s4916_s18 + $0x2360] sm:$0xff]  ;;  %v3604_v45 = vadd.f32 %v3603_v37, %v1795_v25  ;;  %v2733_v62 = vadd.f32 %v2732_v47, %v2731_v28  ;;  %v2071_v37 = vadd.f32 %v2070_v17, %v2069_v4  ;;  %v554_v47 = vld [vmem:[%s4916_s18 + $0x658] sm:$0xff] }
 0x2a4   : > { %v1309_v35 = vld [vmem:[%s4916_s18 + $0x1df0] sm:$0xff]  ;;  %v1807_v26 = vld [vmem:[%s4916_s18 + $0x2d80] sm:$0xff]  ;;  %v3171_v43 = vadd.f32 %v3170_v33, %v1477_v30  ;;  %v3388_v38 = vadd.f32 %v3387_v29, %v1639_v32  ;;  %v2514_v31 = vrot.slane %v2513_v15, 1  ;;  %v356_v33 = vld [vmem:[%s4916_s18 + $0x28] sm:$0xff]  ;;  %v2294_v61 = vadd.f32 %v554_v47, %v548_v46 }
 0x2a5   : > { %v1645_v44 = vld [vmem:[%s4916_s18 + $0x2870] sm:$0xff]  ;;  %v1651_v50 = vld [vmem:[%s4916_s18 + $0x28a0] sm:$0xff]  ;;  %v3605_v53 = vadd.f32 %v3604_v45, %v1801_v39  ;;  %v2953_v55 = vadd.f32 %v2952_v40, %v1309_v35  ;;  %v2734_v16 = vrot.slane %v2733_v62, 2  ;;  %v2293_v39 = vadd.f32 %v2292_v20, %v2291_v0  ;;  %v362_v29 = vld [vmem:[%s4916_s18 + $0x58] sm:$0xff] }
 0x2a6   : > { %v1489_v49 = vld [vmem:[%s4916_s18 + $0x2390] sm:$0xff]  ;;  %v3172_v56 = vadd.f32 %v3171_v43, %v1483_v42  ;;  %v3389_v57 = vadd.f32 %v3388_v38, %v1645_v44  ;;  %v1495_v58 = vld [vmem:[%s4916_s18 + $0x23c0] sm:$0xff]  ;;  %v368_v38 = vld [vmem:[%s4916_s18 + $0x88] sm:$0xff]  ;;  %v2515_v51 = vadd.f32 %v2514_v31, %v2513_v15 }
 0x2a7   : > { %v1813_v54 = vld [vmem:[%s4916_s18 + $0x2db0] sm:$0xff]  ;;  %v3606_v48 = vadd.f32 %v3605_v53, %v1807_v26  ;;  %v1819_v41 = vld [vmem:[%s4916_s18 + $0x2de0] sm:$0xff]  ;;  %v2954_v6 = vrot.slane %v2953_v55, 4  ;;  %v2735_v30 = vadd.f32 %v2734_v16, %v2733_v62  ;;  %v944_v4 = vld [vmem:[%s4916_s18 + $0x1288] sm:$0xff] }
 0x2a8   : > { %v1657_v60 = vld [vmem:[%s4916_s18 + $0x28d0] sm:$0xff]  ;;  %v3173_v59 = vadd.f32 %v3172_v56, %v1489_v49  ;;  %v3390_v63 = vadd.f32 %v3389_v57, %v1651_v50  ;;  %v1663_v3 = vld [vmem:[%s4916_s18 + $0x2900] sm:$0xff]  ;;  %v740_v49 = vld [vmem:[%s4916_s18 + $0xc28] sm:$0xff] }
 0x2a9   : > { %v1501_v1 = vld [vmem:[%s4916_s18 + $0x23f0] sm:$0xff]  ;;  %v3607_v5 = vadd.f32 %v3606_v48, %v1813_v54  ;;  %v1831_v12 = vld [vmem:[%s4916_s18 + $0x2e40] sm:$0xff]  ;;  %v2955_v22 = vadd.f32 %v2954_v6, %v2953_v55  ;;  %v746_v50 = vld [vmem:[%s4916_s18 + $0xc58] sm:$0xff]  ;;  %v2736_v52 = vrot.slane %v2735_v30, 1 }
 0x2aa   : > { %v1825_v2 = vld [vmem:[%s4916_s18 + $0x2e10] sm:$0xff]  ;;  %v3174_v7 = vadd.f32 %v3173_v59, %v1495_v58  ;;  %v3391_v9 = vadd.f32 %v3390_v63, %v1657_v60  ;;  %v1675_v14 = vld [vmem:[%s4916_s18 + $0x2960] sm:$0xff]  ;;  %v560_v54 = vld [vmem:[%s4916_s18 + $0x688] sm:$0xff]  ;;  %v3746_v60 = vsel %vm3711_vm0, %v2293_v39, %v2071_v37  ;;  %v2516_v0 = vadd.f32 %v746_v50, %v740_v49 }
 0x2ab   : > { %v1669_v10 = vld [vmem:[%s4916_s18 + $0x2930] sm:$0xff]  ;;  %v3608_v11 = vadd.f32 %v3607_v5, %v1819_v41  ;;  %v1687_v28 = vld [vmem:[%s4916_s18 + $0x29c0] sm:$0xff]  ;;  %v2956_v42 = vrot.slane %v2955_v22, 2  ;;  %v932_v55 = vld [vmem:[%s4916_s18 + $0x1228] sm:$0xff]  ;;  %v2072_v41 = vadd.f32 %v362_v29, %v356_v33  ;;  %v3747_v16 = vsel %vm3713_vm1, %v2515_v51, %v3746_v60 }
 0x2ac   : > { %v3175_v18 = vadd.f32 %v3174_v7, %v1501_v1  ;;  %v3392_v19 = vadd.f32 %v3391_v9, %v1663_v3  ;;  %v1837_v21 = vld [vmem:[%s4916_s18 + $0x2e70] sm:$0xff]  ;;  %v1843_v13 = vld [vmem:[%s4916_s18 + $0x2ea0] sm:$0xff]  ;;  %v938_v56 = vld [vmem:[%s4916_s18 + $0x1258] sm:$0xff]  ;;  %v2295_v9 = vadd.f32 %v2294_v61, %v560_v54 }
 0x2ad   : > { %v3609_v8 = vadd.f32 %v3608_v11, %v1825_v2  ;;  %v1681_v25 = vld [vmem:[%s4916_s18 + $0x2990] sm:$0xff]  ;;  %v1855_v35 = vld [vmem:[%s4916_s18 + $0x2f00] sm:$0xff]  ;;  %v752_v48 = vld [vmem:[%s4916_s18 + $0xc88] sm:$0xff]  ;;  %v2957_v62 = vadd.f32 %v2956_v42, %v2955_v22  ;;  %v2073_v7 = vadd.f32 %v2072_v41, %v368_v38 }
 0x2ae   : > { %v3176_v23 = vrot.slane %v3175_v18, 4  ;;  %v3393_v24 = vadd.f32 %v3392_v19, %v1669_v10  ;;  %v1693_v34 = vld [vmem:[%s4916_s18 + $0x29f0] sm:$0xff]  ;;  %v3873_v26 = vld [vmem:[%s7020_s1 + $0x280] sm:$0xff]  ;;  %v374_v1 = vld [vmem:[%s4916_s18 + $0xb8] sm:$0xff]  ;;  %v2738_v10 = vadd.f32 %v938_v56, %v932_v55  ;;  %v2517_v17 = vadd.f32 %v2516_v0, %v752_v48 }
 0x2af   : > { %v3610_v27 = vadd.f32 %v3609_v8, %v1831_v12  ;;  %v1849_v36 = vld [vmem:[%s4916_s18 + $0x2ed0] sm:$0xff]  ;;  %4008 = vmatpush.msrb.mxu1 %v3873_v26  ;;  %v566_v3 = vld [vmem:[%s4916_s18 + $0x6b8] sm:$0xff]  ;;  %v1867_v5 = vld [vmem:[%s4916_s18 + $0x2f60] sm:$0xff]  ;;  %v2737_v12 = vadd.f32 %v2736_v52, %v2735_v30 }
 0x2b0   : > { %v3394_v32 = vadd.f32 %v3393_v24, %v1675_v14  ;;  %v3177_v44 = vadd.f32 %v3176_v23, %v3175_v18  ;;  %v1861_v57 = vld [vmem:[%s4916_s18 + $0x2f30] sm:$0xff]  ;;  %v758_v6 = vld [vmem:[%s4916_s18 + $0xcb8] sm:$0xff]  ;;  %v380_v18 = vld [vmem:[%s4916_s18 + $0xe8] sm:$0xff]  ;;  %v2074_v23 = vadd.f32 %v2073_v7, %v374_v1  ;;  %v2296_v24 = vadd.f32 %v2295_v9, %v566_v3 }
 0x2b1   : > { %v3611_v40 = vadd.f32 %v3610_v27, %v1837_v21  ;;  %v1873_v11 = vld [vmem:[%s4916_s18 + $0x2f90] sm:$0xff]  ;;  %v572_v19 = vld [vmem:[%s4916_s18 + $0x6e8] sm:$0xff]  ;;  %v950_v14 = vld [vmem:[%s4916_s18 + $0x12b8] sm:$0xff]  ;;  %v2958_v27 = vrot.slane %v2957_v62, 1 }
 0x2b2   : > { %v3395_v45 = vadd.f32 %v3394_v32, %v1681_v25  ;;  %v3178_v59 = vrot.slane %v3177_v44, 2  ;;  %v386_v8 = vld [vmem:[%s4916_s18 + $0x118] sm:$0xff]  ;;  %v764_v21 = vld [vmem:[%s4916_s18 + $0xce8] sm:$0xff]  ;;  %v2739_v25 = vadd.f32 %v2738_v10, %v944_v4  ;;  %v2075_v33 = vadd.f32 %v2074_v23, %v380_v18  ;;  %v1885_v38 = vld [vmem:[%s4916_s18 + $0x2ff0] sm:$0xff] }
 0x2b3   : > { %v3612_v43 = vadd.f32 %v3611_v40, %v1843_v13  ;;  %v1124_v22 = vld [vmem:[%s4916_s18 + $0x1828] sm:$0xff]  ;;  %v578_v31 = vld [vmem:[%s4916_s18 + $0x718] sm:$0xff]  ;;  %v2297_v29 = vadd.f32 %v2296_v24, %v572_v19  ;;  %v2959_v55 = vadd.f32 %v2958_v27, %v2957_v62 }
 0x2b4   : > { %v3396_v53 = vadd.f32 %v3395_v45, %v1687_v28  ;;  %v3179_v28 = vadd.f32 %v3178_v59, %v3177_v44  ;;  %v956_v30 = vld [vmem:[%s4916_s18 + $0x12e8] sm:$0xff]  ;;  %v1130_v32 = vld [vmem:[%s4916_s18 + $0x1858] sm:$0xff]  ;;  %v3748_v44 = vsel %vm3715_vm2, %v2737_v12, %v3747_v16  ;;  %v2076_v52 = vadd.f32 %v2075_v33, %v386_v8 }
 0x2b5   : > { %v3613_v58 = vadd.f32 %v3612_v43, %v1849_v36  ;;  %v1879_v36 = vld [vmem:[%s4916_s18 + $0x2fc0] sm:$0xff]  ;;  %v770_v39 = vld [vmem:[%s4916_s18 + $0xd18] sm:$0xff]  ;;  %v1136_v40 = vld [vmem:[%s4916_s18 + $0x1888] sm:$0xff]  ;;  %v2960_v43 = vadd.f32 %v1130_v32, %v1124_v22 }
 0x2b6   : > { %v3397_v63 = vadd.f32 %v3396_v53, %v1693_v34  ;;  %v2518_v34 = vadd.f32 %v2517_v17, %v758_v6  ;;  %v392_v45 = vld [vmem:[%s4916_s18 + $0x148] sm:$0xff]  ;;  %v962_v46 = vld [vmem:[%s4916_s18 + $0x1318] sm:$0xff]  ;;  %v2298_v53 = vadd.f32 %v2297_v29, %v578_v31  ;;  %v3180_v56 = vrot.slane %v3179_v28, 1 }
 0x2b7   : > { %v3614_v2 = vadd.f32 %v3613_v58, %v1855_v35  ;;  %v2740_v35 = vadd.f32 %v2739_v25, %v950_v14  ;;  %v584_v26 = vld [vmem:[%s4916_s18 + $0x748] sm:$0xff]  ;;  %v1142_v51 = vld [vmem:[%s4916_s18 + $0x18b8] sm:$0xff]  ;;  %v2961_v41 = vadd.f32 %v2960_v43, %v1136_v40  ;;  %v2077_v1 = vadd.f32 %v2076_v52, %v392_v45 }
 0x2b8   : > { %v3398_v15 = vrot.slane %v3397_v63, 4  ;;  %v2519_v47 = vadd.f32 %v2518_v34, %v764_v21  ;;  %v776_v50 = vld [vmem:[%s4916_s18 + $0xd48] sm:$0xff]  ;;  %v590_v58 = vld [vmem:[%s4916_s18 + $0x778] sm:$0xff]  ;;  %v2299_v3 = vadd.f32 %v2298_v53, %v584_v26  ;;  %v3181_v19 = vadd.f32 %v3180_v56, %v3179_v28 }
 0x2b9   : > { %v3615_v20 = vadd.f32 %v3614_v2, %v1861_v57  ;;  %v2741_v54 = vadd.f32 %v2740_v35, %v956_v30  ;;  %v398_v57 = vld [vmem:[%s4916_s18 + $0x178] sm:$0xff]  ;;  %v968_v60 = vld [vmem:[%s4916_s18 + $0x1348] sm:$0xff]  ;;  %v2962_v7 = vadd.f32 %v2961_v41, %v1142_v51  ;;  %v3749_v14 = vsel %vm3717_vm3, %v2959_v55, %v3748_v44 }
 0x2ba   : > { %v3399_v13 = vadd.f32 %v3398_v15, %v3397_v63  ;;  %v2520_v48 = vadd.f32 %v2519_v47, %v770_v39  ;;  %v782_v59 = vld [vmem:[%s4916_s18 + $0xd78] sm:$0xff]  ;;  %v1148_v63 = vld [vmem:[%s4916_s18 + $0x18e8] sm:$0xff]  ;;  %v2078_v15 = vadd.f32 %v2077_v1, %v398_v57  ;;  %v2300_v16 = vadd.f32 %v2299_v3, %v590_v58 }
 0x2bb   : > { %v3616_v37 = vadd.f32 %v3615_v20, %v1867_v5  ;;  %v2742_v4 = vadd.f32 %v2741_v54, %v962_v46  ;;  %v404_v62 = vld [vmem:[%s4916_s18 + $0x1a8] sm:$0xff]  ;;  %v974_v2 = vld [vmem:[%s4916_s18 + $0x1378] sm:$0xff]  ;;  %v2963_v22 = vadd.f32 %v2962_v7, %v1148_v63  ;;  %v3750_v46 = vsel %vm3719_vm4, %v3181_v19, %v3749_v14 }
 0x2bc   : > { %v3400_v42 = vrot.slane %v3399_v13, 2  ;;  %v596_v5 = vld [vmem:[%s4916_s18 + $0x7a8] sm:$0xff]  ;;  %v2521_v6 = vadd.f32 %v2520_v48, %v776_v50  ;;  %v410_v10 = vld [vmem:[%s4916_s18 + $0x1d8] sm:$0xff] }
 0x2bd   : > { %v3617_v49 = vadd.f32 %v3616_v37, %v1873_v11  ;;  %v788_v11 = vld [vmem:[%s4916_s18 + $0xda8] sm:$0xff]  ;;  %v1154_v12 = vld [vmem:[%s4916_s18 + $0x1918] sm:$0xff]  ;;  %v2743_v18 = vadd.f32 %v2742_v4, %v968_v60  ;;  %v2301_v31 = vadd.f32 %v2300_v16, %v596_v5 }
 0x2be   : > { %v3401_v0 = vadd.f32 %v3400_v42, %v3399_v13  ;;  %v416_v17 = vld [vmem:[%s4916_s18 + $0x208] sm:$0xff]  ;;  %v602_v20 = vld [vmem:[%s4916_s18 + $0x7d8] sm:$0xff]  ;;  %v2522_v21 = vadd.f32 %v2521_v6, %v782_v59  ;;  %v2079_v13 = vadd.f32 %v2078_v15, %v404_v62  ;;  %v2964_v40 = vadd.f32 %v2963_v22, %v1154_v12 }
 0x2bf   : > { %v3618_v61 = vadd.f32 %v3617_v49, %v1879_v36  ;;  %v980_v8 = vld [vmem:[%s4916_s18 + $0x13a8] sm:$0xff]  ;;  %v794_v25 = vld [vmem:[%s4916_s18 + $0xdd8] sm:$0xff]  ;;  %v2744_v28 = vadd.f32 %v2743_v18, %v974_v2  ;;  %v2302_v45 = vadd.f32 %v2301_v31, %v602_v20 }
 0x2c0   : > { %v608_v24 = vld [vmem:[%s4916_s18 + $0x808] sm:$0xff]  ;;  %v3402_v30 = vrot.slane %v3401_v0, 1  ;;  %v422_v32 = vld [vmem:[%s4916_s18 + $0x238] sm:$0xff]  ;;  %v2523_v39 = vadd.f32 %v2522_v21, %v788_v11  ;;  %v2080_v44 = vadd.f32 %v2079_v13, %v410_v10 }
 0x2c1   : > { %v3619_v9 = vadd.f32 %v3618_v61, %v1885_v38  ;;  %v1160_v27 = vld [vmem:[%s4916_s18 + $0x1948] sm:$0xff]  ;;  %v986_v34 = vld [vmem:[%s4916_s18 + $0x13d8] sm:$0xff]  ;;  %v2745_v26 = vadd.f32 %v2744_v28, %v980_v8  ;;  %v2303_v57 = vadd.f32 %v2302_v45, %v608_v24 }
 0x2c2   : > { %v1316_v36 = vld [vmem:[%s4916_s18 + $0x1e28] sm:$0xff]  ;;  %v1322_v37 = vld [vmem:[%s4916_s18 + $0x1e58] sm:$0xff]  ;;  %v2524_v49 = vadd.f32 %v2523_v39, %v794_v25  ;;  %v2965_v50 = vadd.f32 %v2964_v40, %v1160_v27  ;;  %v2081_v56 = vadd.f32 %v2080_v44, %v416_v17  ;;  %v3403_v60 = vadd.f32 %v3402_v30, %v3401_v0 }
 0x2c3   : > { %v3620_v23 = vrot.slane %v3619_v9, 4  ;;  %v800_v29 = vld [vmem:[%s4916_s18 + $0xe08] sm:$0xff]  ;;  %v1166_v35 = vld [vmem:[%s4916_s18 + $0x1978] sm:$0xff]  ;;  %v3182_v51 = vadd.f32 %v1322_v37, %v1316_v36  ;;  %v2746_v58 = vadd.f32 %v2745_v26, %v986_v34 }
 0x2c4   : > { %v1328_v42 = vld [vmem:[%s4916_s18 + $0x1e88] sm:$0xff]  ;;  %v614_v43 = vld [vmem:[%s4916_s18 + $0x838] sm:$0xff]  ;;  %v2525_v59 = vadd.f32 %v2524_v49, %v800_v29  ;;  %v2966_v63 = vadd.f32 %v2965_v50, %v1166_v35  ;;  %v2082_v2 = vadd.f32 %v2081_v56, %v422_v32  ;;  %v3751_v21 = vsel %vm3721_vm5, %v3403_v60, %v3750_v46 }
 0x2c5   : > { %v3621_v33 = vadd.f32 %v3620_v23, %v3619_v9  ;;  %v428_v47 = vld [vmem:[%s4916_s18 + $0x268] sm:$0xff]  ;;  %v806_v53 = vld [vmem:[%s4916_s18 + $0xe38] sm:$0xff]  ;;  %v3183_v1 = vadd.f32 %v3182_v51, %v1328_v42  ;;  %v2304_v6 = vadd.f32 %v2303_v57, %v614_v43 }
 0x2c6   : > { %v992_v38 = vld [vmem:[%s4916_s18 + $0x1408] sm:$0xff]  ;;  %v1334_v55 = vld [vmem:[%s4916_s18 + $0x1eb8] sm:$0xff]  ;;  %v2526_v11 = vadd.f32 %v2525_v59, %v806_v53  ;;  %v2083_v17 = vadd.f32 %v2082_v2, %v428_v47 }
 0x2c7   : > { %v3622_v52 = vrot.slane %v3621_v33, 2  ;;  %v1172_v54 = vld [vmem:[%s4916_s18 + $0x19a8] sm:$0xff]  ;;  %v434_v48 = vld [vmem:[%s4916_s18 + $0x298] sm:$0xff]  ;;  %v2747_v7 = vadd.f32 %v2746_v58, %v992_v38  ;;  %v3184_v15 = vadd.f32 %v3183_v1, %v1334_v55 }
 0x2c8   : > { %v620_v41 = vld [vmem:[%s4916_s18 + $0x868] sm:$0xff]  ;;  %v998_v61 = vld [vmem:[%s4916_s18 + $0x1438] sm:$0xff]  ;;  %v2967_v12 = vadd.f32 %v2966_v63, %v1172_v54  ;;  %v2084_v36 = vadd.f32 %v2083_v17, %v434_v48 }
 0x2c9   : > { %v3623_v3 = vadd.f32 %v3622_v52, %v3621_v33  ;;  %v812_v4 = vld [vmem:[%s4916_s18 + $0xe68] sm:$0xff]  ;;  %v1178_v62 = vld [vmem:[%s4916_s18 + $0x19d8] sm:$0xff]  ;;  %v2305_v20 = vadd.f32 %v2304_v6, %v620_v41  ;;  %v2748_v8 = vadd.f32 %v2747_v7, %v998_v61 }
 0x2ca   : > { %v1340_v5 = vld [vmem:[%s4916_s18 + $0x1ee8] sm:$0xff]  ;;  %v626_v9 = vld [vmem:[%s4916_s18 + $0x898] sm:$0xff]  ;;  %v2527_v27 = vadd.f32 %v2526_v11, %v812_v4  ;;  %v2968_v13 = vadd.f32 %v2967_v12, %v1178_v62 }
 0x2cb   : > { %v440_v0 = vld [vmem:[%s4916_s18 + $0x2c8] sm:$0xff]  ;;  %v3624_v16 = vrot.slane %v3623_v3, 1  ;;  %v818_v18 = vld [vmem:[%s4916_s18 + $0xe98] sm:$0xff]  ;;  %v3185_v31 = vadd.f32 %v3184_v15, %v1340_v5  ;;  %v2306_v37 = vadd.f32 %v2305_v20, %v626_v9 }
 0x2cc   : > { %v1004_v10 = vld [vmem:[%s4916_s18 + $0x1468] sm:$0xff]  ;;  %v1346_v14 = vld [vmem:[%s4916_s18 + $0x1f18] sm:$0xff]  ;;  %v2528_v44 = vadd.f32 %v2527_v27, %v818_v18  ;;  %v2085_v49 = vadd.f32 %v2084_v36, %v440_v0 }
 0x2cd   : > { %v1184_v19 = vld [vmem:[%s4916_s18 + $0x1a08] sm:$0xff]  ;;  %v446_v22 = vld [vmem:[%s4916_s18 + $0x2f8] sm:$0xff]  ;;  %v3625_v28 = vadd.f32 %v3624_v16, %v3623_v3  ;;  %v2749_v39 = vadd.f32 %v2748_v8, %v1004_v10  ;;  %v3186_v26 = vadd.f32 %v3185_v31, %v1346_v14 }
 0x2ce   : > { %v632_v23 = vld [vmem:[%s4916_s18 + $0x8c8] sm:$0xff]  ;;  %v638_v24 = vld [vmem:[%s4916_s18 + $0x8f8] sm:$0xff]  ;;  %v2969_v45 = vadd.f32 %v2968_v13, %v1184_v19  ;;  %v2086_v59 = vadd.f32 %v2085_v49, %v446_v22 }
 0x2cf   : > { %v1010_v25 = vld [vmem:[%s4916_s18 + $0x1498] sm:$0xff]  ;;  %v824_v30 = vld [vmem:[%s4916_s18 + $0xec8] sm:$0xff]  ;;  %v3752_v46 = vsel %vm3723_vm6, %v3625_v28, %v3751_v21  ;;  %v2307_v50 = vadd.f32 %v2306_v37, %v632_v23 }
 0x2d0   : > { %v1190_v32 = vld [vmem:[%s4916_s18 + $0x1a38] sm:$0xff]  ;;  %v1352_v34 = vld [vmem:[%s4916_s18 + $0x1f48] sm:$0xff]  ;;  %v2750_v51 = vadd.f32 %v2749_v39, %v1010_v25  ;;  %v3791_v52 = vmul.f32 0.00390625, %v3752_v46  ;;  %v2529_v57 = vadd.f32 %v2528_v44, %v824_v30 }
 0x2d1   : > { %v452_v40 = vld [vmem:[%s4916_s18 + $0x328] sm:$0xff]  ;;  %v830_v29 = vld [vmem:[%s4916_s18 + $0xef8] sm:$0xff]  ;;  %v2970_v58 = vadd.f32 %v2969_v45, %v1190_v32  ;;  %v3187_v60 = vadd.f32 %v3186_v26, %v1352_v34  ;;  %v2308_v63 = vadd.f32 %v2307_v50, %v638_v24 }
 0x2d2   : > { %v644_v33 = vld [vmem:[%s4916_s18 + $0x928] sm:$0xff]  ;;  %v1358_v47 = vld [vmem:[%s4916_s18 + $0x1f78] sm:$0xff]  ;;  %3989 = vmatmul.f32.vlgmr.msrb.gmra.mxu0 %v3791_v52  ;;  %v2530_v6 = vadd.f32 %v2529_v57, %v830_v29  ;;  %v2087_v12 = vadd.f32 %v2086_v59, %v452_v40 }
 0x2d3   : > { %v1016_v35 = vld [vmem:[%s4916_s18 + $0x14c8] sm:$0xff]  ;;  %v1514_v38 = vld [vmem:[%s4916_s18 + $0x2458] sm:$0xff]  ;;  %v3188_v0 = vadd.f32 %v3187_v60, %v1358_v47  ;;  %v2309_v15 = vadd.f32 %v2308_v63, %v644_v33 }
 0x2d4   : > { %v1196_v42 = vld [vmem:[%s4916_s18 + $0x1a68] sm:$0xff]  ;;  %v458_v53 = vld [vmem:[%s4916_s18 + $0x358] sm:$0xff]  ;;  %v2751_v1 = vadd.f32 %v2750_v51, %v1016_v35 }
 0x2d5   : > { %v1508_v43 = vld [vmem:[%s4916_s18 + $0x2428] sm:$0xff]  ;;  %v650_v54 = vld [vmem:[%s4916_s18 + $0x958] sm:$0xff]  ;;  %v2971_v7 = vadd.f32 %v2970_v58, %v1196_v42  ;;  %v2088_v27 = vadd.f32 %v2087_v12, %v458_v53 }
 0x2d6   : > { %v1022_v55 = vld [vmem:[%s4916_s18 + $0x14f8] sm:$0xff]  ;;  %v1520_v56 = vld [vmem:[%s4916_s18 + $0x2488] sm:$0xff]  ;;  %v3404_v3 = vadd.f32 %v1514_v38, %v1508_v43  ;;  %v2310_v13 = vadd.f32 %v2309_v15, %v650_v54 }
 0x2d7   : > { %v836_v48 = vld [vmem:[%s4916_s18 + $0xf28] sm:$0xff]  ;;  %v1202_v41 = vld [vmem:[%s4916_s18 + $0x1a98] sm:$0xff]  ;;  %v2752_v16 = vadd.f32 %v2751_v1, %v1022_v55 }
 0x2d8   : > { %v1364_v61 = vld [vmem:[%s4916_s18 + $0x1fa8] sm:$0xff]  ;;  %v1526_v2 = vld [vmem:[%s4916_s18 + $0x24b8] sm:$0xff]  ;;  %v3405_v18 = vadd.f32 %v3404_v3, %v1520_v56  ;;  %v2531_v8 = vadd.f32 %v2530_v6, %v836_v48  ;;  %v2972_v21 = vadd.f32 %v2971_v7, %v1202_v41 }
 0x2d9   : > { %v464_v4 = vld [vmem:[%s4916_s18 + $0x388] sm:$0xff]  ;;  %v842_v9 = vld [vmem:[%s4916_s18 + $0xf58] sm:$0xff]  ;;  %v3189_v22 = vadd.f32 %v3188_v0, %v1364_v61 }
 0x2da   : > { %v656_v62 = vld [vmem:[%s4916_s18 + $0x988] sm:$0xff]  ;;  %v1370_v11 = vld [vmem:[%s4916_s18 + $0x1fd8] sm:$0xff]  ;;  %v3406_v28 = vadd.f32 %v3405_v18, %v1526_v2  ;;  %v2532_v37 = vadd.f32 %v2531_v8, %v842_v9  ;;  %v2089_v42 = vadd.f32 %v2088_v27, %v464_v4 }
 0x2db   : > { %v1028_v5 = vld [vmem:[%s4916_s18 + $0x1528] sm:$0xff]  ;;  %v470_v19 = vld [vmem:[%s4916_s18 + $0x3b8] sm:$0xff]  ;;  %v3190_v40 = vadd.f32 %v3189_v22, %v1370_v11  ;;  %v2311_v44 = vadd.f32 %v2310_v13, %v656_v62 }
 0x2dc   : > { %v1208_v10 = vld [vmem:[%s4916_s18 + $0x1ac8] sm:$0xff]  ;;  %v662_v14 = vld [vmem:[%s4916_s18 + $0x9b8] sm:$0xff]  ;;  %v2753_v31 = vadd.f32 %v2752_v16, %v1028_v5  ;;  %v2090_v57 = vadd.f32 %v2089_v42, %v470_v19 }
 0x2dd   : > { %v1034_v17 = vld [vmem:[%s4916_s18 + $0x1558] sm:$0xff]  ;;  %v1532_v20 = vld [vmem:[%s4916_s18 + $0x24e8] sm:$0xff]  ;;  %v2973_v39 = vadd.f32 %v2972_v21, %v1208_v10  ;;  %v2312_v58 = vadd.f32 %v2311_v44, %v662_v14 }
 0x2de   : > { %v848_v23 = vld [vmem:[%s4916_s18 + $0xf88] sm:$0xff]  ;;  %v1214_v24 = vld [vmem:[%s4916_s18 + $0x1af8] sm:$0xff]  ;;  %v2754_v45 = vadd.f32 %v2753_v31, %v1034_v17  ;;  %v3407_v26 = vadd.f32 %v3406_v28, %v1532_v20 }
 0x2df   : > { %v1376_v25 = vld [vmem:[%s4916_s18 + $0x2008] sm:$0xff]  ;;  %v1538_v36 = vld [vmem:[%s4916_s18 + $0x2518] sm:$0xff]  ;;  %v2533_v50 = vadd.f32 %v2532_v37, %v848_v23  ;;  %v2974_v51 = vadd.f32 %v2973_v39, %v1214_v24 }
 0x2e0   : > { %v476_v30 = vld [vmem:[%s4916_s18 + $0x3e8] sm:$0xff]  ;;  %v854_v33 = vld [vmem:[%s4916_s18 + $0xfb8] sm:$0xff]  ;;  %v3191_v52 = vadd.f32 %v3190_v40, %v1376_v25  ;;  %v3408_v48 = vadd.f32 %v3407_v26, %v1538_v36 }
 0x2e1   : > { %v668_v32 = vld [vmem:[%s4916_s18 + $0x9e8] sm:$0xff]  ;;  %v1382_v35 = vld [vmem:[%s4916_s18 + $0x2038] sm:$0xff]  ;;  %v2534_v3 = vadd.f32 %v2533_v50, %v854_v33  ;;  %v2091_v7 = vadd.f32 %v2090_v57, %v476_v30 }
 0x2e2   : > { %v1040_v34 = vld [vmem:[%s4916_s18 + $0x1588] sm:$0xff]  ;;  %v482_v46 = vld [vmem:[%s4916_s18 + $0x418] sm:$0xff]  ;;  %v3192_v62 = vadd.f32 %v3191_v52, %v1382_v35  ;;  %v2313_v0 = vadd.f32 %v2312_v58, %v668_v32 }
 0x2e3   : > { %v1220_v29 = vld [vmem:[%s4916_s18 + $0x1b28] sm:$0xff]  ;;  %v674_v47 = vld [vmem:[%s4916_s18 + $0xa18] sm:$0xff]  ;;  %v2755_v60 = vadd.f32 %v2754_v45, %v1040_v34  ;;  %v2092_v23 = vadd.f32 %v2091_v7, %v482_v46 }
 0x2e4   : > { %v860_v43 = vld [vmem:[%s4916_s18 + $0xfe8] sm:$0xff]  ;;  %v1046_v38 = vld [vmem:[%s4916_s18 + $0x15b8] sm:$0xff]  ;;  %v2975_v4 = vadd.f32 %v2974_v51, %v1220_v29  ;;  %v2314_v24 = vadd.f32 %v2313_v0, %v674_v47 }
 0x2e5   : > { %v1544_v49 = vld [vmem:[%s4916_s18 + $0x2548] sm:$0xff]  ;;  %v866_v53 = vld [vmem:[%s4916_s18 + $0x1018] sm:$0xff]  ;;  %v2756_v9 = vadd.f32 %v2755_v60, %v1046_v38  ;;  %v2535_v19 = vadd.f32 %v2534_v3, %v860_v43 }
 0x2e6   : > { %v1226_v54 = vld [vmem:[%s4916_s18 + $0x1b58] sm:$0xff]  ;;  %v1388_v55 = vld [vmem:[%s4916_s18 + $0x2068] sm:$0xff]  ;;  %v3409_v10 = vadd.f32 %v3408_v48, %v1544_v49 }
 0x2e7   : > { %v1700_v56 = vld [vmem:[%s4916_s18 + $0x2a28] sm:$0xff]  ;;  %v1550_v63 = vld [vmem:[%s4916_s18 + $0x2578] sm:$0xff]  ;;  %v2976_v14 = vadd.f32 %v2975_v4, %v1226_v54  ;;  %v3193_v17 = vadd.f32 %v3192_v62, %v1388_v55  ;;  %v2536_v34 = vadd.f32 %v2535_v19, %v866_v53 }
 0x2e8   : > { %v488_v41 = vld [vmem:[%s4916_s18 + $0x448] sm:$0xff]  ;;  %v1706_v1 = vld [vmem:[%s4916_s18 + $0x2a58] sm:$0xff]  ;;  %v3410_v27 = vadd.f32 %v3409_v10, %v1550_v63 }
 0x2e9   : > { %v680_v61 = vld [vmem:[%s4916_s18 + $0xa48] sm:$0xff]  ;;  %v1394_v2 = vld [vmem:[%s4916_s18 + $0x2098] sm:$0xff]  ;;  %v3626_v20 = vadd.f32 %v1706_v1, %v1700_v56  ;;  %v2093_v35 = vadd.f32 %v2092_v23, %v488_v41 }
 0x2ea   : > { %v1052_v59 = vld [vmem:[%s4916_s18 + $0x15e8] sm:$0xff]  ;;  %v494_v11 = vld [vmem:[%s4916_s18 + $0x478] sm:$0xff]  ;;  %v3194_v37 = vadd.f32 %v3193_v17, %v1394_v2  ;;  %v2315_v42 = vadd.f32 %v2314_v24, %v680_v61 }
 0x2eb   : > { %v1232_v5 = vld [vmem:[%s4916_s18 + $0x1b88] sm:$0xff]  ;;  %v686_v12 = vld [vmem:[%s4916_s18 + $0xa78] sm:$0xff]  ;;  %v2757_v25 = vadd.f32 %v2756_v9, %v1052_v59  ;;  %v2094_v56 = vadd.f32 %v2093_v35, %v494_v11 }
 0x2ec   : > { %v1712_v6 = vld [vmem:[%s4916_s18 + $0x2a88] sm:$0xff]  ;;  %v1058_v16 = vld [vmem:[%s4916_s18 + $0x1618] sm:$0xff]  ;;  %v2977_v36 = vadd.f32 %v2976_v14, %v1232_v5  ;;  %v2316_v57 = vadd.f32 %v2315_v42, %v686_v12 }
 0x2ed   : > { %v872_v15 = vld [vmem:[%s4916_s18 + $0x1048] sm:$0xff]  ;;  %v1238_v8 = vld [vmem:[%s4916_s18 + $0x1bb8] sm:$0xff]  ;;  %v3627_v39 = vadd.f32 %v3626_v20, %v1712_v6  ;;  %v2758_v44 = vadd.f32 %v2757_v25, %v1058_v16 }
 0x2ee   : > { %v1556_v18 = vld [vmem:[%s4916_s18 + $0x25a8] sm:$0xff]  ;;  %v1718_v22 = vld [vmem:[%s4916_s18 + $0x2ab8] sm:$0xff]  ;;  %v2537_v49 = vadd.f32 %v2536_v34, %v872_v15  ;;  %v2978_v50 = vadd.f32 %v2977_v36, %v1238_v8 }
 0x2ef   : > { %v1400_v21 = vld [vmem:[%s4916_s18 + $0x20c8] sm:$0xff]  ;;  %v878_v28 = vld [vmem:[%s4916_s18 + $0x1078] sm:$0xff]  ;;  %v3411_v45 = vadd.f32 %v3410_v27, %v1556_v18  ;;  %v3628_v52 = vadd.f32 %v3627_v39, %v1718_v22 }
 0x2f0   : > { %v500_v13 = vld [vmem:[%s4916_s18 + $0x4a8] sm:$0xff]  ;;  %v1562_v32 = vld [vmem:[%s4916_s18 + $0x25d8] sm:$0xff]  ;;  %v3195_v51 = vadd.f32 %v3194_v37, %v1400_v21  ;;  %v2538_v1 = vadd.f32 %v2537_v49, %v878_v28 }
 0x2f1   : > { %v692_v31 = vld [vmem:[%s4916_s18 + $0xaa8] sm:$0xff]  ;;  %v1406_v33 = vld [vmem:[%s4916_s18 + $0x20f8] sm:$0xff]  ;;  %v3412_v60 = vadd.f32 %v3411_v45, %v1562_v32  ;;  %v2095_v0 = vadd.f32 %v2094_v56, %v500_v13 }
 0x2f2   : > { %v1064_v30 = vld [vmem:[%s4916_s18 + $0x1648] sm:$0xff]  ;;  %v506_v26 = vld [vmem:[%s4916_s18 + $0x4d8] sm:$0xff]  ;;  %v3196_v4 = vadd.f32 %v3195_v51, %v1406_v33  ;;  %v2317_v9 = vadd.f32 %v2316_v57, %v692_v31 }
 0x2f3   : > { %v1244_v40 = vld [vmem:[%s4916_s18 + $0x1be8] sm:$0xff]  ;;  %v698_v46 = vld [vmem:[%s4916_s18 + $0xad8] sm:$0xff]  ;;  %v2759_v58 = vadd.f32 %v2758_v44, %v1064_v30  ;;  %v2096_v23 = vadd.f32 %v2095_v0, %v506_v26 }
 0x2f4   : > { %v1724_v29 = vld [vmem:[%s4916_s18 + $0x2ae8] sm:$0xff]  ;;  %v1070_v43 = vld [vmem:[%s4916_s18 + $0x1678] sm:$0xff]  ;;  %v2979_v3 = vadd.f32 %v2978_v50, %v1244_v40  ;;  %v2318_v24 = vadd.f32 %v2317_v9, %v698_v46 }
 0x2f5   : > { %v884_v47 = vld [vmem:[%s4916_s18 + $0x10a8] sm:$0xff]  ;;  %v1250_v53 = vld [vmem:[%s4916_s18 + $0x1c18] sm:$0xff]  ;;  %v3629_v62 = vadd.f32 %v3628_v52, %v1724_v29  ;;  %v2760_v10 = vadd.f32 %v2759_v58, %v1070_v43 }
 0x2f6   : > { %v1568_v38 = vld [vmem:[%s4916_s18 + $0x2608] sm:$0xff]  ;;  %v1730_v55 = vld [vmem:[%s4916_s18 + $0x2b18] sm:$0xff]  ;;  %v2539_v19 = vadd.f32 %v2538_v1, %v884_v47  ;;  %v2980_v14 = vadd.f32 %v2979_v3, %v1250_v53 }
 0x2f7   : > { %v1412_v54 = vld [vmem:[%s4916_s18 + $0x2128] sm:$0xff]  ;;  %v890_v61 = vld [vmem:[%s4916_s18 + $0x10d8] sm:$0xff]  ;;  %v3413_v11 = vadd.f32 %v3412_v60, %v1568_v38  ;;  %v3630_v20 = vadd.f32 %v3629_v62, %v1730_v55 }
 0x2f8   : > { %v512_v48 = vld [vmem:[%s4916_s18 + $0x508] sm:$0xff]  ;;  %v1574_v63 = vld [vmem:[%s4916_s18 + $0x2638] sm:$0xff]  ;;  %v3197_v17 = vadd.f32 %v3196_v4, %v1412_v54  ;;  %v2540_v30 = vadd.f32 %v2539_v19, %v890_v61 }
 0x2f9   : > { %v704_v41 = vld [vmem:[%s4916_s18 + $0xb08] sm:$0xff]  ;;  %v1418_v6 = vld [vmem:[%s4916_s18 + $0x2158] sm:$0xff]  ;;  %v3414_v27 = vadd.f32 %v3413_v11, %v1574_v63  ;;  %v2097_v33 = vadd.f32 %v2096_v23, %v512_v48 }
 0x2fa   : > { %v1076_v59 = vld [vmem:[%s4916_s18 + $0x16a8] sm:$0xff]  ;;  %v518_v12 = vld [vmem:[%s4916_s18 + $0x538] sm:$0xff]  ;;  %v3198_v34 = vadd.f32 %v3197_v17, %v1418_v6  ;;  %v2319_v29 = vadd.f32 %v2318_v24, %v704_v41 }
 0x2fb   : > { %v896_v5 = vld [vmem:[%s4916_s18 + $0x1108] sm:$0xff]  ;;  %v710_v15 = vld [vmem:[%s4916_s18 + $0xb38] sm:$0xff]  ;;  %v2761_v25 = vadd.f32 %v2760_v10, %v1076_v59  ;;  %v2098_v53 = vadd.f32 %v2097_v33, %v518_v12 }
 0x2fc   : > { %v1256_v2 = vld [vmem:[%s4916_s18 + $0x1c48] sm:$0xff]  ;;  %v1082_v16 = vld [vmem:[%s4916_s18 + $0x16d8] sm:$0xff]  ;;  %v2541_v46 = vadd.f32 %v2540_v30, %v896_v5  ;;  %v2320_v54 = vadd.f32 %v2319_v29, %v710_v15 }
 0x2fd   : > { %v1736_v7 = vld [vmem:[%s4916_s18 + $0x2b48] sm:$0xff]  ;;  %v1262_v8 = vld [vmem:[%s4916_s18 + $0x1c78] sm:$0xff]  ;;  %v2981_v32 = vadd.f32 %v2980_v14, %v1256_v2  ;;  %v2762_v35 = vadd.f32 %v2761_v25, %v1082_v16 }
 0x2fe   : > { %v1580_v18 = vld [vmem:[%s4916_s18 + $0x2668] sm:$0xff]  ;;  %v1742_v22 = vld [vmem:[%s4916_s18 + $0x2b78] sm:$0xff]  ;;  %v3631_v36 = vadd.f32 %v3630_v20, %v1736_v7 }
 0x2ff   : > { %v1424_v21 = vld [vmem:[%s4916_s18 + $0x2188] sm:$0xff]  ;;  %v902_v13 = vld [vmem:[%s4916_s18 + $0x1138] sm:$0xff]  ;;  %v3415_v42 = vadd.f32 %v3414_v27, %v1580_v18  ;;  %v2982_v47 = vadd.f32 %v2981_v32, %v1262_v8 }
 0x300   : > { %v1088_v31 = vld [vmem:[%s4916_s18 + $0x1708] sm:$0xff]  ;;  %v1586_v28 = vld [vmem:[%s4916_s18 + $0x2698] sm:$0xff]  ;;  %v3199_v43 = vadd.f32 %v3198_v34, %v1424_v21  ;;  %v3632_v38 = vadd.f32 %v3631_v36, %v1742_v22  ;;  %v2542_v48 = vadd.f32 %v2541_v46, %v902_v13 }
 0x301   : > { %v1268_v37 = vld [vmem:[%s4916_s18 + $0x1ca8] sm:$0xff]  ;;  %v1430_v39 = vld [vmem:[%s4916_s18 + $0x21b8] sm:$0xff]  ;;  %v2763_v55 = vadd.f32 %v2762_v35, %v1088_v31  ;;  %v3416_v56 = vadd.f32 %v3415_v42, %v1586_v28 }
 0x302   : > { %v1748_v40 = vld [vmem:[%s4916_s18 + $0x2ba8] sm:$0xff]  ;;  %v530_v49 = vld [vmem:[%s4916_s18 + $0x598] sm:$0xff]  ;;  %v2983_v41 = vadd.f32 %v2982_v47, %v1268_v37  ;;  %v3200_v61 = vadd.f32 %v3199_v43, %v1430_v39 }
 0x303   : > { %v524_v44 = vld [vmem:[%s4916_s18 + $0x568] sm:$0xff]  ;;  %v1274_v50 = vld [vmem:[%s4916_s18 + $0x1cd8] sm:$0xff]  ;;  %v3633_v59 = vadd.f32 %v3632_v38, %v1748_v40 }
 0x304   : > { %v716_v45 = vld [vmem:[%s4916_s18 + $0xb68] sm:$0xff]  ;;  %v1754_v52 = vld [vmem:[%s4916_s18 + $0x2bd8] sm:$0xff]  ;;  %v2099_v4 = vadd.f32 %v2098_v53, %v524_v44  ;;  %v2984_v6 = vadd.f32 %v2983_v41, %v1274_v50 }
 0x305   : > { %v1592_v26 = vld [vmem:[%s4916_s18 + $0x26c8] sm:$0xff]  ;;  %v1094_v58 = vld [vmem:[%s4916_s18 + $0x1738] sm:$0xff]  ;;  %v2321_v2 = vadd.f32 %v2320_v54, %v716_v45  ;;  %v3634_v0 = vadd.f32 %v3633_v59, %v1754_v52 }
 0x306   : > { %v1436_v51 = vld [vmem:[%s4916_s18 + $0x21e8] sm:$0xff]  ;;  %v1598_v60 = vld [vmem:[%s4916_s18 + $0x26f8] sm:$0xff]  ;;  %v3417_v62 = vadd.f32 %v3416_v56, %v1592_v26  ;;  %v2764_v16 = vadd.f32 %v2763_v55, %v1094_v58  ;;  %v2100_v20 = vadd.f32 %v2099_v4, %v530_v49 }
 0x307   : > { %v908_v57 = vld [vmem:[%s4916_s18 + $0x1168] sm:$0xff]  ;;  %v1442_v1 = vld [vmem:[%s4916_s18 + $0x2218] sm:$0xff]  ;;  %v3201_v7 = vadd.f32 %v3200_v61, %v1436_v51 }
 0x308   : > { %v1280_v63 = vld [vmem:[%s4916_s18 + $0x1d08] sm:$0xff]  ;;  %v722_v10 = vld [vmem:[%s4916_s18 + $0xb98] sm:$0xff]  ;;  %v2543_v15 = vadd.f32 %v2542_v48, %v908_v57  ;;  %v3418_v18 = vadd.f32 %v3417_v62, %v1598_v60 }
 0x309   : > { %v1760_v3 = vld [vmem:[%s4916_s18 + $0x2c08] sm:$0xff]  ;;  %v1766_v12 = vld [vmem:[%s4916_s18 + $0x2c38] sm:$0xff]  ;;  %v2985_v8 = vadd.f32 %v2984_v6, %v1280_v63  ;;  %v3202_v21 = vadd.f32 %v3201_v7, %v1442_v1  ;;  %v2322_v31 = vadd.f32 %v2321_v2, %v722_v10 }
 0x30a   : > { %v1604_v5 = vld [vmem:[%s4916_s18 + $0x2728] sm:$0xff]  ;;  %v1286_v14 = vld [vmem:[%s4916_s18 + $0x1d38] sm:$0xff]  ;;  %v3635_v22 = vadd.f32 %v3634_v0, %v1760_v3 }
 0x30b   : > { %v536_v9 = vld [vmem:[%s4916_s18 + $0x5c8] sm:$0xff]  ;;  %v1610_v17 = vld [vmem:[%s4916_s18 + $0x2758] sm:$0xff]  ;;  %v3419_v27 = vadd.f32 %v3418_v18, %v1604_v5  ;;  %v2986_v40 = vadd.f32 %v2985_v8, %v1286_v14 }
 0x30c   : > { %v1448_v11 = vld [vmem:[%s4916_s18 + $0x2248] sm:$0xff]  ;;  %v914_v23 = vld [vmem:[%s4916_s18 + $0x1198] sm:$0xff]  ;;  %v3636_v30 = vadd.f32 %v3635_v22, %v1766_v12  ;;  %v2101_v44 = vadd.f32 %v2100_v20, %v536_v9 }
 0x30d   : > { %v1100_v19 = vld [vmem:[%s4916_s18 + $0x1768] sm:$0xff]  ;;  %v1454_v24 = vld [vmem:[%s4916_s18 + $0x2278] sm:$0xff]  ;;  %v3203_v28 = vadd.f32 %v3202_v21, %v1448_v11  ;;  %v3420_v33 = vadd.f32 %v3419_v27, %v1610_v17  ;;  %v2544_v45 = vadd.f32 %v2543_v15, %v914_v23 }
 0x30e   : > { %v1772_v25 = vld [vmem:[%s4916_s18 + $0x2c68] sm:$0xff]  ;;  %v542_v32 = vld [vmem:[%s4916_s18 + $0x5f8] sm:$0xff]  ;;  %v2765_v39 = vadd.f32 %v2764_v16, %v1100_v19 }
 0x30f   : > { %v1616_v13 = vld [vmem:[%s4916_s18 + $0x2788] sm:$0xff]  ;;  %v1778_v37 = vld [vmem:[%s4916_s18 + $0x2c98] sm:$0xff]  ;;  %v3204_v26 = vadd.f32 %v3203_v28, %v1454_v24  ;;  %v3637_v46 = vadd.f32 %v3636_v30, %v1772_v25  ;;  %v2102_v59 = vadd.f32 %v2101_v44, %v542_v32 }
 0x310   : > { %v728_v34 = vld [vmem:[%s4916_s18 + $0xbc8] sm:$0xff]  ;;  %v1106_v29 = vld [vmem:[%s4916_s18 + $0x1798] sm:$0xff]  ;;  %v3421_v49 = vadd.f32 %v3420_v33, %v1616_v13 }
 0x311   : > { %v1460_v36 = vld [vmem:[%s4916_s18 + $0x22a8] sm:$0xff]  ;;  %v1622_v42 = vld [vmem:[%s4916_s18 + $0x27b8] sm:$0xff]  ;;  %v2323_v51 = vadd.f32 %v2322_v31, %v728_v34  ;;  %v3638_v53 = vadd.f32 %v3637_v46, %v1778_v37  ;;  %v2766_v57 = vadd.f32 %v2765_v39, %v1106_v29  ;;  %v2103_v17 = vrot.slane %v2102_v59, 4 }
 0x312   : > { %v1292_v35 = vld [vmem:[%s4916_s18 + $0x1d68] sm:$0xff]  ;;  %v1466_v43 = vld [vmem:[%s4916_s18 + $0x22d8] sm:$0xff]  ;;  %v3205_v52 = vadd.f32 %v3204_v26, %v1460_v36  ;;  %v3422_v60 = vadd.f32 %v3421_v49, %v1622_v42 }
 0x313   : > { %v920_v47 = vld [vmem:[%s4916_s18 + $0x11c8] sm:$0xff]  ;;  %v734_v54 = vld [vmem:[%s4916_s18 + $0xbf8] sm:$0xff]  ;;  %v2987_v58 = vadd.f32 %v2986_v40, %v1292_v35  ;;  %v2104_v40 = vadd.f32 %v2103_v17, %v2102_v59 }
 0x314   : > { %v1784_v38 = vld [vmem:[%s4916_s18 + $0x2cc8] sm:$0xff]  ;;  %v1790_v56 = vld [vmem:[%s4916_s18 + $0x2cf8] sm:$0xff]  ;;  %v2545_v63 = vadd.f32 %v2544_v45, %v920_v47  ;;  %v3206_v1 = vadd.f32 %v3205_v52, %v1466_v43  ;;  %v2324_v7 = vadd.f32 %v2323_v51, %v734_v54 }
 0x315   : > { %v1628_v50 = vld [vmem:[%s4916_s18 + $0x27e8] sm:$0xff]  ;;  %v1298_v41 = vld [vmem:[%s4916_s18 + $0x1d98] sm:$0xff]  ;;  %v3639_v3 = vadd.f32 %v3638_v53, %v1784_v38  ;;  %v2105_v52 = vrot.slane %v2104_v40, 2 }
 0x316   : > { %v1472_v55 = vld [vmem:[%s4916_s18 + $0x2308] sm:$0xff]  ;;  %v1634_v61 = vld [vmem:[%s4916_s18 + $0x2818] sm:$0xff]  ;;  %v3423_v2 = vadd.f32 %v3422_v60, %v1628_v50  ;;  %v2988_v15 = vadd.f32 %v2987_v58, %v1298_v41  ;;  %v2325_v27 = vrot.slane %v2324_v7, 4 }
 0x317   : > { %v1112_v48 = vld [vmem:[%s4916_s18 + $0x17c8] sm:$0xff]  ;;  %v926_v4 = vld [vmem:[%s4916_s18 + $0x11f8] sm:$0xff]  ;;  %v3207_v0 = vadd.f32 %v3206_v1, %v1472_v55  ;;  %v3640_v9 = vadd.f32 %v3639_v3, %v1790_v56  ;;  %v2106_v3 = vadd.f32 %v2105_v52, %v2104_v40  ;;  %v4779_v40 = vmov 0.0  }
 0x318   : > { %v1478_v62 = vld [vmem:[%s4916_s18 + $0x2338] sm:$0xff]  ;;  %v1796_v5 = vld [vmem:[%s4916_s18 + $0x2d28] sm:$0xff]  ;;  %v2767_v12 = vadd.f32 %v2766_v57, %v1112_v48  ;;  %v3424_v16 = vadd.f32 %v3423_v2, %v1634_v61  ;;  %v2546_v20 = vadd.f32 %v2545_v63, %v926_v4  ;;  %v2326_v26 = vadd.f32 %v2325_v27, %v2324_v7  ;;  %v6817_v27 = vld [vmem:[%s4958_s28] sm:$0xff]  ;;  %s4780_s28 = smov 4  }
 0x319   : > { %v1640_v6 = vld [vmem:[%s4916_s18 + $0x2848] sm:$0xff]  ;;  %v1802_v11 = vld [vmem:[%s4916_s18 + $0x2d58] sm:$0xff]  ;;  %v3208_v8 = vadd.f32 %v3207_v0, %v1478_v62  ;;  %v3641_v21 = vadd.f32 %v3640_v9, %v1796_v5  ;;  %v2107_v17 = vrot.slane %v2106_v3, 1 }
 0x31a   : > { %v1484_v10 = vld [vmem:[%s4916_s18 + $0x2368] sm:$0xff]  ;;  %v1118_v18 = vld [vmem:[%s4916_s18 + $0x17f8] sm:$0xff]  ;;  %v3425_v24 = vadd.f32 %v3424_v16, %v1640_v6  ;;  %v2547_v33 = vrot.slane %v2546_v20, 4  ;;  %v2327_v60 = vrot.slane %v2326_v26, 2  ;;  %v4017_v16 = vlaneseq }
 0x31b   : > { %v1304_v19 = vld [vmem:[%s4916_s18 + $0x1dc8] sm:$0xff]  ;;  %v1646_v14 = vld [vmem:[%s4916_s18 + $0x2878] sm:$0xff]  ;;  %v3209_v13 = vadd.f32 %v3208_v8, %v1484_v10  ;;  %v3642_v31 = vadd.f32 %v3641_v21, %v1802_v11  ;;  %v2768_v32 = vadd.f32 %v2767_v12, %v1118_v18  ;;  %v4072_v18 = vpop.permute.xlu2 %4071 }
 0x31c   : > { %v1490_v22 = vld [vmem:[%s4916_s18 + $0x2398] sm:$0xff]  ;;  %v1808_v23 = vld [vmem:[%s4916_s18 + $0x2d88] sm:$0xff]  ;;  %v2989_v34 = vadd.f32 %v2988_v15, %v1304_v19  ;;  %v3426_v36 = vadd.f32 %v3425_v24, %v1646_v14  ;;  %v2548_v53 = vadd.f32 %v2547_v33, %v2546_v20  ;;  %v2328_v0 = vadd.f32 %v2327_v60, %v2326_v26  ;;  %v6810_v19 = vld [vmem:[%s7022_s3] sm:$0x7f] }
 0x31d   : > { %v1652_v25 = vld [vmem:[%s4916_s18 + $0x28a8] sm:$0xff]  ;;  %v1814_v30 = vld [vmem:[%s4916_s18 + $0x2db8] sm:$0xff]  ;;  %v3210_v29 = vadd.f32 %v3209_v13, %v1490_v22  ;;  %v3643_v35 = vadd.f32 %v3642_v31, %v1808_v23  ;;  %v2769_v54 = vrot.slane %v2768_v32, 4  ;;  %v4778_v22 = vmov 5  }
 0x31e   : > { %v1496_v28 = vld [vmem:[%s4916_s18 + $0x23c8] sm:$0xff]  ;;  %v1310_v37 = vld [vmem:[%s4916_s18 + $0x1df8] sm:$0xff]  ;;  %v3427_v44 = vadd.f32 %v3426_v36, %v1652_v25  ;;  %v2549_v4 = vrot.slane %v2548_v53, 2  ;;  %4607 = vset.pattern.permute.xlu0 %v4778_v22  ;;  %v6814_v25 = vand.u32 127, %v4017_v16  ;;  %v4090_v13 = vperm.slane %v6810_v19, 1 }
 0x31f   : > { %v1658_v39 = vld [vmem:[%s4916_s18 + $0x28d8] sm:$0xff]  ;;  %v1820_v42 = vld [vmem:[%s4916_s18 + $0x2de8] sm:$0xff]  ;;  %v3211_v46 = vadd.f32 %v3210_v29, %v1496_v28  ;;  %v3644_v47 = vadd.f32 %v3643_v35, %v1814_v30  ;;  %v2990_v49 = vadd.f32 %v2989_v34, %v1310_v37  ;;  %v2770_v62 = vadd.f32 %v2769_v54, %v2768_v32  ;;  %4255 = vperm.xlu0 %4607, %v6817_v27  }
 0x320   : > { %v1664_v45 = vld [vmem:[%s4916_s18 + $0x2908] sm:$0xff]  ;;  %v1502_v43 = vld [vmem:[%s4916_s18 + $0x23f8] sm:$0xff]  ;;  %v3428_v50 = vadd.f32 %v3427_v44, %v1658_v39  ;;  %v2550_v20 = vadd.f32 %v2549_v4, %v2548_v53  ;;  %v2329_v31 = vrot.slane %v2328_v0, 1  ;;  %vm4073_vm7 = vcmp.eq.s32.totalorder %v6814_v25, %v4072_v18 }
 0x321   : > { %v1826_v38 = vld [vmem:[%s4916_s18 + $0x2e18] sm:$0xff]  ;;  %v3645_v55 = vadd.f32 %v3644_v47, %v1820_v42  ;;  %v1832_v56 = vld [vmem:[%s4916_s18 + $0x2e48] sm:$0xff]  ;;  %v3212_v48 = vadd.f32 %v3211_v46, %v1502_v43  ;;  %v2991_v59 = vrot.slane %v2990_v49, 4  ;;  %v2771_v8 = vrot.slane %v2770_v62, 2 }
 0x322   : > { %v1670_v51 = vld [vmem:[%s4916_s18 + $0x2938] sm:$0xff]  ;;  %v3429_v57 = vadd.f32 %v3428_v50, %v1664_v45  ;;  %v1676_v58 = vld [vmem:[%s4916_s18 + $0x2968] sm:$0xff]  ;;  %v4503_v33 = vsel %vm4073_vm7, 1.0, %v4779_v40  ;;  %v2108_v35 = vadd.f32 %v2107_v17, %v2106_v3  ;;  %v2551_v42 = vrot.slane %v2550_v20, 1 }
 0x323   : > { %v3646_v41 = vadd.f32 %v3645_v55, %v1826_v38  ;;  %v1838_v61 = vld [vmem:[%s4916_s18 + $0x2e78] sm:$0xff]  ;;  %v1844_v2 = vld [vmem:[%s4916_s18 + $0x2ea8] sm:$0xff]  ;;  %v3213_v9 = vrot.slane %v3212_v48, 4  ;;  %v2992_v12 = vadd.f32 %v2991_v59, %v2990_v49  ;;  %v2772_v37 = vadd.f32 %v2771_v8, %v2770_v62  ;;  %v4118_v52 = vpop.permute.xlu2 %4117 }
 0x324   : > { %v3430_v63 = vadd.f32 %v3429_v57, %v1670_v51  ;;  %v1682_v1 = vld [vmem:[%s4916_s18 + $0x2998] sm:$0xff]  ;;  %v1688_v7 = vld [vmem:[%s4916_s18 + $0x29c8] sm:$0xff]  ;;  %v4091_v45 = vmul.f32 %v4503_v33, %v4090_v13  ;;  %v2330_v26 = vadd.f32 %v2329_v31, %v2328_v0  ;;  %v4136_v43 = vperm.slane %v6810_v19, 2 }
 0x325   : > { %v3647_v5 = vadd.f32 %v3646_v41, %v1832_v56  ;;  %v1850_v11 = vld [vmem:[%s4916_s18 + $0x2ed8] sm:$0xff]  ;;  %v1856_v23 = vld [vmem:[%s4916_s18 + $0x2f08] sm:$0xff]  ;;  %v3214_v28 = vadd.f32 %v3213_v9, %v3212_v48  ;;  %v2993_v34 = vrot.slane %v2992_v12, 2  ;;  %v2773_v53 = vrot.slane %v2772_v37, 1 }
 0x326   : > { %v3431_v6 = vadd.f32 %v3430_v63, %v1676_v58  ;;  %v1694_v14 = vld [vmem:[%s4916_s18 + $0x29f8] sm:$0xff]  ;;  %v1868_v29 = vld [vmem:[%s4916_s18 + $0x2f68] sm:$0xff]  ;;  %v4092_v51 = vsel %vm4019_vm8, %v4091_v45, 0.0  ;;  %vm4119_vm9 = vcmp.eq.s32.totalorder %v6814_v25, %v4118_v52  ;;  %v2552_v56 = vadd.f32 %v2551_v42, %v2550_v20 }
 0x327   : > { %v3648_v10 = vadd.f32 %v3647_v5, %v1838_v61  ;;  %v1862_v32 = vld [vmem:[%s4916_s18 + $0x2f38] sm:$0xff]  ;;  %v3215_v46 = vrot.slane %v3214_v28, 2  ;;  %v2994_v49 = vadd.f32 %v2993_v34, %v2992_v12  ;;  %4093 = vadd.xlane.f32.xlu1 %v4092_v51  ;;  %v1880_v55 = vld [vmem:[%s4916_s18 + $0x2fc8] sm:$0xff]  ;;  %v4504_v58 = vsel %vm4119_vm9, 1.0, %v4779_v40  ;;  %4077 = vrot.lane.b32.xlu0 %v4503_v33, %s4780_s28  ;;  %v3910_v33 = vpop.f32.mrf.mxu0 }
 0x328   : > { %v3432_v15 = vadd.f32 %v3431_v6, %v1682_v1  ;;  %v1874_v38 = vld [vmem:[%s4916_s18 + $0x2f98] sm:$0xff]  ;;  %v3753_v41 = vsel %vm3711_vm0, %v2330_v26, %v2108_v35  ;;  %v4137_v61 = vmul.f32 %v4504_v58, %v4136_v43  ;;  %v2774_v1 = vadd.f32 %v2773_v53, %v2772_v37  ;;  %v3930_v35 = vpop.f32.mrf.mxu1  ;;  %v3970_v26 = vpop.f32.mrf.mxu3 }
 0x329   : > { %v3649_v21 = vadd.f32 %v3648_v10, %v1844_v2  ;;  %v3216_v60 = vadd.f32 %v3215_v46, %v3214_v28  ;;  %v1886_v59 = vld [vmem:[%s4916_s18 + $0x2ff8] sm:$0xff]  ;;  %v2995_v63 = vrot.slane %v2994_v49, 1  ;;  %v3754_v62 = vsel %vm3713_vm1, %v2552_v56, %v3753_v41  ;;  %s4781_s18 = smov 8  }
 0x32a   : > { %v3433_v24 = vadd.f32 %v3432_v15, %v1688_v7  ;;  %v4138_v5 = vsel %vm4019_vm8, %v4137_v61, 0.0  ;;  %v3755_v10 = vsel %vm3715_vm2, %v2774_v1, %v3754_v62  ;;  %vm4237_vm0 = vcmask 195744  }
 0x32b   : > { %v3650_v30 = vadd.f32 %v3649_v21, %v1850_v11  ;;  %v3217_v2 = vrot.slane %v3216_v60, 1  ;;  %v2996_v7 = vadd.f32 %v2995_v63, %v2994_v49  ;;  %v4164_v0 = vpop.permute.xlu2 %4163  ;;  %v4034_v21 = vpop.permute.xlu1 %4033  ;;  %vm4145_vm1 = vcmask 130144  }
 0x32c   : > { %v3434_v36 = vadd.f32 %v3433_v24, %v1694_v14  ;;  %vm4165_vm10 = vcmp.eq.s32.totalorder %v6814_v25, %v4164_v0  ;;  %vm4035_vm12 = vcmp.eq.s32.totalorder %v6814_v25, %v4034_v21  ;;  %vm4099_vm2 = vcmask 97344  }
 0x32d   : > { %v3651_v39 = vadd.f32 %v3650_v30, %v1856_v23  ;;  %v6838_v12 = vsel %vm4165_vm10, 1.0, %v4779_v40  ;;  %v3218_v15 = vadd.f32 %v3217_v2, %v3216_v60  ;;  %v3756_v18 = vsel %vm3717_vm3, %v2996_v7, %v3755_v10 }
 0x32e   : > { %v3435_v44 = vrot.slane %v3434_v36, 4  ;;  %4169 = vrot.lane.b32.xlu2 %v6838_v12, %s4782_s14  ;;  %v6853_v34 = vsel %vm4035_vm12, 1.0, %v4779_v40  ;;  %vm4283_vm3 = vcmask 228544   ;;  %vm4331_vm7 = vcmask 15360  }
 0x32f   : > { %v3652_v47 = vadd.f32 %v3651_v39, %v1862_v32  ;;  %4139 = vadd.xlane.f32.xlu1 %v4138_v5  ;;  %4123 = vrot.lane.b32.xlu0 %v4504_v58, %s4781_s18  ;;  %v3757_v8 = vsel %vm3719_vm4, %v3218_v15, %v3756_v18  ;;  %v4044_v32 = vperm.slane %v6810_v19, 0  ;;  %v4610_v39 = vld [vmem:[#allocation5] ss:$0 sm:$0xff]  ;;  %vm4333_vm9 = vcmask 23552  }
 0x330   : > { %v3436_v50 = vadd.f32 %v3435_v44, %v3434_v36  ;;  %v3950_v44 = vpop.f32.mrf.mxu2  ;;  %vm4336_vm10 = vcmask 39936   ;;  %vm4340_vm12 = vcmask 56320  }
 0x331   : > { %v3653_v54 = vadd.f32 %v3652_v47, %v1868_v29  ;;  %v4045_v36 = vmul.f32 %v6853_v34, %v4044_v32  ;;  %v3911_v29 = vadd.f32 %v4610_v39, %v3910_v33 }
 0x332   : > { %v3437_v57 = vrot.slane %v3436_v50, 2 }
 0x333   : > { %v3654_v48 = vadd.f32 %v3653_v54, %v1874_v38  ;;  %v4210_v28 = vpop.permute.xlu1 %4209  ;;  %v4046_v37 = vsel %vm4019_vm8, %v4045_v36, 0.0  ;;  %v3931_v42 = vadd.f32 %v3930_v35, %v3911_v29 }
 0x334   : > { %v3438_v4 = vadd.f32 %v3437_v57, %v3436_v50  ;;  %vm4211_vm11 = vcmp.eq.s32.totalorder %v6814_v25, %v4210_v28  ;;  %v4790_v28 = vmov 6  }
 0x335   : > { %v3655_v3 = vadd.f32 %v3654_v48, %v1880_v55  ;;  %v6847_v30 = vsel %vm4211_vm11, 1.0, %v4779_v40  ;;  %v3951_v45 = vadd.f32 %v3950_v44, %v3931_v42  ;;  %4608 = vset.pattern.permute.xlu2 %v4790_v28  ;;  %4609 = vset.pattern.permute.xlu0 %v4790_v28  ;;  %vm4338_vm11 = vcmask 48128  }
 0x336   : > { %v3439_v11 = vrot.slane %v3438_v4, 1 }
 0x337   : > { %v3656_v6 = vadd.f32 %v3655_v3, %v1886_v59  ;;  %v3971_v46 = vadd.f32 %v3970_v26, %v3951_v45 }
 0x338   : > { %v3440_v17 = vadd.f32 %v3439_v11, %v3438_v4 }
 0x339   : > { %v3657_v9 = vrot.slane %v3656_v6, 4 }
 0x33a   : > { %v3758_v23 = vsel %vm3721_vm5, %v3440_v17, %v3757_v8 }
 0x33b   : > { %v3658_v16 = vadd.f32 %v3657_v9, %v3656_v6 }
 0x33d   : > { %v3659_v14 = vrot.slane %v3658_v16, 2 }
 0x33f   : > { %v3660_v20 = vadd.f32 %v3659_v14, %v3658_v16 }
 0x341   : > { %v3661_v22 = vrot.slane %v3660_v20, 1 }
 0x343   : > { %v3662_v24 = vadd.f32 %v3661_v22, %v3660_v20 }
 0x345   : > { %v3759_v13 = vsel %vm3723_vm6, %v3662_v24, %v3758_v23  ;;  %vm4329_vm6 = vcmask 7168  }
 0x346   : > { %v3792_v31 = vmul.f32 0.00390625, %v3759_v13 }
 0x348   : > { %4009 = vmatmul.f32.vlgmr.msrb.gmra.mxu1 %v3792_v31  ;;  %4215 = vrot.lane.b32.xlu1 %v6847_v30, %s4783_s16 }
 0x34f   : > { %v3990_v47 = vpop.f32.mrf.mxu0 }
 0x350   : > { %v3991_v43 = vadd.f32 %v3990_v47, %v3971_v46 }
 0x357   : > { %4047 = vadd.xlane.f32.xlu2 %v4046_v37 }
 0x388   : > { %v6876_v60 = vpop.permute.xlu2 %4169 }
 0x391   : > { %v6874_v58 = vpop.permute.xlu0 %4255 }
 0x392   : > { %vm4257_vm4 = vcmp.eq.s32.totalorder %v6814_v25, %v6874_v58 }
 0x399   : > { %v6880_v41 = vpop.permute.xlu0 %4077 }
 0x39a   : > { %v6872_v57 = vpop.xlane.xlu1 %4093 }
 0x3a1   : > { %v6886_v63 = vpop.permute.xlu0 %4123 }
 0x3a2   : > { %v6878_v48 = vpop.xlane.xlu1 %4139 }
 0x3ba   : > { %v6884_v59 = vpop.permute.xlu1 %4215 }
 0x3c5   : > { %v4010_v38 = vpop.f32.mrf.mxu1 }
 0x3c6   : > { %v6861_v49 = vadd.f32 %v4010_v38, %v3991_v43 }
 0x3c8   : > { %4014 = vst.msk [vmem:[%s330_s30] sm:$0xff] %vm4013_vm13, %v6861_v49  ;;  %v4192_v50 = vsel %vm4191_vm14, %v6861_v49, -inf  ;;  %v4054_v51 = vsel %vm4053_vm15, %v6861_v49, -inf  ;;  %v4020_v52 = vsel %vm4019_vm8, %v6861_v49, -inf  ;;  %v4238_v53 = vsel %vm4237_vm0, %v6861_v49, -inf }
 0x3c9   : > { %4193 = vmax.xlane.f32.xlu1 %v4192_v50  ;;  %4055 = vmax.xlane.f32.xlu2 %v4054_v51  ;;  %v4146_v54 = vsel %vm4145_vm1, %v6861_v49, -inf  ;;  %v4100_v55 = vsel %vm4099_vm2, %v6861_v49, -inf  ;;  %v4284_v56 = vsel %vm4283_vm3, %v6861_v49, -inf  ;;  %vm4342_vm13 = vcmask 64512  }
 0x3ca   : > { %4021 = vmax.xlane.f32.xlu0 %v4020_v52  ;;  %v6882_v61 = vpop.xlane.xlu2 %4047  ;;  %vm4344_vm14 = vcmask 72704   ;;  %vm4346_vm15 = vcmask 80896   ;;  %vm4350_vm0 = vcmask 97280   ;;  %vm4352_vm1 = vcmask 105472  }
 0x3cb   : > { %vm4354_vm2 = vcmask 113664   ;;  %vm4356_vm3 = vcmask 121856  }
 0x3d1   : > { %4239 = vmax.xlane.f32.xlu1 %v4238_v53  ;;  %4147 = vmax.xlane.f32.xlu2 %v4146_v54 }
 0x3d2   : > { %4101 = vmax.xlane.f32.xlu0 %v4100_v55 }
 0x3d9   : > { %4285 = vmax.xlane.f32.xlu1 %v4284_v56 }
 0x3e9   : > { %4301 = vperm.xlu2 %4608, %v6817_v27  }
 0x43c   : > { %v4194_v1 = vpop.xlane.xlu1 %4193  ;;  %v4056_v3 = vpop.xlane.xlu2 %4055 }
 0x43d   : > { %v6889_v4 = vsub.f32 %v6861_v49, %v4056_v3  ;;  %v4022_v62 = vpop.xlane.xlu0 %4021  ;;  %v6905_v18 = vsub.f32 %v6861_v49, %v4194_v1 }
 0x43e   : > { %v4023_v32 = vsub.f32 %v6861_v49, %v4022_v62 }
 0x43f   : > { %v4058_v5 = vmul.f32 1.442695, %v6889_v4  ;;  %v4196_v17 = vmul.f32 1.442695, %v6905_v18 }
 0x440   : > { %v4024_v36 = vmul.f32 1.442695, %v4023_v32 }
 0x441   : > { %4611 = vpow2.f32 %v4058_v5 }
 0x444   : > { %v4148_v2 = vpop.xlane.xlu2 %4147  ;;  %v4240_v6 = vpop.xlane.xlu1 %4239 }
 0x445   : > { %v6893_v7 = vsub.f32 %v6861_v49, %v4148_v2  ;;  %v4102_v0 = vpop.xlane.xlu0 %4101  ;;  %v6902_v16 = vsub.f32 %v6861_v49, %v4240_v6 }
 0x446   : > { %v6896_v9 = vsub.f32 %v6861_v49, %v4102_v0 }
 0x447   : > { %v4150_v10 = vmul.f32 1.442695, %v6893_v7  ;;  %v4612_v11 = vpop.eup %4611  ;;  %v4242_v14 = vmul.f32 1.442695, %v6902_v16 }
 0x448   : > { %v4104_v15 = vmul.f32 1.442695, %v6896_v9  ;;  %4061 = vrot.lane.b32.xlu0 %v4612_v11, %s4784_s8  ;;  %v4507_v11 = vsel %vm4257_vm4, 1.0, %v4779_v40  ;;  %vm4358_vm4 = vcmask 130048  }
 0x449   : > { %4613 = vpow2.f32 %v4150_v10 }
 0x44a   : > { %4615 = vpow2.f32 %v4104_v15 }
 0x44b   : > { %4617 = vpow2.f32 %v4242_v14 }
 0x44c   : > { %v4286_v20 = vpop.xlane.xlu1 %4285  ;;  %4619 = vpow2.f32 %v4196_v17  ;;  %v4302_v55 = vpop.permute.xlu2 %4301 }
 0x44d   : > { %v6911_v22 = vsub.f32 %v6861_v49, %v4286_v20  ;;  %vm4303_vm5 = vcmp.eq.s32.totalorder %v6814_v25, %v4302_v55  ;;  %v4182_v25 = vperm.slane %v6810_v19, 3 }
 0x44f   : > { %v4614_v8 = vpop.eup %4613  ;;  %v4288_v23 = vmul.f32 1.442695, %v6911_v22 }
 0x450   : > { %v4616_v21 = vpop.eup %4615  ;;  %4153 = vrot.lane.b32.xlu0 %v4614_v8, %s4785_s9 }
 0x451   : > { %4107 = vrot.lane.b32.xlu1 %v4616_v21, %s4786_s10  ;;  %v4618_v24 = vpop.eup %4617  ;;  %4621 = vpow2.f32 %v4288_v23 }
 0x452   : > { %v4620_v13 = vpop.eup %4619  ;;  %4623 = vpow2.f32 %v4024_v36 }
 0x457   : > { %v4622_v31 = vpop.eup %4621 }
 0x458   : > { %4245 = vrot.lane.b32.xlu0 %v4618_v24, %s4787_s13  ;;  %v4624_v37 = vpop.eup %4623 }
 0x459   : > { %4199 = vrot.lane.b32.xlu1 %v4620_v13, %s4788_s17  ;;  %v4026_v39 = vsel %vm4019_vm8, %v4624_v37, 0.0 }
 0x460   : > { %4291 = vrot.lane.b32.xlu0 %v4622_v31, %s4789_s19 }
 0x48a   : > { %4027 = vadd.xlane.f32.xlu0 %v4026_v39 }
 0x4ba   : > { %v4062_v33 = vpop.permute.xlu0 %4061 }
 0x4bb   : > { %v4064_v29 = vsel %vm4019_vm8, %v4062_v33, 0.0 }
 0x4bc   : > { %4065 = vadd.xlane.f32.xlu2 %v4064_v29 }
 0x4c2   : > { %v4154_v35 = vpop.permute.xlu0 %4153 }
 0x4c3   : > { %v4108_v42 = vpop.permute.xlu1 %4107  ;;  %v4156_v26 = vsel %vm4019_vm8, %v4154_v35, 0.0 }
 0x4c4   : > { %v4110_v44 = vsel %vm4019_vm8, %v4108_v42, 0.0 }
 0x4c5   : > { %4111 = vadd.xlane.f32.xlu1 %v4110_v44 }
 0x4ca   : > { %v4246_v45 = vpop.permute.xlu0 %4245 }
 0x4cb   : > { %v4248_v27 = vsel %vm4019_vm8, %v4246_v45, 0.0  ;;  %v4200_v46 = vpop.permute.xlu1 %4199 }
 0x4cc   : > { %4249 = vadd.xlane.f32.xlu0 %v4248_v27  ;;  %v4202_v38 = vsel %vm4019_vm8, %v4200_v46, 0.0 }
 0x4cd   : > { %4157 = vadd.xlane.f32.xlu1 %v4156_v26  ;;  %v4274_v26 = vperm.slane %v6810_v19, 5 }
 0x4cf   : > { %v4275_v46 = vmul.f32 %v4507_v11, %v4274_v26 }
 0x4d2   : > { %v4292_v47 = vpop.permute.xlu0 %4291 }
 0x4d3   : > { %v4294_v43 = vsel %vm4019_vm8, %v4292_v47, 0.0  ;;  %v4276_v47 = vsel %vm4019_vm8, %v4275_v46, 0.0 }
 0x4d4   : > { %4295 = vadd.xlane.f32.xlu2 %v4294_v43  ;;  %v4320_v43 = vperm.slane %v6810_v19, 6 }
 0x4d5   : > { %4203 = vadd.xlane.f32.xlu1 %v4202_v38 }
 0x4fd   : > { %v4028_v49 = vpop.xlane.xlu0 %4027 }
 0x4fe   : > { %4625 = vlog2.f32 %v4028_v49  ;;  %v4228_v49 = vperm.slane %v6810_v19, 4 }
 0x504   : > { %v4626_v50 = vpop.eup %4625 }
 0x505   : > { %v4030_v51 = vmul.f32 0.6931472, %v4626_v50  ;;  %v4229_v50 = vmul.f32 %v6847_v30, %v4228_v49 }
 0x507   : > { %v4031_v52 = vsub.f32 %v4023_v32, %v4030_v51  ;;  %v4230_v51 = vsel %vm4019_vm8, %v4229_v50, 0.0 }
 0x509   : > { %v4038_v53 = vmul.f32 %v6853_v34, %v4031_v52 }
 0x50b   : > { %v4039_v54 = vsel %vm4019_vm8, %v4038_v53, 0.0 }
 0x50c   : > { %4040 = vadd.xlane.f32.xlu1 %v4039_v54 }
 0x52f   : > { %v4066_v56 = vpop.xlane.xlu2 %4065 }
 0x530   : > { %4627 = vlog2.f32 %v4066_v56 }
 0x536   : > { %v4628_v1 = vpop.eup %4627 }
 0x537   : > { %v4068_v3 = vmul.f32 0.6931472, %v4628_v1 }
 0x538   : > { %v4112_v62 = vpop.xlane.xlu1 %4111 }
 0x539   : > { %v4069_v5 = vsub.f32 %v6889_v4, %v4068_v3  ;;  %4629 = vlog2.f32 %v4112_v62 }
 0x53b   : > { %v4080_v2 = vmul.f32 %v6880_v41, %v4069_v5 }
 0x53d   : > { %4082 = vrot.lane.b32.xlu0 %v4080_v2, %s4784_s8 }
 0x53f   : > { %v4630_v6 = vpop.eup %4629  ;;  %v4250_v13 = vpop.xlane.xlu0 %4249 }
 0x540   : > { %v4114_v0 = vmul.f32 0.6931472, %v4630_v6  ;;  %v4158_v10 = vpop.xlane.xlu1 %4157 }
 0x541   : > { %4631 = vlog2.f32 %v4158_v10 }
 0x542   : > { %v4115_v34 = vsub.f32 %v6896_v9, %v4114_v0  ;;  %v4508_v9 = vsel %vm4303_vm5, 1.0, %v4779_v40 }
 0x544   : > { %v4126_v15 = vmul.f32 %v6886_v63, %v4115_v34 }
 0x545   : > { %4261 = vrot.lane.b32.xlu0 %v4507_v11, %s4791_s20 }
 0x546   : > { %4128 = vrot.lane.b32.xlu2 %v4126_v15, %s4786_s10 }
 0x547   : > { %v4632_v41 = vpop.eup %4631  ;;  %v4296_v40 = vpop.xlane.xlu2 %4295 }
 0x548   : > { %v4160_v4 = vmul.f32 0.6931472, %v4632_v41  ;;  %v4204_v14 = vpop.xlane.xlu1 %4203 }
 0x549   : > { %4633 = vlog2.f32 %v4204_v14 }
 0x54a   : > { %v4161_v17 = vsub.f32 %v6893_v7, %v4160_v4  ;;  %v4183_v7 = vmul.f32 %v6838_v12, %v4182_v25  ;;  %4635 = vlog2.f32 %v4250_v13 }
 0x54b   : > { %4637 = vlog2.f32 %v4296_v40 }
 0x54c   : > { %v4172_v58 = vmul.f32 %v6876_v60, %v4161_v17  ;;  %v4184_v60 = vsel %vm4019_vm8, %v4183_v7, 0.0 }
 0x54e   : > { %4307 = vrot.lane.b32.xlu2 %v4508_v9, %s4792_s24  ;;  %4174 = vrot.lane.b32.xlu1 %v4172_v58, %s4785_s9 }
 0x54f   : > { %v4634_v63 = vpop.eup %4633 }
 0x550   : > { %v4206_v20 = vmul.f32 0.6931472, %v4634_v63  ;;  %v4636_v31 = vpop.eup %4635 }
 0x551   : > { %v4252_v28 = vmul.f32 0.6931472, %v4636_v31  ;;  %v4638_v12 = vpop.eup %4637 }
 0x552   : > { %v4207_v8 = vsub.f32 %v6905_v18, %v4206_v20  ;;  %v4298_v33 = vmul.f32 0.6931472, %v4638_v12 }
 0x553   : > { %v4253_v32 = vsub.f32 %v6902_v16, %v4252_v28 }
 0x554   : > { %v4218_v21 = vmul.f32 %v6884_v59, %v4207_v8  ;;  %v4299_v35 = vsub.f32 %v6911_v22, %v4298_v33  ;;  %v4321_v22 = vmul.f32 %v4508_v9, %v4320_v43  ;;  %v4051_v33 = vsub.f32 0.0, %v6882_v61 }
 0x556   : > { %4220 = vrot.lane.b32.xlu1 %v4218_v21, %s4788_s17  ;;  %v4322_v38 = vsel %vm4019_vm8, %v4321_v22, 0.0 }
 0x56f   : > { %4185 = vadd.xlane.f32.xlu0 %v4184_v60 }
 0x57f   : > { %v6952_v37 = vpop.xlane.xlu1 %4040 }
 0x580   : > { %v4042_v62 = vmul.f32 1.442695, %v6952_v37 }
 0x5a0   : > { %v4129_v23 = vpop.permute.xlu2 %4128 }
 0x5a1   : > { %v4131_v24 = vsel %vm4019_vm8, %v4129_v23, 0.0 }
 0x5a2   : > { %4132 = vadd.xlane.f32.xlu0 %v4131_v24 }
 0x5a8   : > { %v4308_v29 = vpop.permute.xlu2 %4307 }
 0x5a9   : > { %v4310_v42 = vmul.f32 %v4308_v29, %v4299_v35 }
 0x5af   : > { %v4083_v18 = vpop.permute.xlu0 %4082 }
 0x5b0   : > { %v4085_v59 = vsel %vm4019_vm8, %v4083_v18, 0.0 }
 0x5b1   : > { %4086 = vadd.xlane.f32.xlu2 %v4085_v59 }
 0x5b7   : > { %v4262_v36 = vpop.permute.xlu0 %4261 }
 0x5b8   : > { %v4264_v39 = vmul.f32 %v4262_v36, %v4253_v32 }
 0x5ba   : > { %4266 = vrot.lane.b32.xlu1 %v4264_v39, %s4787_s13 }
 0x5c0   : > { %v4175_v44 = vpop.permute.xlu1 %4174 }
 0x5c1   : > { %v4177_v45 = vsel %vm4019_vm8, %v4175_v44, 0.0  ;;  %v4143_v44 = vsub.f32 0.0, %v6878_v48 }
 0x5c2   : > { %4178 = vadd.xlane.f32.xlu2 %v4177_v45  ;;  %4312 = vrot.lane.b32.xlu1 %v4310_v42, %s4789_s19  ;;  %v4097_v42 = vsub.f32 0.0, %v6872_v57 }
 0x5c8   : > { %v4221_v27 = vpop.permute.xlu1 %4220 }
 0x5c9   : > { %v4223_v16 = vsel %vm4019_vm8, %v4221_v27, 0.0  ;;  %v4052_v27 = vmul.f32 %v4051_v33, %v6952_v37 }
 0x5ca   : > { %4224 = vadd.xlane.f32.xlu2 %v4223_v16 }
 0x5d2   : > { %4277 = vadd.xlane.f32.xlu2 %v4276_v47 }
 0x5da   : > { %4323 = vadd.xlane.f32.xlu2 %v4322_v38 }
 0x5e2   : > { %v6970_v1 = vpop.xlane.xlu0 %4185 }
 0x5e3   : > { %v4189_v46 = vsub.f32 0.0, %v6970_v1 }
 0x5ec   : > { %4231 = vadd.xlane.f32.xlu1 %v4230_v51 }
 0x615   : > { %v6974_v19 = vpop.xlane.xlu0 %4132 }
 0x616   : > { %v4134_v2 = vmul.f32 1.442695, %v6974_v19  ;;  %v4144_v22 = vmul.f32 %v4143_v44, %v6974_v19 }
 0x624   : > { %v6968_v56 = vpop.xlane.xlu2 %4086 }
 0x625   : > { %v4088_v30 = vmul.f32 1.442695, %v6968_v56  ;;  %v4098_v47 = vmul.f32 %v4097_v42, %v6968_v56 }
 0x627   : > { %4639 = vpow2.f32 %v4088_v30 }
 0x628   : > { %4641 = vpow2.f32 %v4042_v62 }
 0x629   : > { %4643 = vpow2.f32 %v4134_v2 }
 0x62c   : > { %v4267_v52 = vpop.permute.xlu1 %4266 }
 0x62d   : > { %v4269_v53 = vsel %vm4019_vm8, %v4267_v52, 0.0  ;;  %v4640_v11 = vpop.eup %4639 }
 0x62e   : > { %4270 = vadd.xlane.f32.xlu0 %v4269_v53  ;;  %v4642_v15 = vpop.eup %4641  ;;  %v4095_v4 = vsub.f32 1.0, %v4640_v11 }
 0x62f   : > { %v4644_v41 = vpop.eup %4643  ;;  %v4049_v9 = vsub.f32 1.0, %v4642_v15 }
 0x630   : > { %v4096_v8 = vmul.f32 %v4095_v4, %v4095_v4  ;;  %v4141_v25 = vsub.f32 1.0, %v4644_v41 }
 0x631   : > { %v4050_v60 = vmul.f32 %v4049_v9, %v4049_v9 }
 0x632   : > { %v4142_v31 = vmul.f32 %v4141_v25, %v4141_v25 }
 0x633   : > { %v4330_v24 = vsel %vm4329_vm6, %v4050_v60, %v4096_v8 }
 0x634   : > { %v4313_v54 = vpop.permute.xlu1 %4312  ;;  %v4332_v32 = vsel %vm4331_vm7, %v4330_v24, %v4142_v31 }
 0x635   : > { %v4315_v55 = vsel %vm4019_vm8, %v4313_v54, 0.0  ;;  %v6972_v3 = vpop.xlane.xlu2 %4178 }
 0x636   : > { %4316 = vadd.xlane.f32.xlu0 %v4315_v55  ;;  %v4180_v6 = vmul.f32 1.442695, %v6972_v3  ;;  %v4190_v48 = vmul.f32 %v4189_v46, %v6972_v3 }
 0x638   : > { %4645 = vpow2.f32 %v4180_v6 }
 0x63d   : > { %v6978_v5 = vpop.xlane.xlu2 %4224 }
 0x63e   : > { %v4226_v0 = vmul.f32 1.442695, %v6978_v5  ;;  %v4646_v14 = vpop.eup %4645 }
 0x63f   : > { %v4187_v21 = vsub.f32 1.0, %v4646_v14 }
 0x640   : > { %4647 = vpow2.f32 %v4226_v0 }
 0x641   : > { %v4188_v13 = vmul.f32 %v4187_v21, %v4187_v21 }
 0x643   : > { %v4334_v36 = vsel %vm4333_vm9, %v4332_v32, %v4188_v13 }
 0x645   : > { %v4278_v40 = vpop.xlane.xlu2 %4277 }
 0x646   : > { %v4648_v58 = vpop.eup %4647  ;;  %v4281_v38 = vsub.f32 0.0, %v4278_v40 }
 0x647   : > { %v4233_v7 = vsub.f32 1.0, %v4648_v58 }
 0x649   : > { %v4234_v18 = vmul.f32 %v4233_v7, %v4233_v7 }
 0x64b   : > { %v4335_v29 = vsel %vm4019_vm8, %v4334_v36, %v4234_v18  ;;  %vm4348_vm8 = vcmask 89088  }
 0x64d   : > { %v4324_v61 = vpop.xlane.xlu2 %4323 }
 0x64e   : > { %v4327_v49 = vsub.f32 0.0, %v4324_v61 }
 0x65f   : > { %v4232_v39 = vpop.xlane.xlu1 %4231 }
 0x660   : > { %v4235_v16 = vsub.f32 0.0, %v4232_v39 }
 0x662   : > { %v4236_v50 = vmul.f32 %v4235_v16, %v6978_v5 }
 0x6a1   : > { %v6983_v10 = vpop.xlane.xlu0 %4270 }
 0x6a2   : > { %v4272_v34 = vmul.f32 1.442695, %v6983_v10  ;;  %v4282_v52 = vmul.f32 %v4281_v38, %v6983_v10 }
 0x6a4   : > { %4649 = vpow2.f32 %v4272_v34 }
 0x6a9   : > { %v4317_v17 = vpop.xlane.xlu0 %4316 }
 0x6aa   : > { %v4318_v63 = vmul.f32 1.442695, %v4317_v17  ;;  %v4650_v20 = vpop.eup %4649  ;;  %v4328_v54 = vmul.f32 %v4327_v49, %v4317_v17 }
 0x6ab   : > { %v4279_v23 = vsub.f32 1.0, %v4650_v20 }
 0x6ac   : > { %4651 = vpow2.f32 %v4318_v63 }
 0x6ad   : > { %v4280_v28 = vmul.f32 %v4279_v23, %v4279_v23 }
 0x6af   : > { %v4337_v45 = vsel %vm4336_vm10, %v4335_v29, %v4280_v28 }
 0x6b2   : > { %v4652_v59 = vpop.eup %4651 }
 0x6b3   : > { %v4325_v12 = vsub.f32 1.0, %v4652_v59 }
 0x6b5   : > { %v4326_v35 = vmul.f32 %v4325_v12, %v4325_v12 }
 0x6b7   : > { %v4339_v26 = vsel %vm4338_vm11, %v4337_v45, %v4326_v35 }
 0x6b8   : > { %v4341_v43 = vsel %vm4340_vm12, %v4339_v26, 0.0 }
 0x6b9   : > { %v4343_v57 = vsel %vm4342_vm13, %v4341_v43, %v4052_v27 }
 0x6ba   : > { %v4345_v37 = vsel %vm4344_vm14, %v4343_v57, %v4098_v47 }
 0x6bb   : > { %v4347_v51 = vsel %vm4346_vm15, %v4345_v37, %v4144_v22 }
 0x6bc   : > { %v4349_v53 = vsel %vm4348_vm8, %v4347_v51, %v4190_v48 }
 0x6bd   : > { %v4351_v55 = vsel %vm4350_vm0, %v4349_v53, %v4236_v50 }
 0x6be   : > { %v4353_v56 = vsel %vm4352_vm1, %v4351_v55, %v4282_v52 }
 0x6bf   : > { %v4355_v1 = vsel %vm4354_vm2, %v4353_v56, %v4328_v54 }
 0x6c0   : > { %v4357_v3 = vsel %vm4356_vm3, %v4355_v1, 0.0 }
 0x6c1   : > { %4359 = vst.msk [vmem:[%s334_s11] sm:$0xff] %vm4358_vm4, %v4357_v3 }
 0x6c2 PF: > { %s21_s26 = sadd.s32 1, %s4768_s26   ;;  %s7033_s21 = smov %s4752_s22 }
 0x6c3   : > { %p18_p2 = scmp.ge.s32.totalorder %s21_s26, 4   ;;  %s7034_s22 = smov %s4756_s23 }
 0x6c4   : > { %s7035_s23 = smov %s4909_s12  ;;  %s7036_s24 = smov %s4764_s25 }
 0x6c5   : > { %s7037_s25 = smov %s7039_s15  ;;  %20 = sbr.rel (!%p18_p2) target bundleno = 7 (0x7), region = 107 }
 0x6ca   :  { %4393 = vsyncpa [#allocation4], 1 }
 0x6cb   :  { %4395 = vsyncpa [#allocation4 + $0x1], 1 }
 0x6cc   :  { %4396 = vsyncpa [#allocation6], 1 }

</bundles_post_ra>
